<compile_context>
chip_gen: v6e
topology: v6e:2x2x1
jax: 0.10.0
libtpu: 0.0.40
codegen_flags: <defaults>
</compile_context>

<pallas_src>
import math

import jax
import jax.numpy as jnp
from jax.experimental import pallas as pl
from jax.experimental.pallas import tpu as pltpu

# ----------------------------- config ---------------------------------------
B = 2                      # image batch
IMG = 16                   # image height/width
C_IN = 3                   # image channels (NCHW)
PATCH = 8                  # ViT patch size
N_PATCH = (IMG // PATCH) ** 2      # 4 patches per image
S_IMG = N_PATCH + 1                # +CLS = 5 image tokens
D = 128                    # hidden width (lane-aligned)
NH = 4                     # attention heads
DH = D // NH               # head dim
MLP = 256                  # FFN width
V_LAYERS = 2               # visual encoder depth
T_LAYERS = 2               # text encoder depth
VOCAB = 64                 # toy vocab
L_TXT = 8                  # text sequence length
N_ITM = 2                  # itm head classes
BT = 2 * B                 # captions + foils batched together
CPP = C_IN * PATCH * PATCH # 192 raw patch features
KPAD = 256                 # lane-padded patch feature dim
LANE = 128                 # lane-dense output width
EPS_VIS = 1e-6
EPS_TXT = 1e-12
NEG_INF = -1e9

# ----------------------------- in-kernel helpers -----------------------------

def _layernorm(x, g, b, eps):
    x = x.astype(jnp.float32)
    mu = jnp.mean(x, axis=-1, keepdims=True)
    var = jnp.mean(jnp.square(x - mu), axis=-1, keepdims=True)
    return (x - mu) * jax.lax.rsqrt(var + eps) * g + b


def _mha(q, k, v, mask_add, wo, bo):
    """Multi-head attention.

    q: [Mq, D] bf16; k, v: [Mk, D] bf16; mask_add: [Mq, Mk] f32 additive;
    wo: [D, D] bf16; bo: [1, D] f32.
    Per-head scores/softmax/context, then the head contexts are lane-concatenated
    and pushed through ONE full-K [Mq,D]x[D,D] output-projection matmul.
    """
    scale = 1.0 / math.sqrt(DH)
    ctxs = []
    for h in range(NH):
        c0 = h * DH
        qh = q[:, c0:c0 + DH]
        kh = k[:, c0:c0 + DH]
        vh = v[:, c0:c0 + DH]
        s = jax.lax.dot_general(qh, kh, (((1,), (1,)), ((), ())),
                                preferred_element_type=jnp.float32) * scale
        s = s + mask_add
        s = s - jnp.max(s, axis=-1, keepdims=True)
        e = jnp.exp(s)
        p = e * pl.reciprocal(jnp.sum(e, axis=-1, keepdims=True), approx=True)
        ctxs.append(jax.lax.dot_general(p.astype(jnp.bfloat16), vh,
                                        (((1,), (0,)), ((), ())),
                                        preferred_element_type=jnp.float32))
    ctx = jnp.concatenate(ctxs, axis=-1)                      # [Mq, D] f32
    return jnp.dot(ctx.astype(jnp.bfloat16), wo,
                   preferred_element_type=jnp.float32) + bo


# ----------------------------- fused kernel ----------------------------------

def _blip_itm_kernel(
        # --- visual encoder inputs ---
        patches_ref, v_patch_w_ref, v_add_ref, vis_mask_ref,
        v_ln1_g_ref, v_ln1_b_ref, v_wqkv_ref, v_bqkv_ref, v_wo_ref, v_bo_ref,
        v_ln2_g_ref, v_ln2_b_ref, v_fc1_w_ref, v_fc1_b_ref, v_fc2_w_ref, v_fc2_b_ref,
        v_lnpost_g_ref, v_lnpost_b_ref,
        # --- text encoder inputs ---
        ids_ref, tok_emb_ref, pos_ref, emb_ln_g_ref, emb_ln_b_ref,
        self_mask_ref, cross_mask_ref,
        swqkv_ref, sbqkv_ref, swo_ref, sbo_ref, lns_g_ref, lns_b_ref,
        cwq_ref, cbq_ref, cwkv_ref, cbkv_ref, cwo_ref, cbo_ref, lnc_g_ref, lnc_b_ref,
        fc1_w_ref, fc1_b_ref, fc2_w_ref, fc2_b_ref, lnf_g_ref, lnf_b_ref,
        cls_sel_ref, itm_w_ref, itm_b_ref,
        # --- output ---
        out_ref):
    bf = jnp.bfloat16

    # ---------------- visual encoder (pre-LN ViT), CLS-first layout ----------------
    # patch conv (stride=PATCH) as one matmul; CLS/pos/conv-bias folded into v_add.
    x = jnp.dot(patches_ref[...].astype(bf), v_patch_w_ref[...],
                preferred_element_type=jnp.float32) + v_add_ref[...]     # [B*S_IMG, D]
    vm = vis_mask_ref[...]                                               # [B*S, B*S]
    for l in range(V_LAYERS):
        h = _layernorm(x, v_ln1_g_ref[l], v_ln1_b_ref[l], EPS_VIS)
        qkv = jnp.dot(h.astype(bf), v_wqkv_ref[l],
                      preferred_element_type=jnp.float32) + v_bqkv_ref[l]
        qkv_b = qkv.astype(bf)
        x = x + _mha(qkv_b[:, 0:D], qkv_b[:, D:2 * D], qkv_b[:, 2 * D:3 * D],
                     vm, v_wo_ref[l], v_bo_ref[l])
        h = _layernorm(x, v_ln2_g_ref[l], v_ln2_b_ref[l], EPS_VIS)
        m = jnp.dot(h.astype(bf), v_fc1_w_ref[l],
                    preferred_element_type=jnp.float32) + v_fc1_b_ref[l]
        # TODO(synk): PyTorch nn.GELU defaults to exact erf; tanh approximation used here.
        m = jax.nn.gelu(m, approximate=True)
        m = jnp.dot(m.astype(bf), v_fc2_w_ref[l],
                    preferred_element_type=jnp.float32) + v_fc2_b_ref[l]
        x = x + m
    img = _layernorm(x, v_lnpost_g_ref[...], v_lnpost_b_ref[...], EPS_VIS)
    img_b = img.astype(bf)                                               # [B*S_IMG, D]

    # ---------------- text encoder (post-LN BERT w/ cross-attn), captions+foils ----
    # token embedding gather as a one-hot matmul (no host-side take)
    ids = ids_ref[...]                                                   # [BT*L, 1] int32
    onehot = jnp.where(
        ids == jax.lax.broadcasted_iota(jnp.int32, (BT * L_TXT, VOCAB), 1),
        1.0, 0.0).astype(bf)
    x = jnp.dot(onehot, tok_emb_ref[...],
                preferred_element_type=jnp.float32) + pos_ref[...]       # [BT*L, D]
    x = _layernorm(x, emb_ln_g_ref[...], emb_ln_b_ref[...], EPS_TXT)
    sm = self_mask_ref[...]                                              # [BT*L, BT*L]
    cm = cross_mask_ref[...]                                             # [BT*L, B*S_IMG]

    for l in range(T_LAYERS):
        # --- self attention ---
        qkv = jnp.dot(x.astype(bf), swqkv_ref[l],
                      preferred_element_type=jnp.float32) + sbqkv_ref[l]
        qkv_b = qkv.astype(bf)
        a = _mha(qkv_b[:, 0:D], qkv_b[:, D:2 * D], qkv_b[:, 2 * D:3 * D],
                 sm, swo_ref[l], sbo_ref[l])
        x = _layernorm(x + a, lns_g_ref[l], lns_b_ref[l], EPS_TXT)
        # --- cross attention over the (non-duplicated) image tokens ---
        q = jnp.dot(x.astype(bf), cwq_ref[l],
                    preferred_element_type=jnp.float32) + cbq_ref[l]
        kv = jnp.dot(img_b, cwkv_ref[l],
                     preferred_element_type=jnp.float32) + cbkv_ref[l]
        q_b = q.astype(bf)
        kv_b = kv.astype(bf)
        c = _mha(q_b, kv_b[:, 0:D], kv_b[:, D:2 * D], cm, cwo_ref[l], cbo_ref[l])
        x = _layernorm(x + c, lnc_g_ref[l], lnc_b_ref[l], EPS_TXT)
        # --- FFN ---
        m = jnp.dot(x.astype(bf), fc1_w_ref[l],
                    preferred_element_type=jnp.float32) + fc1_b_ref[l]
        m = jax.nn.gelu(m, approximate=True)
        m = jnp.dot(m.astype(bf), fc2_w_ref[l],
                    preferred_element_type=jnp.float32) + fc2_b_ref[l]
        x = _layernorm(x + m, lnf_g_ref[l], lnf_b_ref[l], EPS_TXT)

    # ---------------- ITM head + softmax (CLS rows selected via one matmul) --------
    cls = jnp.dot(cls_sel_ref[...], x.astype(bf),
                  preferred_element_type=jnp.float32)                    # [BT, D]
    logits = jnp.dot(cls.astype(bf), itm_w_ref[...],
                     preferred_element_type=jnp.float32) + itm_b_ref[...]  # [BT, 128]
    logits = logits - jnp.max(logits, axis=-1, keepdims=True)
    e = jnp.exp(logits)                                                  # padded lanes -> 0
    out_ref[...] = (e / jnp.sum(e, axis=-1, keepdims=True)).astype(out_ref.dtype)


# ----------------------------- host-side glue --------------------------------

def _full_specs(args):
    """Full-array (single block, grid=(1,)) BlockSpecs for every argument."""
    specs = []
    for a in args:
        nd = a.ndim
        specs.append(pl.BlockSpec(a.shape, lambda i, _nd=nd: (0,) * _nd))
    return specs


def _extract_patches(images):
    """NCHW -> [B*NP, KPAD] patch vectors, zero-padded from CPP to a lane-friendly 256."""
    Bi, Ci, Hi, Wi = images.shape
    nh, nw = Hi // PATCH, Wi // PATCH
    pt = images.reshape(Bi, Ci, nh, PATCH, nw, PATCH)
    pt = pt.transpose(0, 2, 4, 1, 3, 5).reshape(Bi * nh * nw, Ci * PATCH * PATCH)
    return jnp.pad(pt, ((0, 0), (0, KPAD - Ci * PATCH * PATCH)))


def blip_for_itm_forward(params, images, captions, foils):
    """Mirrors BLIPForITM.forward (captions & foils share the image embeds)."""
    p = params
    # visual: CLS-first token layout -> zero rows for the B CLS slots, patches below
    patches = _extract_patches(images)                                  # [B*NP, KPAD]
    patches_full = jnp.pad(patches, ((B, 0), (0, 0)))                   # [B*S_IMG, KPAD]

    # text: batch captions + foils into one pass
    c_ids = jnp.squeeze(captions["input_ids"], axis=0)                  # squeeze(dim=0)
    f_ids = jnp.squeeze(foils["input_ids"], axis=0)
    ids_all = jnp.concatenate([c_ids, f_ids], axis=0).reshape(BT * L_TXT, 1).astype(jnp.int32)
    mask_all = jnp.concatenate([captions["attention_mask"],
                                foils["attention_mask"]], axis=0)       # [BT, L]
    key_pad = (1.0 - mask_all.astype(jnp.float32)).reshape(1, BT * L_TXT) * NEG_INF
    self_mask = p["t_block_mask"] + key_pad                             # [BT*L, BT*L]

    args = (
        # vision
        patches_full, p["v_patch_w"], p["v_add"], p["vis_mask"],
        p["v_ln1_g"], p["v_ln1_b"], p["v_wqkv"], p["v_bqkv"], p["v_wo"], p["v_bo"],
        p["v_ln2_g"], p["v_ln2_b"], p["v_fc1_w"], p["v_fc1_b"], p["v_fc2_w"], p["v_fc2_b"],
        p["v_lnpost_g"], p["v_lnpost_b"],
        # text
        ids_all, p["t_tok_emb"], p["t_pos_tiled"], p["t_emb_ln_g"], p["t_emb_ln_b"],
        self_mask, p["cross_mask"],
        p["t_self_wqkv"], p["t_self_bqkv"], p["t_self_wo"], p["t_self_bo"],
        p["t_ln_self_g"], p["t_ln_self_b"],
        p["t_cross_wq"], p["t_cross_bq"], p["t_cross_wkv"], p["t_cross_bkv"],
        p["t_cross_wo"], p["t_cross_bo"], p["t_ln_cross_g"], p["t_ln_cross_b"],
        p["t_fc1_w"], p["t_fc1_b"], p["t_fc2_w"], p["t_fc2_b"],
        p["t_ln_ffn_g"], p["t_ln_ffn_b"],
        p["cls_sel"], p["itm_w"], p["itm_b"],
    )

    probs_pad = pl.pallas_call(
        _blip_itm_kernel,
        out_shape=jax.ShapeDtypeStruct((BT, LANE), jnp.float32),
        grid=(1,),
        in_specs=_full_specs(args),
        out_specs=pl.BlockSpec((BT, LANE), lambda i: (0, 0)),
        compiler_params=pltpu.CompilerParams(dimension_semantics=("arbitrary",)),
    )(*args)

    probs = probs_pad[:, :N_ITM]                                        # lane-dense slab -> [BT, 2]
    # F.softmax without dim -> dim=1 on 2-D tensors (already applied inside the kernel)
    return [probs[:B], probs[B:]]


# ----------------------------- deterministic init ----------------------------

class _Init:
    def __init__(self, seed):
        self.key = jax.random.PRNGKey(seed)

    def n(self, shape, scale=0.02):
        self.key, k = jax.random.split(self.key)
        return scale * jax.random.normal(k, shape, jnp.float32)

    def ones(self, shape):
        return jnp.ones(shape, jnp.float32)

    def zeros(self, shape):
        return jnp.zeros(shape, jnp.float32)


def make_params(seed=0):
    it = _Init(seed)
    bf = jnp.bfloat16
    p = {}

    # ---- visual encoder (pre-LN ViT), weight matrices in bf16, layer-stacked ----
    w_patch = it.n((CPP, D))
    p["v_patch_w"] = jnp.pad(w_patch, ((0, KPAD - CPP), (0, 0))).astype(bf)   # lane-padded K
    patch_b = it.zeros((1, D))
    cls = it.n((1, D))
    pos = it.n((S_IMG, D))
    # CLS-first additive term: rows [0,B) = cls + pos[0]; patch rows = pos[1+p] + conv bias
    cls_rows = jnp.tile(cls + pos[0:1, :], (B, 1))                            # [B, D]
    patch_rows = jnp.tile(pos[1:, :] + patch_b, (B, 1))                       # [B*NP, D]
    p["v_add"] = jnp.concatenate([cls_rows, patch_rows], axis=0)              # [B*S_IMG, D]

    p["v_ln1_g"] = it.ones((V_LAYERS, 1, D)); p["v_ln1_b"] = it.zeros((V_LAYERS, 1, D))
    p["v_wqkv"] = it.n((V_LAYERS, D, 3 * D)).astype(bf)
    p["v_bqkv"] = it.zeros((V_LAYERS, 1, 3 * D))
    p["v_wo"] = it.n((V_LAYERS, D, D)).astype(bf)
    p["v_bo"] = it.zeros((V_LAYERS, 1, D))
    p["v_ln2_g"] = it.ones((V_LAYERS, 1, D)); p["v_ln2_b"] = it.zeros((V_LAYERS, 1, D))
    p["v_fc1_w"] = it.n((V_LAYERS, D, MLP)).astype(bf)
    p["v_fc1_b"] = it.zeros((V_LAYERS, 1, MLP))
    p["v_fc2_w"] = it.n((V_LAYERS, MLP, D)).astype(bf)
    p["v_fc2_b"] = it.zeros((V_LAYERS, 1, D))
    p["v_lnpost_g"] = it.ones((1, D)); p["v_lnpost_b"] = it.zeros((1, D))

    # ---- text encoder (post-LN BERT-style with cross attention) ----
    p["t_tok_emb"] = it.n((VOCAB, D)).astype(bf)
    p["t_pos_tiled"] = jnp.tile(it.n((L_TXT, D)), (BT, 1))                    # [BT*L, D]
    p["t_emb_ln_g"] = it.ones((1, D)); p["t_emb_ln_b"] = it.zeros((1, D))
    p["t_self_wqkv"] = it.n((T_LAYERS, D, 3 * D)).astype(bf)
    p["t_self_bqkv"] = it.zeros((T_LAYERS, 1, 3 * D))
    p["t_self_wo"] = it.n((T_LAYERS, D, D)).astype(bf)
    p["t_self_bo"] = it.zeros((T_LAYERS, 1, D))
    p["t_ln_self_g"] = it.ones((T_LAYERS, 1, D)); p["t_ln_self_b"] = it.zeros((T_LAYERS, 1, D))
    p["t_cross_wq"] = it.n((T_LAYERS, D, D)).astype(bf)
    p["t_cross_bq"] = it.zeros((T_LAYERS, 1, D))
    p["t_cross_wkv"] = it.n((T_LAYERS, D, 2 * D)).astype(bf)
    p["t_cross_bkv"] = it.zeros((T_LAYERS, 1, 2 * D))
    p["t_cross_wo"] = it.n((T_LAYERS, D, D)).astype(bf)
    p["t_cross_bo"] = it.zeros((T_LAYERS, 1, D))
    p["t_ln_cross_g"] = it.ones((T_LAYERS, 1, D)); p["t_ln_cross_b"] = it.zeros((T_LAYERS, 1, D))
    p["t_fc1_w"] = it.n((T_LAYERS, D, MLP)).astype(bf)
    p["t_fc1_b"] = it.zeros((T_LAYERS, 1, MLP))
    p["t_fc2_w"] = it.n((T_LAYERS, MLP, D)).astype(bf)
    p["t_fc2_b"] = it.zeros((T_LAYERS, 1, D))
    p["t_ln_ffn_g"] = it.ones((T_LAYERS, 1, D)); p["t_ln_ffn_b"] = it.zeros((T_LAYERS, 1, D))

    # ---- ITM head (lane-padded to 128 for a lane-dense output) ----
    itm_w = it.n((D, N_ITM))
    itm_b = it.zeros((1, N_ITM))
    p["itm_w"] = jnp.pad(itm_w, ((0, 0), (0, LANE - N_ITM))).astype(bf)
    p["itm_b"] = jnp.concatenate(
        [itm_b, jnp.full((1, LANE - N_ITM), NEG_INF, jnp.float32)], axis=1)

    # ---- static structural masks / selection matrices (config-only, built once) ----
    tok = jnp.arange(B * S_IMG)
    img_id = jnp.where(tok < B, tok, (tok - B) // N_PATCH)                    # CLS-first layout
    p["vis_mask"] = jnp.where(img_id[:, None] == img_id[None, :],
                              0.0, NEG_INF).astype(jnp.float32)               # [B*S, B*S]
    seq = jnp.arange(BT * L_TXT) // L_TXT
    p["t_block_mask"] = jnp.where(seq[:, None] == seq[None, :],
                                  0.0, NEG_INF).astype(jnp.float32)           # [BT*L, BT*L]
    q_img = seq % B                                                           # caption/foil -> its image
    p["cross_mask"] = jnp.where(q_img[:, None] == img_id[None, :],
                                0.0, NEG_INF).astype(jnp.float32)             # [BT*L, B*S]
    rows = jnp.arange(BT)
    cols = jnp.arange(BT * L_TXT)
    p["cls_sel"] = (cols[None, :] == (rows * L_TXT)[:, None]).astype(bf)      # [BT, BT*L]
    return p


# ----------------------------- main ------------------------------------------

if __name__ == "__main__":
    params = make_params(0)

    key = jax.random.PRNGKey(0)
    k_img, k_cap, k_foil = jax.random.split(key, 3)
    images = jax.random.normal(k_img, (B, C_IN, IMG, IMG), jnp.float32)   # NCHW

    # tokenizer-style inputs: input_ids carry a leading dim of 1 (squeezed in forward)
    captions = {
        "input_ids": jax.random.randint(k_cap, (1, B, L_TXT), 0, VOCAB, jnp.int32),
        "attention_mask": jnp.concatenate(
            [jnp.ones((B, L_TXT - 2), jnp.int32), jnp.zeros((B, 2), jnp.int32)], axis=1),
    }
    foils = {
        "input_ids": jax.random.randint(k_foil, (1, B, L_TXT), 0, VOCAB, jnp.int32),
        "attention_mask": jnp.ones((B, L_TXT), jnp.int32),
    }

    forward = jax.jit(blip_for_itm_forward)
    prob_scores = forward(params, images, captions, foils)
    prob_scores = jax.block_until_ready(prob_scores)

    cap_probs, foil_probs = prob_scores
    assert cap_probs.shape == (B, N_ITM) and foil_probs.shape == (B, N_ITM)
    assert bool(jnp.all(jnp.isfinite(cap_probs))) and bool(jnp.all(jnp.isfinite(foil_probs)))
    assert bool(jnp.allclose(jnp.sum(cap_probs, axis=-1), 1.0, atol=1e-5))
    assert bool(jnp.allclose(jnp.sum(foil_probs, axis=-1), 1.0, atol=1e-5))
    print("KERNEL_OK")
</pallas_src>

<mosaic_0001>
module attributes {stable_mosaic.version = 11 : i64} {
  func.func @_blip_itm_kernel(%arg0: i32, %arg1: memref<10x256xf32, #tpu.memory_space<vmem>>, %arg2: memref<256x128xbf16, #tpu.memory_space<vmem>>, %arg3: memref<10x128xf32, #tpu.memory_space<vmem>>, %arg4: memref<10x10xf32, #tpu.memory_space<vmem>>, %arg5: memref<2x1x128xf32, #tpu.memory_space<vmem>>, %arg6: memref<2x1x128xf32, #tpu.memory_space<vmem>>, %arg7: memref<2x128x384xbf16, #tpu.memory_space<vmem>>, %arg8: memref<2x1x384xf32, #tpu.memory_space<vmem>>, %arg9: memref<2x128x128xbf16, #tpu.memory_space<vmem>>, %arg10: memref<2x1x128xf32, #tpu.memory_space<vmem>>, %arg11: memref<2x1x128xf32, #tpu.memory_space<vmem>>, %arg12: memref<2x1x128xf32, #tpu.memory_space<vmem>>, %arg13: memref<2x128x256xbf16, #tpu.memory_space<vmem>>, %arg14: memref<2x1x256xf32, #tpu.memory_space<vmem>>, %arg15: memref<2x256x128xbf16, #tpu.memory_space<vmem>>, %arg16: memref<2x1x128xf32, #tpu.memory_space<vmem>>, %arg17: memref<1x128xf32, #tpu.memory_space<vmem>>, %arg18: memref<1x128xf32, #tpu.memory_space<vmem>>, %arg19: memref<32x1xi32, #tpu.memory_space<vmem>>, %arg20: memref<64x128xbf16, #tpu.memory_space<vmem>>, %arg21: memref<32x128xf32, #tpu.memory_space<vmem>>, %arg22: memref<1x128xf32, #tpu.memory_space<vmem>>, %arg23: memref<1x128xf32, #tpu.memory_space<vmem>>, %arg24: memref<32x32xf32, #tpu.memory_space<vmem>>, %arg25: memref<32x10xf32, #tpu.memory_space<vmem>>, %arg26: memref<2x128x384xbf16, #tpu.memory_space<vmem>>, %arg27: memref<2x1x384xf32, #tpu.memory_space<vmem>>, %arg28: memref<2x128x128xbf16, #tpu.memory_space<vmem>>, %arg29: memref<2x1x128xf32, #tpu.memory_space<vmem>>, %arg30: memref<2x1x128xf32, #tpu.memory_space<vmem>>, %arg31: memref<2x1x128xf32, #tpu.memory_space<vmem>>, %arg32: memref<2x128x128xbf16, #tpu.memory_space<vmem>>, %arg33: memref<2x1x128xf32, #tpu.memory_space<vmem>>, %arg34: memref<2x128x256xbf16, #tpu.memory_space<vmem>>, %arg35: memref<2x1x256xf32, #tpu.memory_space<vmem>>, %arg36: memref<2x128x128xbf16, #tpu.memory_space<vmem>>, %arg37: memref<2x1x128xf32, #tpu.memory_space<vmem>>, %arg38: memref<2x1x128xf32, #tpu.memory_space<vmem>>, %arg39: memref<2x1x128xf32, #tpu.memory_space<vmem>>, %arg40: memref<2x128x256xbf16, #tpu.memory_space<vmem>>, %arg41: memref<2x1x256xf32, #tpu.memory_space<vmem>>, %arg42: memref<2x256x128xbf16, #tpu.memory_space<vmem>>, %arg43: memref<2x1x128xf32, #tpu.memory_space<vmem>>, %arg44: memref<2x1x128xf32, #tpu.memory_space<vmem>>, %arg45: memref<2x1x128xf32, #tpu.memory_space<vmem>>, %arg46: memref<4x32xbf16, #tpu.memory_space<vmem>>, %arg47: memref<128x128xbf16, #tpu.memory_space<vmem>>, %arg48: memref<1x128xf32, #tpu.memory_space<vmem>>, %arg49: memref<4x128xf32, #tpu.memory_space<vmem>>) attributes {dimension_semantics = [#tpu.dimension_semantics<arbitrary>], iteration_bounds = array<i64: 1>, scalar_prefetch = 0 : i64, scratch_operands = 0 : i64, tpu.core_type = #tpu.core_type<tc>, window_params = [{pipeline_mode = #tpu.pipeline_mode<synchronous>, transform_indices = @transform_0, window_bounds = array<i64: 10, 256>}, {pipeline_mode = #tpu.pipeline_mode<synchronous>, transform_indices = @transform_1, window_bounds = array<i64: 256, 128>}, {pipeline_mode = #tpu.pipeline_mode<synchronous>, transform_indices = @transform_2, window_bounds = array<i64: 10, 128>}, {pipeline_mode = #tpu.pipeline_mode<synchronous>, transform_indices = @transform_3, window_bounds = array<i64: 10, 10>}, {pipeline_mode = #tpu.pipeline_mode<synchronous>, transform_indices = @transform_4, window_bounds = array<i64: 2, 1, 128>}, {pipeline_mode = #tpu.pipeline_mode<synchronous>, transform_indices = @transform_5, window_bounds = array<i64: 2, 1, 128>}, {pipeline_mode = #tpu.pipeline_mode<synchronous>, transform_indices = @transform_6, window_bounds = array<i64: 2, 128, 384>}, {pipeline_mode = #tpu.pipeline_mode<synchronous>, transform_indices = @transform_7, window_bounds = array<i64: 2, 1, 384>}, {pipeline_mode = #tpu.pipeline_mode<synchronous>, transform_indices = @transform_8, window_bounds = array<i64: 2, 128, 128>}, {pipeline_mode = #tpu.pipeline_mode<synchronous>, transform_indices = @transform_9, window_bounds = array<i64: 2, 1, 128>}, {pipeline_mode = #tpu.pipeline_mode<synchronous>, transform_indices = @transform_10, window_bounds = array<i64: 2, 1, 128>}, {pipeline_mode = #tpu.pipeline_mode<synchronous>, transform_indices = @transform_11, window_bounds = array<i64: 2, 1, 128>}, {pipeline_mode = #tpu.pipeline_mode<synchronous>, transform_indices = @transform_12, window_bounds = array<i64: 2, 128, 256>}, {pipeline_mode = #tpu.pipeline_mode<synchronous>, transform_indices = @transform_13, window_bounds = array<i64: 2, 1, 256>}, {pipeline_mode = #tpu.pipeline_mode<synchronous>, transform_indices = @transform_14, window_bounds = array<i64: 2, 256, 128>}, {pipeline_mode = #tpu.pipeline_mode<synchronous>, transform_indices = @transform_15, window_bounds = array<i64: 2, 1, 128>}, {pipeline_mode = #tpu.pipeline_mode<synchronous>, transform_indices = @transform_16, window_bounds = array<i64: 1, 128>}, {pipeline_mode = #tpu.pipeline_mode<synchronous>, transform_indices = @transform_17, window_bounds = array<i64: 1, 128>}, {pipeline_mode = #tpu.pipeline_mode<synchronous>, transform_indices = @transform_18, window_bounds = array<i64: 32, 1>}, {pipeline_mode = #tpu.pipeline_mode<synchronous>, transform_indices = @transform_19, window_bounds = array<i64: 64, 128>}, {pipeline_mode = #tpu.pipeline_mode<synchronous>, transform_indices = @transform_20, window_bounds = array<i64: 32, 128>}, {pipeline_mode = #tpu.pipeline_mode<synchronous>, transform_indices = @transform_21, window_bounds = array<i64: 1, 128>}, {pipeline_mode = #tpu.pipeline_mode<synchronous>, transform_indices = @transform_22, window_bounds = array<i64: 1, 128>}, {pipeline_mode = #tpu.pipeline_mode<synchronous>, transform_indices = @transform_23, window_bounds = array<i64: 32, 32>}, {pipeline_mode = #tpu.pipeline_mode<synchronous>, transform_indices = @transform_24, window_bounds = array<i64: 32, 10>}, {pipeline_mode = #tpu.pipeline_mode<synchronous>, transform_indices = @transform_25, window_bounds = array<i64: 2, 128, 384>}, {pipeline_mode = #tpu.pipeline_mode<synchronous>, transform_indices = @transform_26, window_bounds = array<i64: 2, 1, 384>}, {pipeline_mode = #tpu.pipeline_mode<synchronous>, transform_indices = @transform_27, window_bounds = array<i64: 2, 128, 128>}, {pipeline_mode = #tpu.pipeline_mode<synchronous>, transform_indices = @transform_28, window_bounds = array<i64: 2, 1, 128>}, {pipeline_mode = #tpu.pipeline_mode<synchronous>, transform_indices = @transform_29, window_bounds = array<i64: 2, 1, 128>}, {pipeline_mode = #tpu.pipeline_mode<synchronous>, transform_indices = @transform_30, window_bounds = array<i64: 2, 1, 128>}, {pipeline_mode = #tpu.pipeline_mode<synchronous>, transform_indices = @transform_31, window_bounds = array<i64: 2, 128, 128>}, {pipeline_mode = #tpu.pipeline_mode<synchronous>, transform_indices = @transform_32, window_bounds = array<i64: 2, 1, 128>}, {pipeline_mode = #tpu.pipeline_mode<synchronous>, transform_indices = @transform_33, window_bounds = array<i64: 2, 128, 256>}, {pipeline_mode = #tpu.pipeline_mode<synchronous>, transform_indices = @transform_34, window_bounds = array<i64: 2, 1, 256>}, {pipeline_mode = #tpu.pipeline_mode<synchronous>, transform_indices = @transform_35, window_bounds = array<i64: 2, 128, 128>}, {pipeline_mode = #tpu.pipeline_mode<synchronous>, transform_indices = @transform_36, window_bounds = array<i64: 2, 1, 128>}, {pipeline_mode = #tpu.pipeline_mode<synchronous>, transform_indices = @transform_37, window_bounds = array<i64: 2, 1, 128>}, {pipeline_mode = #tpu.pipeline_mode<synchronous>, transform_indices = @transform_38, window_bounds = array<i64: 2, 1, 128>}, {pipeline_mode = #tpu.pipeline_mode<synchronous>, transform_indices = @transform_39, window_bounds = array<i64: 2, 128, 256>}, {pipeline_mode = #tpu.pipeline_mode<synchronous>, transform_indices = @transform_40, window_bounds = array<i64: 2, 1, 256>}, {pipeline_mode = #tpu.pipeline_mode<synchronous>, transform_indices = @transform_41, window_bounds = array<i64: 2, 256, 128>}, {pipeline_mode = #tpu.pipeline_mode<synchronous>, transform_indices = @transform_42, window_bounds = array<i64: 2, 1, 128>}, {pipeline_mode = #tpu.pipeline_mode<synchronous>, transform_indices = @transform_43, window_bounds = array<i64: 2, 1, 128>}, {pipeline_mode = #tpu.pipeline_mode<synchronous>, transform_indices = @transform_44, window_bounds = array<i64: 2, 1, 128>}, {pipeline_mode = #tpu.pipeline_mode<synchronous>, transform_indices = @transform_45, window_bounds = array<i64: 4, 32>}, {pipeline_mode = #tpu.pipeline_mode<synchronous>, transform_indices = @transform_46, window_bounds = array<i64: 128, 128>}, {pipeline_mode = #tpu.pipeline_mode<synchronous>, transform_indices = @transform_47, window_bounds = array<i64: 1, 128>}, {pipeline_mode = #tpu.pipeline_mode<synchronous>, transform_indices = @transform_48, window_bounds = array<i64: 4, 128>}]} {
    %c0 = arith.constant 0 : index
    %c0_0 = arith.constant 0 : index
    %0 = vector.load %arg1[%c0, %c0_0] : memref<10x256xf32, #tpu.memory_space<vmem>>, vector<10x256xf32>
    %1 = arith.truncf %0 : vector<10x256xf32> to vector<10x256xbf16>
    %c0_1 = arith.constant 0 : index
    %c0_2 = arith.constant 0 : index
    %2 = vector.load %arg2[%c0_1, %c0_2] : memref<256x128xbf16, #tpu.memory_space<vmem>>, vector<256x128xbf16>
    %cst = arith.constant dense<0.000000e+00> : vector<10x128xf32>
    %3 = tpu.matmul %1, %2, %cst {dimension_numbers = #tpu.dot_dimension_numbers<[1], [0], [0], [1], [0, 0, 1, 1], [], []>} : vector<10x256xbf16>, vector<256x128xbf16>, vector<10x128xf32> -> vector<10x128xf32>
    %c0_3 = arith.constant 0 : index
    %c0_4 = arith.constant 0 : index
    %4 = vector.load %arg3[%c0_3, %c0_4] : memref<10x128xf32, #tpu.memory_space<vmem>>, vector<10x128xf32>
    %5 = arith.addf %3, %4 : vector<10x128xf32>
    %c0_5 = arith.constant 0 : index
    %c0_6 = arith.constant 0 : index
    %6 = vector.load %arg4[%c0_5, %c0_6] : memref<10x10xf32, #tpu.memory_space<vmem>>, vector<10x10xf32>
    %c0_7 = arith.constant 0 : index
    %c0_8 = arith.constant 0 : index
    %c0_9 = arith.constant 0 : index
    %7 = vector.load %arg5[%c0_7, %c0_8, %c0_9] : memref<2x1x128xf32, #tpu.memory_space<vmem>>, vector<1x1x128xf32>
    %8 = vector.shape_cast %7 : vector<1x1x128xf32> to vector<1x128xf32>
    %c0_10 = arith.constant 0 : index
    %c0_11 = arith.constant 0 : index
    %c0_12 = arith.constant 0 : index
    %9 = vector.load %arg6[%c0_10, %c0_11, %c0_12] : memref<2x1x128xf32, #tpu.memory_space<vmem>>, vector<1x1x128xf32>
    %10 = vector.shape_cast %9 : vector<1x1x128xf32> to vector<1x128xf32>
    %cst_13 = arith.constant dense<0.000000e+00> : vector<10xf32>
    %11 = vector.multi_reduction <add>, %5, %cst_13 [1] : vector<10x128xf32> to vector<10xf32>
    %12 = vector.shape_cast %11 : vector<10xf32> to vector<10x1xf32>
    %cst_14 = arith.constant 1.280000e+02 : f32
    %13 = vector.broadcast %cst_14 : f32 to vector<10x1xf32>
    %14 = arith.divf %12, %13 : vector<10x1xf32>
    %15 = vector.broadcast %14 : vector<10x1xf32> to vector<10x128xf32>
    %16 = arith.subf %5, %15 : vector<10x128xf32>
    %17 = arith.mulf %16, %16 : vector<10x128xf32>
    %cst_15 = arith.constant dense<0.000000e+00> : vector<10xf32>
    %18 = vector.multi_reduction <add>, %17, %cst_15 [1] : vector<10x128xf32> to vector<10xf32>
    %19 = vector.shape_cast %18 : vector<10xf32> to vector<10x1xf32>
    %cst_16 = arith.constant 1.280000e+02 : f32
    %20 = vector.broadcast %cst_16 : f32 to vector<10x1xf32>
    %21 = arith.divf %19, %20 : vector<10x1xf32>
    %22 = vector.broadcast %14 : vector<10x1xf32> to vector<10x128xf32>
    %23 = arith.subf %5, %22 : vector<10x128xf32>
    %cst_17 = arith.constant 9.99999997E-7 : f32
    %24 = vector.broadcast %cst_17 : f32 to vector<10x1xf32>
    %25 = arith.addf %21, %24 : vector<10x1xf32>
    %26 = math.rsqrt %25 : vector<10x1xf32>
    %27 = vector.broadcast %26 : vector<10x1xf32> to vector<10x128xf32>
    %28 = arith.mulf %23, %27 : vector<10x128xf32>
    %29 = vector.broadcast %8 : vector<1x128xf32> to vector<10x128xf32>
    %30 = arith.mulf %28, %29 : vector<10x128xf32>
    %31 = vector.broadcast %10 : vector<1x128xf32> to vector<10x128xf32>
    %32 = arith.addf %30, %31 : vector<10x128xf32>
    %33 = arith.truncf %32 : vector<10x128xf32> to vector<10x128xbf16>
    %c0_18 = arith.constant 0 : index
    %c0_19 = arith.constant 0 : index
    %c0_20 = arith.constant 0 : index
    %34 = vector.load %arg7[%c0_18, %c0_19, %c0_20] : memref<2x128x384xbf16, #tpu.memory_space<vmem>>, vector<1x128x384xbf16>
    %35 = vector.shape_cast %34 : vector<1x128x384xbf16> to vector<128x384xbf16>
    %cst_21 = arith.constant dense<0.000000e+00> : vector<10x384xf32>
    %36 = tpu.matmul %33, %35, %cst_21 {dimension_numbers = #tpu.dot_dimension_numbers<[1], [0], [0], [1], [0, 0, 1, 1], [], []>} : vector<10x128xbf16>, vector<128x384xbf16>, vector<10x384xf32> -> vector<10x384xf32>
    %c0_22 = arith.constant 0 : index
    %c0_23 = arith.constant 0 : index
    %c0_24 = arith.constant 0 : index
    %37 = vector.load %arg8[%c0_22, %c0_23, %c0_24] : memref<2x1x384xf32, #tpu.memory_space<vmem>>, vector<1x1x384xf32>
    %38 = vector.shape_cast %37 : vector<1x1x384xf32> to vector<1x384xf32>
    %39 = vector.broadcast %38 : vector<1x384xf32> to vector<10x384xf32>
    %40 = arith.addf %36, %39 : vector<10x384xf32>
    %41 = arith.truncf %40 : vector<10x384xf32> to vector<10x384xbf16>
    %42 = vector.extract_strided_slice %41 {offsets = [0, 0], sizes = [10, 128], strides = [1, 1]} : vector<10x384xbf16> to vector<10x128xbf16>
    %43 = vector.extract_strided_slice %41 {offsets = [0, 128], sizes = [10, 128], strides = [1, 1]} : vector<10x384xbf16> to vector<10x128xbf16>
    %44 = vector.extract_strided_slice %41 {offsets = [0, 256], sizes = [10, 128], strides = [1, 1]} : vector<10x384xbf16> to vector<10x128xbf16>
    %c0_25 = arith.constant 0 : index
    %c0_26 = arith.constant 0 : index
    %c0_27 = arith.constant 0 : index
    %45 = vector.load %arg9[%c0_25, %c0_26, %c0_27] : memref<2x128x128xbf16, #tpu.memory_space<vmem>>, vector<1x128x128xbf16>
    %46 = vector.shape_cast %45 : vector<1x128x128xbf16> to vector<128x128xbf16>
    %c0_28 = arith.constant 0 : index
    %c0_29 = arith.constant 0 : index
    %c0_30 = arith.constant 0 : index
    %47 = vector.load %arg10[%c0_28, %c0_29, %c0_30] : memref<2x1x128xf32, #tpu.memory_space<vmem>>, vector<1x1x128xf32>
    %48 = vector.shape_cast %47 : vector<1x1x128xf32> to vector<1x128xf32>
    %49 = vector.extract_strided_slice %42 {offsets = [0, 0], sizes = [10, 32], strides = [1, 1]} : vector<10x128xbf16> to vector<10x32xbf16>
    %50 = vector.extract_strided_slice %43 {offsets = [0, 0], sizes = [10, 32], strides = [1, 1]} : vector<10x128xbf16> to vector<10x32xbf16>
    %51 = vector.extract_strided_slice %44 {offsets = [0, 0], sizes = [10, 32], strides = [1, 1]} : vector<10x128xbf16> to vector<10x32xbf16>
    %cst_31 = arith.constant dense<0.000000e+00> : vector<10x10xf32>
    %52 = tpu.matmul %49, %50, %cst_31 {dimension_numbers = #tpu.dot_dimension_numbers<[1], [1], [0], [0], [0, 0, 1, 0], [], []>} : vector<10x32xbf16>, vector<10x32xbf16>, vector<10x10xf32> -> vector<10x10xf32>
    %cst_32 = arith.constant 0.176776692 : f32
    %53 = vector.broadcast %cst_32 : f32 to vector<10x10xf32>
    %54 = arith.mulf %52, %53 : vector<10x10xf32>
    %55 = arith.addf %54, %6 : vector<10x10xf32>
    %cst_33 = arith.constant dense<0xFF800000> : vector<10xf32>
    %56 = vector.multi_reduction <maximumf>, %55, %cst_33 [1] : vector<10x10xf32> to vector<10xf32>
    %57 = vector.shape_cast %56 : vector<10xf32> to vector<10x1xf32>
    %58 = vector.broadcast %57 : vector<10x1xf32> to vector<10x10xf32>
    %59 = arith.subf %55, %58 : vector<10x10xf32>
    %60 = math.exp %59 : vector<10x10xf32>
    %cst_34 = arith.constant dense<0.000000e+00> : vector<10xf32>
    %61 = vector.multi_reduction <add>, %60, %cst_34 [1] : vector<10x10xf32> to vector<10xf32>
    %62 = vector.shape_cast %61 : vector<10xf32> to vector<10x1xf32>
    %63 = tpu.reciprocal %62 {approx = true} : vector<10x1xf32> -> vector<10x1xf32>
    %64 = vector.broadcast %63 : vector<10x1xf32> to vector<10x10xf32>
    %65 = arith.mulf %60, %64 : vector<10x10xf32>
    %66 = arith.truncf %65 : vector<10x10xf32> to vector<10x10xbf16>
    %cst_35 = arith.constant dense<0.000000e+00> : vector<10x32xf32>
    %67 = tpu.matmul %66, %51, %cst_35 {dimension_numbers = #tpu.dot_dimension_numbers<[1], [0], [0], [1], [0, 0, 1, 1], [], []>} : vector<10x10xbf16>, vector<10x32xbf16>, vector<10x32xf32> -> vector<10x32xf32>
    %68 = vector.extract_strided_slice %42 {offsets = [0, 32], sizes = [10, 32], strides = [1, 1]} : vector<10x128xbf16> to vector<10x32xbf16>
    %69 = vector.extract_strided_slice %43 {offsets = [0, 32], sizes = [10, 32], strides = [1, 1]} : vector<10x128xbf16> to vector<10x32xbf16>
    %70 = vector.extract_strided_slice %44 {offsets = [0, 32], sizes = [10, 32], strides = [1, 1]} : vector<10x128xbf16> to vector<10x32xbf16>
    %cst_36 = arith.constant dense<0.000000e+00> : vector<10x10xf32>
    %71 = tpu.matmul %68, %69, %cst_36 {dimension_numbers = #tpu.dot_dimension_numbers<[1], [1], [0], [0], [0, 0, 1, 0], [], []>} : vector<10x32xbf16>, vector<10x32xbf16>, vector<10x10xf32> -> vector<10x10xf32>
    %cst_37 = arith.constant 0.176776692 : f32
    %72 = vector.broadcast %cst_37 : f32 to vector<10x10xf32>
    %73 = arith.mulf %71, %72 : vector<10x10xf32>
    %74 = arith.addf %73, %6 : vector<10x10xf32>
    %cst_38 = arith.constant dense<0xFF800000> : vector<10xf32>
    %75 = vector.multi_reduction <maximumf>, %74, %cst_38 [1] : vector<10x10xf32> to vector<10xf32>
    %76 = vector.shape_cast %75 : vector<10xf32> to vector<10x1xf32>
    %77 = vector.broadcast %76 : vector<10x1xf32> to vector<10x10xf32>
    %78 = arith.subf %74, %77 : vector<10x10xf32>
    %79 = math.exp %78 : vector<10x10xf32>
    %cst_39 = arith.constant dense<0.000000e+00> : vector<10xf32>
    %80 = vector.multi_reduction <add>, %79, %cst_39 [1] : vector<10x10xf32> to vector<10xf32>
    %81 = vector.shape_cast %80 : vector<10xf32> to vector<10x1xf32>
    %82 = tpu.reciprocal %81 {approx = true} : vector<10x1xf32> -> vector<10x1xf32>
    %83 = vector.broadcast %82 : vector<10x1xf32> to vector<10x10xf32>
    %84 = arith.mulf %79, %83 : vector<10x10xf32>
    %85 = arith.truncf %84 : vector<10x10xf32> to vector<10x10xbf16>
    %cst_40 = arith.constant dense<0.000000e+00> : vector<10x32xf32>
    %86 = tpu.matmul %85, %70, %cst_40 {dimension_numbers = #tpu.dot_dimension_numbers<[1], [0], [0], [1], [0, 0, 1, 1], [], []>} : vector<10x10xbf16>, vector<10x32xbf16>, vector<10x32xf32> -> vector<10x32xf32>
    %87 = vector.extract_strided_slice %42 {offsets = [0, 64], sizes = [10, 32], strides = [1, 1]} : vector<10x128xbf16> to vector<10x32xbf16>
    %88 = vector.extract_strided_slice %43 {offsets = [0, 64], sizes = [10, 32], strides = [1, 1]} : vector<10x128xbf16> to vector<10x32xbf16>
    %89 = vector.extract_strided_slice %44 {offsets = [0, 64], sizes = [10, 32], strides = [1, 1]} : vector<10x128xbf16> to vector<10x32xbf16>
    %cst_41 = arith.constant dense<0.000000e+00> : vector<10x10xf32>
    %90 = tpu.matmul %87, %88, %cst_41 {dimension_numbers = #tpu.dot_dimension_numbers<[1], [1], [0], [0], [0, 0, 1, 0], [], []>} : vector<10x32xbf16>, vector<10x32xbf16>, vector<10x10xf32> -> vector<10x10xf32>
    %cst_42 = arith.constant 0.176776692 : f32
    %91 = vector.broadcast %cst_42 : f32 to vector<10x10xf32>
    %92 = arith.mulf %90, %91 : vector<10x10xf32>
    %93 = arith.addf %92, %6 : vector<10x10xf32>
    %cst_43 = arith.constant dense<0xFF800000> : vector<10xf32>
    %94 = vector.multi_reduction <maximumf>, %93, %cst_43 [1] : vector<10x10xf32> to vector<10xf32>
    %95 = vector.shape_cast %94 : vector<10xf32> to vector<10x1xf32>
    %96 = vector.broadcast %95 : vector<10x1xf32> to vector<10x10xf32>
    %97 = arith.subf %93, %96 : vector<10x10xf32>
    %98 = math.exp %97 : vector<10x10xf32>
    %cst_44 = arith.constant dense<0.000000e+00> : vector<10xf32>
    %99 = vector.multi_reduction <add>, %98, %cst_44 [1] : vector<10x10xf32> to vector<10xf32>
    %100 = vector.shape_cast %99 : vector<10xf32> to vector<10x1xf32>
    %101 = tpu.reciprocal %100 {approx = true} : vector<10x1xf32> -> vector<10x1xf32>
    %102 = vector.broadcast %101 : vector<10x1xf32> to vector<10x10xf32>
    %103 = arith.mulf %98, %102 : vector<10x10xf32>
    %104 = arith.truncf %103 : vector<10x10xf32> to vector<10x10xbf16>
    %cst_45 = arith.constant dense<0.000000e+00> : vector<10x32xf32>
    %105 = tpu.matmul %104, %89, %cst_45 {dimension_numbers = #tpu.dot_dimension_numbers<[1], [0], [0], [1], [0, 0, 1, 1], [], []>} : vector<10x10xbf16>, vector<10x32xbf16>, vector<10x32xf32> -> vector<10x32xf32>
    %106 = vector.extract_strided_slice %42 {offsets = [0, 96], sizes = [10, 32], strides = [1, 1]} : vector<10x128xbf16> to vector<10x32xbf16>
    %107 = vector.extract_strided_slice %43 {offsets = [0, 96], sizes = [10, 32], strides = [1, 1]} : vector<10x128xbf16> to vector<10x32xbf16>
    %108 = vector.extract_strided_slice %44 {offsets = [0, 96], sizes = [10, 32], strides = [1, 1]} : vector<10x128xbf16> to vector<10x32xbf16>
    %cst_46 = arith.constant dense<0.000000e+00> : vector<10x10xf32>
    %109 = tpu.matmul %106, %107, %cst_46 {dimension_numbers = #tpu.dot_dimension_numbers<[1], [1], [0], [0], [0, 0, 1, 0], [], []>} : vector<10x32xbf16>, vector<10x32xbf16>, vector<10x10xf32> -> vector<10x10xf32>
    %cst_47 = arith.constant 0.176776692 : f32
    %110 = vector.broadcast %cst_47 : f32 to vector<10x10xf32>
    %111 = arith.mulf %109, %110 : vector<10x10xf32>
    %112 = arith.addf %111, %6 : vector<10x10xf32>
    %cst_48 = arith.constant dense<0xFF800000> : vector<10xf32>
    %113 = vector.multi_reduction <maximumf>, %112, %cst_48 [1] : vector<10x10xf32> to vector<10xf32>
    %114 = vector.shape_cast %113 : vector<10xf32> to vector<10x1xf32>
    %115 = vector.broadcast %114 : vector<10x1xf32> to vector<10x10xf32>
    %116 = arith.subf %112, %115 : vector<10x10xf32>
    %117 = math.exp %116 : vector<10x10xf32>
    %cst_49 = arith.constant dense<0.000000e+00> : vector<10xf32>
    %118 = vector.multi_reduction <add>, %117, %cst_49 [1] : vector<10x10xf32> to vector<10xf32>
    %119 = vector.shape_cast %118 : vector<10xf32> to vector<10x1xf32>
    %120 = tpu.reciprocal %119 {approx = true} : vector<10x1xf32> -> vector<10x1xf32>
    %121 = vector.broadcast %120 : vector<10x1xf32> to vector<10x10xf32>
    %122 = arith.mulf %117, %121 : vector<10x10xf32>
    %123 = arith.truncf %122 : vector<10x10xf32> to vector<10x10xbf16>
    %cst_50 = arith.constant dense<0.000000e+00> : vector<10x32xf32>
    %124 = tpu.matmul %123, %108, %cst_50 {dimension_numbers = #tpu.dot_dimension_numbers<[1], [0], [0], [1], [0, 0, 1, 1], [], []>} : vector<10x10xbf16>, vector<10x32xbf16>, vector<10x32xf32> -> vector<10x32xf32>
    %125 = tpu.concatenate %67, %86, %105, %124 in 1 : vector<10x32xf32>, vector<10x32xf32>, vector<10x32xf32>, vector<10x32xf32> -> vector<10x128xf32>
    %126 = arith.truncf %125 : vector<10x128xf32> to vector<10x128xbf16>
    %cst_51 = arith.constant dense<0.000000e+00> : vector<10x128xf32>
    %127 = tpu.matmul %126, %46, %cst_51 {dimension_numbers = #tpu.dot_dimension_numbers<[1], [0], [0], [1], [0, 0, 1, 1], [], []>} : vector<10x128xbf16>, vector<128x128xbf16>, vector<10x128xf32> -> vector<10x128xf32>
    %128 = vector.broadcast %48 : vector<1x128xf32> to vector<10x128xf32>
    %129 = arith.addf %127, %128 : vector<10x128xf32>
    %130 = arith.addf %5, %129 : vector<10x128xf32>
    %c0_52 = arith.constant 0 : index
    %c0_53 = arith.constant 0 : index
    %c0_54 = arith.constant 0 : index
    %131 = vector.load %arg11[%c0_52, %c0_53, %c0_54] : memref<2x1x128xf32, #tpu.memory_space<vmem>>, vector<1x1x128xf32>
    %132 = vector.shape_cast %131 : vector<1x1x128xf32> to vector<1x128xf32>
    %c0_55 = arith.constant 0 : index
    %c0_56 = arith.constant 0 : index
    %c0_57 = arith.constant 0 : index
    %133 = vector.load %arg12[%c0_55, %c0_56, %c0_57] : memref<2x1x128xf32, #tpu.memory_space<vmem>>, vector<1x1x128xf32>
    %134 = vector.shape_cast %133 : vector<1x1x128xf32> to vector<1x128xf32>
    %cst_58 = arith.constant dense<0.000000e+00> : vector<10xf32>
    %135 = vector.multi_reduction <add>, %130, %cst_58 [1] : vector<10x128xf32> to vector<10xf32>
    %136 = vector.shape_cast %135 : vector<10xf32> to vector<10x1xf32>
    %cst_59 = arith.constant 1.280000e+02 : f32
    %137 = vector.broadcast %cst_59 : f32 to vector<10x1xf32>
    %138 = arith.divf %136, %137 : vector<10x1xf32>
    %139 = vector.broadcast %138 : vector<10x1xf32> to vector<10x128xf32>
    %140 = arith.subf %130, %139 : vector<10x128xf32>
    %141 = arith.mulf %140, %140 : vector<10x128xf32>
    %cst_60 = arith.constant dense<0.000000e+00> : vector<10xf32>
    %142 = vector.multi_reduction <add>, %141, %cst_60 [1] : vector<10x128xf32> to vector<10xf32>
    %143 = vector.shape_cast %142 : vector<10xf32> to vector<10x1xf32>
    %cst_61 = arith.constant 1.280000e+02 : f32
    %144 = vector.broadcast %cst_61 : f32 to vector<10x1xf32>
    %145 = arith.divf %143, %144 : vector<10x1xf32>
    %146 = vector.broadcast %138 : vector<10x1xf32> to vector<10x128xf32>
    %147 = arith.subf %130, %146 : vector<10x128xf32>
    %cst_62 = arith.constant 9.99999997E-7 : f32
    %148 = vector.broadcast %cst_62 : f32 to vector<10x1xf32>
    %149 = arith.addf %145, %148 : vector<10x1xf32>
    %150 = math.rsqrt %149 : vector<10x1xf32>
    %151 = vector.broadcast %150 : vector<10x1xf32> to vector<10x128xf32>
    %152 = arith.mulf %147, %151 : vector<10x128xf32>
    %153 = vector.broadcast %132 : vector<1x128xf32> to vector<10x128xf32>
    %154 = arith.mulf %152, %153 : vector<10x128xf32>
    %155 = vector.broadcast %134 : vector<1x128xf32> to vector<10x128xf32>
    %156 = arith.addf %154, %155 : vector<10x128xf32>
    %157 = arith.truncf %156 : vector<10x128xf32> to vector<10x128xbf16>
    %c0_63 = arith.constant 0 : index
    %c0_64 = arith.constant 0 : index
    %c0_65 = arith.constant 0 : index
    %158 = vector.load %arg13[%c0_63, %c0_64, %c0_65] : memref<2x128x256xbf16, #tpu.memory_space<vmem>>, vector<1x128x256xbf16>
    %159 = vector.shape_cast %158 : vector<1x128x256xbf16> to vector<128x256xbf16>
    %cst_66 = arith.constant dense<0.000000e+00> : vector<10x256xf32>
    %160 = tpu.matmul %157, %159, %cst_66 {dimension_numbers = #tpu.dot_dimension_numbers<[1], [0], [0], [1], [0, 0, 1, 1], [], []>} : vector<10x128xbf16>, vector<128x256xbf16>, vector<10x256xf32> -> vector<10x256xf32>
    %c0_67 = arith.constant 0 : index
    %c0_68 = arith.constant 0 : index
    %c0_69 = arith.constant 0 : index
    %161 = vector.load %arg14[%c0_67, %c0_68, %c0_69] : memref<2x1x256xf32, #tpu.memory_space<vmem>>, vector<1x1x256xf32>
    %162 = vector.shape_cast %161 : vector<1x1x256xf32> to vector<1x256xf32>
    %163 = vector.broadcast %162 : vector<1x256xf32> to vector<10x256xf32>
    %164 = arith.addf %160, %163 : vector<10x256xf32>
    %165 = arith.mulf %164, %164 : vector<10x256xf32>
    %166 = arith.mulf %164, %165 : vector<10x256xf32>
    %cst_70 = arith.constant 4.471500e-02 : f32
    %167 = vector.broadcast %cst_70 : f32 to vector<10x256xf32>
    %168 = arith.mulf %167, %166 : vector<10x256xf32>
    %169 = arith.addf %164, %168 : vector<10x256xf32>
    %cst_71 = arith.constant 0.797884583 : f32
    %170 = vector.broadcast %cst_71 : f32 to vector<10x256xf32>
    %171 = arith.mulf %170, %169 : vector<10x256xf32>
    %172 = math.tanh %171 : vector<10x256xf32>
    %cst_72 = arith.constant 1.000000e+00 : f32
    %173 = vector.broadcast %cst_72 : f32 to vector<10x256xf32>
    %174 = arith.addf %173, %172 : vector<10x256xf32>
    %cst_73 = arith.constant 5.000000e-01 : f32
    %175 = vector.broadcast %cst_73 : f32 to vector<10x256xf32>
    %176 = arith.mulf %175, %174 : vector<10x256xf32>
    %177 = arith.mulf %164, %176 : vector<10x256xf32>
    %178 = arith.truncf %177 : vector<10x256xf32> to vector<10x256xbf16>
    %c0_74 = arith.constant 0 : index
    %c0_75 = arith.constant 0 : index
    %c0_76 = arith.constant 0 : index
    %179 = vector.load %arg15[%c0_74, %c0_75, %c0_76] : memref<2x256x128xbf16, #tpu.memory_space<vmem>>, vector<1x256x128xbf16>
    %180 = vector.shape_cast %179 : vector<1x256x128xbf16> to vector<256x128xbf16>
    %cst_77 = arith.constant dense<0.000000e+00> : vector<10x128xf32>
    %181 = tpu.matmul %178, %180, %cst_77 {dimension_numbers = #tpu.dot_dimension_numbers<[1], [0], [0], [1], [0, 0, 1, 1], [], []>} : vector<10x256xbf16>, vector<256x128xbf16>, vector<10x128xf32> -> vector<10x128xf32>
    %c0_78 = arith.constant 0 : index
    %c0_79 = arith.constant 0 : index
    %c0_80 = arith.constant 0 : index
    %182 = vector.load %arg16[%c0_78, %c0_79, %c0_80] : memref<2x1x128xf32, #tpu.memory_space<vmem>>, vector<1x1x128xf32>
    %183 = vector.shape_cast %182 : vector<1x1x128xf32> to vector<1x128xf32>
    %184 = vector.broadcast %183 : vector<1x128xf32> to vector<10x128xf32>
    %185 = arith.addf %181, %184 : vector<10x128xf32>
    %186 = arith.addf %130, %185 : vector<10x128xf32>
    %c1 = arith.constant 1 : index
    %c0_81 = arith.constant 0 : index
    %c0_82 = arith.constant 0 : index
    %187 = vector.load %arg5[%c1, %c0_81, %c0_82] : memref<2x1x128xf32, #tpu.memory_space<vmem>>, vector<1x1x128xf32>
    %188 = vector.shape_cast %187 : vector<1x1x128xf32> to vector<1x128xf32>
    %c1_83 = arith.constant 1 : index
    %c0_84 = arith.constant 0 : index
    %c0_85 = arith.constant 0 : index
    %189 = vector.load %arg6[%c1_83, %c0_84, %c0_85] : memref<2x1x128xf32, #tpu.memory_space<vmem>>, vector<1x1x128xf32>
    %190 = vector.shape_cast %189 : vector<1x1x128xf32> to vector<1x128xf32>
    %cst_86 = arith.constant dense<0.000000e+00> : vector<10xf32>
    %191 = vector.multi_reduction <add>, %186, %cst_86 [1] : vector<10x128xf32> to vector<10xf32>
    %192 = vector.shape_cast %191 : vector<10xf32> to vector<10x1xf32>
    %cst_87 = arith.constant 1.280000e+02 : f32
    %193 = vector.broadcast %cst_87 : f32 to vector<10x1xf32>
    %194 = arith.divf %192, %193 : vector<10x1xf32>
    %195 = vector.broadcast %194 : vector<10x1xf32> to vector<10x128xf32>
    %196 = arith.subf %186, %195 : vector<10x128xf32>
    %197 = arith.mulf %196, %196 : vector<10x128xf32>
    %cst_88 = arith.constant dense<0.000000e+00> : vector<10xf32>
    %198 = vector.multi_reduction <add>, %197, %cst_88 [1] : vector<10x128xf32> to vector<10xf32>
    %199 = vector.shape_cast %198 : vector<10xf32> to vector<10x1xf32>
    %cst_89 = arith.constant 1.280000e+02 : f32
    %200 = vector.broadcast %cst_89 : f32 to vector<10x1xf32>
    %201 = arith.divf %199, %200 : vector<10x1xf32>
    %202 = vector.broadcast %194 : vector<10x1xf32> to vector<10x128xf32>
    %203 = arith.subf %186, %202 : vector<10x128xf32>
    %cst_90 = arith.constant 9.99999997E-7 : f32
    %204 = vector.broadcast %cst_90 : f32 to vector<10x1xf32>
    %205 = arith.addf %201, %204 : vector<10x1xf32>
    %206 = math.rsqrt %205 : vector<10x1xf32>
    %207 = vector.broadcast %206 : vector<10x1xf32> to vector<10x128xf32>
    %208 = arith.mulf %203, %207 : vector<10x128xf32>
    %209 = vector.broadcast %188 : vector<1x128xf32> to vector<10x128xf32>
    %210 = arith.mulf %208, %209 : vector<10x128xf32>
    %211 = vector.broadcast %190 : vector<1x128xf32> to vector<10x128xf32>
    %212 = arith.addf %210, %211 : vector<10x128xf32>
    %213 = arith.truncf %212 : vector<10x128xf32> to vector<10x128xbf16>
    %c1_91 = arith.constant 1 : index
    %c0_92 = arith.constant 0 : index
    %c0_93 = arith.constant 0 : index
    %214 = vector.load %arg7[%c1_91, %c0_92, %c0_93] : memref<2x128x384xbf16, #tpu.memory_space<vmem>>, vector<1x128x384xbf16>
    %215 = vector.shape_cast %214 : vector<1x128x384xbf16> to vector<128x384xbf16>
    %cst_94 = arith.constant dense<0.000000e+00> : vector<10x384xf32>
    %216 = tpu.matmul %213, %215, %cst_94 {dimension_numbers = #tpu.dot_dimension_numbers<[1], [0], [0], [1], [0, 0, 1, 1], [], []>} : vector<10x128xbf16>, vector<128x384xbf16>, vector<10x384xf32> -> vector<10x384xf32>
    %c1_95 = arith.constant 1 : index
    %c0_96 = arith.constant 0 : index
    %c0_97 = arith.constant 0 : index
    %217 = vector.load %arg8[%c1_95, %c0_96, %c0_97] : memref<2x1x384xf32, #tpu.memory_space<vmem>>, vector<1x1x384xf32>
    %218 = vector.shape_cast %217 : vector<1x1x384xf32> to vector<1x384xf32>
    %219 = vector.broadcast %218 : vector<1x384xf32> to vector<10x384xf32>
    %220 = arith.addf %216, %219 : vector<10x384xf32>
    %221 = arith.truncf %220 : vector<10x384xf32> to vector<10x384xbf16>
    %222 = vector.extract_strided_slice %221 {offsets = [0, 0], sizes = [10, 128], strides = [1, 1]} : vector<10x384xbf16> to vector<10x128xbf16>
    %223 = vector.extract_strided_slice %221 {offsets = [0, 128], sizes = [10, 128], strides = [1, 1]} : vector<10x384xbf16> to vector<10x128xbf16>
    %224 = vector.extract_strided_slice %221 {offsets = [0, 256], sizes = [10, 128], strides = [1, 1]} : vector<10x384xbf16> to vector<10x128xbf16>
    %c1_98 = arith.constant 1 : index
    %c0_99 = arith.constant 0 : index
    %c0_100 = arith.constant 0 : index
    %225 = vector.load %arg9[%c1_98, %c0_99, %c0_100] : memref<2x128x128xbf16, #tpu.memory_space<vmem>>, vector<1x128x128xbf16>
    %226 = vector.shape_cast %225 : vector<1x128x128xbf16> to vector<128x128xbf16>
    %c1_101 = arith.constant 1 : index
    %c0_102 = arith.constant 0 : index
    %c0_103 = arith.constant 0 : index
    %227 = vector.load %arg10[%c1_101, %c0_102, %c0_103] : memref<2x1x128xf32, #tpu.memory_space<vmem>>, vector<1x1x128xf32>
    %228 = vector.shape_cast %227 : vector<1x1x128xf32> to vector<1x128xf32>
    %229 = vector.extract_strided_slice %222 {offsets = [0, 0], sizes = [10, 32], strides = [1, 1]} : vector<10x128xbf16> to vector<10x32xbf16>
    %230 = vector.extract_strided_slice %223 {offsets = [0, 0], sizes = [10, 32], strides = [1, 1]} : vector<10x128xbf16> to vector<10x32xbf16>
    %231 = vector.extract_strided_slice %224 {offsets = [0, 0], sizes = [10, 32], strides = [1, 1]} : vector<10x128xbf16> to vector<10x32xbf16>
    %cst_104 = arith.constant dense<0.000000e+00> : vector<10x10xf32>
    %232 = tpu.matmul %229, %230, %cst_104 {dimension_numbers = #tpu.dot_dimension_numbers<[1], [1], [0], [0], [0, 0, 1, 0], [], []>} : vector<10x32xbf16>, vector<10x32xbf16>, vector<10x10xf32> -> vector<10x10xf32>
    %cst_105 = arith.constant 0.176776692 : f32
    %233 = vector.broadcast %cst_105 : f32 to vector<10x10xf32>
    %234 = arith.mulf %232, %233 : vector<10x10xf32>
    %235 = arith.addf %234, %6 : vector<10x10xf32>
    %cst_106 = arith.constant dense<0xFF800000> : vector<10xf32>
    %236 = vector.multi_reduction <maximumf>, %235, %cst_106 [1] : vector<10x10xf32> to vector<10xf32>
    %237 = vector.shape_cast %236 : vector<10xf32> to vector<10x1xf32>
    %238 = vector.broadcast %237 : vector<10x1xf32> to vector<10x10xf32>
    %239 = arith.subf %235, %238 : vector<10x10xf32>
    %240 = math.exp %239 : vector<10x10xf32>
    %cst_107 = arith.constant dense<0.000000e+00> : vector<10xf32>
    %241 = vector.multi_reduction <add>, %240, %cst_107 [1] : vector<10x10xf32> to vector<10xf32>
    %242 = vector.shape_cast %241 : vector<10xf32> to vector<10x1xf32>
    %243 = tpu.reciprocal %242 {approx = true} : vector<10x1xf32> -> vector<10x1xf32>
    %244 = vector.broadcast %243 : vector<10x1xf32> to vector<10x10xf32>
    %245 = arith.mulf %240, %244 : vector<10x10xf32>
    %246 = arith.truncf %245 : vector<10x10xf32> to vector<10x10xbf16>
    %cst_108 = arith.constant dense<0.000000e+00> : vector<10x32xf32>
    %247 = tpu.matmul %246, %231, %cst_108 {dimension_numbers = #tpu.dot_dimension_numbers<[1], [0], [0], [1], [0, 0, 1, 1], [], []>} : vector<10x10xbf16>, vector<10x32xbf16>, vector<10x32xf32> -> vector<10x32xf32>
    %248 = vector.extract_strided_slice %222 {offsets = [0, 32], sizes = [10, 32], strides = [1, 1]} : vector<10x128xbf16> to vector<10x32xbf16>
    %249 = vector.extract_strided_slice %223 {offsets = [0, 32], sizes = [10, 32], strides = [1, 1]} : vector<10x128xbf16> to vector<10x32xbf16>
    %250 = vector.extract_strided_slice %224 {offsets = [0, 32], sizes = [10, 32], strides = [1, 1]} : vector<10x128xbf16> to vector<10x32xbf16>
    %cst_109 = arith.constant dense<0.000000e+00> : vector<10x10xf32>
    %251 = tpu.matmul %248, %249, %cst_109 {dimension_numbers = #tpu.dot_dimension_numbers<[1], [1], [0], [0], [0, 0, 1, 0], [], []>} : vector<10x32xbf16>, vector<10x32xbf16>, vector<10x10xf32> -> vector<10x10xf32>
    %cst_110 = arith.constant 0.176776692 : f32
    %252 = vector.broadcast %cst_110 : f32 to vector<10x10xf32>
    %253 = arith.mulf %251, %252 : vector<10x10xf32>
    %254 = arith.addf %253, %6 : vector<10x10xf32>
    %cst_111 = arith.constant dense<0xFF800000> : vector<10xf32>
    %255 = vector.multi_reduction <maximumf>, %254, %cst_111 [1] : vector<10x10xf32> to vector<10xf32>
    %256 = vector.shape_cast %255 : vector<10xf32> to vector<10x1xf32>
    %257 = vector.broadcast %256 : vector<10x1xf32> to vector<10x10xf32>
    %258 = arith.subf %254, %257 : vector<10x10xf32>
    %259 = math.exp %258 : vector<10x10xf32>
    %cst_112 = arith.constant dense<0.000000e+00> : vector<10xf32>
    %260 = vector.multi_reduction <add>, %259, %cst_112 [1] : vector<10x10xf32> to vector<10xf32>
    %261 = vector.shape_cast %260 : vector<10xf32> to vector<10x1xf32>
    %262 = tpu.reciprocal %261 {approx = true} : vector<10x1xf32> -> vector<10x1xf32>
    %263 = vector.broadcast %262 : vector<10x1xf32> to vector<10x10xf32>
    %264 = arith.mulf %259, %263 : vector<10x10xf32>
    %265 = arith.truncf %264 : vector<10x10xf32> to vector<10x10xbf16>
    %cst_113 = arith.constant dense<0.000000e+00> : vector<10x32xf32>
    %266 = tpu.matmul %265, %250, %cst_113 {dimension_numbers = #tpu.dot_dimension_numbers<[1], [0], [0], [1], [0, 0, 1, 1], [], []>} : vector<10x10xbf16>, vector<10x32xbf16>, vector<10x32xf32> -> vector<10x32xf32>
    %267 = vector.extract_strided_slice %222 {offsets = [0, 64], sizes = [10, 32], strides = [1, 1]} : vector<10x128xbf16> to vector<10x32xbf16>
    %268 = vector.extract_strided_slice %223 {offsets = [0, 64], sizes = [10, 32], strides = [1, 1]} : vector<10x128xbf16> to vector<10x32xbf16>
    %269 = vector.extract_strided_slice %224 {offsets = [0, 64], sizes = [10, 32], strides = [1, 1]} : vector<10x128xbf16> to vector<10x32xbf16>
    %cst_114 = arith.constant dense<0.000000e+00> : vector<10x10xf32>
    %270 = tpu.matmul %267, %268, %cst_114 {dimension_numbers = #tpu.dot_dimension_numbers<[1], [1], [0], [0], [0, 0, 1, 0], [], []>} : vector<10x32xbf16>, vector<10x32xbf16>, vector<10x10xf32> -> vector<10x10xf32>
    %cst_115 = arith.constant 0.176776692 : f32
    %271 = vector.broadcast %cst_115 : f32 to vector<10x10xf32>
    %272 = arith.mulf %270, %271 : vector<10x10xf32>
    %273 = arith.addf %272, %6 : vector<10x10xf32>
    %cst_116 = arith.constant dense<0xFF800000> : vector<10xf32>
    %274 = vector.multi_reduction <maximumf>, %273, %cst_116 [1] : vector<10x10xf32> to vector<10xf32>
    %275 = vector.shape_cast %274 : vector<10xf32> to vector<10x1xf32>
    %276 = vector.broadcast %275 : vector<10x1xf32> to vector<10x10xf32>
    %277 = arith.subf %273, %276 : vector<10x10xf32>
    %278 = math.exp %277 : vector<10x10xf32>
    %cst_117 = arith.constant dense<0.000000e+00> : vector<10xf32>
    %279 = vector.multi_reduction <add>, %278, %cst_117 [1] : vector<10x10xf32> to vector<10xf32>
    %280 = vector.shape_cast %279 : vector<10xf32> to vector<10x1xf32>
    %281 = tpu.reciprocal %280 {approx = true} : vector<10x1xf32> -> vector<10x1xf32>
    %282 = vector.broadcast %281 : vector<10x1xf32> to vector<10x10xf32>
    %283 = arith.mulf %278, %282 : vector<10x10xf32>
    %284 = arith.truncf %283 : vector<10x10xf32> to vector<10x10xbf16>
    %cst_118 = arith.constant dense<0.000000e+00> : vector<10x32xf32>
    %285 = tpu.matmul %284, %269, %cst_118 {dimension_numbers = #tpu.dot_dimension_numbers<[1], [0], [0], [1], [0, 0, 1, 1], [], []>} : vector<10x10xbf16>, vector<10x32xbf16>, vector<10x32xf32> -> vector<10x32xf32>
    %286 = vector.extract_strided_slice %222 {offsets = [0, 96], sizes = [10, 32], strides = [1, 1]} : vector<10x128xbf16> to vector<10x32xbf16>
    %287 = vector.extract_strided_slice %223 {offsets = [0, 96], sizes = [10, 32], strides = [1, 1]} : vector<10x128xbf16> to vector<10x32xbf16>
    %288 = vector.extract_strided_slice %224 {offsets = [0, 96], sizes = [10, 32], strides = [1, 1]} : vector<10x128xbf16> to vector<10x32xbf16>
    %cst_119 = arith.constant dense<0.000000e+00> : vector<10x10xf32>
    %289 = tpu.matmul %286, %287, %cst_119 {dimension_numbers = #tpu.dot_dimension_numbers<[1], [1], [0], [0], [0, 0, 1, 0], [], []>} : vector<10x32xbf16>, vector<10x32xbf16>, vector<10x10xf32> -> vector<10x10xf32>
    %cst_120 = arith.constant 0.176776692 : f32
    %290 = vector.broadcast %cst_120 : f32 to vector<10x10xf32>
    %291 = arith.mulf %289, %290 : vector<10x10xf32>
    %292 = arith.addf %291, %6 : vector<10x10xf32>
    %cst_121 = arith.constant dense<0xFF800000> : vector<10xf32>
    %293 = vector.multi_reduction <maximumf>, %292, %cst_121 [1] : vector<10x10xf32> to vector<10xf32>
    %294 = vector.shape_cast %293 : vector<10xf32> to vector<10x1xf32>
    %295 = vector.broadcast %294 : vector<10x1xf32> to vector<10x10xf32>
    %296 = arith.subf %292, %295 : vector<10x10xf32>
    %297 = math.exp %296 : vector<10x10xf32>
    %cst_122 = arith.constant dense<0.000000e+00> : vector<10xf32>
    %298 = vector.multi_reduction <add>, %297, %cst_122 [1] : vector<10x10xf32> to vector<10xf32>
    %299 = vector.shape_cast %298 : vector<10xf32> to vector<10x1xf32>
    %300 = tpu.reciprocal %299 {approx = true} : vector<10x1xf32> -> vector<10x1xf32>
    %301 = vector.broadcast %300 : vector<10x1xf32> to vector<10x10xf32>
    %302 = arith.mulf %297, %301 : vector<10x10xf32>
    %303 = arith.truncf %302 : vector<10x10xf32> to vector<10x10xbf16>
    %cst_123 = arith.constant dense<0.000000e+00> : vector<10x32xf32>
    %304 = tpu.matmul %303, %288, %cst_123 {dimension_numbers = #tpu.dot_dimension_numbers<[1], [0], [0], [1], [0, 0, 1, 1], [], []>} : vector<10x10xbf16>, vector<10x32xbf16>, vector<10x32xf32> -> vector<10x32xf32>
    %305 = tpu.concatenate %247, %266, %285, %304 in 1 : vector<10x32xf32>, vector<10x32xf32>, vector<10x32xf32>, vector<10x32xf32> -> vector<10x128xf32>
    %306 = arith.truncf %305 : vector<10x128xf32> to vector<10x128xbf16>
    %cst_124 = arith.constant dense<0.000000e+00> : vector<10x128xf32>
    %307 = tpu.matmul %306, %226, %cst_124 {dimension_numbers = #tpu.dot_dimension_numbers<[1], [0], [0], [1], [0, 0, 1, 1], [], []>} : vector<10x128xbf16>, vector<128x128xbf16>, vector<10x128xf32> -> vector<10x128xf32>
    %308 = vector.broadcast %228 : vector<1x128xf32> to vector<10x128xf32>
    %309 = arith.addf %307, %308 : vector<10x128xf32>
    %310 = arith.addf %186, %309 : vector<10x128xf32>
    %c1_125 = arith.constant 1 : index
    %c0_126 = arith.constant 0 : index
    %c0_127 = arith.constant 0 : index
    %311 = vector.load %arg11[%c1_125, %c0_126, %c0_127] : memref<2x1x128xf32, #tpu.memory_space<vmem>>, vector<1x1x128xf32>
    %312 = vector.shape_cast %311 : vector<1x1x128xf32> to vector<1x128xf32>
    %c1_128 = arith.constant 1 : index
    %c0_129 = arith.constant 0 : index
    %c0_130 = arith.constant 0 : index
    %313 = vector.load %arg12[%c1_128, %c0_129, %c0_130] : memref<2x1x128xf32, #tpu.memory_space<vmem>>, vector<1x1x128xf32>
    %314 = vector.shape_cast %313 : vector<1x1x128xf32> to vector<1x128xf32>
    %cst_131 = arith.constant dense<0.000000e+00> : vector<10xf32>
    %315 = vector.multi_reduction <add>, %310, %cst_131 [1] : vector<10x128xf32> to vector<10xf32>
    %316 = vector.shape_cast %315 : vector<10xf32> to vector<10x1xf32>
    %cst_132 = arith.constant 1.280000e+02 : f32
    %317 = vector.broadcast %cst_132 : f32 to vector<10x1xf32>
    %318 = arith.divf %316, %317 : vector<10x1xf32>
    %319 = vector.broadcast %318 : vector<10x1xf32> to vector<10x128xf32>
    %320 = arith.subf %310, %319 : vector<10x128xf32>
    %321 = arith.mulf %320, %320 : vector<10x128xf32>
    %cst_133 = arith.constant dense<0.000000e+00> : vector<10xf32>
    %322 = vector.multi_reduction <add>, %321, %cst_133 [1] : vector<10x128xf32> to vector<10xf32>
    %323 = vector.shape_cast %322 : vector<10xf32> to vector<10x1xf32>
    %cst_134 = arith.constant 1.280000e+02 : f32
    %324 = vector.broadcast %cst_134 : f32 to vector<10x1xf32>
    %325 = arith.divf %323, %324 : vector<10x1xf32>
    %326 = vector.broadcast %318 : vector<10x1xf32> to vector<10x128xf32>
    %327 = arith.subf %310, %326 : vector<10x128xf32>
    %cst_135 = arith.constant 9.99999997E-7 : f32
    %328 = vector.broadcast %cst_135 : f32 to vector<10x1xf32>
    %329 = arith.addf %325, %328 : vector<10x1xf32>
    %330 = math.rsqrt %329 : vector<10x1xf32>
    %331 = vector.broadcast %330 : vector<10x1xf32> to vector<10x128xf32>
    %332 = arith.mulf %327, %331 : vector<10x128xf32>
    %333 = vector.broadcast %312 : vector<1x128xf32> to vector<10x128xf32>
    %334 = arith.mulf %332, %333 : vector<10x128xf32>
    %335 = vector.broadcast %314 : vector<1x128xf32> to vector<10x128xf32>
    %336 = arith.addf %334, %335 : vector<10x128xf32>
    %337 = arith.truncf %336 : vector<10x128xf32> to vector<10x128xbf16>
    %c1_136 = arith.constant 1 : index
    %c0_137 = arith.constant 0 : index
    %c0_138 = arith.constant 0 : index
    %338 = vector.load %arg13[%c1_136, %c0_137, %c0_138] : memref<2x128x256xbf16, #tpu.memory_space<vmem>>, vector<1x128x256xbf16>
    %339 = vector.shape_cast %338 : vector<1x128x256xbf16> to vector<128x256xbf16>
    %cst_139 = arith.constant dense<0.000000e+00> : vector<10x256xf32>
    %340 = tpu.matmul %337, %339, %cst_139 {dimension_numbers = #tpu.dot_dimension_numbers<[1], [0], [0], [1], [0, 0, 1, 1], [], []>} : vector<10x128xbf16>, vector<128x256xbf16>, vector<10x256xf32> -> vector<10x256xf32>
    %c1_140 = arith.constant 1 : index
    %c0_141 = arith.constant 0 : index
    %c0_142 = arith.constant 0 : index
    %341 = vector.load %arg14[%c1_140, %c0_141, %c0_142] : memref<2x1x256xf32, #tpu.memory_space<vmem>>, vector<1x1x256xf32>
    %342 = vector.shape_cast %341 : vector<1x1x256xf32> to vector<1x256xf32>
    %343 = vector.broadcast %342 : vector<1x256xf32> to vector<10x256xf32>
    %344 = arith.addf %340, %343 : vector<10x256xf32>
    %345 = arith.mulf %344, %344 : vector<10x256xf32>
    %346 = arith.mulf %344, %345 : vector<10x256xf32>
    %cst_143 = arith.constant 4.471500e-02 : f32
    %347 = vector.broadcast %cst_143 : f32 to vector<10x256xf32>
    %348 = arith.mulf %347, %346 : vector<10x256xf32>
    %349 = arith.addf %344, %348 : vector<10x256xf32>
    %cst_144 = arith.constant 0.797884583 : f32
    %350 = vector.broadcast %cst_144 : f32 to vector<10x256xf32>
    %351 = arith.mulf %350, %349 : vector<10x256xf32>
    %352 = math.tanh %351 : vector<10x256xf32>
    %cst_145 = arith.constant 1.000000e+00 : f32
    %353 = vector.broadcast %cst_145 : f32 to vector<10x256xf32>
    %354 = arith.addf %353, %352 : vector<10x256xf32>
    %cst_146 = arith.constant 5.000000e-01 : f32
    %355 = vector.broadcast %cst_146 : f32 to vector<10x256xf32>
    %356 = arith.mulf %355, %354 : vector<10x256xf32>
    %357 = arith.mulf %344, %356 : vector<10x256xf32>
    %358 = arith.truncf %357 : vector<10x256xf32> to vector<10x256xbf16>
    %c1_147 = arith.constant 1 : index
    %c0_148 = arith.constant 0 : index
    %c0_149 = arith.constant 0 : index
    %359 = vector.load %arg15[%c1_147, %c0_148, %c0_149] : memref<2x256x128xbf16, #tpu.memory_space<vmem>>, vector<1x256x128xbf16>
    %360 = vector.shape_cast %359 : vector<1x256x128xbf16> to vector<256x128xbf16>
    %cst_150 = arith.constant dense<0.000000e+00> : vector<10x128xf32>
    %361 = tpu.matmul %358, %360, %cst_150 {dimension_numbers = #tpu.dot_dimension_numbers<[1], [0], [0], [1], [0, 0, 1, 1], [], []>} : vector<10x256xbf16>, vector<256x128xbf16>, vector<10x128xf32> -> vector<10x128xf32>
    %c1_151 = arith.constant 1 : index
    %c0_152 = arith.constant 0 : index
    %c0_153 = arith.constant 0 : index
    %362 = vector.load %arg16[%c1_151, %c0_152, %c0_153] : memref<2x1x128xf32, #tpu.memory_space<vmem>>, vector<1x1x128xf32>
    %363 = vector.shape_cast %362 : vector<1x1x128xf32> to vector<1x128xf32>
    %364 = vector.broadcast %363 : vector<1x128xf32> to vector<10x128xf32>
    %365 = arith.addf %361, %364 : vector<10x128xf32>
    %366 = arith.addf %310, %365 : vector<10x128xf32>
    %c0_154 = arith.constant 0 : index
    %c0_155 = arith.constant 0 : index
    %367 = vector.load %arg17[%c0_154, %c0_155] : memref<1x128xf32, #tpu.memory_space<vmem>>, vector<1x128xf32>
    %c0_156 = arith.constant 0 : index
    %c0_157 = arith.constant 0 : index
    %368 = vector.load %arg18[%c0_156, %c0_157] : memref<1x128xf32, #tpu.memory_space<vmem>>, vector<1x128xf32>
    %cst_158 = arith.constant dense<0.000000e+00> : vector<10xf32>
    %369 = vector.multi_reduction <add>, %366, %cst_158 [1] : vector<10x128xf32> to vector<10xf32>
    %370 = vector.shape_cast %369 : vector<10xf32> to vector<10x1xf32>
    %cst_159 = arith.constant 1.280000e+02 : f32
    %371 = vector.broadcast %cst_159 : f32 to vector<10x1xf32>
    %372 = arith.divf %370, %371 : vector<10x1xf32>
    %373 = vector.broadcast %372 : vector<10x1xf32> to vector<10x128xf32>
    %374 = arith.subf %366, %373 : vector<10x128xf32>
    %375 = arith.mulf %374, %374 : vector<10x128xf32>
    %cst_160 = arith.constant dense<0.000000e+00> : vector<10xf32>
    %376 = vector.multi_reduction <add>, %375, %cst_160 [1] : vector<10x128xf32> to vector<10xf32>
    %377 = vector.shape_cast %376 : vector<10xf32> to vector<10x1xf32>
    %cst_161 = arith.constant 1.280000e+02 : f32
    %378 = vector.broadcast %cst_161 : f32 to vector<10x1xf32>
    %379 = arith.divf %377, %378 : vector<10x1xf32>
    %380 = vector.broadcast %372 : vector<10x1xf32> to vector<10x128xf32>
    %381 = arith.subf %366, %380 : vector<10x128xf32>
    %cst_162 = arith.constant 9.99999997E-7 : f32
    %382 = vector.broadcast %cst_162 : f32 to vector<10x1xf32>
    %383 = arith.addf %379, %382 : vector<10x1xf32>
    %384 = math.rsqrt %383 : vector<10x1xf32>
    %385 = vector.broadcast %384 : vector<10x1xf32> to vector<10x128xf32>
    %386 = arith.mulf %381, %385 : vector<10x128xf32>
    %387 = vector.broadcast %367 : vector<1x128xf32> to vector<10x128xf32>
    %388 = arith.mulf %386, %387 : vector<10x128xf32>
    %389 = vector.broadcast %368 : vector<1x128xf32> to vector<10x128xf32>
    %390 = arith.addf %388, %389 : vector<10x128xf32>
    %391 = arith.truncf %390 : vector<10x128xf32> to vector<10x128xbf16>
    %c0_163 = arith.constant 0 : index
    %c0_164 = arith.constant 0 : index
    %392 = vector.load %arg19[%c0_163, %c0_164] : memref<32x1xi32, #tpu.memory_space<vmem>>, vector<32x1xi32>
    %393 = tpu.iota {dimensions = array<i32: 1>} : vector<32x64xi32>
    %394 = vector.broadcast %392 : vector<32x1xi32> to vector<32x64xi32>
    %395 = arith.cmpi eq, %394, %393 : vector<32x64xi32>
    %cst_165 = arith.constant 1.000000e+00 : f32
    %cst_166 = arith.constant 0.000000e+00 : f32
    %396 = vector.broadcast %cst_165 : f32 to vector<32x64xf32>
    %397 = vector.broadcast %cst_166 : f32 to vector<32x64xf32>
    %398 = arith.select %395, %396, %397 : vector<32x64xi1>, vector<32x64xf32>
    %399 = arith.truncf %398 : vector<32x64xf32> to vector<32x64xbf16>
    %c0_167 = arith.constant 0 : index
    %c0_168 = arith.constant 0 : index
    %400 = vector.load %arg20[%c0_167, %c0_168] : memref<64x128xbf16, #tpu.memory_space<vmem>>, vector<64x128xbf16>
    %cst_169 = arith.constant dense<0.000000e+00> : vector<32x128xf32>
    %401 = tpu.matmul %399, %400, %cst_169 {dimension_numbers = #tpu.dot_dimension_numbers<[1], [0], [0], [1], [0, 0, 1, 1], [], []>} : vector<32x64xbf16>, vector<64x128xbf16>, vector<32x128xf32> -> vector<32x128xf32>
    %c0_170 = arith.constant 0 : index
    %c0_171 = arith.constant 0 : index
    %402 = vector.load %arg21[%c0_170, %c0_171] : memref<32x128xf32, #tpu.memory_space<vmem>>, vector<32x128xf32>
    %403 = arith.addf %401, %402 : vector<32x128xf32>
    %c0_172 = arith.constant 0 : index
    %c0_173 = arith.constant 0 : index
    %404 = vector.load %arg22[%c0_172, %c0_173] : memref<1x128xf32, #tpu.memory_space<vmem>>, vector<1x128xf32>
    %c0_174 = arith.constant 0 : index
    %c0_175 = arith.constant 0 : index
    %405 = vector.load %arg23[%c0_174, %c0_175] : memref<1x128xf32, #tpu.memory_space<vmem>>, vector<1x128xf32>
    %cst_176 = arith.constant dense<0.000000e+00> : vector<32xf32>
    %406 = vector.multi_reduction <add>, %403, %cst_176 [1] : vector<32x128xf32> to vector<32xf32>
    %407 = vector.shape_cast %406 : vector<32xf32> to vector<32x1xf32>
    %cst_177 = arith.constant 1.280000e+02 : f32
    %408 = vector.broadcast %cst_177 : f32 to vector<32x1xf32>
    %409 = arith.divf %407, %408 : vector<32x1xf32>
    %410 = vector.broadcast %409 : vector<32x1xf32> to vector<32x128xf32>
    %411 = arith.subf %403, %410 : vector<32x128xf32>
    %412 = arith.mulf %411, %411 : vector<32x128xf32>
    %cst_178 = arith.constant dense<0.000000e+00> : vector<32xf32>
    %413 = vector.multi_reduction <add>, %412, %cst_178 [1] : vector<32x128xf32> to vector<32xf32>
    %414 = vector.shape_cast %413 : vector<32xf32> to vector<32x1xf32>
    %cst_179 = arith.constant 1.280000e+02 : f32
    %415 = vector.broadcast %cst_179 : f32 to vector<32x1xf32>
    %416 = arith.divf %414, %415 : vector<32x1xf32>
    %417 = vector.broadcast %409 : vector<32x1xf32> to vector<32x128xf32>
    %418 = arith.subf %403, %417 : vector<32x128xf32>
    %cst_180 = arith.constant 9.99999996E-13 : f32
    %419 = vector.broadcast %cst_180 : f32 to vector<32x1xf32>
    %420 = arith.addf %416, %419 : vector<32x1xf32>
    %421 = math.rsqrt %420 : vector<32x1xf32>
    %422 = vector.broadcast %421 : vector<32x1xf32> to vector<32x128xf32>
    %423 = arith.mulf %418, %422 : vector<32x128xf32>
    %424 = vector.broadcast %404 : vector<1x128xf32> to vector<32x128xf32>
    %425 = arith.mulf %423, %424 : vector<32x128xf32>
    %426 = vector.broadcast %405 : vector<1x128xf32> to vector<32x128xf32>
    %427 = arith.addf %425, %426 : vector<32x128xf32>
    %c0_181 = arith.constant 0 : index
    %c0_182 = arith.constant 0 : index
    %428 = vector.load %arg24[%c0_181, %c0_182] : memref<32x32xf32, #tpu.memory_space<vmem>>, vector<32x32xf32>
    %c0_183 = arith.constant 0 : index
    %c0_184 = arith.constant 0 : index
    %429 = vector.load %arg25[%c0_183, %c0_184] : memref<32x10xf32, #tpu.memory_space<vmem>>, vector<32x10xf32>
    %430 = arith.truncf %427 : vector<32x128xf32> to vector<32x128xbf16>
    %c0_185 = arith.constant 0 : index
    %c0_186 = arith.constant 0 : index
    %c0_187 = arith.constant 0 : index
    %431 = vector.load %arg26[%c0_185, %c0_186, %c0_187] : memref<2x128x384xbf16, #tpu.memory_space<vmem>>, vector<1x128x384xbf16>
    %432 = vector.shape_cast %431 : vector<1x128x384xbf16> to vector<128x384xbf16>
    %cst_188 = arith.constant dense<0.000000e+00> : vector<32x384xf32>
    %433 = tpu.matmul %430, %432, %cst_188 {dimension_numbers = #tpu.dot_dimension_numbers<[1], [0], [0], [1], [0, 0, 1, 1], [], []>} : vector<32x128xbf16>, vector<128x384xbf16>, vector<32x384xf32> -> vector<32x384xf32>
    %c0_189 = arith.constant 0 : index
    %c0_190 = arith.constant 0 : index
    %c0_191 = arith.constant 0 : index
    %434 = vector.load %arg27[%c0_189, %c0_190, %c0_191] : memref<2x1x384xf32, #tpu.memory_space<vmem>>, vector<1x1x384xf32>
    %435 = vector.shape_cast %434 : vector<1x1x384xf32> to vector<1x384xf32>
    %436 = vector.broadcast %435 : vector<1x384xf32> to vector<32x384xf32>
    %437 = arith.addf %433, %436 : vector<32x384xf32>
    %438 = arith.truncf %437 : vector<32x384xf32> to vector<32x384xbf16>
    %439 = vector.extract_strided_slice %438 {offsets = [0, 0], sizes = [32, 128], strides = [1, 1]} : vector<32x384xbf16> to vector<32x128xbf16>
    %440 = vector.extract_strided_slice %438 {offsets = [0, 128], sizes = [32, 128], strides = [1, 1]} : vector<32x384xbf16> to vector<32x128xbf16>
    %441 = vector.extract_strided_slice %438 {offsets = [0, 256], sizes = [32, 128], strides = [1, 1]} : vector<32x384xbf16> to vector<32x128xbf16>
    %c0_192 = arith.constant 0 : index
    %c0_193 = arith.constant 0 : index
    %c0_194 = arith.constant 0 : index
    %442 = vector.load %arg28[%c0_192, %c0_193, %c0_194] : memref<2x128x128xbf16, #tpu.memory_space<vmem>>, vector<1x128x128xbf16>
    %443 = vector.shape_cast %442 : vector<1x128x128xbf16> to vector<128x128xbf16>
    %c0_195 = arith.constant 0 : index
    %c0_196 = arith.constant 0 : index
    %c0_197 = arith.constant 0 : index
    %444 = vector.load %arg29[%c0_195, %c0_196, %c0_197] : memref<2x1x128xf32, #tpu.memory_space<vmem>>, vector<1x1x128xf32>
    %445 = vector.shape_cast %444 : vector<1x1x128xf32> to vector<1x128xf32>
    %446 = vector.extract_strided_slice %439 {offsets = [0, 0], sizes = [32, 32], strides = [1, 1]} : vector<32x128xbf16> to vector<32x32xbf16>
    %447 = vector.extract_strided_slice %440 {offsets = [0, 0], sizes = [32, 32], strides = [1, 1]} : vector<32x128xbf16> to vector<32x32xbf16>
    %448 = vector.extract_strided_slice %441 {offsets = [0, 0], sizes = [32, 32], strides = [1, 1]} : vector<32x128xbf16> to vector<32x32xbf16>
    %cst_198 = arith.constant dense<0.000000e+00> : vector<32x32xf32>
    %449 = tpu.matmul %446, %447, %cst_198 {dimension_numbers = #tpu.dot_dimension_numbers<[1], [1], [0], [0], [0, 0, 1, 0], [], []>} : vector<32x32xbf16>, vector<32x32xbf16>, vector<32x32xf32> -> vector<32x32xf32>
    %cst_199 = arith.constant 0.176776692 : f32
    %450 = vector.broadcast %cst_199 : f32 to vector<32x32xf32>
    %451 = arith.mulf %449, %450 : vector<32x32xf32>
    %452 = arith.addf %451, %428 : vector<32x32xf32>
    %cst_200 = arith.constant dense<0xFF800000> : vector<32xf32>
    %453 = vector.multi_reduction <maximumf>, %452, %cst_200 [1] : vector<32x32xf32> to vector<32xf32>
    %454 = vector.shape_cast %453 : vector<32xf32> to vector<32x1xf32>
    %455 = vector.broadcast %454 : vector<32x1xf32> to vector<32x32xf32>
    %456 = arith.subf %452, %455 : vector<32x32xf32>
    %457 = math.exp %456 : vector<32x32xf32>
    %cst_201 = arith.constant dense<0.000000e+00> : vector<32xf32>
    %458 = vector.multi_reduction <add>, %457, %cst_201 [1] : vector<32x32xf32> to vector<32xf32>
    %459 = vector.shape_cast %458 : vector<32xf32> to vector<32x1xf32>
    %460 = tpu.reciprocal %459 {approx = true} : vector<32x1xf32> -> vector<32x1xf32>
    %461 = vector.broadcast %460 : vector<32x1xf32> to vector<32x32xf32>
    %462 = arith.mulf %457, %461 : vector<32x32xf32>
    %463 = arith.truncf %462 : vector<32x32xf32> to vector<32x32xbf16>
    %cst_202 = arith.constant dense<0.000000e+00> : vector<32x32xf32>
    %464 = tpu.matmul %463, %448, %cst_202 {dimension_numbers = #tpu.dot_dimension_numbers<[1], [0], [0], [1], [0, 0, 1, 1], [], []>} : vector<32x32xbf16>, vector<32x32xbf16>, vector<32x32xf32> -> vector<32x32xf32>
    %465 = vector.extract_strided_slice %439 {offsets = [0, 32], sizes = [32, 32], strides = [1, 1]} : vector<32x128xbf16> to vector<32x32xbf16>
    %466 = vector.extract_strided_slice %440 {offsets = [0, 32], sizes = [32, 32], strides = [1, 1]} : vector<32x128xbf16> to vector<32x32xbf16>
    %467 = vector.extract_strided_slice %441 {offsets = [0, 32], sizes = [32, 32], strides = [1, 1]} : vector<32x128xbf16> to vector<32x32xbf16>
    %cst_203 = arith.constant dense<0.000000e+00> : vector<32x32xf32>
    %468 = tpu.matmul %465, %466, %cst_203 {dimension_numbers = #tpu.dot_dimension_numbers<[1], [1], [0], [0], [0, 0, 1, 0], [], []>} : vector<32x32xbf16>, vector<32x32xbf16>, vector<32x32xf32> -> vector<32x32xf32>
    %cst_204 = arith.constant 0.176776692 : f32
    %469 = vector.broadcast %cst_204 : f32 to vector<32x32xf32>
    %470 = arith.mulf %468, %469 : vector<32x32xf32>
    %471 = arith.addf %470, %428 : vector<32x32xf32>
    %cst_205 = arith.constant dense<0xFF800000> : vector<32xf32>
    %472 = vector.multi_reduction <maximumf>, %471, %cst_205 [1] : vector<32x32xf32> to vector<32xf32>
    %473 = vector.shape_cast %472 : vector<32xf32> to vector<32x1xf32>
    %474 = vector.broadcast %473 : vector<32x1xf32> to vector<32x32xf32>
    %475 = arith.subf %471, %474 : vector<32x32xf32>
    %476 = math.exp %475 : vector<32x32xf32>
    %cst_206 = arith.constant dense<0.000000e+00> : vector<32xf32>
    %477 = vector.multi_reduction <add>, %476, %cst_206 [1] : vector<32x32xf32> to vector<32xf32>
    %478 = vector.shape_cast %477 : vector<32xf32> to vector<32x1xf32>
    %479 = tpu.reciprocal %478 {approx = true} : vector<32x1xf32> -> vector<32x1xf32>
    %480 = vector.broadcast %479 : vector<32x1xf32> to vector<32x32xf32>
    %481 = arith.mulf %476, %480 : vector<32x32xf32>
    %482 = arith.truncf %481 : vector<32x32xf32> to vector<32x32xbf16>
    %cst_207 = arith.constant dense<0.000000e+00> : vector<32x32xf32>
    %483 = tpu.matmul %482, %467, %cst_207 {dimension_numbers = #tpu.dot_dimension_numbers<[1], [0], [0], [1], [0, 0, 1, 1], [], []>} : vector<32x32xbf16>, vector<32x32xbf16>, vector<32x32xf32> -> vector<32x32xf32>
    %484 = vector.extract_strided_slice %439 {offsets = [0, 64], sizes = [32, 32], strides = [1, 1]} : vector<32x128xbf16> to vector<32x32xbf16>
    %485 = vector.extract_strided_slice %440 {offsets = [0, 64], sizes = [32, 32], strides = [1, 1]} : vector<32x128xbf16> to vector<32x32xbf16>
    %486 = vector.extract_strided_slice %441 {offsets = [0, 64], sizes = [32, 32], strides = [1, 1]} : vector<32x128xbf16> to vector<32x32xbf16>
    %cst_208 = arith.constant dense<0.000000e+00> : vector<32x32xf32>
    %487 = tpu.matmul %484, %485, %cst_208 {dimension_numbers = #tpu.dot_dimension_numbers<[1], [1], [0], [0], [0, 0, 1, 0], [], []>} : vector<32x32xbf16>, vector<32x32xbf16>, vector<32x32xf32> -> vector<32x32xf32>
    %cst_209 = arith.constant 0.176776692 : f32
    %488 = vector.broadcast %cst_209 : f32 to vector<32x32xf32>
    %489 = arith.mulf %487, %488 : vector<32x32xf32>
    %490 = arith.addf %489, %428 : vector<32x32xf32>
    %cst_210 = arith.constant dense<0xFF800000> : vector<32xf32>
    %491 = vector.multi_reduction <maximumf>, %490, %cst_210 [1] : vector<32x32xf32> to vector<32xf32>
    %492 = vector.shape_cast %491 : vector<32xf32> to vector<32x1xf32>
    %493 = vector.broadcast %492 : vector<32x1xf32> to vector<32x32xf32>
    %494 = arith.subf %490, %493 : vector<32x32xf32>
    %495 = math.exp %494 : vector<32x32xf32>
    %cst_211 = arith.constant dense<0.000000e+00> : vector<32xf32>
    %496 = vector.multi_reduction <add>, %495, %cst_211 [1] : vector<32x32xf32> to vector<32xf32>
    %497 = vector.shape_cast %496 : vector<32xf32> to vector<32x1xf32>
    %498 = tpu.reciprocal %497 {approx = true} : vector<32x1xf32> -> vector<32x1xf32>
    %499 = vector.broadcast %498 : vector<32x1xf32> to vector<32x32xf32>
    %500 = arith.mulf %495, %499 : vector<32x32xf32>
    %501 = arith.truncf %500 : vector<32x32xf32> to vector<32x32xbf16>
    %cst_212 = arith.constant dense<0.000000e+00> : vector<32x32xf32>
    %502 = tpu.matmul %501, %486, %cst_212 {dimension_numbers = #tpu.dot_dimension_numbers<[1], [0], [0], [1], [0, 0, 1, 1], [], []>} : vector<32x32xbf16>, vector<32x32xbf16>, vector<32x32xf32> -> vector<32x32xf32>
    %503 = vector.extract_strided_slice %439 {offsets = [0, 96], sizes = [32, 32], strides = [1, 1]} : vector<32x128xbf16> to vector<32x32xbf16>
    %504 = vector.extract_strided_slice %440 {offsets = [0, 96], sizes = [32, 32], strides = [1, 1]} : vector<32x128xbf16> to vector<32x32xbf16>
    %505 = vector.extract_strided_slice %441 {offsets = [0, 96], sizes = [32, 32], strides = [1, 1]} : vector<32x128xbf16> to vector<32x32xbf16>
    %cst_213 = arith.constant dense<0.000000e+00> : vector<32x32xf32>
    %506 = tpu.matmul %503, %504, %cst_213 {dimension_numbers = #tpu.dot_dimension_numbers<[1], [1], [0], [0], [0, 0, 1, 0], [], []>} : vector<32x32xbf16>, vector<32x32xbf16>, vector<32x32xf32> -> vector<32x32xf32>
    %cst_214 = arith.constant 0.176776692 : f32
    %507 = vector.broadcast %cst_214 : f32 to vector<32x32xf32>
    %508 = arith.mulf %506, %507 : vector<32x32xf32>
    %509 = arith.addf %508, %428 : vector<32x32xf32>
    %cst_215 = arith.constant dense<0xFF800000> : vector<32xf32>
    %510 = vector.multi_reduction <maximumf>, %509, %cst_215 [1] : vector<32x32xf32> to vector<32xf32>
    %511 = vector.shape_cast %510 : vector<32xf32> to vector<32x1xf32>
    %512 = vector.broadcast %511 : vector<32x1xf32> to vector<32x32xf32>
    %513 = arith.subf %509, %512 : vector<32x32xf32>
    %514 = math.exp %513 : vector<32x32xf32>
    %cst_216 = arith.constant dense<0.000000e+00> : vector<32xf32>
    %515 = vector.multi_reduction <add>, %514, %cst_216 [1] : vector<32x32xf32> to vector<32xf32>
    %516 = vector.shape_cast %515 : vector<32xf32> to vector<32x1xf32>
    %517 = tpu.reciprocal %516 {approx = true} : vector<32x1xf32> -> vector<32x1xf32>
    %518 = vector.broadcast %517 : vector<32x1xf32> to vector<32x32xf32>
    %519 = arith.mulf %514, %518 : vector<32x32xf32>
    %520 = arith.truncf %519 : vector<32x32xf32> to vector<32x32xbf16>
    %cst_217 = arith.constant dense<0.000000e+00> : vector<32x32xf32>
    %521 = tpu.matmul %520, %505, %cst_217 {dimension_numbers = #tpu.dot_dimension_numbers<[1], [0], [0], [1], [0, 0, 1, 1], [], []>} : vector<32x32xbf16>, vector<32x32xbf16>, vector<32x32xf32> -> vector<32x32xf32>
    %522 = tpu.concatenate %464, %483, %502, %521 in 1 : vector<32x32xf32>, vector<32x32xf32>, vector<32x32xf32>, vector<32x32xf32> -> vector<32x128xf32>
    %523 = arith.truncf %522 : vector<32x128xf32> to vector<32x128xbf16>
    %cst_218 = arith.constant dense<0.000000e+00> : vector<32x128xf32>
    %524 = tpu.matmul %523, %443, %cst_218 {dimension_numbers = #tpu.dot_dimension_numbers<[1], [0], [0], [1], [0, 0, 1, 1], [], []>} : vector<32x128xbf16>, vector<128x128xbf16>, vector<32x128xf32> -> vector<32x128xf32>
    %525 = vector.broadcast %445 : vector<1x128xf32> to vector<32x128xf32>
    %526 = arith.addf %524, %525 : vector<32x128xf32>
    %527 = arith.addf %427, %526 : vector<32x128xf32>
    %c0_219 = arith.constant 0 : index
    %c0_220 = arith.constant 0 : index
    %c0_221 = arith.constant 0 : index
    %528 = vector.load %arg30[%c0_219, %c0_220, %c0_221] : memref<2x1x128xf32, #tpu.memory_space<vmem>>, vector<1x1x128xf32>
    %529 = vector.shape_cast %528 : vector<1x1x128xf32> to vector<1x128xf32>
    %c0_222 = arith.constant 0 : index
    %c0_223 = arith.constant 0 : index
    %c0_224 = arith.constant 0 : index
    %530 = vector.load %arg31[%c0_222, %c0_223, %c0_224] : memref<2x1x128xf32, #tpu.memory_space<vmem>>, vector<1x1x128xf32>
    %531 = vector.shape_cast %530 : vector<1x1x128xf32> to vector<1x128xf32>
    %cst_225 = arith.constant dense<0.000000e+00> : vector<32xf32>
    %532 = vector.multi_reduction <add>, %527, %cst_225 [1] : vector<32x128xf32> to vector<32xf32>
    %533 = vector.shape_cast %532 : vector<32xf32> to vector<32x1xf32>
    %cst_226 = arith.constant 1.280000e+02 : f32
    %534 = vector.broadcast %cst_226 : f32 to vector<32x1xf32>
    %535 = arith.divf %533, %534 : vector<32x1xf32>
    %536 = vector.broadcast %535 : vector<32x1xf32> to vector<32x128xf32>
    %537 = arith.subf %527, %536 : vector<32x128xf32>
    %538 = arith.mulf %537, %537 : vector<32x128xf32>
    %cst_227 = arith.constant dense<0.000000e+00> : vector<32xf32>
    %539 = vector.multi_reduction <add>, %538, %cst_227 [1] : vector<32x128xf32> to vector<32xf32>
    %540 = vector.shape_cast %539 : vector<32xf32> to vector<32x1xf32>
    %cst_228 = arith.constant 1.280000e+02 : f32
    %541 = vector.broadcast %cst_228 : f32 to vector<32x1xf32>
    %542 = arith.divf %540, %541 : vector<32x1xf32>
    %543 = vector.broadcast %535 : vector<32x1xf32> to vector<32x128xf32>
    %544 = arith.subf %527, %543 : vector<32x128xf32>
    %cst_229 = arith.constant 9.99999996E-13 : f32
    %545 = vector.broadcast %cst_229 : f32 to vector<32x1xf32>
    %546 = arith.addf %542, %545 : vector<32x1xf32>
    %547 = math.rsqrt %546 : vector<32x1xf32>
    %548 = vector.broadcast %547 : vector<32x1xf32> to vector<32x128xf32>
    %549 = arith.mulf %544, %548 : vector<32x128xf32>
    %550 = vector.broadcast %529 : vector<1x128xf32> to vector<32x128xf32>
    %551 = arith.mulf %549, %550 : vector<32x128xf32>
    %552 = vector.broadcast %531 : vector<1x128xf32> to vector<32x128xf32>
    %553 = arith.addf %551, %552 : vector<32x128xf32>
    %554 = arith.truncf %553 : vector<32x128xf32> to vector<32x128xbf16>
    %c0_230 = arith.constant 0 : index
    %c0_231 = arith.constant 0 : index
    %c0_232 = arith.constant 0 : index
    %555 = vector.load %arg32[%c0_230, %c0_231, %c0_232] : memref<2x128x128xbf16, #tpu.memory_space<vmem>>, vector<1x128x128xbf16>
    %556 = vector.shape_cast %555 : vector<1x128x128xbf16> to vector<128x128xbf16>
    %cst_233 = arith.constant dense<0.000000e+00> : vector<32x128xf32>
    %557 = tpu.matmul %554, %556, %cst_233 {dimension_numbers = #tpu.dot_dimension_numbers<[1], [0], [0], [1], [0, 0, 1, 1], [], []>} : vector<32x128xbf16>, vector<128x128xbf16>, vector<32x128xf32> -> vector<32x128xf32>
    %c0_234 = arith.constant 0 : index
    %c0_235 = arith.constant 0 : index
    %c0_236 = arith.constant 0 : index
    %558 = vector.load %arg33[%c0_234, %c0_235, %c0_236] : memref<2x1x128xf32, #tpu.memory_space<vmem>>, vector<1x1x128xf32>
    %559 = vector.shape_cast %558 : vector<1x1x128xf32> to vector<1x128xf32>
    %560 = vector.broadcast %559 : vector<1x128xf32> to vector<32x128xf32>
    %561 = arith.addf %557, %560 : vector<32x128xf32>
    %c0_237 = arith.constant 0 : index
    %c0_238 = arith.constant 0 : index
    %c0_239 = arith.constant 0 : index
    %562 = vector.load %arg34[%c0_237, %c0_238, %c0_239] : memref<2x128x256xbf16, #tpu.memory_space<vmem>>, vector<1x128x256xbf16>
    %563 = vector.shape_cast %562 : vector<1x128x256xbf16> to vector<128x256xbf16>
    %cst_240 = arith.constant dense<0.000000e+00> : vector<10x256xf32>
    %564 = tpu.matmul %391, %563, %cst_240 {dimension_numbers = #tpu.dot_dimension_numbers<[1], [0], [0], [1], [0, 0, 1, 1], [], []>} : vector<10x128xbf16>, vector<128x256xbf16>, vector<10x256xf32> -> vector<10x256xf32>
    %c0_241 = arith.constant 0 : index
    %c0_242 = arith.constant 0 : index
    %c0_243 = arith.constant 0 : index
    %565 = vector.load %arg35[%c0_241, %c0_242, %c0_243] : memref<2x1x256xf32, #tpu.memory_space<vmem>>, vector<1x1x256xf32>
    %566 = vector.shape_cast %565 : vector<1x1x256xf32> to vector<1x256xf32>
    %567 = vector.broadcast %566 : vector<1x256xf32> to vector<10x256xf32>
    %568 = arith.addf %564, %567 : vector<10x256xf32>
    %569 = arith.truncf %561 : vector<32x128xf32> to vector<32x128xbf16>
    %570 = arith.truncf %568 : vector<10x256xf32> to vector<10x256xbf16>
    %571 = vector.extract_strided_slice %570 {offsets = [0, 0], sizes = [10, 128], strides = [1, 1]} : vector<10x256xbf16> to vector<10x128xbf16>
    %572 = vector.extract_strided_slice %570 {offsets = [0, 128], sizes = [10, 128], strides = [1, 1]} : vector<10x256xbf16> to vector<10x128xbf16>
    %c0_244 = arith.constant 0 : index
    %c0_245 = arith.constant 0 : index
    %c0_246 = arith.constant 0 : index
    %573 = vector.load %arg36[%c0_244, %c0_245, %c0_246] : memref<2x128x128xbf16, #tpu.memory_space<vmem>>, vector<1x128x128xbf16>
    %574 = vector.shape_cast %573 : vector<1x128x128xbf16> to vector<128x128xbf16>
    %c0_247 = arith.constant 0 : index
    %c0_248 = arith.constant 0 : index
    %c0_249 = arith.constant 0 : index
    %575 = vector.load %arg37[%c0_247, %c0_248, %c0_249] : memref<2x1x128xf32, #tpu.memory_space<vmem>>, vector<1x1x128xf32>
    %576 = vector.shape_cast %575 : vector<1x1x128xf32> to vector<1x128xf32>
    %577 = vector.extract_strided_slice %569 {offsets = [0, 0], sizes = [32, 32], strides = [1, 1]} : vector<32x128xbf16> to vector<32x32xbf16>
    %578 = vector.extract_strided_slice %571 {offsets = [0, 0], sizes = [10, 32], strides = [1, 1]} : vector<10x128xbf16> to vector<10x32xbf16>
    %579 = vector.extract_strided_slice %572 {offsets = [0, 0], sizes = [10, 32], strides = [1, 1]} : vector<10x128xbf16> to vector<10x32xbf16>
    %cst_250 = arith.constant dense<0.000000e+00> : vector<32x10xf32>
    %580 = tpu.matmul %577, %578, %cst_250 {dimension_numbers = #tpu.dot_dimension_numbers<[1], [1], [0], [0], [0, 0, 1, 0], [], []>} : vector<32x32xbf16>, vector<10x32xbf16>, vector<32x10xf32> -> vector<32x10xf32>
    %cst_251 = arith.constant 0.176776692 : f32
    %581 = vector.broadcast %cst_251 : f32 to vector<32x10xf32>
    %582 = arith.mulf %580, %581 : vector<32x10xf32>
    %583 = arith.addf %582, %429 : vector<32x10xf32>
    %cst_252 = arith.constant dense<0xFF800000> : vector<32xf32>
    %584 = vector.multi_reduction <maximumf>, %583, %cst_252 [1] : vector<32x10xf32> to vector<32xf32>
    %585 = vector.shape_cast %584 : vector<32xf32> to vector<32x1xf32>
    %586 = vector.broadcast %585 : vector<32x1xf32> to vector<32x10xf32>
    %587 = arith.subf %583, %586 : vector<32x10xf32>
    %588 = math.exp %587 : vector<32x10xf32>
    %cst_253 = arith.constant dense<0.000000e+00> : vector<32xf32>
    %589 = vector.multi_reduction <add>, %588, %cst_253 [1] : vector<32x10xf32> to vector<32xf32>
    %590 = vector.shape_cast %589 : vector<32xf32> to vector<32x1xf32>
    %591 = tpu.reciprocal %590 {approx = true} : vector<32x1xf32> -> vector<32x1xf32>
    %592 = vector.broadcast %591 : vector<32x1xf32> to vector<32x10xf32>
    %593 = arith.mulf %588, %592 : vector<32x10xf32>
    %594 = arith.truncf %593 : vector<32x10xf32> to vector<32x10xbf16>
    %cst_254 = arith.constant dense<0.000000e+00> : vector<32x32xf32>
    %595 = tpu.matmul %594, %579, %cst_254 {dimension_numbers = #tpu.dot_dimension_numbers<[1], [0], [0], [1], [0, 0, 1, 1], [], []>} : vector<32x10xbf16>, vector<10x32xbf16>, vector<32x32xf32> -> vector<32x32xf32>
    %596 = vector.extract_strided_slice %569 {offsets = [0, 32], sizes = [32, 32], strides = [1, 1]} : vector<32x128xbf16> to vector<32x32xbf16>
    %597 = vector.extract_strided_slice %571 {offsets = [0, 32], sizes = [10, 32], strides = [1, 1]} : vector<10x128xbf16> to vector<10x32xbf16>
    %598 = vector.extract_strided_slice %572 {offsets = [0, 32], sizes = [10, 32], strides = [1, 1]} : vector<10x128xbf16> to vector<10x32xbf16>
    %cst_255 = arith.constant dense<0.000000e+00> : vector<32x10xf32>
    %599 = tpu.matmul %596, %597, %cst_255 {dimension_numbers = #tpu.dot_dimension_numbers<[1], [1], [0], [0], [0, 0, 1, 0], [], []>} : vector<32x32xbf16>, vector<10x32xbf16>, vector<32x10xf32> -> vector<32x10xf32>
    %cst_256 = arith.constant 0.176776692 : f32
    %600 = vector.broadcast %cst_256 : f32 to vector<32x10xf32>
    %601 = arith.mulf %599, %600 : vector<32x10xf32>
    %602 = arith.addf %601, %429 : vector<32x10xf32>
    %cst_257 = arith.constant dense<0xFF800000> : vector<32xf32>
    %603 = vector.multi_reduction <maximumf>, %602, %cst_257 [1] : vector<32x10xf32> to vector<32xf32>
    %604 = vector.shape_cast %603 : vector<32xf32> to vector<32x1xf32>
    %605 = vector.broadcast %604 : vector<32x1xf32> to vector<32x10xf32>
    %606 = arith.subf %602, %605 : vector<32x10xf32>
    %607 = math.exp %606 : vector<32x10xf32>
    %cst_258 = arith.constant dense<0.000000e+00> : vector<32xf32>
    %608 = vector.multi_reduction <add>, %607, %cst_258 [1] : vector<32x10xf32> to vector<32xf32>
    %609 = vector.shape_cast %608 : vector<32xf32> to vector<32x1xf32>
    %610 = tpu.reciprocal %609 {approx = true} : vector<32x1xf32> -> vector<32x1xf32>
    %611 = vector.broadcast %610 : vector<32x1xf32> to vector<32x10xf32>
    %612 = arith.mulf %607, %611 : vector<32x10xf32>
    %613 = arith.truncf %612 : vector<32x10xf32> to vector<32x10xbf16>
    %cst_259 = arith.constant dense<0.000000e+00> : vector<32x32xf32>
    %614 = tpu.matmul %613, %598, %cst_259 {dimension_numbers = #tpu.dot_dimension_numbers<[1], [0], [0], [1], [0, 0, 1, 1], [], []>} : vector<32x10xbf16>, vector<10x32xbf16>, vector<32x32xf32> -> vector<32x32xf32>
    %615 = vector.extract_strided_slice %569 {offsets = [0, 64], sizes = [32, 32], strides = [1, 1]} : vector<32x128xbf16> to vector<32x32xbf16>
    %616 = vector.extract_strided_slice %571 {offsets = [0, 64], sizes = [10, 32], strides = [1, 1]} : vector<10x128xbf16> to vector<10x32xbf16>
    %617 = vector.extract_strided_slice %572 {offsets = [0, 64], sizes = [10, 32], strides = [1, 1]} : vector<10x128xbf16> to vector<10x32xbf16>
    %cst_260 = arith.constant dense<0.000000e+00> : vector<32x10xf32>
    %618 = tpu.matmul %615, %616, %cst_260 {dimension_numbers = #tpu.dot_dimension_numbers<[1], [1], [0], [0], [0, 0, 1, 0], [], []>} : vector<32x32xbf16>, vector<10x32xbf16>, vector<32x10xf32> -> vector<32x10xf32>
    %cst_261 = arith.constant 0.176776692 : f32
    %619 = vector.broadcast %cst_261 : f32 to vector<32x10xf32>
    %620 = arith.mulf %618, %619 : vector<32x10xf32>
    %621 = arith.addf %620, %429 : vector<32x10xf32>
    %cst_262 = arith.constant dense<0xFF800000> : vector<32xf32>
    %622 = vector.multi_reduction <maximumf>, %621, %cst_262 [1] : vector<32x10xf32> to vector<32xf32>
    %623 = vector.shape_cast %622 : vector<32xf32> to vector<32x1xf32>
    %624 = vector.broadcast %623 : vector<32x1xf32> to vector<32x10xf32>
    %625 = arith.subf %621, %624 : vector<32x10xf32>
    %626 = math.exp %625 : vector<32x10xf32>
    %cst_263 = arith.constant dense<0.000000e+00> : vector<32xf32>
    %627 = vector.multi_reduction <add>, %626, %cst_263 [1] : vector<32x10xf32> to vector<32xf32>
    %628 = vector.shape_cast %627 : vector<32xf32> to vector<32x1xf32>
    %629 = tpu.reciprocal %628 {approx = true} : vector<32x1xf32> -> vector<32x1xf32>
    %630 = vector.broadcast %629 : vector<32x1xf32> to vector<32x10xf32>
    %631 = arith.mulf %626, %630 : vector<32x10xf32>
    %632 = arith.truncf %631 : vector<32x10xf32> to vector<32x10xbf16>
    %cst_264 = arith.constant dense<0.000000e+00> : vector<32x32xf32>
    %633 = tpu.matmul %632, %617, %cst_264 {dimension_numbers = #tpu.dot_dimension_numbers<[1], [0], [0], [1], [0, 0, 1, 1], [], []>} : vector<32x10xbf16>, vector<10x32xbf16>, vector<32x32xf32> -> vector<32x32xf32>
    %634 = vector.extract_strided_slice %569 {offsets = [0, 96], sizes = [32, 32], strides = [1, 1]} : vector<32x128xbf16> to vector<32x32xbf16>
    %635 = vector.extract_strided_slice %571 {offsets = [0, 96], sizes = [10, 32], strides = [1, 1]} : vector<10x128xbf16> to vector<10x32xbf16>
    %636 = vector.extract_strided_slice %572 {offsets = [0, 96], sizes = [10, 32], strides = [1, 1]} : vector<10x128xbf16> to vector<10x32xbf16>
    %cst_265 = arith.constant dense<0.000000e+00> : vector<32x10xf32>
    %637 = tpu.matmul %634, %635, %cst_265 {dimension_numbers = #tpu.dot_dimension_numbers<[1], [1], [0], [0], [0, 0, 1, 0], [], []>} : vector<32x32xbf16>, vector<10x32xbf16>, vector<32x10xf32> -> vector<32x10xf32>
    %cst_266 = arith.constant 0.176776692 : f32
    %638 = vector.broadcast %cst_266 : f32 to vector<32x10xf32>
    %639 = arith.mulf %637, %638 : vector<32x10xf32>
    %640 = arith.addf %639, %429 : vector<32x10xf32>
    %cst_267 = arith.constant dense<0xFF800000> : vector<32xf32>
    %641 = vector.multi_reduction <maximumf>, %640, %cst_267 [1] : vector<32x10xf32> to vector<32xf32>
    %642 = vector.shape_cast %641 : vector<32xf32> to vector<32x1xf32>
    %643 = vector.broadcast %642 : vector<32x1xf32> to vector<32x10xf32>
    %644 = arith.subf %640, %643 : vector<32x10xf32>
    %645 = math.exp %644 : vector<32x10xf32>
    %cst_268 = arith.constant dense<0.000000e+00> : vector<32xf32>
    %646 = vector.multi_reduction <add>, %645, %cst_268 [1] : vector<32x10xf32> to vector<32xf32>
    %647 = vector.shape_cast %646 : vector<32xf32> to vector<32x1xf32>
    %648 = tpu.reciprocal %647 {approx = true} : vector<32x1xf32> -> vector<32x1xf32>
    %649 = vector.broadcast %648 : vector<32x1xf32> to vector<32x10xf32>
    %650 = arith.mulf %645, %649 : vector<32x10xf32>
    %651 = arith.truncf %650 : vector<32x10xf32> to vector<32x10xbf16>
    %cst_269 = arith.constant dense<0.000000e+00> : vector<32x32xf32>
    %652 = tpu.matmul %651, %636, %cst_269 {dimension_numbers = #tpu.dot_dimension_numbers<[1], [0], [0], [1], [0, 0, 1, 1], [], []>} : vector<32x10xbf16>, vector<10x32xbf16>, vector<32x32xf32> -> vector<32x32xf32>
    %653 = tpu.concatenate %595, %614, %633, %652 in 1 : vector<32x32xf32>, vector<32x32xf32>, vector<32x32xf32>, vector<32x32xf32> -> vector<32x128xf32>
    %654 = arith.truncf %653 : vector<32x128xf32> to vector<32x128xbf16>
    %cst_270 = arith.constant dense<0.000000e+00> : vector<32x128xf32>
    %655 = tpu.matmul %654, %574, %cst_270 {dimension_numbers = #tpu.dot_dimension_numbers<[1], [0], [0], [1], [0, 0, 1, 1], [], []>} : vector<32x128xbf16>, vector<128x128xbf16>, vector<32x128xf32> -> vector<32x128xf32>
    %656 = vector.broadcast %576 : vector<1x128xf32> to vector<32x128xf32>
    %657 = arith.addf %655, %656 : vector<32x128xf32>
    %658 = arith.addf %553, %657 : vector<32x128xf32>
    %c0_271 = arith.constant 0 : index
    %c0_272 = arith.constant 0 : index
    %c0_273 = arith.constant 0 : index
    %659 = vector.load %arg38[%c0_271, %c0_272, %c0_273] : memref<2x1x128xf32, #tpu.memory_space<vmem>>, vector<1x1x128xf32>
    %660 = vector.shape_cast %659 : vector<1x1x128xf32> to vector<1x128xf32>
    %c0_274 = arith.constant 0 : index
    %c0_275 = arith.constant 0 : index
    %c0_276 = arith.constant 0 : index
    %661 = vector.load %arg39[%c0_274, %c0_275, %c0_276] : memref<2x1x128xf32, #tpu.memory_space<vmem>>, vector<1x1x128xf32>
    %662 = vector.shape_cast %661 : vector<1x1x128xf32> to vector<1x128xf32>
    %cst_277 = arith.constant dense<0.000000e+00> : vector<32xf32>
    %663 = vector.multi_reduction <add>, %658, %cst_277 [1] : vector<32x128xf32> to vector<32xf32>
    %664 = vector.shape_cast %663 : vector<32xf32> to vector<32x1xf32>
    %cst_278 = arith.constant 1.280000e+02 : f32
    %665 = vector.broadcast %cst_278 : f32 to vector<32x1xf32>
    %666 = arith.divf %664, %665 : vector<32x1xf32>
    %667 = vector.broadcast %666 : vector<32x1xf32> to vector<32x128xf32>
    %668 = arith.subf %658, %667 : vector<32x128xf32>
    %669 = arith.mulf %668, %668 : vector<32x128xf32>
    %cst_279 = arith.constant dense<0.000000e+00> : vector<32xf32>
    %670 = vector.multi_reduction <add>, %669, %cst_279 [1] : vector<32x128xf32> to vector<32xf32>
    %671 = vector.shape_cast %670 : vector<32xf32> to vector<32x1xf32>
    %cst_280 = arith.constant 1.280000e+02 : f32
    %672 = vector.broadcast %cst_280 : f32 to vector<32x1xf32>
    %673 = arith.divf %671, %672 : vector<32x1xf32>
    %674 = vector.broadcast %666 : vector<32x1xf32> to vector<32x128xf32>
    %675 = arith.subf %658, %674 : vector<32x128xf32>
    %cst_281 = arith.constant 9.99999996E-13 : f32
    %676 = vector.broadcast %cst_281 : f32 to vector<32x1xf32>
    %677 = arith.addf %673, %676 : vector<32x1xf32>
    %678 = math.rsqrt %677 : vector<32x1xf32>
    %679 = vector.broadcast %678 : vector<32x1xf32> to vector<32x128xf32>
    %680 = arith.mulf %675, %679 : vector<32x128xf32>
    %681 = vector.broadcast %660 : vector<1x128xf32> to vector<32x128xf32>
    %682 = arith.mulf %680, %681 : vector<32x128xf32>
    %683 = vector.broadcast %662 : vector<1x128xf32> to vector<32x128xf32>
    %684 = arith.addf %682, %683 : vector<32x128xf32>
    %685 = arith.truncf %684 : vector<32x128xf32> to vector<32x128xbf16>
    %c0_282 = arith.constant 0 : index
    %c0_283 = arith.constant 0 : index
    %c0_284 = arith.constant 0 : index
    %686 = vector.load %arg40[%c0_282, %c0_283, %c0_284] : memref<2x128x256xbf16, #tpu.memory_space<vmem>>, vector<1x128x256xbf16>
    %687 = vector.shape_cast %686 : vector<1x128x256xbf16> to vector<128x256xbf16>
    %cst_285 = arith.constant dense<0.000000e+00> : vector<32x256xf32>
    %688 = tpu.matmul %685, %687, %cst_285 {dimension_numbers = #tpu.dot_dimension_numbers<[1], [0], [0], [1], [0, 0, 1, 1], [], []>} : vector<32x128xbf16>, vector<128x256xbf16>, vector<32x256xf32> -> vector<32x256xf32>
    %c0_286 = arith.constant 0 : index
    %c0_287 = arith.constant 0 : index
    %c0_288 = arith.constant 0 : index
    %689 = vector.load %arg41[%c0_286, %c0_287, %c0_288] : memref<2x1x256xf32, #tpu.memory_space<vmem>>, vector<1x1x256xf32>
    %690 = vector.shape_cast %689 : vector<1x1x256xf32> to vector<1x256xf32>
    %691 = vector.broadcast %690 : vector<1x256xf32> to vector<32x256xf32>
    %692 = arith.addf %688, %691 : vector<32x256xf32>
    %693 = arith.mulf %692, %692 : vector<32x256xf32>
    %694 = arith.mulf %692, %693 : vector<32x256xf32>
    %cst_289 = arith.constant 4.471500e-02 : f32
    %695 = vector.broadcast %cst_289 : f32 to vector<32x256xf32>
    %696 = arith.mulf %695, %694 : vector<32x256xf32>
    %697 = arith.addf %692, %696 : vector<32x256xf32>
    %cst_290 = arith.constant 0.797884583 : f32
    %698 = vector.broadcast %cst_290 : f32 to vector<32x256xf32>
    %699 = arith.mulf %698, %697 : vector<32x256xf32>
    %700 = math.tanh %699 : vector<32x256xf32>
    %cst_291 = arith.constant 1.000000e+00 : f32
    %701 = vector.broadcast %cst_291 : f32 to vector<32x256xf32>
    %702 = arith.addf %701, %700 : vector<32x256xf32>
    %cst_292 = arith.constant 5.000000e-01 : f32
    %703 = vector.broadcast %cst_292 : f32 to vector<32x256xf32>
    %704 = arith.mulf %703, %702 : vector<32x256xf32>
    %705 = arith.mulf %692, %704 : vector<32x256xf32>
    %706 = arith.truncf %705 : vector<32x256xf32> to vector<32x256xbf16>
    %c0_293 = arith.constant 0 : index
    %c0_294 = arith.constant 0 : index
    %c0_295 = arith.constant 0 : index
    %707 = vector.load %arg42[%c0_293, %c0_294, %c0_295] : memref<2x256x128xbf16, #tpu.memory_space<vmem>>, vector<1x256x128xbf16>
    %708 = vector.shape_cast %707 : vector<1x256x128xbf16> to vector<256x128xbf16>
    %cst_296 = arith.constant dense<0.000000e+00> : vector<32x128xf32>
    %709 = tpu.matmul %706, %708, %cst_296 {dimension_numbers = #tpu.dot_dimension_numbers<[1], [0], [0], [1], [0, 0, 1, 1], [], []>} : vector<32x256xbf16>, vector<256x128xbf16>, vector<32x128xf32> -> vector<32x128xf32>
    %c0_297 = arith.constant 0 : index
    %c0_298 = arith.constant 0 : index
    %c0_299 = arith.constant 0 : index
    %710 = vector.load %arg43[%c0_297, %c0_298, %c0_299] : memref<2x1x128xf32, #tpu.memory_space<vmem>>, vector<1x1x128xf32>
    %711 = vector.shape_cast %710 : vector<1x1x128xf32> to vector<1x128xf32>
    %712 = vector.broadcast %711 : vector<1x128xf32> to vector<32x128xf32>
    %713 = arith.addf %709, %712 : vector<32x128xf32>
    %714 = arith.addf %684, %713 : vector<32x128xf32>
    %c0_300 = arith.constant 0 : index
    %c0_301 = arith.constant 0 : index
    %c0_302 = arith.constant 0 : index
    %715 = vector.load %arg44[%c0_300, %c0_301, %c0_302] : memref<2x1x128xf32, #tpu.memory_space<vmem>>, vector<1x1x128xf32>
    %716 = vector.shape_cast %715 : vector<1x1x128xf32> to vector<1x128xf32>
    %c0_303 = arith.constant 0 : index
    %c0_304 = arith.constant 0 : index
    %c0_305 = arith.constant 0 : index
    %717 = vector.load %arg45[%c0_303, %c0_304, %c0_305] : memref<2x1x128xf32, #tpu.memory_space<vmem>>, vector<1x1x128xf32>
    %718 = vector.shape_cast %717 : vector<1x1x128xf32> to vector<1x128xf32>
    %cst_306 = arith.constant dense<0.000000e+00> : vector<32xf32>
    %719 = vector.multi_reduction <add>, %714, %cst_306 [1] : vector<32x128xf32> to vector<32xf32>
    %720 = vector.shape_cast %719 : vector<32xf32> to vector<32x1xf32>
    %cst_307 = arith.constant 1.280000e+02 : f32
    %721 = vector.broadcast %cst_307 : f32 to vector<32x1xf32>
    %722 = arith.divf %720, %721 : vector<32x1xf32>
    %723 = vector.broadcast %722 : vector<32x1xf32> to vector<32x128xf32>
    %724 = arith.subf %714, %723 : vector<32x128xf32>
    %725 = arith.mulf %724, %724 : vector<32x128xf32>
    %cst_308 = arith.constant dense<0.000000e+00> : vector<32xf32>
    %726 = vector.multi_reduction <add>, %725, %cst_308 [1] : vector<32x128xf32> to vector<32xf32>
    %727 = vector.shape_cast %726 : vector<32xf32> to vector<32x1xf32>
    %cst_309 = arith.constant 1.280000e+02 : f32
    %728 = vector.broadcast %cst_309 : f32 to vector<32x1xf32>
    %729 = arith.divf %727, %728 : vector<32x1xf32>
    %730 = vector.broadcast %722 : vector<32x1xf32> to vector<32x128xf32>
    %731 = arith.subf %714, %730 : vector<32x128xf32>
    %cst_310 = arith.constant 9.99999996E-13 : f32
    %732 = vector.broadcast %cst_310 : f32 to vector<32x1xf32>
    %733 = arith.addf %729, %732 : vector<32x1xf32>
    %734 = math.rsqrt %733 : vector<32x1xf32>
    %735 = vector.broadcast %734 : vector<32x1xf32> to vector<32x128xf32>
    %736 = arith.mulf %731, %735 : vector<32x128xf32>
    %737 = vector.broadcast %716 : vector<1x128xf32> to vector<32x128xf32>
    %738 = arith.mulf %736, %737 : vector<32x128xf32>
    %739 = vector.broadcast %718 : vector<1x128xf32> to vector<32x128xf32>
    %740 = arith.addf %738, %739 : vector<32x128xf32>
    %741 = arith.truncf %740 : vector<32x128xf32> to vector<32x128xbf16>
    %c1_311 = arith.constant 1 : index
    %c0_312 = arith.constant 0 : index
    %c0_313 = arith.constant 0 : index
    %742 = vector.load %arg26[%c1_311, %c0_312, %c0_313] : memref<2x128x384xbf16, #tpu.memory_space<vmem>>, vector<1x128x384xbf16>
    %743 = vector.shape_cast %742 : vector<1x128x384xbf16> to vector<128x384xbf16>
    %cst_314 = arith.constant dense<0.000000e+00> : vector<32x384xf32>
    %744 = tpu.matmul %741, %743, %cst_314 {dimension_numbers = #tpu.dot_dimension_numbers<[1], [0], [0], [1], [0, 0, 1, 1], [], []>} : vector<32x128xbf16>, vector<128x384xbf16>, vector<32x384xf32> -> vector<32x384xf32>
    %c1_315 = arith.constant 1 : index
    %c0_316 = arith.constant 0 : index
    %c0_317 = arith.constant 0 : index
    %745 = vector.load %arg27[%c1_315, %c0_316, %c0_317] : memref<2x1x384xf32, #tpu.memory_space<vmem>>, vector<1x1x384xf32>
    %746 = vector.shape_cast %745 : vector<1x1x384xf32> to vector<1x384xf32>
    %747 = vector.broadcast %746 : vector<1x384xf32> to vector<32x384xf32>
    %748 = arith.addf %744, %747 : vector<32x384xf32>
    %749 = arith.truncf %748 : vector<32x384xf32> to vector<32x384xbf16>
    %750 = vector.extract_strided_slice %749 {offsets = [0, 0], sizes = [32, 128], strides = [1, 1]} : vector<32x384xbf16> to vector<32x128xbf16>
    %751 = vector.extract_strided_slice %749 {offsets = [0, 128], sizes = [32, 128], strides = [1, 1]} : vector<32x384xbf16> to vector<32x128xbf16>
    %752 = vector.extract_strided_slice %749 {offsets = [0, 256], sizes = [32, 128], strides = [1, 1]} : vector<32x384xbf16> to vector<32x128xbf16>
    %c1_318 = arith.constant 1 : index
    %c0_319 = arith.constant 0 : index
    %c0_320 = arith.constant 0 : index
    %753 = vector.load %arg28[%c1_318, %c0_319, %c0_320] : memref<2x128x128xbf16, #tpu.memory_space<vmem>>, vector<1x128x128xbf16>
    %754 = vector.shape_cast %753 : vector<1x128x128xbf16> to vector<128x128xbf16>
    %c1_321 = arith.constant 1 : index
    %c0_322 = arith.constant 0 : index
    %c0_323 = arith.constant 0 : index
    %755 = vector.load %arg29[%c1_321, %c0_322, %c0_323] : memref<2x1x128xf32, #tpu.memory_space<vmem>>, vector<1x1x128xf32>
    %756 = vector.shape_cast %755 : vector<1x1x128xf32> to vector<1x128xf32>
    %757 = vector.extract_strided_slice %750 {offsets = [0, 0], sizes = [32, 32], strides = [1, 1]} : vector<32x128xbf16> to vector<32x32xbf16>
    %758 = vector.extract_strided_slice %751 {offsets = [0, 0], sizes = [32, 32], strides = [1, 1]} : vector<32x128xbf16> to vector<32x32xbf16>
    %759 = vector.extract_strided_slice %752 {offsets = [0, 0], sizes = [32, 32], strides = [1, 1]} : vector<32x128xbf16> to vector<32x32xbf16>
    %cst_324 = arith.constant dense<0.000000e+00> : vector<32x32xf32>
    %760 = tpu.matmul %757, %758, %cst_324 {dimension_numbers = #tpu.dot_dimension_numbers<[1], [1], [0], [0], [0, 0, 1, 0], [], []>} : vector<32x32xbf16>, vector<32x32xbf16>, vector<32x32xf32> -> vector<32x32xf32>
    %cst_325 = arith.constant 0.176776692 : f32
    %761 = vector.broadcast %cst_325 : f32 to vector<32x32xf32>
    %762 = arith.mulf %760, %761 : vector<32x32xf32>
    %763 = arith.addf %762, %428 : vector<32x32xf32>
    %cst_326 = arith.constant dense<0xFF800000> : vector<32xf32>
    %764 = vector.multi_reduction <maximumf>, %763, %cst_326 [1] : vector<32x32xf32> to vector<32xf32>
    %765 = vector.shape_cast %764 : vector<32xf32> to vector<32x1xf32>
    %766 = vector.broadcast %765 : vector<32x1xf32> to vector<32x32xf32>
    %767 = arith.subf %763, %766 : vector<32x32xf32>
    %768 = math.exp %767 : vector<32x32xf32>
    %cst_327 = arith.constant dense<0.000000e+00> : vector<32xf32>
    %769 = vector.multi_reduction <add>, %768, %cst_327 [1] : vector<32x32xf32> to vector<32xf32>
    %770 = vector.shape_cast %769 : vector<32xf32> to vector<32x1xf32>
    %771 = tpu.reciprocal %770 {approx = true} : vector<32x1xf32> -> vector<32x1xf32>
    %772 = vector.broadcast %771 : vector<32x1xf32> to vector<32x32xf32>
    %773 = arith.mulf %768, %772 : vector<32x32xf32>
    %774 = arith.truncf %773 : vector<32x32xf32> to vector<32x32xbf16>
    %cst_328 = arith.constant dense<0.000000e+00> : vector<32x32xf32>
    %775 = tpu.matmul %774, %759, %cst_328 {dimension_numbers = #tpu.dot_dimension_numbers<[1], [0], [0], [1], [0, 0, 1, 1], [], []>} : vector<32x32xbf16>, vector<32x32xbf16>, vector<32x32xf32> -> vector<32x32xf32>
    %776 = vector.extract_strided_slice %750 {offsets = [0, 32], sizes = [32, 32], strides = [1, 1]} : vector<32x128xbf16> to vector<32x32xbf16>
    %777 = vector.extract_strided_slice %751 {offsets = [0, 32], sizes = [32, 32], strides = [1, 1]} : vector<32x128xbf16> to vector<32x32xbf16>
    %778 = vector.extract_strided_slice %752 {offsets = [0, 32], sizes = [32, 32], strides = [1, 1]} : vector<32x128xbf16> to vector<32x32xbf16>
    %cst_329 = arith.constant dense<0.000000e+00> : vector<32x32xf32>
    %779 = tpu.matmul %776, %777, %cst_329 {dimension_numbers = #tpu.dot_dimension_numbers<[1], [1], [0], [0], [0, 0, 1, 0], [], []>} : vector<32x32xbf16>, vector<32x32xbf16>, vector<32x32xf32> -> vector<32x32xf32>
    %cst_330 = arith.constant 0.176776692 : f32
    %780 = vector.broadcast %cst_330 : f32 to vector<32x32xf32>
    %781 = arith.mulf %779, %780 : vector<32x32xf32>
    %782 = arith.addf %781, %428 : vector<32x32xf32>
    %cst_331 = arith.constant dense<0xFF800000> : vector<32xf32>
    %783 = vector.multi_reduction <maximumf>, %782, %cst_331 [1] : vector<32x32xf32> to vector<32xf32>
    %784 = vector.shape_cast %783 : vector<32xf32> to vector<32x1xf32>
    %785 = vector.broadcast %784 : vector<32x1xf32> to vector<32x32xf32>
    %786 = arith.subf %782, %785 : vector<32x32xf32>
    %787 = math.exp %786 : vector<32x32xf32>
    %cst_332 = arith.constant dense<0.000000e+00> : vector<32xf32>
    %788 = vector.multi_reduction <add>, %787, %cst_332 [1] : vector<32x32xf32> to vector<32xf32>
    %789 = vector.shape_cast %788 : vector<32xf32> to vector<32x1xf32>
    %790 = tpu.reciprocal %789 {approx = true} : vector<32x1xf32> -> vector<32x1xf32>
    %791 = vector.broadcast %790 : vector<32x1xf32> to vector<32x32xf32>
    %792 = arith.mulf %787, %791 : vector<32x32xf32>
    %793 = arith.truncf %792 : vector<32x32xf32> to vector<32x32xbf16>
    %cst_333 = arith.constant dense<0.000000e+00> : vector<32x32xf32>
    %794 = tpu.matmul %793, %778, %cst_333 {dimension_numbers = #tpu.dot_dimension_numbers<[1], [0], [0], [1], [0, 0, 1, 1], [], []>} : vector<32x32xbf16>, vector<32x32xbf16>, vector<32x32xf32> -> vector<32x32xf32>
    %795 = vector.extract_strided_slice %750 {offsets = [0, 64], sizes = [32, 32], strides = [1, 1]} : vector<32x128xbf16> to vector<32x32xbf16>
    %796 = vector.extract_strided_slice %751 {offsets = [0, 64], sizes = [32, 32], strides = [1, 1]} : vector<32x128xbf16> to vector<32x32xbf16>
    %797 = vector.extract_strided_slice %752 {offsets = [0, 64], sizes = [32, 32], strides = [1, 1]} : vector<32x128xbf16> to vector<32x32xbf16>
    %cst_334 = arith.constant dense<0.000000e+00> : vector<32x32xf32>
    %798 = tpu.matmul %795, %796, %cst_334 {dimension_numbers = #tpu.dot_dimension_numbers<[1], [1], [0], [0], [0, 0, 1, 0], [], []>} : vector<32x32xbf16>, vector<32x32xbf16>, vector<32x32xf32> -> vector<32x32xf32>
    %cst_335 = arith.constant 0.176776692 : f32
    %799 = vector.broadcast %cst_335 : f32 to vector<32x32xf32>
    %800 = arith.mulf %798, %799 : vector<32x32xf32>
    %801 = arith.addf %800, %428 : vector<32x32xf32>
    %cst_336 = arith.constant dense<0xFF800000> : vector<32xf32>
    %802 = vector.multi_reduction <maximumf>, %801, %cst_336 [1] : vector<32x32xf32> to vector<32xf32>
    %803 = vector.shape_cast %802 : vector<32xf32> to vector<32x1xf32>
    %804 = vector.broadcast %803 : vector<32x1xf32> to vector<32x32xf32>
    %805 = arith.subf %801, %804 : vector<32x32xf32>
    %806 = math.exp %805 : vector<32x32xf32>
    %cst_337 = arith.constant dense<0.000000e+00> : vector<32xf32>
    %807 = vector.multi_reduction <add>, %806, %cst_337 [1] : vector<32x32xf32> to vector<32xf32>
    %808 = vector.shape_cast %807 : vector<32xf32> to vector<32x1xf32>
    %809 = tpu.reciprocal %808 {approx = true} : vector<32x1xf32> -> vector<32x1xf32>
    %810 = vector.broadcast %809 : vector<32x1xf32> to vector<32x32xf32>
    %811 = arith.mulf %806, %810 : vector<32x32xf32>
    %812 = arith.truncf %811 : vector<32x32xf32> to vector<32x32xbf16>
    %cst_338 = arith.constant dense<0.000000e+00> : vector<32x32xf32>
    %813 = tpu.matmul %812, %797, %cst_338 {dimension_numbers = #tpu.dot_dimension_numbers<[1], [0], [0], [1], [0, 0, 1, 1], [], []>} : vector<32x32xbf16>, vector<32x32xbf16>, vector<32x32xf32> -> vector<32x32xf32>
    %814 = vector.extract_strided_slice %750 {offsets = [0, 96], sizes = [32, 32], strides = [1, 1]} : vector<32x128xbf16> to vector<32x32xbf16>
    %815 = vector.extract_strided_slice %751 {offsets = [0, 96], sizes = [32, 32], strides = [1, 1]} : vector<32x128xbf16> to vector<32x32xbf16>
    %816 = vector.extract_strided_slice %752 {offsets = [0, 96], sizes = [32, 32], strides = [1, 1]} : vector<32x128xbf16> to vector<32x32xbf16>
    %cst_339 = arith.constant dense<0.000000e+00> : vector<32x32xf32>
    %817 = tpu.matmul %814, %815, %cst_339 {dimension_numbers = #tpu.dot_dimension_numbers<[1], [1], [0], [0], [0, 0, 1, 0], [], []>} : vector<32x32xbf16>, vector<32x32xbf16>, vector<32x32xf32> -> vector<32x32xf32>
    %cst_340 = arith.constant 0.176776692 : f32
    %818 = vector.broadcast %cst_340 : f32 to vector<32x32xf32>
    %819 = arith.mulf %817, %818 : vector<32x32xf32>
    %820 = arith.addf %819, %428 : vector<32x32xf32>
    %cst_341 = arith.constant dense<0xFF800000> : vector<32xf32>
    %821 = vector.multi_reduction <maximumf>, %820, %cst_341 [1] : vector<32x32xf32> to vector<32xf32>
    %822 = vector.shape_cast %821 : vector<32xf32> to vector<32x1xf32>
    %823 = vector.broadcast %822 : vector<32x1xf32> to vector<32x32xf32>
    %824 = arith.subf %820, %823 : vector<32x32xf32>
    %825 = math.exp %824 : vector<32x32xf32>
    %cst_342 = arith.constant dense<0.000000e+00> : vector<32xf32>
    %826 = vector.multi_reduction <add>, %825, %cst_342 [1] : vector<32x32xf32> to vector<32xf32>
    %827 = vector.shape_cast %826 : vector<32xf32> to vector<32x1xf32>
    %828 = tpu.reciprocal %827 {approx = true} : vector<32x1xf32> -> vector<32x1xf32>
    %829 = vector.broadcast %828 : vector<32x1xf32> to vector<32x32xf32>
    %830 = arith.mulf %825, %829 : vector<32x32xf32>
    %831 = arith.truncf %830 : vector<32x32xf32> to vector<32x32xbf16>
    %cst_343 = arith.constant dense<0.000000e+00> : vector<32x32xf32>
    %832 = tpu.matmul %831, %816, %cst_343 {dimension_numbers = #tpu.dot_dimension_numbers<[1], [0], [0], [1], [0, 0, 1, 1], [], []>} : vector<32x32xbf16>, vector<32x32xbf16>, vector<32x32xf32> -> vector<32x32xf32>
    %833 = tpu.concatenate %775, %794, %813, %832 in 1 : vector<32x32xf32>, vector<32x32xf32>, vector<32x32xf32>, vector<32x32xf32> -> vector<32x128xf32>
    %834 = arith.truncf %833 : vector<32x128xf32> to vector<32x128xbf16>
    %cst_344 = arith.constant dense<0.000000e+00> : vector<32x128xf32>
    %835 = tpu.matmul %834, %754, %cst_344 {dimension_numbers = #tpu.dot_dimension_numbers<[1], [0], [0], [1], [0, 0, 1, 1], [], []>} : vector<32x128xbf16>, vector<128x128xbf16>, vector<32x128xf32> -> vector<32x128xf32>
    %836 = vector.broadcast %756 : vector<1x128xf32> to vector<32x128xf32>
    %837 = arith.addf %835, %836 : vector<32x128xf32>
    %838 = arith.addf %740, %837 : vector<32x128xf32>
    %c1_345 = arith.constant 1 : index
    %c0_346 = arith.constant 0 : index
    %c0_347 = arith.constant 0 : index
    %839 = vector.load %arg30[%c1_345, %c0_346, %c0_347] : memref<2x1x128xf32, #tpu.memory_space<vmem>>, vector<1x1x128xf32>
    %840 = vector.shape_cast %839 : vector<1x1x128xf32> to vector<1x128xf32>
    %c1_348 = arith.constant 1 : index
    %c0_349 = arith.constant 0 : index
    %c0_350 = arith.constant 0 : index
    %841 = vector.load %arg31[%c1_348, %c0_349, %c0_350] : memref<2x1x128xf32, #tpu.memory_space<vmem>>, vector<1x1x128xf32>
    %842 = vector.shape_cast %841 : vector<1x1x128xf32> to vector<1x128xf32>
    %cst_351 = arith.constant dense<0.000000e+00> : vector<32xf32>
    %843 = vector.multi_reduction <add>, %838, %cst_351 [1] : vector<32x128xf32> to vector<32xf32>
    %844 = vector.shape_cast %843 : vector<32xf32> to vector<32x1xf32>
    %cst_352 = arith.constant 1.280000e+02 : f32
    %845 = vector.broadcast %cst_352 : f32 to vector<32x1xf32>
    %846 = arith.divf %844, %845 : vector<32x1xf32>
    %847 = vector.broadcast %846 : vector<32x1xf32> to vector<32x128xf32>
    %848 = arith.subf %838, %847 : vector<32x128xf32>
    %849 = arith.mulf %848, %848 : vector<32x128xf32>
    %cst_353 = arith.constant dense<0.000000e+00> : vector<32xf32>
    %850 = vector.multi_reduction <add>, %849, %cst_353 [1] : vector<32x128xf32> to vector<32xf32>
    %851 = vector.shape_cast %850 : vector<32xf32> to vector<32x1xf32>
    %cst_354 = arith.constant 1.280000e+02 : f32
    %852 = vector.broadcast %cst_354 : f32 to vector<32x1xf32>
    %853 = arith.divf %851, %852 : vector<32x1xf32>
    %854 = vector.broadcast %846 : vector<32x1xf32> to vector<32x128xf32>
    %855 = arith.subf %838, %854 : vector<32x128xf32>
    %cst_355 = arith.constant 9.99999996E-13 : f32
    %856 = vector.broadcast %cst_355 : f32 to vector<32x1xf32>
    %857 = arith.addf %853, %856 : vector<32x1xf32>
    %858 = math.rsqrt %857 : vector<32x1xf32>
    %859 = vector.broadcast %858 : vector<32x1xf32> to vector<32x128xf32>
    %860 = arith.mulf %855, %859 : vector<32x128xf32>
    %861 = vector.broadcast %840 : vector<1x128xf32> to vector<32x128xf32>
    %862 = arith.mulf %860, %861 : vector<32x128xf32>
    %863 = vector.broadcast %842 : vector<1x128xf32> to vector<32x128xf32>
    %864 = arith.addf %862, %863 : vector<32x128xf32>
    %865 = arith.truncf %864 : vector<32x128xf32> to vector<32x128xbf16>
    %c1_356 = arith.constant 1 : index
    %c0_357 = arith.constant 0 : index
    %c0_358 = arith.constant 0 : index
    %866 = vector.load %arg32[%c1_356, %c0_357, %c0_358] : memref<2x128x128xbf16, #tpu.memory_space<vmem>>, vector<1x128x128xbf16>
    %867 = vector.shape_cast %866 : vector<1x128x128xbf16> to vector<128x128xbf16>
    %cst_359 = arith.constant dense<0.000000e+00> : vector<32x128xf32>
    %868 = tpu.matmul %865, %867, %cst_359 {dimension_numbers = #tpu.dot_dimension_numbers<[1], [0], [0], [1], [0, 0, 1, 1], [], []>} : vector<32x128xbf16>, vector<128x128xbf16>, vector<32x128xf32> -> vector<32x128xf32>
    %c1_360 = arith.constant 1 : index
    %c0_361 = arith.constant 0 : index
    %c0_362 = arith.constant 0 : index
    %869 = vector.load %arg33[%c1_360, %c0_361, %c0_362] : memref<2x1x128xf32, #tpu.memory_space<vmem>>, vector<1x1x128xf32>
    %870 = vector.shape_cast %869 : vector<1x1x128xf32> to vector<1x128xf32>
    %871 = vector.broadcast %870 : vector<1x128xf32> to vector<32x128xf32>
    %872 = arith.addf %868, %871 : vector<32x128xf32>
    %c1_363 = arith.constant 1 : index
    %c0_364 = arith.constant 0 : index
    %c0_365 = arith.constant 0 : index
    %873 = vector.load %arg34[%c1_363, %c0_364, %c0_365] : memref<2x128x256xbf16, #tpu.memory_space<vmem>>, vector<1x128x256xbf16>
    %874 = vector.shape_cast %873 : vector<1x128x256xbf16> to vector<128x256xbf16>
    %cst_366 = arith.constant dense<0.000000e+00> : vector<10x256xf32>
    %875 = tpu.matmul %391, %874, %cst_366 {dimension_numbers = #tpu.dot_dimension_numbers<[1], [0], [0], [1], [0, 0, 1, 1], [], []>} : vector<10x128xbf16>, vector<128x256xbf16>, vector<10x256xf32> -> vector<10x256xf32>
    %c1_367 = arith.constant 1 : index
    %c0_368 = arith.constant 0 : index
    %c0_369 = arith.constant 0 : index
    %876 = vector.load %arg35[%c1_367, %c0_368, %c0_369] : memref<2x1x256xf32, #tpu.memory_space<vmem>>, vector<1x1x256xf32>
    %877 = vector.shape_cast %876 : vector<1x1x256xf32> to vector<1x256xf32>
    %878 = vector.broadcast %877 : vector<1x256xf32> to vector<10x256xf32>
    %879 = arith.addf %875, %878 : vector<10x256xf32>
    %880 = arith.truncf %872 : vector<32x128xf32> to vector<32x128xbf16>
    %881 = arith.truncf %879 : vector<10x256xf32> to vector<10x256xbf16>
    %882 = vector.extract_strided_slice %881 {offsets = [0, 0], sizes = [10, 128], strides = [1, 1]} : vector<10x256xbf16> to vector<10x128xbf16>
    %883 = vector.extract_strided_slice %881 {offsets = [0, 128], sizes = [10, 128], strides = [1, 1]} : vector<10x256xbf16> to vector<10x128xbf16>
    %c1_370 = arith.constant 1 : index
    %c0_371 = arith.constant 0 : index
    %c0_372 = arith.constant 0 : index
    %884 = vector.load %arg36[%c1_370, %c0_371, %c0_372] : memref<2x128x128xbf16, #tpu.memory_space<vmem>>, vector<1x128x128xbf16>
    %885 = vector.shape_cast %884 : vector<1x128x128xbf16> to vector<128x128xbf16>
    %c1_373 = arith.constant 1 : index
    %c0_374 = arith.constant 0 : index
    %c0_375 = arith.constant 0 : index
    %886 = vector.load %arg37[%c1_373, %c0_374, %c0_375] : memref<2x1x128xf32, #tpu.memory_space<vmem>>, vector<1x1x128xf32>
    %887 = vector.shape_cast %886 : vector<1x1x128xf32> to vector<1x128xf32>
    %888 = vector.extract_strided_slice %880 {offsets = [0, 0], sizes = [32, 32], strides = [1, 1]} : vector<32x128xbf16> to vector<32x32xbf16>
    %889 = vector.extract_strided_slice %882 {offsets = [0, 0], sizes = [10, 32], strides = [1, 1]} : vector<10x128xbf16> to vector<10x32xbf16>
    %890 = vector.extract_strided_slice %883 {offsets = [0, 0], sizes = [10, 32], strides = [1, 1]} : vector<10x128xbf16> to vector<10x32xbf16>
    %cst_376 = arith.constant dense<0.000000e+00> : vector<32x10xf32>
    %891 = tpu.matmul %888, %889, %cst_376 {dimension_numbers = #tpu.dot_dimension_numbers<[1], [1], [0], [0], [0, 0, 1, 0], [], []>} : vector<32x32xbf16>, vector<10x32xbf16>, vector<32x10xf32> -> vector<32x10xf32>
    %cst_377 = arith.constant 0.176776692 : f32
    %892 = vector.broadcast %cst_377 : f32 to vector<32x10xf32>
    %893 = arith.mulf %891, %892 : vector<32x10xf32>
    %894 = arith.addf %893, %429 : vector<32x10xf32>
    %cst_378 = arith.constant dense<0xFF800000> : vector<32xf32>
    %895 = vector.multi_reduction <maximumf>, %894, %cst_378 [1] : vector<32x10xf32> to vector<32xf32>
    %896 = vector.shape_cast %895 : vector<32xf32> to vector<32x1xf32>
    %897 = vector.broadcast %896 : vector<32x1xf32> to vector<32x10xf32>
    %898 = arith.subf %894, %897 : vector<32x10xf32>
    %899 = math.exp %898 : vector<32x10xf32>
    %cst_379 = arith.constant dense<0.000000e+00> : vector<32xf32>
    %900 = vector.multi_reduction <add>, %899, %cst_379 [1] : vector<32x10xf32> to vector<32xf32>
    %901 = vector.shape_cast %900 : vector<32xf32> to vector<32x1xf32>
    %902 = tpu.reciprocal %901 {approx = true} : vector<32x1xf32> -> vector<32x1xf32>
    %903 = vector.broadcast %902 : vector<32x1xf32> to vector<32x10xf32>
    %904 = arith.mulf %899, %903 : vector<32x10xf32>
    %905 = arith.truncf %904 : vector<32x10xf32> to vector<32x10xbf16>
    %cst_380 = arith.constant dense<0.000000e+00> : vector<32x32xf32>
    %906 = tpu.matmul %905, %890, %cst_380 {dimension_numbers = #tpu.dot_dimension_numbers<[1], [0], [0], [1], [0, 0, 1, 1], [], []>} : vector<32x10xbf16>, vector<10x32xbf16>, vector<32x32xf32> -> vector<32x32xf32>
    %907 = vector.extract_strided_slice %880 {offsets = [0, 32], sizes = [32, 32], strides = [1, 1]} : vector<32x128xbf16> to vector<32x32xbf16>
    %908 = vector.extract_strided_slice %882 {offsets = [0, 32], sizes = [10, 32], strides = [1, 1]} : vector<10x128xbf16> to vector<10x32xbf16>
    %909 = vector.extract_strided_slice %883 {offsets = [0, 32], sizes = [10, 32], strides = [1, 1]} : vector<10x128xbf16> to vector<10x32xbf16>
    %cst_381 = arith.constant dense<0.000000e+00> : vector<32x10xf32>
    %910 = tpu.matmul %907, %908, %cst_381 {dimension_numbers = #tpu.dot_dimension_numbers<[1], [1], [0], [0], [0, 0, 1, 0], [], []>} : vector<32x32xbf16>, vector<10x32xbf16>, vector<32x10xf32> -> vector<32x10xf32>
    %cst_382 = arith.constant 0.176776692 : f32
    %911 = vector.broadcast %cst_382 : f32 to vector<32x10xf32>
    %912 = arith.mulf %910, %911 : vector<32x10xf32>
    %913 = arith.addf %912, %429 : vector<32x10xf32>
    %cst_383 = arith.constant dense<0xFF800000> : vector<32xf32>
    %914 = vector.multi_reduction <maximumf>, %913, %cst_383 [1] : vector<32x10xf32> to vector<32xf32>
    %915 = vector.shape_cast %914 : vector<32xf32> to vector<32x1xf32>
    %916 = vector.broadcast %915 : vector<32x1xf32> to vector<32x10xf32>
    %917 = arith.subf %913, %916 : vector<32x10xf32>
    %918 = math.exp %917 : vector<32x10xf32>
    %cst_384 = arith.constant dense<0.000000e+00> : vector<32xf32>
    %919 = vector.multi_reduction <add>, %918, %cst_384 [1] : vector<32x10xf32> to vector<32xf32>
    %920 = vector.shape_cast %919 : vector<32xf32> to vector<32x1xf32>
    %921 = tpu.reciprocal %920 {approx = true} : vector<32x1xf32> -> vector<32x1xf32>
    %922 = vector.broadcast %921 : vector<32x1xf32> to vector<32x10xf32>
    %923 = arith.mulf %918, %922 : vector<32x10xf32>
    %924 = arith.truncf %923 : vector<32x10xf32> to vector<32x10xbf16>
    %cst_385 = arith.constant dense<0.000000e+00> : vector<32x32xf32>
    %925 = tpu.matmul %924, %909, %cst_385 {dimension_numbers = #tpu.dot_dimension_numbers<[1], [0], [0], [1], [0, 0, 1, 1], [], []>} : vector<32x10xbf16>, vector<10x32xbf16>, vector<32x32xf32> -> vector<32x32xf32>
    %926 = vector.extract_strided_slice %880 {offsets = [0, 64], sizes = [32, 32], strides = [1, 1]} : vector<32x128xbf16> to vector<32x32xbf16>
    %927 = vector.extract_strided_slice %882 {offsets = [0, 64], sizes = [10, 32], strides = [1, 1]} : vector<10x128xbf16> to vector<10x32xbf16>
    %928 = vector.extract_strided_slice %883 {offsets = [0, 64], sizes = [10, 32], strides = [1, 1]} : vector<10x128xbf16> to vector<10x32xbf16>
    %cst_386 = arith.constant dense<0.000000e+00> : vector<32x10xf32>
    %929 = tpu.matmul %926, %927, %cst_386 {dimension_numbers = #tpu.dot_dimension_numbers<[1], [1], [0], [0], [0, 0, 1, 0], [], []>} : vector<32x32xbf16>, vector<10x32xbf16>, vector<32x10xf32> -> vector<32x10xf32>
    %cst_387 = arith.constant 0.176776692 : f32
    %930 = vector.broadcast %cst_387 : f32 to vector<32x10xf32>
    %931 = arith.mulf %929, %930 : vector<32x10xf32>
    %932 = arith.addf %931, %429 : vector<32x10xf32>
    %cst_388 = arith.constant dense<0xFF800000> : vector<32xf32>
    %933 = vector.multi_reduction <maximumf>, %932, %cst_388 [1] : vector<32x10xf32> to vector<32xf32>
    %934 = vector.shape_cast %933 : vector<32xf32> to vector<32x1xf32>
    %935 = vector.broadcast %934 : vector<32x1xf32> to vector<32x10xf32>
    %936 = arith.subf %932, %935 : vector<32x10xf32>
    %937 = math.exp %936 : vector<32x10xf32>
    %cst_389 = arith.constant dense<0.000000e+00> : vector<32xf32>
    %938 = vector.multi_reduction <add>, %937, %cst_389 [1] : vector<32x10xf32> to vector<32xf32>
    %939 = vector.shape_cast %938 : vector<32xf32> to vector<32x1xf32>
    %940 = tpu.reciprocal %939 {approx = true} : vector<32x1xf32> -> vector<32x1xf32>
    %941 = vector.broadcast %940 : vector<32x1xf32> to vector<32x10xf32>
    %942 = arith.mulf %937, %941 : vector<32x10xf32>
    %943 = arith.truncf %942 : vector<32x10xf32> to vector<32x10xbf16>
    %cst_390 = arith.constant dense<0.000000e+00> : vector<32x32xf32>
    %944 = tpu.matmul %943, %928, %cst_390 {dimension_numbers = #tpu.dot_dimension_numbers<[1], [0], [0], [1], [0, 0, 1, 1], [], []>} : vector<32x10xbf16>, vector<10x32xbf16>, vector<32x32xf32> -> vector<32x32xf32>
    %945 = vector.extract_strided_slice %880 {offsets = [0, 96], sizes = [32, 32], strides = [1, 1]} : vector<32x128xbf16> to vector<32x32xbf16>
    %946 = vector.extract_strided_slice %882 {offsets = [0, 96], sizes = [10, 32], strides = [1, 1]} : vector<10x128xbf16> to vector<10x32xbf16>
    %947 = vector.extract_strided_slice %883 {offsets = [0, 96], sizes = [10, 32], strides = [1, 1]} : vector<10x128xbf16> to vector<10x32xbf16>
    %cst_391 = arith.constant dense<0.000000e+00> : vector<32x10xf32>
    %948 = tpu.matmul %945, %946, %cst_391 {dimension_numbers = #tpu.dot_dimension_numbers<[1], [1], [0], [0], [0, 0, 1, 0], [], []>} : vector<32x32xbf16>, vector<10x32xbf16>, vector<32x10xf32> -> vector<32x10xf32>
    %cst_392 = arith.constant 0.176776692 : f32
    %949 = vector.broadcast %cst_392 : f32 to vector<32x10xf32>
    %950 = arith.mulf %948, %949 : vector<32x10xf32>
    %951 = arith.addf %950, %429 : vector<32x10xf32>
    %cst_393 = arith.constant dense<0xFF800000> : vector<32xf32>
    %952 = vector.multi_reduction <maximumf>, %951, %cst_393 [1] : vector<32x10xf32> to vector<32xf32>
    %953 = vector.shape_cast %952 : vector<32xf32> to vector<32x1xf32>
    %954 = vector.broadcast %953 : vector<32x1xf32> to vector<32x10xf32>
    %955 = arith.subf %951, %954 : vector<32x10xf32>
    %956 = math.exp %955 : vector<32x10xf32>
    %cst_394 = arith.constant dense<0.000000e+00> : vector<32xf32>
    %957 = vector.multi_reduction <add>, %956, %cst_394 [1] : vector<32x10xf32> to vector<32xf32>
    %958 = vector.shape_cast %957 : vector<32xf32> to vector<32x1xf32>
    %959 = tpu.reciprocal %958 {approx = true} : vector<32x1xf32> -> vector<32x1xf32>
    %960 = vector.broadcast %959 : vector<32x1xf32> to vector<32x10xf32>
    %961 = arith.mulf %956, %960 : vector<32x10xf32>
    %962 = arith.truncf %961 : vector<32x10xf32> to vector<32x10xbf16>
    %cst_395 = arith.constant dense<0.000000e+00> : vector<32x32xf32>
    %963 = tpu.matmul %962, %947, %cst_395 {dimension_numbers = #tpu.dot_dimension_numbers<[1], [0], [0], [1], [0, 0, 1, 1], [], []>} : vector<32x10xbf16>, vector<10x32xbf16>, vector<32x32xf32> -> vector<32x32xf32>
    %964 = tpu.concatenate %906, %925, %944, %963 in 1 : vector<32x32xf32>, vector<32x32xf32>, vector<32x32xf32>, vector<32x32xf32> -> vector<32x128xf32>
    %965 = arith.truncf %964 : vector<32x128xf32> to vector<32x128xbf16>
    %cst_396 = arith.constant dense<0.000000e+00> : vector<32x128xf32>
    %966 = tpu.matmul %965, %885, %cst_396 {dimension_numbers = #tpu.dot_dimension_numbers<[1], [0], [0], [1], [0, 0, 1, 1], [], []>} : vector<32x128xbf16>, vector<128x128xbf16>, vector<32x128xf32> -> vector<32x128xf32>
    %967 = vector.broadcast %887 : vector<1x128xf32> to vector<32x128xf32>
    %968 = arith.addf %966, %967 : vector<32x128xf32>
    %969 = arith.addf %864, %968 : vector<32x128xf32>
    %c1_397 = arith.constant 1 : index
    %c0_398 = arith.constant 0 : index
    %c0_399 = arith.constant 0 : index
    %970 = vector.load %arg38[%c1_397, %c0_398, %c0_399] : memref<2x1x128xf32, #tpu.memory_space<vmem>>, vector<1x1x128xf32>
    %971 = vector.shape_cast %970 : vector<1x1x128xf32> to vector<1x128xf32>
    %c1_400 = arith.constant 1 : index
    %c0_401 = arith.constant 0 : index
    %c0_402 = arith.constant 0 : index
    %972 = vector.load %arg39[%c1_400, %c0_401, %c0_402] : memref<2x1x128xf32, #tpu.memory_space<vmem>>, vector<1x1x128xf32>
    %973 = vector.shape_cast %972 : vector<1x1x128xf32> to vector<1x128xf32>
    %cst_403 = arith.constant dense<0.000000e+00> : vector<32xf32>
    %974 = vector.multi_reduction <add>, %969, %cst_403 [1] : vector<32x128xf32> to vector<32xf32>
    %975 = vector.shape_cast %974 : vector<32xf32> to vector<32x1xf32>
    %cst_404 = arith.constant 1.280000e+02 : f32
    %976 = vector.broadcast %cst_404 : f32 to vector<32x1xf32>
    %977 = arith.divf %975, %976 : vector<32x1xf32>
    %978 = vector.broadcast %977 : vector<32x1xf32> to vector<32x128xf32>
    %979 = arith.subf %969, %978 : vector<32x128xf32>
    %980 = arith.mulf %979, %979 : vector<32x128xf32>
    %cst_405 = arith.constant dense<0.000000e+00> : vector<32xf32>
    %981 = vector.multi_reduction <add>, %980, %cst_405 [1] : vector<32x128xf32> to vector<32xf32>
    %982 = vector.shape_cast %981 : vector<32xf32> to vector<32x1xf32>
    %cst_406 = arith.constant 1.280000e+02 : f32
    %983 = vector.broadcast %cst_406 : f32 to vector<32x1xf32>
    %984 = arith.divf %982, %983 : vector<32x1xf32>
    %985 = vector.broadcast %977 : vector<32x1xf32> to vector<32x128xf32>
    %986 = arith.subf %969, %985 : vector<32x128xf32>
    %cst_407 = arith.constant 9.99999996E-13 : f32
    %987 = vector.broadcast %cst_407 : f32 to vector<32x1xf32>
    %988 = arith.addf %984, %987 : vector<32x1xf32>
    %989 = math.rsqrt %988 : vector<32x1xf32>
    %990 = vector.broadcast %989 : vector<32x1xf32> to vector<32x128xf32>
    %991 = arith.mulf %986, %990 : vector<32x128xf32>
    %992 = vector.broadcast %971 : vector<1x128xf32> to vector<32x128xf32>
    %993 = arith.mulf %991, %992 : vector<32x128xf32>
    %994 = vector.broadcast %973 : vector<1x128xf32> to vector<32x128xf32>
    %995 = arith.addf %993, %994 : vector<32x128xf32>
    %996 = arith.truncf %995 : vector<32x128xf32> to vector<32x128xbf16>
    %c1_408 = arith.constant 1 : index
    %c0_409 = arith.constant 0 : index
    %c0_410 = arith.constant 0 : index
    %997 = vector.load %arg40[%c1_408, %c0_409, %c0_410] : memref<2x128x256xbf16, #tpu.memory_space<vmem>>, vector<1x128x256xbf16>
    %998 = vector.shape_cast %997 : vector<1x128x256xbf16> to vector<128x256xbf16>
    %cst_411 = arith.constant dense<0.000000e+00> : vector<32x256xf32>
    %999 = tpu.matmul %996, %998, %cst_411 {dimension_numbers = #tpu.dot_dimension_numbers<[1], [0], [0], [1], [0, 0, 1, 1], [], []>} : vector<32x128xbf16>, vector<128x256xbf16>, vector<32x256xf32> -> vector<32x256xf32>
    %c1_412 = arith.constant 1 : index
    %c0_413 = arith.constant 0 : index
    %c0_414 = arith.constant 0 : index
    %1000 = vector.load %arg41[%c1_412, %c0_413, %c0_414] : memref<2x1x256xf32, #tpu.memory_space<vmem>>, vector<1x1x256xf32>
    %1001 = vector.shape_cast %1000 : vector<1x1x256xf32> to vector<1x256xf32>
    %1002 = vector.broadcast %1001 : vector<1x256xf32> to vector<32x256xf32>
    %1003 = arith.addf %999, %1002 : vector<32x256xf32>
    %1004 = arith.mulf %1003, %1003 : vector<32x256xf32>
    %1005 = arith.mulf %1003, %1004 : vector<32x256xf32>
    %cst_415 = arith.constant 4.471500e-02 : f32
    %1006 = vector.broadcast %cst_415 : f32 to vector<32x256xf32>
    %1007 = arith.mulf %1006, %1005 : vector<32x256xf32>
    %1008 = arith.addf %1003, %1007 : vector<32x256xf32>
    %cst_416 = arith.constant 0.797884583 : f32
    %1009 = vector.broadcast %cst_416 : f32 to vector<32x256xf32>
    %1010 = arith.mulf %1009, %1008 : vector<32x256xf32>
    %1011 = math.tanh %1010 : vector<32x256xf32>
    %cst_417 = arith.constant 1.000000e+00 : f32
    %1012 = vector.broadcast %cst_417 : f32 to vector<32x256xf32>
    %1013 = arith.addf %1012, %1011 : vector<32x256xf32>
    %cst_418 = arith.constant 5.000000e-01 : f32
    %1014 = vector.broadcast %cst_418 : f32 to vector<32x256xf32>
    %1015 = arith.mulf %1014, %1013 : vector<32x256xf32>
    %1016 = arith.mulf %1003, %1015 : vector<32x256xf32>
    %1017 = arith.truncf %1016 : vector<32x256xf32> to vector<32x256xbf16>
    %c1_419 = arith.constant 1 : index
    %c0_420 = arith.constant 0 : index
    %c0_421 = arith.constant 0 : index
    %1018 = vector.load %arg42[%c1_419, %c0_420, %c0_421] : memref<2x256x128xbf16, #tpu.memory_space<vmem>>, vector<1x256x128xbf16>
    %1019 = vector.shape_cast %1018 : vector<1x256x128xbf16> to vector<256x128xbf16>
    %cst_422 = arith.constant dense<0.000000e+00> : vector<32x128xf32>
    %1020 = tpu.matmul %1017, %1019, %cst_422 {dimension_numbers = #tpu.dot_dimension_numbers<[1], [0], [0], [1], [0, 0, 1, 1], [], []>} : vector<32x256xbf16>, vector<256x128xbf16>, vector<32x128xf32> -> vector<32x128xf32>
    %c1_423 = arith.constant 1 : index
    %c0_424 = arith.constant 0 : index
    %c0_425 = arith.constant 0 : index
    %1021 = vector.load %arg43[%c1_423, %c0_424, %c0_425] : memref<2x1x128xf32, #tpu.memory_space<vmem>>, vector<1x1x128xf32>
    %1022 = vector.shape_cast %1021 : vector<1x1x128xf32> to vector<1x128xf32>
    %1023 = vector.broadcast %1022 : vector<1x128xf32> to vector<32x128xf32>
    %1024 = arith.addf %1020, %1023 : vector<32x128xf32>
    %1025 = arith.addf %995, %1024 : vector<32x128xf32>
    %c1_426 = arith.constant 1 : index
    %c0_427 = arith.constant 0 : index
    %c0_428 = arith.constant 0 : index
    %1026 = vector.load %arg44[%c1_426, %c0_427, %c0_428] : memref<2x1x128xf32, #tpu.memory_space<vmem>>, vector<1x1x128xf32>
    %1027 = vector.shape_cast %1026 : vector<1x1x128xf32> to vector<1x128xf32>
    %c1_429 = arith.constant 1 : index
    %c0_430 = arith.constant 0 : index
    %c0_431 = arith.constant 0 : index
    %1028 = vector.load %arg45[%c1_429, %c0_430, %c0_431] : memref<2x1x128xf32, #tpu.memory_space<vmem>>, vector<1x1x128xf32>
    %1029 = vector.shape_cast %1028 : vector<1x1x128xf32> to vector<1x128xf32>
    %cst_432 = arith.constant dense<0.000000e+00> : vector<32xf32>
    %1030 = vector.multi_reduction <add>, %1025, %cst_432 [1] : vector<32x128xf32> to vector<32xf32>
    %1031 = vector.shape_cast %1030 : vector<32xf32> to vector<32x1xf32>
    %cst_433 = arith.constant 1.280000e+02 : f32
    %1032 = vector.broadcast %cst_433 : f32 to vector<32x1xf32>
    %1033 = arith.divf %1031, %1032 : vector<32x1xf32>
    %1034 = vector.broadcast %1033 : vector<32x1xf32> to vector<32x128xf32>
    %1035 = arith.subf %1025, %1034 : vector<32x128xf32>
    %1036 = arith.mulf %1035, %1035 : vector<32x128xf32>
    %cst_434 = arith.constant dense<0.000000e+00> : vector<32xf32>
    %1037 = vector.multi_reduction <add>, %1036, %cst_434 [1] : vector<32x128xf32> to vector<32xf32>
    %1038 = vector.shape_cast %1037 : vector<32xf32> to vector<32x1xf32>
    %cst_435 = arith.constant 1.280000e+02 : f32
    %1039 = vector.broadcast %cst_435 : f32 to vector<32x1xf32>
    %1040 = arith.divf %1038, %1039 : vector<32x1xf32>
    %1041 = vector.broadcast %1033 : vector<32x1xf32> to vector<32x128xf32>
    %1042 = arith.subf %1025, %1041 : vector<32x128xf32>
    %cst_436 = arith.constant 9.99999996E-13 : f32
    %1043 = vector.broadcast %cst_436 : f32 to vector<32x1xf32>
    %1044 = arith.addf %1040, %1043 : vector<32x1xf32>
    %1045 = math.rsqrt %1044 : vector<32x1xf32>
    %1046 = vector.broadcast %1045 : vector<32x1xf32> to vector<32x128xf32>
    %1047 = arith.mulf %1042, %1046 : vector<32x128xf32>
    %1048 = vector.broadcast %1027 : vector<1x128xf32> to vector<32x128xf32>
    %1049 = arith.mulf %1047, %1048 : vector<32x128xf32>
    %1050 = vector.broadcast %1029 : vector<1x128xf32> to vector<32x128xf32>
    %1051 = arith.addf %1049, %1050 : vector<32x128xf32>
    %c0_437 = arith.constant 0 : index
    %c0_438 = arith.constant 0 : index
    %1052 = vector.load %arg46[%c0_437, %c0_438] : memref<4x32xbf16, #tpu.memory_space<vmem>>, vector<4x32xbf16>
    %1053 = arith.truncf %1051 : vector<32x128xf32> to vector<32x128xbf16>
    %cst_439 = arith.constant dense<0.000000e+00> : vector<4x128xf32>
    %1054 = tpu.matmul %1052, %1053, %cst_439 {dimension_numbers = #tpu.dot_dimension_numbers<[1], [0], [0], [1], [0, 0, 1, 1], [], []>} : vector<4x32xbf16>, vector<32x128xbf16>, vector<4x128xf32> -> vector<4x128xf32>
    %1055 = arith.truncf %1054 : vector<4x128xf32> to vector<4x128xbf16>
    %c0_440 = arith.constant 0 : index
    %c0_441 = arith.constant 0 : index
    %1056 = vector.load %arg47[%c0_440, %c0_441] : memref<128x128xbf16, #tpu.memory_space<vmem>>, vector<128x128xbf16>
    %cst_442 = arith.constant dense<0.000000e+00> : vector<4x128xf32>
    %1057 = tpu.matmul %1055, %1056, %cst_442 {dimension_numbers = #tpu.dot_dimension_numbers<[1], [0], [0], [1], [0, 0, 1, 1], [], []>} : vector<4x128xbf16>, vector<128x128xbf16>, vector<4x128xf32> -> vector<4x128xf32>
    %c0_443 = arith.constant 0 : index
    %c0_444 = arith.constant 0 : index
    %1058 = vector.load %arg48[%c0_443, %c0_444] : memref<1x128xf32, #tpu.memory_space<vmem>>, vector<1x128xf32>
    %1059 = vector.broadcast %1058 : vector<1x128xf32> to vector<4x128xf32>
    %1060 = arith.addf %1057, %1059 : vector<4x128xf32>
    %cst_445 = arith.constant dense<0xFF800000> : vector<4xf32>
    %1061 = vector.multi_reduction <maximumf>, %1060, %cst_445 [1] : vector<4x128xf32> to vector<4xf32>
    %1062 = vector.shape_cast %1061 : vector<4xf32> to vector<4x1xf32>
    %1063 = vector.broadcast %1062 : vector<4x1xf32> to vector<4x128xf32>
    %1064 = arith.subf %1060, %1063 : vector<4x128xf32>
    %1065 = math.exp %1064 : vector<4x128xf32>
    %cst_446 = arith.constant dense<0.000000e+00> : vector<4xf32>
    %1066 = vector.multi_reduction <add>, %1065, %cst_446 [1] : vector<4x128xf32> to vector<4xf32>
    %1067 = vector.shape_cast %1066 : vector<4xf32> to vector<4x1xf32>
    %1068 = vector.broadcast %1067 : vector<4x1xf32> to vector<4x128xf32>
    %1069 = arith.divf %1065, %1068 : vector<4x128xf32>
    %c0_447 = arith.constant 0 : index
    %c0_448 = arith.constant 0 : index
    %1070 = vector.load %arg49[%c0_447, %c0_448] : memref<4x128xf32, #tpu.memory_space<vmem>>, vector<4x128xf32>
    tpu.vector_store %arg49[%c0_447, %c0_448], %1069 {strides = array<i32>} : memref<4x128xf32, #tpu.memory_space<vmem>>, vector<4x128xf32>,
    return
  }
  func.func @transform_0(%arg0: i32) -> (i32, i32) {
    %c0_i32 = arith.constant 0 : i32
    %c0_i32_0 = arith.constant 0 : i32
    %c0_i32_1 = arith.constant 0 : i32
    return %c0_i32, %c0_i32_0 : i32, i32
  }
  func.func @transform_1(%arg0: i32) -> (i32, i32) {
    %c0_i32 = arith.constant 0 : i32
    %c0_i32_0 = arith.constant 0 : i32
    %c0_i32_1 = arith.constant 0 : i32
    return %c0_i32, %c0_i32_0 : i32, i32
  }
  func.func @transform_2(%arg0: i32) -> (i32, i32) {
    %c0_i32 = arith.constant 0 : i32
    %c0_i32_0 = arith.constant 0 : i32
    %c0_i32_1 = arith.constant 0 : i32
    return %c0_i32, %c0_i32_0 : i32, i32
  }
  func.func @transform_3(%arg0: i32) -> (i32, i32) {
    %c0_i32 = arith.constant 0 : i32
    %c0_i32_0 = arith.constant 0 : i32
    %c0_i32_1 = arith.constant 0 : i32
    return %c0_i32, %c0_i32_0 : i32, i32
  }
  func.func @transform_4(%arg0: i32) -> (i32, i32, i32) {
    %c0_i32 = arith.constant 0 : i32
    %c0_i32_0 = arith.constant 0 : i32
    %c0_i32_1 = arith.constant 0 : i32
    %c0_i32_2 = arith.constant 0 : i32
    return %c0_i32, %c0_i32_0, %c0_i32_1 : i32, i32, i32
  }
  func.func @transform_5(%arg0: i32) -> (i32, i32, i32) {
    %c0_i32 = arith.constant 0 : i32
    %c0_i32_0 = arith.constant 0 : i32
    %c0_i32_1 = arith.constant 0 : i32
    %c0_i32_2 = arith.constant 0 : i32
    return %c0_i32, %c0_i32_0, %c0_i32_1 : i32, i32, i32
  }
  func.func @transform_6(%arg0: i32) -> (i32, i32, i32) {
    %c0_i32 = arith.constant 0 : i32
    %c0_i32_0 = arith.constant 0 : i32
    %c0_i32_1 = arith.constant 0 : i32
    %c0_i32_2 = arith.constant 0 : i32
    return %c0_i32, %c0_i32_0, %c0_i32_1 : i32, i32, i32
  }
  func.func @transform_7(%arg0: i32) -> (i32, i32, i32) {
    %c0_i32 = arith.constant 0 : i32
    %c0_i32_0 = arith.constant 0 : i32
    %c0_i32_1 = arith.constant 0 : i32
    %c0_i32_2 = arith.constant 0 : i32
    return %c0_i32, %c0_i32_0, %c0_i32_1 : i32, i32, i32
  }
  func.func @transform_8(%arg0: i32) -> (i32, i32, i32) {
    %c0_i32 = arith.constant 0 : i32
    %c0_i32_0 = arith.constant 0 : i32
    %c0_i32_1 = arith.constant 0 : i32
    %c0_i32_2 = arith.constant 0 : i32
    return %c0_i32, %c0_i32_0, %c0_i32_1 : i32, i32, i32
  }
  func.func @transform_9(%arg0: i32) -> (i32, i32, i32) {
    %c0_i32 = arith.constant 0 : i32
    %c0_i32_0 = arith.constant 0 : i32
    %c0_i32_1 = arith.constant 0 : i32
    %c0_i32_2 = arith.constant 0 : i32
    return %c0_i32, %c0_i32_0, %c0_i32_1 : i32, i32, i32
  }
  func.func @transform_10(%arg0: i32) -> (i32, i32, i32) {
    %c0_i32 = arith.constant 0 : i32
    %c0_i32_0 = arith.constant 0 : i32
    %c0_i32_1 = arith.constant 0 : i32
    %c0_i32_2 = arith.constant 0 : i32
    return %c0_i32, %c0_i32_0, %c0_i32_1 : i32, i32, i32
  }
  func.func @transform_11(%arg0: i32) -> (i32, i32, i32) {
    %c0_i32 = arith.constant 0 : i32
    %c0_i32_0 = arith.constant 0 : i32
    %c0_i32_1 = arith.constant 0 : i32
    %c0_i32_2 = arith.constant 0 : i32
    return %c0_i32, %c0_i32_0, %c0_i32_1 : i32, i32, i32
  }
  func.func @transform_12(%arg0: i32) -> (i32, i32, i32) {
    %c0_i32 = arith.constant 0 : i32
    %c0_i32_0 = arith.constant 0 : i32
    %c0_i32_1 = arith.constant 0 : i32
    %c0_i32_2 = arith.constant 0 : i32
    return %c0_i32, %c0_i32_0, %c0_i32_1 : i32, i32, i32
  }
  func.func @transform_13(%arg0: i32) -> (i32, i32, i32) {
    %c0_i32 = arith.constant 0 : i32
    %c0_i32_0 = arith.constant 0 : i32
    %c0_i32_1 = arith.constant 0 : i32
    %c0_i32_2 = arith.constant 0 : i32
    return %c0_i32, %c0_i32_0, %c0_i32_1 : i32, i32, i32
  }
  func.func @transform_14(%arg0: i32) -> (i32, i32, i32) {
    %c0_i32 = arith.constant 0 : i32
    %c0_i32_0 = arith.constant 0 : i32
    %c0_i32_1 = arith.constant 0 : i32
    %c0_i32_2 = arith.constant 0 : i32
    return %c0_i32, %c0_i32_0, %c0_i32_1 : i32, i32, i32
  }
  func.func @transform_15(%arg0: i32) -> (i32, i32, i32) {
    %c0_i32 = arith.constant 0 : i32
    %c0_i32_0 = arith.constant 0 : i32
    %c0_i32_1 = arith.constant 0 : i32
    %c0_i32_2 = arith.constant 0 : i32
    return %c0_i32, %c0_i32_0, %c0_i32_1 : i32, i32, i32
  }
  func.func @transform_16(%arg0: i32) -> (i32, i32) {
    %c0_i32 = arith.constant 0 : i32
    %c0_i32_0 = arith.constant 0 : i32
    %c0_i32_1 = arith.constant 0 : i32
    return %c0_i32, %c0_i32_0 : i32, i32
  }
  func.func @transform_17(%arg0: i32) -> (i32, i32) {
    %c0_i32 = arith.constant 0 : i32
    %c0_i32_0 = arith.constant 0 : i32
    %c0_i32_1 = arith.constant 0 : i32
    return %c0_i32, %c0_i32_0 : i32, i32
  }
  func.func @transform_18(%arg0: i32) -> (i32, i32) {
    %c0_i32 = arith.constant 0 : i32
    %c0_i32_0 = arith.constant 0 : i32
    %c0_i32_1 = arith.constant 0 : i32
    return %c0_i32, %c0_i32_0 : i32, i32
  }
  func.func @transform_19(%arg0: i32) -> (i32, i32) {
    %c0_i32 = arith.constant 0 : i32
    %c0_i32_0 = arith.constant 0 : i32
    %c0_i32_1 = arith.constant 0 : i32
    return %c0_i32, %c0_i32_0 : i32, i32
  }
  func.func @transform_20(%arg0: i32) -> (i32, i32) {
    %c0_i32 = arith.constant 0 : i32
    %c0_i32_0 = arith.constant 0 : i32
    %c0_i32_1 = arith.constant 0 : i32
    return %c0_i32, %c0_i32_0 : i32, i32
  }
  func.func @transform_21(%arg0: i32) -> (i32, i32) {
    %c0_i32 = arith.constant 0 : i32
    %c0_i32_0 = arith.constant 0 : i32
    %c0_i32_1 = arith.constant 0 : i32
    return %c0_i32, %c0_i32_0 : i32, i32
  }
  func.func @transform_22(%arg0: i32) -> (i32, i32) {
    %c0_i32 = arith.constant 0 : i32
    %c0_i32_0 = arith.constant 0 : i32
    %c0_i32_1 = arith.constant 0 : i32
    return %c0_i32, %c0_i32_0 : i32, i32
  }
  func.func @transform_23(%arg0: i32) -> (i32, i32) {
    %c0_i32 = arith.constant 0 : i32
    %c0_i32_0 = arith.constant 0 : i32
    %c0_i32_1 = arith.constant 0 : i32
    return %c0_i32, %c0_i32_0 : i32, i32
  }
  func.func @transform_24(%arg0: i32) -> (i32, i32) {
    %c0_i32 = arith.constant 0 : i32
    %c0_i32_0 = arith.constant 0 : i32
    %c0_i32_1 = arith.constant 0 : i32
    return %c0_i32, %c0_i32_0 : i32, i32
  }
  func.func @transform_25(%arg0: i32) -> (i32, i32, i32) {
    %c0_i32 = arith.constant 0 : i32
    %c0_i32_0 = arith.constant 0 : i32
    %c0_i32_1 = arith.constant 0 : i32
    %c0_i32_2 = arith.constant 0 : i32
    return %c0_i32, %c0_i32_0, %c0_i32_1 : i32, i32, i32
  }
  func.func @transform_26(%arg0: i32) -> (i32, i32, i32) {
    %c0_i32 = arith.constant 0 : i32
    %c0_i32_0 = arith.constant 0 : i32
    %c0_i32_1 = arith.constant 0 : i32
    %c0_i32_2 = arith.constant 0 : i32
    return %c0_i32, %c0_i32_0, %c0_i32_1 : i32, i32, i32
  }
  func.func @transform_27(%arg0: i32) -> (i32, i32, i32) {
    %c0_i32 = arith.constant 0 : i32
    %c0_i32_0 = arith.constant 0 : i32
    %c0_i32_1 = arith.constant 0 : i32
    %c0_i32_2 = arith.constant 0 : i32
    return %c0_i32, %c0_i32_0, %c0_i32_1 : i32, i32, i32
  }
  func.func @transform_28(%arg0: i32) -> (i32, i32, i32) {
    %c0_i32 = arith.constant 0 : i32
    %c0_i32_0 = arith.constant 0 : i32
    %c0_i32_1 = arith.constant 0 : i32
    %c0_i32_2 = arith.constant 0 : i32
    return %c0_i32, %c0_i32_0, %c0_i32_1 : i32, i32, i32
  }
  func.func @transform_29(%arg0: i32) -> (i32, i32, i32) {
    %c0_i32 = arith.constant 0 : i32
    %c0_i32_0 = arith.constant 0 : i32
    %c0_i32_1 = arith.constant 0 : i32
    %c0_i32_2 = arith.constant 0 : i32
    return %c0_i32, %c0_i32_0, %c0_i32_1 : i32, i32, i32
  }
  func.func @transform_30(%arg0: i32) -> (i32, i32, i32) {
    %c0_i32 = arith.constant 0 : i32
    %c0_i32_0 = arith.constant 0 : i32
    %c0_i32_1 = arith.constant 0 : i32
    %c0_i32_2 = arith.constant 0 : i32
    return %c0_i32, %c0_i32_0, %c0_i32_1 : i32, i32, i32
  }
  func.func @transform_31(%arg0: i32) -> (i32, i32, i32) {
    %c0_i32 = arith.constant 0 : i32
    %c0_i32_0 = arith.constant 0 : i32
    %c0_i32_1 = arith.constant 0 : i32
    %c0_i32_2 = arith.constant 0 : i32
    return %c0_i32, %c0_i32_0, %c0_i32_1 : i32, i32, i32
  }
  func.func @transform_32(%arg0: i32) -> (i32, i32, i32) {
    %c0_i32 = arith.constant 0 : i32
    %c0_i32_0 = arith.constant 0 : i32
    %c0_i32_1 = arith.constant 0 : i32
    %c0_i32_2 = arith.constant 0 : i32
    return %c0_i32, %c0_i32_0, %c0_i32_1 : i32, i32, i32
  }
  func.func @transform_33(%arg0: i32) -> (i32, i32, i32) {
    %c0_i32 = arith.constant 0 : i32
    %c0_i32_0 = arith.constant 0 : i32
    %c0_i32_1 = arith.constant 0 : i32
    %c0_i32_2 = arith.constant 0 : i32
    return %c0_i32, %c0_i32_0, %c0_i32_1 : i32, i32, i32
  }
  func.func @transform_34(%arg0: i32) -> (i32, i32, i32) {
    %c0_i32 = arith.constant 0 : i32
    %c0_i32_0 = arith.constant 0 : i32
    %c0_i32_1 = arith.constant 0 : i32
    %c0_i32_2 = arith.constant 0 : i32
    return %c0_i32, %c0_i32_0, %c0_i32_1 : i32, i32, i32
  }
  func.func @transform_35(%arg0: i32) -> (i32, i32, i32) {
    %c0_i32 = arith.constant 0 : i32
    %c0_i32_0 = arith.constant 0 : i32
    %c0_i32_1 = arith.constant 0 : i32
    %c0_i32_2 = arith.constant 0 : i32
    return %c0_i32, %c0_i32_0, %c0_i32_1 : i32, i32, i32
  }
  func.func @transform_36(%arg0: i32) -> (i32, i32, i32) {
    %c0_i32 = arith.constant 0 : i32
    %c0_i32_0 = arith.constant 0 : i32
    %c0_i32_1 = arith.constant 0 : i32
    %c0_i32_2 = arith.constant 0 : i32
    return %c0_i32, %c0_i32_0, %c0_i32_1 : i32, i32, i32
  }
  func.func @transform_37(%arg0: i32) -> (i32, i32, i32) {
    %c0_i32 = arith.constant 0 : i32
    %c0_i32_0 = arith.constant 0 : i32
    %c0_i32_1 = arith.constant 0 : i32
    %c0_i32_2 = arith.constant 0 : i32
    return %c0_i32, %c0_i32_0, %c0_i32_1 : i32, i32, i32
  }
  func.func @transform_38(%arg0: i32) -> (i32, i32, i32) {
    %c0_i32 = arith.constant 0 : i32
    %c0_i32_0 = arith.constant 0 : i32
    %c0_i32_1 = arith.constant 0 : i32
    %c0_i32_2 = arith.constant 0 : i32
    return %c0_i32, %c0_i32_0, %c0_i32_1 : i32, i32, i32
  }
  func.func @transform_39(%arg0: i32) -> (i32, i32, i32) {
    %c0_i32 = arith.constant 0 : i32
    %c0_i32_0 = arith.constant 0 : i32
    %c0_i32_1 = arith.constant 0 : i32
    %c0_i32_2 = arith.constant 0 : i32
    return %c0_i32, %c0_i32_0, %c0_i32_1 : i32, i32, i32
  }
  func.func @transform_40(%arg0: i32) -> (i32, i32, i32) {
    %c0_i32 = arith.constant 0 : i32
    %c0_i32_0 = arith.constant 0 : i32
    %c0_i32_1 = arith.constant 0 : i32
    %c0_i32_2 = arith.constant 0 : i32
    return %c0_i32, %c0_i32_0, %c0_i32_1 : i32, i32, i32
  }
  func.func @transform_41(%arg0: i32) -> (i32, i32, i32) {
    %c0_i32 = arith.constant 0 : i32
    %c0_i32_0 = arith.constant 0 : i32
    %c0_i32_1 = arith.constant 0 : i32
    %c0_i32_2 = arith.constant 0 : i32
    return %c0_i32, %c0_i32_0, %c0_i32_1 : i32, i32, i32
  }
  func.func @transform_42(%arg0: i32) -> (i32, i32, i32) {
    %c0_i32 = arith.constant 0 : i32
    %c0_i32_0 = arith.constant 0 : i32
    %c0_i32_1 = arith.constant 0 : i32
    %c0_i32_2 = arith.constant 0 : i32
    return %c0_i32, %c0_i32_0, %c0_i32_1 : i32, i32, i32
  }
  func.func @transform_43(%arg0: i32) -> (i32, i32, i32) {
    %c0_i32 = arith.constant 0 : i32
    %c0_i32_0 = arith.constant 0 : i32
    %c0_i32_1 = arith.constant 0 : i32
    %c0_i32_2 = arith.constant 0 : i32
    return %c0_i32, %c0_i32_0, %c0_i32_1 : i32, i32, i32
  }
  func.func @transform_44(%arg0: i32) -> (i32, i32, i32) {
    %c0_i32 = arith.constant 0 : i32
    %c0_i32_0 = arith.constant 0 : i32
    %c0_i32_1 = arith.constant 0 : i32
    %c0_i32_2 = arith.constant 0 : i32
    return %c0_i32, %c0_i32_0, %c0_i32_1 : i32, i32, i32
  }
  func.func @transform_45(%arg0: i32) -> (i32, i32) {
    %c0_i32 = arith.constant 0 : i32
    %c0_i32_0 = arith.constant 0 : i32
    %c0_i32_1 = arith.constant 0 : i32
    return %c0_i32, %c0_i32_0 : i32, i32
  }
  func.func @transform_46(%arg0: i32) -> (i32, i32) {
    %c0_i32 = arith.constant 0 : i32
    %c0_i32_0 = arith.constant 0 : i32
    %c0_i32_1 = arith.constant 0 : i32
    return %c0_i32, %c0_i32_0 : i32, i32
  }
  func.func @transform_47(%arg0: i32) -> (i32, i32) {
    %c0_i32 = arith.constant 0 : i32
    %c0_i32_0 = arith.constant 0 : i32
    %c0_i32_1 = arith.constant 0 : i32
    return %c0_i32, %c0_i32_0 : i32, i32
  }
  func.func @transform_48(%arg0: i32) -> (i32, i32) {
    %c0_i32 = arith.constant 0 : i32
    %c0_i32_0 = arith.constant 0 : i32
    %c0_i32_1 = arith.constant 0 : i32
    return %c0_i32, %c0_i32_0 : i32, i32
  }
}

</mosaic_0001>

<bundles_post_ra>
// kernel: blip_for_itm_forward.1
= control target key start
LH: loop header
LB: loop body
LE: loop exit
PB: predicated region body
PF: predicated region fallthrough
CT: control target
= control target key end

     0   :  { %s13627_s6 = smov 1   ;;  %s13628_s10 = smov 2   ;;  %s15739_s0 = inlined_call_operand.smem [shape: u32[49], index: -1, kind: input, shape index: {}] }
   0x1   :  { %s13734_s5 = sld [smem:[%s15739_s0]]   ;;  %s13629_s14 = smov 3  }
   0x2   :  { %s13739_s9 = sld [smem:[%s15739_s0 + %s13627_s6]]   ;;  %s13630_s18 = smov 4  }
   0x3   :  { %s13744_s13 = sld [smem:[%s15739_s0 + %s13628_s10]]   ;;  %s13631_s22 = smov 5  }
   0x4   :  { %s13749_s17 = sld [smem:[%s15739_s0 + %s13629_s14]]   ;;  %s13632_s26 = smov 6  }
   0x5   :  { %s13754_s21 = sld [smem:[%s15739_s0 + %s13630_s18]]   ;;  %s13633_s30 = smov 7  }
   0x6   :  { %s13759_s25 = sld [smem:[%s15739_s0 + %s13631_s22]]   ;;  %s13634_s4 = smov 8  }
   0x7   :  { %15750 = sst [smem:[#allocation77_spill]] %s13734_s5  ;;  %s13635_s10 = smov 9  }
   0x8   :  { %15751 = sst [smem:[#allocation78_spill]] %s13739_s9  ;;  %s13636_s15 = smov 10  }
   0x9   :  { %s13764_s29 = sld [smem:[%s15739_s0 + %s13632_s26]]   ;;  %s13637_s20 = smov 11  }
   0xa   :  { %15752 = sst [smem:[#allocation79_spill]] %s13749_s17  ;;  %s13638_s26 = smov 12  }
   0xb   :  { %s13769_s3 = sld [smem:[%s15739_s0 + %s13633_s30]]   ;;  %s13639_s1 = smov 13  }
   0xc   :  { %15753 = sst [smem:[#allocation80_spill]] %s13759_s25  ;;  %s13640_s7 = smov 14  }
   0xd   :  { %s13774_s8 = sld [smem:[%s15739_s0 + %s13634_s4]]   ;;  %s13642_s22 = smov 16  }
   0xe   :  { %s13779_s14 = sld [smem:[%s15739_s0 + %s13635_s10]]   ;;  %s13643_s28 = smov 17  }
   0xf   :  { %15754 = sst [smem:[#allocation81_spill]] %s13764_s29 }
  0x10   :  { %s13784_s19 = sld [smem:[%s15739_s0 + %s13636_s15]]   ;;  %s13641_s15 = smov 15  }
  0x11   :  { %15755 = sst [smem:[#allocation82_spill]] %s13769_s3 }
  0x12   :  { %s13789_s24 = sld [smem:[%s15739_s0 + %s13637_s20]]  }
  0x13   :  { %s13794_s30 = sld [smem:[%s15739_s0 + %s13638_s26]]  }
  0x14   :  { %15756 = sst [smem:[#allocation83_spill]] %s13779_s14 }
  0x15   :  { %s13799_s6 = sld [smem:[%s15739_s0 + %s13639_s1]]  }
  0x16   :  { %s13804_s12 = sld [smem:[%s15739_s0 + %s13640_s7]]   ;;  %s13644_s7 = smov 18  }
  0x17   :  { %s13809_s20 = sld [smem:[%s15739_s0 + %s13641_s15]]   ;;  %s13645_s15 = smov 19  }
  0x18   :  { %15757 = sst [smem:[#allocation84_spill]] %s13789_s24 }
  0x19   :  { %15758 = sst [smem:[#allocation85_spill]] %s13794_s30 }
  0x1a   :  { %s13814_s27 = sld [smem:[%s15739_s0 + %s13642_s22]]   ;;  %s13646_s22 = smov 20  }
  0x1b   :  { %15759 = sst [smem:[#allocation86_spill]] %s13799_s6 }
  0x1c   :  { %s13819_s4 = sld [smem:[%s15739_s0 + %s13643_s28]]   ;;  %s13647_s28 = smov 21  }
  0x1d   :  { %15760 = sst [smem:[#allocation87_spill]] %s13809_s20 }
  0x1e   :  { %s13824_s6 = sld [smem:[%s15739_s0 + %s13644_s7]]   ;;  %s13648_s7 = smov 22  }
  0x1f   :  { %s13829_s30 = sld [smem:[%s15739_s0 + %s13645_s15]]   ;;  %s13649_s15 = smov 23  }
  0x20   :  { %s13834_s3 = sld [smem:[%s15739_s0 + %s13646_s22]]   ;;  %s13650_s22 = smov 24  }
  0x21   :  { %s13839_s29 = sld [smem:[%s15739_s0 + %s13647_s28]]   ;;  %s13651_s28 = smov 25  }
  0x22   :  { %15761 = sst [smem:[#allocation88_spill]] %s13819_s4 }
  0x23   :  { %s13849_s5 = sld [smem:[%s15739_s0 + %s13649_s15]]   ;;  %s13653_s15 = smov 27  }
  0x24   :  { %15762 = sst [smem:[#allocation89_spill]] %s13824_s6 }
  0x25   :  { %s13844_s6 = sld [smem:[%s15739_s0 + %s13648_s7]]   ;;  %s13652_s7 = smov 26  }
  0x26   :  { %15763 = sst [smem:[#allocation90_spill]] %s13834_s3 }
  0x27   :  { %s13854_s3 = sld [smem:[%s15739_s0 + %s13650_s22]]   ;;  %s13654_s22 = smov 28  }
  0x28   :  { %s13859_s4 = sld [smem:[%s15739_s0 + %s13651_s28]]   ;;  %s13655_s28 = smov 29  }
  0x29   :  { %15765 = sst [smem:[#allocation92_spill]] %s13849_s5 }
  0x2a   :  { %s13869_s5 = sld [smem:[%s15739_s0 + %s13653_s15]]   ;;  %s13657_s15 = smov 31  }
  0x2b   :  { %15764 = sst [smem:[#allocation91_spill]] %s13844_s6 }
  0x2c   :  { %s13864_s6 = sld [smem:[%s15739_s0 + %s13652_s7]]   ;;  %s13656_s7 = smov 30  }
  0x2d   :  { %15766 = sst [smem:[#allocation93_spill]] %s13854_s3 }
  0x2e   :  { %15767 = sst [smem:[#allocation94_spill]] %s13859_s4 }
  0x2f   :  { %s13874_s3 = sld [smem:[%s15739_s0 + %s13654_s22]]   ;;  %s13658_s22 = smov 32  }
  0x30   :  { %15768 = sst [smem:[#allocation95_spill]] %s13869_s5 }
  0x31   :  { %s13879_s4 = sld [smem:[%s15739_s0 + %s13655_s28]]   ;;  %s13659_s28 = smov 33  }
  0x32   :  { %s13884_s20 = sld [smem:[%s15739_s0 + %s13656_s7]]   ;;  %s13660_s7 = smov 34  }
  0x33   :  { %s13889_s5 = sld [smem:[%s15739_s0 + %s13657_s15]]   ;;  %s13661_s15 = smov 35  }
  0x34   :  { %s13894_s24 = sld [smem:[%s15739_s0 + %s13658_s22]]   ;;  %s13662_s22 = smov 36  }
  0x35   :  { %s13904_s14 = sld [smem:[%s15739_s0 + %s13660_s7]]   ;;  %s13664_s7 = smov 38  }
  0x37   :  { %15769 = sst [smem:[#allocation96_spill]] %s13879_s4 }
  0x38   :  { %s13899_s4 = sld [smem:[%s15739_s0 + %s13659_s28]]   ;;  %s13663_s28 = smov 37  }
  0x39   :  { %15770 = sst [smem:[#allocation97_spill]] %s13889_s5 }
  0x3a   :  { %15771 = sst [smem:[#allocation98_spill]] %s13894_s24 }
  0x3b   :  { %15772 = sst [smem:[#allocation99_spill]] %s13904_s14 }
  0x3c   :  { %s13909_s5 = sld [smem:[%s15739_s0 + %s13661_s15]]   ;;  %s13665_s15 = smov 39  }
  0x3d   :  { %s13914_s24 = sld [smem:[%s15739_s0 + %s13662_s22]]   ;;  %s13666_s22 = smov 40  }
  0x3e   :  { %s13919_s25 = sld [smem:[%s15739_s0 + %s13663_s28]]   ;;  %s13667_s28 = smov 41  }
  0x3f   :  { %s13924_s14 = sld [smem:[%s15739_s0 + %s13664_s7]]   ;;  %s13668_s7 = smov 42  }
  0x40   :  { %s13929_s17 = sld [smem:[%s15739_s0 + %s13665_s15]]   ;;  %s13669_s15 = smov 43  }
  0x41   :  { %s13939_s9 = sld [smem:[%s15739_s0 + %s13667_s28]]   ;;  %s13671_s28 = smov 45  }
  0x43   :  { %15773 = sst [smem:[#allocation100_spill]] %s13914_s24 }
  0x44   :  { %s13934_s24 = sld [smem:[%s15739_s0 + %s13666_s22]]   ;;  %s13670_s22 = smov 44  }
  0x45   :  { %15774 = sst [smem:[#allocation101_spill]] %s13924_s14 }
  0x46   :  { %15775 = sst [smem:[#allocation102_spill]] %s13929_s17 }
  0x47   :  { %15777 = sst [smem:[#allocation104_spill]] %s13939_s9 }
  0x48   :  { %s13944_s14 = sld [smem:[%s15739_s0 + %s13668_s7]]   ;;  %s13672_s7 = smov 46  }
  0x49   :  { %s13949_s17 = sld [smem:[%s15739_s0 + %s13669_s15]]   ;;  %s13673_s15 = smov 47  }
  0x4a   :  { %15776 = sst [smem:[#allocation103_spill]] %s13934_s24 }
  0x4b   :  { %s13954_s24 = sld [smem:[%s15739_s0 + %s13670_s22]]   ;;  %s13674_s22 = smov 48  }
  0x4c   :  { %s13959_s9 = sld [smem:[%s15739_s0 + %s13671_s28]]  }
  0x4e   :  { %15778 = sst [smem:[#allocation105_spill]] %s13944_s14 }
  0x4f   :  { %15779 = sst [smem:[#allocation106_spill]] %s13949_s17 }
  0x50   :  { %s13964_s14 = sld [smem:[%s15739_s0 + %s13672_s7]]  }
  0x51   :  { %15780 = sst [smem:[#allocation107_spill]] %s13954_s24 }
  0x52   :  { %s13969_s17 = sld [smem:[%s15739_s0 + %s13673_s15]]  }
  0x53   :  { %s13974_s24 = sld [smem:[%s15739_s0 + %s13674_s22]]  }
  0x54   :  { %102 = vsyncpa [#allocation3], 0 }
  0x55   :  { %103 = vsyncpa [#allocation5], 0 }
  0x56   :  { %104 = vsyncpa [#allocation8], 0 }
  0x57   :  { %105 = vsyncpa [#allocation11], 0 }
  0x58   :  { %106 = vsyncpa [#allocation14], 0 }
  0x59   :  { %107 = vsyncpa [#allocation17], 0 }
  0x5a   :  { %108 = vsyncpa [#allocation20], 0 }
  0x5b   :  { %109 = vsyncpa [#allocation23], 0 }
  0x5c   :  { %110 = vsyncpa [#allocation26], 0 }
  0x5d   :  { %111 = vsyncpa [#allocation29], 0 }
  0x5e   :  { %112 = vsyncpa [#allocation32], 0 }
  0x5f   :  { %113 = vsyncpa [#allocation35], 0 }
  0x60   :  { %114 = vsyncpa [#allocation38], 0 }
  0x61   :  { %115 = vsyncpa [#allocation41], 0 }
  0x62   :  { %116 = vsyncpa [#allocation44], 0 }
  0x63   :  { %117 = vsyncpa [#allocation47], 0 }
  0x64   :  { %118 = vsyncpa [#allocation50], 0 }
  0x65   :  { %119 = vsyncpa [#allocation53], 0 }
  0x66   :  { %120 = vsyncpa [#allocation56], 0  ;;  %s13675_s0 = smov [#allocation4]  }
  0x67   :  { %s140_s28 = sshll.u32 %s13675_s0, 4  ;;  %s141_s28 = int_to_ptr.vmem [resolvable:$true] %s140_s28 }
  0x68   :  { %s12857_s1 = scalar_lea.vmem %s141_s28, 256  ;;  %p12862_p1 = scmp.lt.s32.totalorder %s141_s28, %s141_s28 }
  0x69   :  { %p12858_p0 = scmp.ne.s32.totalorder %s141_s28, %s12857_s1  ;;  %p12863_p2 = scmp.lt.s32.totalorder %s12857_s1, %s12857_s1 }
  0x6b   :  { %p12864_p3 = por %p12863_p2, %p12862_p1 }
  0x6d   :  { %p12865_p4 = pnand %p12864_p3, %p12858_p0 }
  0x6f   :  { %12868 = shalt.err (!%p12865_p4)
}
  0x70   :  { %s13676_s2 = smov 128   ;;  %s13677_s7 = smov 8  }
  0x71   :  { %146 = dma.hbm_to_vmem [thread:$0]  %s13744_s13, 256, %s141_s28, [#allocation5], %s13676_s2, %s13676_s2, %s13677_s7  }
  0x72   :  { %s13678_s10 = smov [#allocation7]  }
  0x73   :  { %s164_s11 = sshll.u32 %s13678_s10, 4  ;;  %s165_s11 = int_to_ptr.vmem [resolvable:$true] %s164_s11 }
  0x74   :  { %s12877_s15 = scalar_lea.vmem %s165_s11, 32  ;;  %p12882_p6 = scmp.lt.s32.totalorder %s165_s11, %s165_s11 }
  0x75   :  { %p12878_p5 = scmp.ne.s32.totalorder %s165_s11, %s12877_s15  ;;  %p12883_p7 = scmp.lt.s32.totalorder %s12877_s15, %s12877_s15 }
  0x77   :  { %p12884_p8 = por %p12883_p7, %p12882_p6 }
  0x79   :  { %p12885_p9 = pnand %p12884_p8, %p12878_p5 }
  0x7b   :  { %12888 = shalt.err (!%p12885_p9)
}
  0x7c   :  { %s13679_s16 = smov 16   ;;  %s13680_s18 = smov 1  }
  0x7d   :  { %170 = dma.hbm_to_vmem [thread:$0]  %s13754_s21, 32, %s165_s11, [#allocation8], %s13679_s16, %s13679_s16, %s13680_s18  }
  0x7e   :  { %s13681_s22 = smov [#allocation10]   ;;  %s13682_s13 = smov [#allocation13]  }
  0x7f   :  { %s192_s23 = sshll.u32 %s13681_s22, 4  ;;  %s216_s26 = sshll.u32 %s13682_s13, 4  ;;  %s193_s23 = int_to_ptr.vmem [resolvable:$true] %s192_s23  ;;  %s217_s26 = int_to_ptr.vmem [resolvable:$true] %s216_s26 }
  0x80   :  { %s12897_s0 = scalar_lea.vmem %s193_s23, 2048  ;;  %p12902_p11 = scmp.lt.s32.totalorder %s193_s23, %s193_s23 }
  0x81   :  { %p12898_p10 = scmp.ne.s32.totalorder %s193_s23, %s12897_s0  ;;  %p12903_p12 = scmp.lt.s32.totalorder %s12897_s0, %s12897_s0 }
  0x83   :  { %p12904_p13 = por %p12903_p12, %p12902_p11 }
  0x85   :  { %p12905_p0 = pnand %p12904_p13, %p12898_p10 }
  0x87   :  { %12908 = shalt.err (!%p12905_p0)
}
  0x88   :  { %s13683_s28 = smov 64   ;;  %s13684_s1 = smov 4  }
  0x89   :  { %198 = dma.hbm_to_vmem [thread:$0]  %s13774_s8, 2048, %s193_s23, [#allocation11], %s13683_s28, %s13683_s28, %s13684_s1  }
  0x8a   :  { %s12917_s21 = scalar_lea.vmem %s217_s26, 32  ;;  %p12922_p2 = scmp.lt.s32.totalorder %s217_s26, %s217_s26 }
  0x8b   :  { %p12918_p1 = scmp.ne.s32.totalorder %s217_s26, %s12917_s21  ;;  %p12923_p3 = scmp.lt.s32.totalorder %s12917_s21, %s12917_s21 }
  0x8d   :  { %p12924_p4 = por %p12923_p3, %p12922_p2 }
  0x8f   :  { %p12925_p5 = pnand %p12924_p4, %p12918_p1 }
  0x91   :  { %12928 = shalt.err (!%p12925_p5)
}
  0x92   :  { %222 = dma.hbm_to_vmem [thread:$0]  %s13784_s19, 32, %s217_s26, [#allocation14], %s13679_s16, %s13679_s16, %s13680_s18  }
  0x93   :  { %s13685_s10 = smov [#allocation16]   ;;  %s13686_s15 = smov [#allocation19]  }
  0x94   :  { %s244_s11 = sshll.u32 %s13685_s10, 4  ;;  %s269_s22 = sshll.u32 %s13686_s15, 4  ;;  %s245_s11 = int_to_ptr.vmem [resolvable:$true] %s244_s11  ;;  %s270_s22 = int_to_ptr.vmem [resolvable:$true] %s269_s22 }
  0x95   :  { %s12937_s13 = scalar_lea.vmem %s245_s11, 4096  ;;  %p12942_p7 = scmp.lt.s32.totalorder %s245_s11, %s245_s11 }
  0x96   :  { %p12938_p6 = scmp.ne.s32.totalorder %s245_s11, %s12937_s13  ;;  %p12943_p8 = scmp.lt.s32.totalorder %s12937_s13, %s12937_s13 }
  0x98   :  { %p12944_p9 = por %p12943_p8, %p12942_p7 }
  0x9a   :  { %p12945_p10 = pnand %p12944_p9, %p12938_p6 }
  0x9c   :  { %12948 = shalt.err (!%p12945_p10)
}
  0x9d   :  { %250 = dma.hbm_to_vmem [thread:$0]  %s13804_s12, 4096, %s245_s11, [#allocation17], %s13683_s28, %s13683_s28, %s13684_s1  }
  0x9e   :  { %s12957_s8 = scalar_lea.vmem %s270_s22, 16  ;;  %s12961_s19 = scalar_lea.vmem %s270_s22, 32 }
  0x9f   :  { %p12958_p11 = scmp.ne.s32.totalorder %s270_s22, %s12957_s8  ;;  %p12962_p12 = scmp.lt.s32.totalorder %s270_s22, %s270_s22 }
  0xa0   :  { %p12963_p13 = scmp.lt.s32.totalorder %s12961_s19, %s12957_s8 }
  0xa2   :  { %p12964_p0 = por %p12963_p13, %p12962_p12 }
  0xa4   :  { %p12965_p1 = pnand %p12964_p0, %p12958_p11 }
  0xa6   :  { %12968 = shalt.err (!%p12965_p1)
}
  0xa7   :  { %272 = dma.hbm_to_vmem [thread:$0]  %s13814_s27, 16, %s270_s22, [#allocation20]  }
  0xa8   :  { %s13687_s23 = smov [#allocation22]   ;;  %s13688_s0 = smov [#allocation25]  }
  0xa9   :  { %s290_s26 = sshll.u32 %s13687_s23, 4  ;;  %s315_s21 = sshll.u32 %s13688_s0, 4  ;;  %s291_s26 = int_to_ptr.vmem [resolvable:$true] %s290_s26  ;;  %s316_s21 = int_to_ptr.vmem [resolvable:$true] %s315_s21 }
  0xaa   :  { %s12977_s10 = scalar_lea.vmem %s291_s26, 512  ;;  %p12982_p3 = scmp.lt.s32.totalorder %s291_s26, %s291_s26 }
  0xab   :  { %p12978_p2 = scmp.ne.s32.totalorder %s291_s26, %s12977_s10  ;;  %p12983_p4 = scmp.lt.s32.totalorder %s12977_s10, %s12977_s10 }
  0xad   :  { %p12984_p5 = por %p12983_p4, %p12982_p3 }
  0xaf   :  { %p12985_p6 = pnand %p12984_p5, %p12978_p2 }
  0xb1   :  { %12988 = shalt.err (!%p12985_p6)
}
  0xb2   :  { %296 = dma.hbm_to_vmem [thread:$0]  %s13829_s30, 512, %s291_s26, [#allocation23], %s13683_s28, %s13683_s28, %s13684_s1  }
  0xb3   :  { %s12997_s12 = scalar_lea.vmem %s316_s21, 16  ;;  %s13001_s27 = scalar_lea.vmem %s316_s21, 32 }
  0xb4   :  { %p12998_p7 = scmp.ne.s32.totalorder %s316_s21, %s12997_s12  ;;  %p13002_p8 = scmp.lt.s32.totalorder %s316_s21, %s316_s21 }
  0xb5   :  { %p13003_p9 = scmp.lt.s32.totalorder %s13001_s27, %s12997_s12 }
  0xb7   :  { %p13004_p10 = por %p13003_p9, %p13002_p8 }
  0xb9   :  { %p13005_p11 = pnand %p13004_p10, %p12998_p7 }
  0xbb   :  { %13008 = shalt.err (!%p13005_p11)
}
  0xbc   :  { %318 = dma.hbm_to_vmem [thread:$0]  %s13839_s29, 16, %s316_s21, [#allocation26]  }
  0xbd   :  { %s13689_s11 = smov [#allocation28]  }
  0xbe   :  { %s340_s15 = sshll.u32 %s13689_s11, 4  ;;  %s341_s15 = int_to_ptr.vmem [resolvable:$true] %s340_s15 }
  0xbf   :  { %s13017_s22 = scalar_lea.vmem %s341_s15, 96  ;;  %p13022_p13 = scmp.lt.s32.totalorder %s341_s15, %s341_s15 }
  0xc0   :  { %p13018_p12 = scmp.ne.s32.totalorder %s341_s15, %s13017_s22  ;;  %p13023_p0 = scmp.lt.s32.totalorder %s13017_s22, %s13017_s22 }
  0xc2   :  { %p13024_p1 = por %p13023_p0, %p13022_p13 }
  0xc4   :  { %p13025_p2 = pnand %p13024_p1, %p13018_p12 }
  0xc6   :  { %13028 = shalt.err (!%p13025_p2)
}
  0xc7   :  { %s13690_s30 = smov 48   ;;  %s13691_s13 = smov 3  }
  0xc8   :  { %346 = dma.hbm_to_vmem [thread:$0]  %s13864_s6, 96, %s341_s15, [#allocation29], %s13690_s30, %s13690_s30, %s13691_s13  }
  0xc9   :  { %s13692_s8 = smov [#allocation31]   ;;  %s13693_s23 = smov [#allocation34]  }
  0xca   :  { %s364_s19 = sshll.u32 %s13692_s8, 4  ;;  %s388_s26 = sshll.u32 %s13693_s23, 4  ;;  %s365_s19 = int_to_ptr.vmem [resolvable:$true] %s364_s19  ;;  %s389_s26 = int_to_ptr.vmem [resolvable:$true] %s388_s26 }
  0xcb   :  { %s13037_s29 = scalar_lea.vmem %s365_s19, 32  ;;  %p13042_p4 = scmp.lt.s32.totalorder %s365_s19, %s365_s19 }
  0xcc   :  { %p13038_p3 = scmp.ne.s32.totalorder %s365_s19, %s13037_s29  ;;  %p13043_p5 = scmp.lt.s32.totalorder %s13037_s29, %s13037_s29 }
  0xce   :  { %p13044_p6 = por %p13043_p5, %p13042_p4 }
  0xd0   :  { %p13045_p7 = pnand %p13044_p6, %p13038_p3 }
  0xd2   :  { %13048 = shalt.err (!%p13045_p7)
}
  0xd3   :  { %370 = dma.hbm_to_vmem [thread:$0]  %s13874_s3, 32, %s365_s19, [#allocation32], %s13679_s16, %s13679_s16, %s13680_s18  }
  0xd4   :  { %s13057_s0 = scalar_lea.vmem %s389_s26, 32  ;;  %p13062_p9 = scmp.lt.s32.totalorder %s389_s26, %s389_s26 }
  0xd5   :  { %p13058_p8 = scmp.ne.s32.totalorder %s389_s26, %s13057_s0  ;;  %p13063_p10 = scmp.lt.s32.totalorder %s13057_s0, %s13057_s0 }
  0xd7   :  { %p13064_p11 = por %p13063_p10, %p13062_p9 }
  0xd9   :  { %p13065_p12 = pnand %p13064_p11, %p13058_p8 }
  0xdb   :  { %13068 = shalt.err (!%p13065_p12)
}
  0xdc   :  { %394 = dma.hbm_to_vmem [thread:$0]  %s13884_s20, 32, %s389_s26, [#allocation35], %s13679_s16, %s13679_s16, %s13680_s18  }
  0xdd   :  { %s13694_s6 = smov [#allocation37]   ;;  %s13695_s10 = smov [#allocation40]  }
  0xde   :  { %s414_s21 = sshll.u32 %s13694_s6, 4  ;;  %s438_s12 = sshll.u32 %s13695_s10, 4  ;;  %s415_s21 = int_to_ptr.vmem [resolvable:$true] %s414_s21  ;;  %s439_s12 = int_to_ptr.vmem [resolvable:$true] %s438_s12 }
  0xdf   :  { %s13077_s27 = scalar_lea.vmem %s415_s21, 4096  ;;  %p13082_p0 = scmp.lt.s32.totalorder %s415_s21, %s415_s21 }
  0xe0   :  { %p13078_p13 = scmp.ne.s32.totalorder %s415_s21, %s13077_s27  ;;  %p13083_p1 = scmp.lt.s32.totalorder %s13077_s27, %s13077_s27 }
  0xe2   :  { %p13084_p2 = por %p13083_p1, %p13082_p0 }
  0xe4   :  { %p13085_p3 = pnand %p13084_p2, %p13078_p13 }
  0xe6   :  { %13088 = shalt.err (!%p13085_p3)
}
  0xe7   :  { %420 = dma.hbm_to_vmem [thread:$0]  %s13899_s4, 4096, %s415_s21, [#allocation38], %s13676_s2, %s13676_s2, %s13677_s7  }
  0xe8   :  { %s13097_s3 = scalar_lea.vmem %s439_s12, 2048  ;;  %p13102_p5 = scmp.lt.s32.totalorder %s439_s12, %s439_s12 }
  0xe9   :  { %p13098_p4 = scmp.ne.s32.totalorder %s439_s12, %s13097_s3  ;;  %p13103_p6 = scmp.lt.s32.totalorder %s13097_s3, %s13097_s3 }
  0xeb   :  { %p13104_p7 = por %p13103_p6, %p13102_p5 }
  0xed   :  { %p13105_p8 = pnand %p13104_p7, %p13098_p4 }
  0xef   :  { %13108 = shalt.err (!%p13105_p8)
}
  0xf0   :  { %444 = dma.hbm_to_vmem [thread:$0]  %s13909_s5, 2048, %s439_s12, [#allocation41], %s13683_s28, %s13683_s28, %s13684_s1  }
  0xf1   :  { %s13696_s20 = smov [#allocation43]   ;;  %s13697_s15 = smov [#allocation46]  }
  0xf2   :  { %s462_s11 = sshll.u32 %s13696_s20, 4  ;;  %s486_s22 = sshll.u32 %s13697_s15, 4  ;;  %s463_s11 = int_to_ptr.vmem [resolvable:$true] %s462_s11  ;;  %s487_s22 = int_to_ptr.vmem [resolvable:$true] %s486_s22 }
  0xf3   :  { %s13117_s30 = scalar_lea.vmem %s463_s11, 32  ;;  %p13122_p10 = scmp.lt.s32.totalorder %s463_s11, %s463_s11 }
  0xf4   :  { %p13118_p9 = scmp.ne.s32.totalorder %s463_s11, %s13117_s30  ;;  %p13123_p11 = scmp.lt.s32.totalorder %s13117_s30, %s13117_s30 }
  0xf6   :  { %p13124_p12 = por %p13123_p11, %p13122_p10 }
  0xf8   :  { %p13125_p13 = pnand %p13124_p12, %p13118_p9 }
  0xfa   :  { %13128 = shalt.err (!%p13125_p13)
}
  0xfb   :  { %468 = dma.hbm_to_vmem [thread:$0]  %s13919_s25, 32, %s463_s11, [#allocation44], %s13679_s16, %s13679_s16, %s13680_s18  }
  0xfc   :  { %s13137_s4 = scalar_lea.vmem %s487_s22, 4096  ;;  %p13142_p1 = scmp.lt.s32.totalorder %s487_s22, %s487_s22 }
  0xfd   :  { %p13138_p0 = scmp.ne.s32.totalorder %s487_s22, %s13137_s4  ;;  %p13143_p2 = scmp.lt.s32.totalorder %s13137_s4, %s13137_s4 }
  0xff   :  { %p13144_p3 = por %p13143_p2, %p13142_p1 }
 0x101   :  { %p13145_p4 = pnand %p13144_p3, %p13138_p0 }
 0x103   :  { %13148 = shalt.err (!%p13145_p4)
}
 0x104   :  { %s15781_s5 = sld [smem:[#allocation102_spill]]  ;;  %s13698_s13 = smov [#allocation49]  }
 0x105   :  { %s510_s8 = sshll.u32 %s13698_s13, 4  ;;  %s13699_s19 = smov [#allocation52]   ;;  %s511_s8 = int_to_ptr.vmem [resolvable:$true] %s510_s8 }
 0x106   :  { %s534_s23 = sshll.u32 %s13699_s19, 4  ;;  %s13157_s26 = scalar_lea.vmem %s511_s8, 4096  ;;  %s535_s23 = int_to_ptr.vmem [resolvable:$true] %s534_s23 }
 0x107   :  { %p13158_p5 = scmp.ne.s32.totalorder %s511_s8, %s13157_s26  ;;  %p13162_p6 = scmp.lt.s32.totalorder %s511_s8, %s511_s8 }
 0x108   :  { %p13163_p7 = scmp.lt.s32.totalorder %s13157_s26, %s13157_s26 }
 0x10a   :  { %492 = dma.hbm_to_vmem [thread:$0]  %s15781_s5, 4096, %s487_s22, [#allocation47], %s13676_s2, %s13676_s2, %s13677_s7  }
 0x10b   :  { %p13164_p8 = por %p13163_p7, %p13162_p6 }
 0x10d   :  { %p13165_p9 = pnand %p13164_p8, %p13158_p5 }
 0x10f   :  { %13168 = shalt.err (!%p13165_p9)
}
 0x110   :  { %s15782_s25 = sld [smem:[#allocation104_spill]]  ;;  %s13177_s29 = scalar_lea.vmem %s535_s23, 32 }
 0x111   :  { %p13178_p10 = scmp.ne.s32.totalorder %s535_s23, %s13177_s29  ;;  %p13182_p11 = scmp.lt.s32.totalorder %s535_s23, %s535_s23 }
 0x112   :  { %p13183_p12 = scmp.lt.s32.totalorder %s13177_s29, %s13177_s29 }
 0x114   :  { %p13184_p13 = por %p13183_p12, %p13182_p11 }
 0x116   :  { %516 = dma.hbm_to_vmem [thread:$0]  %s15782_s25, 4096, %s511_s8, [#allocation50], %s13683_s28, %s13683_s28, %s13684_s1  }
 0x117   :  { %p13185_p0 = pnand %p13184_p13, %p13178_p10 }
 0x119   :  { %13188 = shalt.err (!%p13185_p0)
}
 0x11a   :  { %s15783_s0 = sld [smem:[#allocation106_spill]]  ;;  %s13700_s6 = smov [#allocation55]  }
 0x11b   :  { %s559_s21 = sshll.u32 %s13700_s6, 4  ;;  %s13701_s10 = smov [#allocation2]   ;;  %s560_s21 = int_to_ptr.vmem [resolvable:$true] %s559_s21 }
 0x11c   :  { %s128_s12 = sshll.u32 %s13701_s10, 4  ;;  %s13197_s27 = scalar_lea.vmem %s560_s21, 32  ;;  %s129_s12 = int_to_ptr.vmem [resolvable:$true] %s128_s12 }
 0x11d   :  { %p13198_p1 = scmp.ne.s32.totalorder %s560_s21, %s13197_s27  ;;  %p13202_p2 = scmp.lt.s32.totalorder %s560_s21, %s560_s21 }
 0x11e   :  { %p13203_p3 = scmp.lt.s32.totalorder %s13197_s27, %s13197_s27 }
 0x120   :  { %540 = dma.hbm_to_vmem [thread:$0]  %s15783_s0, 32, %s535_s23, [#allocation53], %s13679_s16, %s13679_s16, %s13680_s18  }
 0x121   :  { %p13204_p4 = por %p13203_p3, %p13202_p2 }
 0x123   :  { %p13205_p5 = pnand %p13204_p4, %p13198_p1 }
 0x125   :  { %13208 = shalt.err (!%p13205_p5)
}
 0x126   :  { %562 = dma.hbm_to_vmem [thread:$0]  %s13959_s9, 32, %s560_s21, [#allocation56]  }
 0x127   :  { %s13217_s3 = scalar_lea.vmem %s129_s12, 2048  ;;  %p13222_p7 = scmp.lt.s32.totalorder %s129_s12, %s129_s12 }
 0x128   :  { %p13218_p6 = scmp.ne.s32.totalorder %s129_s12, %s13217_s3  ;;  %p13223_p8 = scmp.lt.s32.totalorder %s13217_s3, %s13217_s3 }
 0x12a   :  { %p13224_p9 = por %p13223_p8, %p13222_p7 }
 0x12c   :  { %p13225_p10 = pnand %p13224_p9, %p13218_p6 }
 0x12e   :  { %13228 = shalt.err (!%p13225_p10)
}
 0x12f   :  { %s15784_s20 = sld [smem:[#allocation78_spill]]  ;;  %s13702_s11 = smov [#allocation6]  }
 0x130   :  { %s152_s15 = sshll.u32 %s13702_s11, 4  ;;  %s13703_s22 = smov [#allocation9]   ;;  %s153_s15 = int_to_ptr.vmem [resolvable:$true] %s152_s15 }
 0x131   :  { %s176_s30 = sshll.u32 %s13703_s22, 4  ;;  %s13237_s4 = scalar_lea.vmem %s153_s15, 256  ;;  %s177_s30 = int_to_ptr.vmem [resolvable:$true] %s176_s30 }
 0x132   :  { %p13238_p11 = scmp.ne.s32.totalorder %s153_s15, %s13237_s4  ;;  %p13242_p12 = scmp.lt.s32.totalorder %s153_s15, %s153_s15 }
 0x133   :  { %p13243_p13 = scmp.lt.s32.totalorder %s13237_s4, %s13237_s4 }
 0x135   :  { %134 = dma.hbm_to_vmem [thread:$0]  %s15784_s20, 2048, %s129_s12, [#allocation3], %s13683_s28, %s13683_s28, %s13684_s1  }
 0x136   :  { %p13244_p0 = por %p13243_p13, %p13242_p12 }
 0x138   :  { %p13245_p1 = pnand %p13244_p0, %p13238_p11 }
 0x13a   :  { %13248 = shalt.err (!%p13245_p1)
}
 0x13b   :  { %s15785_s9 = sld [smem:[#allocation79_spill]]  ;;  %s13257_s5 = scalar_lea.vmem %s177_s30, 32 }
 0x13c   :  { %p13258_p2 = scmp.ne.s32.totalorder %s177_s30, %s13257_s5  ;;  %p13262_p3 = scmp.lt.s32.totalorder %s177_s30, %s177_s30 }
 0x13d   :  { %p13263_p4 = scmp.lt.s32.totalorder %s13257_s5, %s13257_s5 }
 0x13f   :  { %p13264_p5 = por %p13263_p4, %p13262_p3 }
 0x141   :  { %158 = dma.hbm_to_vmem [thread:$0]  %s15785_s9, 256, %s153_s15, [#allocation5], %s13676_s2, %s13676_s2, %s13677_s7  }
 0x142   :  { %p13265_p6 = pnand %p13264_p5, %p13258_p2 }
 0x144   :  { %13268 = shalt.err (!%p13265_p6)
}
 0x145   :  { %s15786_s13 = sld [smem:[#allocation80_spill]]  ;;  %s13704_s8 = smov [#allocation12]  }
 0x146   :  { %s204_s19 = sshll.u32 %s13704_s8, 4  ;;  %s13705_s23 = smov [#allocation15]   ;;  %s205_s19 = int_to_ptr.vmem [resolvable:$true] %s204_s19 }
 0x147   :  { %s228_s26 = sshll.u32 %s13705_s23, 4  ;;  %s13277_s25 = scalar_lea.vmem %s205_s19, 32  ;;  %s229_s26 = int_to_ptr.vmem [resolvable:$true] %s228_s26 }
 0x148   :  { %p13278_p7 = scmp.ne.s32.totalorder %s205_s19, %s13277_s25  ;;  %p13282_p8 = scmp.lt.s32.totalorder %s205_s19, %s205_s19 }
 0x149   :  { %p13283_p9 = scmp.lt.s32.totalorder %s13277_s25, %s13277_s25 }
 0x14b   :  { %182 = dma.hbm_to_vmem [thread:$0]  %s15786_s13, 32, %s177_s30, [#allocation8], %s13679_s16, %s13679_s16, %s13680_s18  }
 0x14c   :  { %p13284_p10 = por %p13283_p9, %p13282_p8 }
 0x14e   :  { %p13285_p11 = pnand %p13284_p10, %p13278_p7 }
 0x150   :  { %13288 = shalt.err (!%p13285_p11)
}
 0x151   :  { %s15787_s29 = sld [smem:[#allocation83_spill]]  ;;  %s13297_s0 = scalar_lea.vmem %s229_s26, 32 }
 0x152   :  { %p13298_p12 = scmp.ne.s32.totalorder %s229_s26, %s13297_s0  ;;  %p13302_p13 = scmp.lt.s32.totalorder %s229_s26, %s229_s26 }
 0x153   :  { %p13303_p0 = scmp.lt.s32.totalorder %s13297_s0, %s13297_s0 }
 0x155   :  { %p13304_p1 = por %p13303_p0, %p13302_p13 }
 0x157   :  { %210 = dma.hbm_to_vmem [thread:$0]  %s15787_s29, 32, %s205_s19, [#allocation11], %s13679_s16, %s13679_s16, %s13680_s18  }
 0x158   :  { %p13305_p2 = pnand %p13304_p1, %p13298_p12 }
 0x15a   :  { %13308 = shalt.err (!%p13305_p2)
}
 0x15b   :  { %s15788_s6 = sld [smem:[#allocation84_spill]]  ;;  %s13706_s21 = smov [#allocation18]  }
 0x15c   :  { %s256_s10 = sshll.u32 %s13706_s21, 4  ;;  %s13707_s12 = smov [#allocation21]   ;;  %s257_s10 = int_to_ptr.vmem [resolvable:$true] %s256_s10 }
 0x15d   :  { %s279_s27 = sshll.u32 %s13707_s12, 4  ;;  %s13317_s3 = scalar_lea.vmem %s257_s10, 32  ;;  %s280_s27 = int_to_ptr.vmem [resolvable:$true] %s279_s27 }
 0x15e   :  { %p13318_p3 = scmp.ne.s32.totalorder %s257_s10, %s13317_s3  ;;  %p13322_p4 = scmp.lt.s32.totalorder %s257_s10, %s257_s10 }
 0x15f   :  { %p13323_p5 = scmp.lt.s32.totalorder %s13317_s3, %s13317_s3 }
 0x161   :  { %234 = dma.hbm_to_vmem [thread:$0]  %s15788_s6, 32, %s229_s26, [#allocation14], %s13679_s16, %s13679_s16, %s13680_s18  }
 0x162   :  { %p13324_p6 = por %p13323_p5, %p13322_p4 }
 0x164   :  { %p13325_p7 = pnand %p13324_p6, %p13318_p3 }
 0x166   :  { %13328 = shalt.err (!%p13325_p7)
}
 0x167   :  { %s15789_s20 = sld [smem:[#allocation87_spill]]  ;;  %s13337_s11 = scalar_lea.vmem %s280_s27, 16 }
 0x168   :  { %p13338_p8 = scmp.ne.s32.totalorder %s280_s27, %s13337_s11  ;;  %s13341_s15 = scalar_lea.vmem %s280_s27, 32 }
 0x169   :  { %p13342_p9 = scmp.lt.s32.totalorder %s280_s27, %s280_s27  ;;  %p13343_p10 = scmp.lt.s32.totalorder %s13341_s15, %s13337_s11 }
 0x16b   :  { %p13344_p11 = por %p13343_p10, %p13342_p9 }
 0x16d   :  { %262 = dma.hbm_to_vmem [thread:$0]  %s15789_s20, 32, %s257_s10, [#allocation17], %s13679_s16, %s13679_s16, %s13680_s18  }
 0x16e   :  { %p13345_p12 = pnand %p13344_p11, %p13338_p8 }
 0x170   :  { %13348 = shalt.err (!%p13345_p12)
}
 0x171   :  { %s15790_s22 = sld [smem:[#allocation88_spill]]  ;;  %s13708_s30 = smov [#allocation24]  }
 0x172   :  { %s302_s4 = sshll.u32 %s13708_s30, 4  ;;  %s13709_s9 = smov [#allocation27]   ;;  %s303_s4 = int_to_ptr.vmem [resolvable:$true] %s302_s4 }
 0x173   :  { %s325_s5 = sshll.u32 %s13709_s9, 4  ;;  %s13357_s13 = scalar_lea.vmem %s303_s4, 512  ;;  %s326_s5 = int_to_ptr.vmem [resolvable:$true] %s325_s5 }
 0x174   :  { %p13358_p13 = scmp.ne.s32.totalorder %s303_s4, %s13357_s13  ;;  %p13362_p0 = scmp.lt.s32.totalorder %s303_s4, %s303_s4 }
 0x175   :  { %p13363_p1 = scmp.lt.s32.totalorder %s13357_s13, %s13357_s13 }
 0x177   :  { %282 = dma.hbm_to_vmem [thread:$0]  %s15790_s22, 16, %s280_s27, [#allocation20]  }
 0x178   :  { %p13364_p2 = por %p13363_p1, %p13362_p0 }
 0x17a   :  { %p13365_p3 = pnand %p13364_p2, %p13358_p13 }
 0x17c   :  { %13368 = shalt.err (!%p13365_p3)
}
 0x17d   :  { %s15791_s8 = sld [smem:[#allocation90_spill]]  ;;  %s13377_s19 = scalar_lea.vmem %s326_s5, 16 }
 0x17e   :  { %p13378_p4 = scmp.ne.s32.totalorder %s326_s5, %s13377_s19  ;;  %s13381_s23 = scalar_lea.vmem %s326_s5, 32 }
 0x17f   :  { %p13382_p5 = scmp.lt.s32.totalorder %s326_s5, %s326_s5  ;;  %p13383_p6 = scmp.lt.s32.totalorder %s13381_s23, %s13377_s19 }
 0x181   :  { %p13384_p7 = por %p13383_p6, %p13382_p5 }
 0x183   :  { %308 = dma.hbm_to_vmem [thread:$0]  %s15791_s8, 512, %s303_s4, [#allocation23], %s13676_s2, %s13676_s2, %s13677_s7  }
 0x184   :  { %p13385_p8 = pnand %p13384_p7, %p13378_p4 }
 0x186   :  { %13388 = shalt.err (!%p13385_p8)
}
 0x187   :  { %s15792_s26 = sld [smem:[#allocation91_spill]]  ;;  %s13710_s25 = smov [#allocation30]  }
 0x188   :  { %s352_s29 = sshll.u32 %s13710_s25, 4  ;;  %s13711_s0 = smov [#allocation33]   ;;  %s353_s29 = int_to_ptr.vmem [resolvable:$true] %s352_s29 }
 0x189   :  { %s376_s6 = sshll.u32 %s13711_s0, 4  ;;  %s13397_s21 = scalar_lea.vmem %s353_s29, 2048  ;;  %s377_s6 = int_to_ptr.vmem [resolvable:$true] %s376_s6 }
 0x18a   :  { %p13398_p9 = scmp.ne.s32.totalorder %s353_s29, %s13397_s21  ;;  %p13402_p10 = scmp.lt.s32.totalorder %s353_s29, %s353_s29 }
 0x18b   :  { %p13403_p11 = scmp.lt.s32.totalorder %s13397_s21, %s13397_s21 }
 0x18d   :  { %328 = dma.hbm_to_vmem [thread:$0]  %s15792_s26, 16, %s326_s5, [#allocation26]  }
 0x18e   :  { %p13404_p12 = por %p13403_p11, %p13402_p10 }
 0x190   :  { %p13405_p13 = pnand %p13404_p12, %p13398_p9 }
 0x192   :  { %13408 = shalt.err (!%p13405_p13)
}
 0x193   :  { %s15793_s2 = sld [smem:[#allocation95_spill]]  ;;  %s13417_s7 = scalar_lea.vmem %s377_s6, 32 }
 0x194   :  { %p13418_p0 = scmp.ne.s32.totalorder %s377_s6, %s13417_s7  ;;  %p13422_p1 = scmp.lt.s32.totalorder %s377_s6, %s377_s6 }
 0x195   :  { %p13423_p2 = scmp.lt.s32.totalorder %s13417_s7, %s13417_s7 }
 0x197   :  { %p13424_p3 = por %p13423_p2, %p13422_p1 }
 0x199   :  { %358 = dma.hbm_to_vmem [thread:$0]  %s15793_s2, 2048, %s353_s29, [#allocation29], %s13683_s28, %s13683_s28, %s13684_s1  }
 0x19a   :  { %p13425_p4 = pnand %p13424_p3, %p13418_p0 }
 0x19c   :  { %13428 = shalt.err (!%p13425_p4)
}
 0x19d   :  { %s15794_s10 = sld [smem:[#allocation96_spill]]  ;;  %s13712_s12 = smov [#allocation36]  }
 0x19e   :  { %s402_s27 = sshll.u32 %s13712_s12, 4  ;;  %s13713_s3 = smov [#allocation39]   ;;  %s403_s27 = int_to_ptr.vmem [resolvable:$true] %s402_s27 }
 0x19f   :  { %s426_s20 = sshll.u32 %s13713_s3, 4  ;;  %s13437_s11 = scalar_lea.vmem %s403_s27, 32  ;;  %s427_s20 = int_to_ptr.vmem [resolvable:$true] %s426_s20 }
 0x1a0   :  { %p13438_p5 = scmp.ne.s32.totalorder %s403_s27, %s13437_s11  ;;  %p13442_p6 = scmp.lt.s32.totalorder %s403_s27, %s403_s27 }
 0x1a1   :  { %p13443_p7 = scmp.lt.s32.totalorder %s13437_s11, %s13437_s11 }
 0x1a3   :  { %382 = dma.hbm_to_vmem [thread:$0]  %s15794_s10, 32, %s377_s6, [#allocation32], %s13679_s16, %s13679_s16, %s13680_s18  }
 0x1a4   :  { %p13444_p8 = por %p13443_p7, %p13442_p6 }
 0x1a6   :  { %p13445_p9 = pnand %p13444_p8, %p13438_p5 }
 0x1a8   :  { %13448 = shalt.err (!%p13445_p9)
}
 0x1a9   :  { %s15795_s15 = sld [smem:[#allocation98_spill]]  ;;  %s13457_s22 = scalar_lea.vmem %s427_s20, 64 }
 0x1aa   :  { %p13458_p10 = scmp.ne.s32.totalorder %s427_s20, %s13457_s22  ;;  %p13462_p11 = scmp.lt.s32.totalorder %s427_s20, %s427_s20 }
 0x1ab   :  { %p13463_p12 = scmp.lt.s32.totalorder %s13457_s22, %s13457_s22 }
 0x1ad   :  { %p13464_p13 = por %p13463_p12, %p13462_p11 }
 0x1af   :  { %408 = dma.hbm_to_vmem [thread:$0]  %s15795_s15, 32, %s403_s27, [#allocation35], %s13679_s16, %s13679_s16, %s13680_s18  }
 0x1b0   :  { %p13465_p0 = pnand %p13464_p13, %p13458_p10 }
 0x1b2   :  { %13468 = shalt.err (!%p13465_p0)
}
 0x1b3   :  { %s13714_s30 = smov 32   ;;  %s15796_s4 = sld [smem:[#allocation99_spill]] }
 0x1b4   :  { %s13715_s9 = smov 2   ;;  %s13716_s5 = smov [#allocation42]  }
 0x1b5   :  { %s450_s13 = sshll.u32 %s13716_s5, 4  ;;  %s13717_s8 = smov [#allocation45]   ;;  %s451_s13 = int_to_ptr.vmem [resolvable:$true] %s450_s13 }
 0x1b6   :  { %s474_s19 = sshll.u32 %s13717_s8, 4  ;;  %s13477_s23 = scalar_lea.vmem %s451_s13, 32  ;;  %s475_s19 = int_to_ptr.vmem [resolvable:$true] %s474_s19 }
 0x1b7   :  { %p13478_p1 = scmp.ne.s32.totalorder %s451_s13, %s13477_s23  ;;  %p13482_p2 = scmp.lt.s32.totalorder %s451_s13, %s451_s13 }
 0x1b8   :  { %p13483_p3 = scmp.lt.s32.totalorder %s13477_s23, %s13477_s23 }
 0x1b9   :  { %432 = dma.hbm_to_vmem [thread:$0]  %s15796_s4, 64, %s427_s20, [#allocation38], %s13714_s30, %s13714_s30, %s13715_s9  }
 0x1ba   :  { %p13484_p4 = por %p13483_p3, %p13482_p2 }
 0x1bc   :  { %p13485_p5 = pnand %p13484_p4, %p13478_p1 }
 0x1be   :  { %13488 = shalt.err (!%p13485_p5)
}
 0x1bf   :  { %s15797_s26 = sld [smem:[#allocation100_spill]]  ;;  %s13497_s25 = scalar_lea.vmem %s475_s19, 32 }
 0x1c0   :  { %p13498_p6 = scmp.ne.s32.totalorder %s475_s19, %s13497_s25  ;;  %p13502_p7 = scmp.lt.s32.totalorder %s475_s19, %s475_s19 }
 0x1c1   :  { %p13503_p8 = scmp.lt.s32.totalorder %s13497_s25, %s13497_s25 }
 0x1c3   :  { %p13504_p9 = por %p13503_p8, %p13502_p7 }
 0x1c5   :  { %456 = dma.hbm_to_vmem [thread:$0]  %s15797_s26, 32, %s451_s13, [#allocation41], %s13679_s16, %s13679_s16, %s13680_s18  }
 0x1c6   :  { %p13505_p10 = pnand %p13504_p9, %p13498_p6 }
 0x1c8   :  { %13508 = shalt.err (!%p13505_p10)
}
 0x1c9   :  { %s15798_s29 = sld [smem:[#allocation101_spill]]  ;;  %s13718_s0 = smov [#allocation48]  }
 0x1ca   :  { %s498_s6 = sshll.u32 %s13718_s0, 4  ;;  %s13719_s21 = smov [#allocation51]   ;;  %s499_s6 = int_to_ptr.vmem [resolvable:$true] %s498_s6 }
 0x1cb   :  { %s522_s2 = sshll.u32 %s13719_s21, 4  ;;  %s13517_s7 = scalar_lea.vmem %s499_s6, 64  ;;  %s523_s2 = int_to_ptr.vmem [resolvable:$true] %s522_s2 }
 0x1cc   :  { %p13518_p11 = scmp.ne.s32.totalorder %s499_s6, %s13517_s7  ;;  %p13522_p12 = scmp.lt.s32.totalorder %s499_s6, %s499_s6 }
 0x1cd   :  { %p13523_p13 = scmp.lt.s32.totalorder %s13517_s7, %s13517_s7 }
 0x1cf   :  { %480 = dma.hbm_to_vmem [thread:$0]  %s15798_s29, 32, %s475_s19, [#allocation44], %s13679_s16, %s13679_s16, %s13680_s18  }
 0x1d0   :  { %p13524_p0 = por %p13523_p13, %p13522_p12 }
 0x1d2   :  { %p13525_p1 = pnand %p13524_p0, %p13518_p11 }
 0x1d4   :  { %13528 = shalt.err (!%p13525_p1)
}
 0x1d5   :  { %s15799_s10 = sld [smem:[#allocation103_spill]]  ;;  %s13537_s12 = scalar_lea.vmem %s523_s2, 32 }
 0x1d6   :  { %p13538_p2 = scmp.ne.s32.totalorder %s523_s2, %s13537_s12  ;;  %p13542_p3 = scmp.lt.s32.totalorder %s523_s2, %s523_s2 }
 0x1d7   :  { %p13543_p4 = scmp.lt.s32.totalorder %s13537_s12, %s13537_s12 }
 0x1d9   :  { %p13544_p5 = por %p13543_p4, %p13542_p3 }
 0x1db   :  { %504 = dma.hbm_to_vmem [thread:$0]  %s15799_s10, 64, %s499_s6, [#allocation47], %s13714_s30, %s13714_s30, %s13715_s9  }
 0x1dc   :  { %p13545_p6 = pnand %p13544_p5, %p13538_p2 }
 0x1de   :  { %13548 = shalt.err (!%p13545_p6)
}
 0x1df   :  { %s15800_s27 = sld [smem:[#allocation105_spill]]  ;;  %s13720_s3 = smov [#allocation54]  }
 0x1e0   :  { %s546_s20 = sshll.u32 %s13720_s3, 4  ;;  %s13721_s11 = smov [#allocation57]   ;;  %s547_s20 = int_to_ptr.vmem [resolvable:$true] %s546_s20 }
 0x1e1   :  { %s568_s15 = sshll.u32 %s13721_s11, 4  ;;  %s13557_s22 = scalar_lea.vmem %s547_s20, 32  ;;  %s569_s15 = int_to_ptr.vmem [resolvable:$true] %s568_s15 }
 0x1e2   :  { %p13558_p7 = scmp.ne.s32.totalorder %s547_s20, %s13557_s22  ;;  %p13562_p8 = scmp.lt.s32.totalorder %s547_s20, %s547_s20 }
 0x1e3   :  { %p13563_p9 = scmp.lt.s32.totalorder %s13557_s22, %s13557_s22 }
 0x1e5   :  { %528 = dma.hbm_to_vmem [thread:$0]  %s15800_s27, 32, %s523_s2, [#allocation50], %s13679_s16, %s13679_s16, %s13680_s18  }
 0x1e6   :  { %p13564_p10 = por %p13563_p9, %p13562_p8 }
 0x1e8   :  { %p13565_p11 = pnand %p13564_p10, %p13558_p7 }
 0x1ea   :  { %13568 = shalt.err (!%p13565_p11)
}
 0x1eb   :  { %s15801_s4 = sld [smem:[#allocation107_spill]]  ;;  %s13577_s9 = scalar_lea.vmem %s569_s15, 1024 }
 0x1ec   :  { %p13578_p12 = scmp.ne.s32.totalorder %s569_s15, %s13577_s9  ;;  %p13582_p13 = scmp.lt.s32.totalorder %s569_s15, %s569_s15 }
 0x1ed   :  { %p13583_p0 = scmp.lt.s32.totalorder %s13577_s9, %s13577_s9 }
 0x1ef   :  { %p13584_p1 = por %p13583_p0, %p13582_p13 }
 0x1f1   :  { %552 = dma.hbm_to_vmem [thread:$0]  %s15801_s4, 32, %s547_s20, [#allocation53], %s13679_s16, %s13679_s16, %s13680_s18  }
 0x1f2   :  { %p13585_p2 = pnand %p13584_p1, %p13578_p12 }
 0x1f4   :  { %13588 = shalt.err (!%p13585_p2)
}
 0x1f5   :  { %574 = dma.hbm_to_vmem [thread:$0]  %s13964_s14, 1024, %s569_s15, [#allocation56], %s13683_s28, %s13683_s28, %s13684_s1  }
 0x1f6   :  { %13589 = dma.done.wait [#allocation3], 2048  }
 0x1f7   :  { %13590 = vsyncadd [#allocation3], 4294965248 }
 0x1f8   :  { %13591 = dma.done.wait [#allocation5], 512  }
 0x1f9   :  { %13592 = vsyncadd [#allocation5], 4294966784 }
 0x1fa   :  { %13593 = dma.done.wait [#allocation8], 64  }
 0x1fb   :  { %13594 = vsyncadd [#allocation8], 4294967232 }
 0x1fc   :  { %13595 = dma.done.wait [#allocation11], 2080  }
 0x1fd   :  { %13596 = vsyncadd [#allocation11], 4294965216 }
 0x1fe   :  { %13597 = dma.done.wait [#allocation14], 64  }
 0x1ff   :  { %13598 = vsyncadd [#allocation14], 4294967232 }
 0x200   :  { %13599 = dma.done.wait [#allocation17], 4128  }
 0x201   :  { %13600 = vsyncadd [#allocation17], 4294963168 }
 0x202   :  { %13601 = dma.done.wait [#allocation20], 32  }
 0x203   :  { %13602 = vsyncadd [#allocation20], 4294967264 }
 0x204   :  { %13603 = dma.done.wait [#allocation23], 1024  }
 0x205   :  { %13604 = vsyncadd [#allocation23], 4294966272 }
 0x206   :  { %13605 = dma.done.wait [#allocation26], 32  }
 0x207   :  { %13606 = vsyncadd [#allocation26], 4294967264 }
 0x208   :  { %13607 = dma.done.wait [#allocation29], 2144  }
 0x209   :  { %13608 = vsyncadd [#allocation29], 4294965152 }
 0x20a   :  { %13609 = dma.done.wait [#allocation32], 64  }
 0x20b   :  { %13610 = vsyncadd [#allocation32], 4294967232 }
 0x20c   :  { %13611 = dma.done.wait [#allocation35], 64  }
 0x20d   :  { %13612 = vsyncadd [#allocation35], 4294967232 }
 0x20e   :  { %13613 = dma.done.wait [#allocation38], 4160  }
 0x20f   :  { %13614 = vsyncadd [#allocation38], 4294963136 }
 0x210   :  { %13615 = dma.done.wait [#allocation41], 2080  }
 0x211   :  { %13616 = vsyncadd [#allocation41], 4294965216 }
 0x212   :  { %13617 = dma.done.wait [#allocation44], 64  }
 0x213   :  { %13618 = vsyncadd [#allocation44], 4294967232 }
 0x214   :  { %13619 = dma.done.wait [#allocation47], 4160  }
 0x215   :  { %13620 = vsyncadd [#allocation47], 4294963136 }
 0x216   :  { %13621 = dma.done.wait [#allocation50], 4128  }
 0x217   :  { %13622 = vsyncadd [#allocation50], 4294963168 }
 0x218   :  { %13623 = dma.done.wait [#allocation53], 64  }
 0x219   :  { %13624 = vsyncadd [#allocation53], 4294967232 }
 0x21a   :  { %13625 = dma.done.wait [#allocation56], 1056  }
 0x21b   :  { %13626 = vsyncadd [#allocation56], 4294966240  ;;  %v11963_v0 = vld [vmem:[#allocation2 + $0x78] sm:$0xff]   ;;  %v11965_v2 = vld [vmem:[#allocation2 + $0x70] sm:$0xff]   ;;  %s15802_s14 = sld [smem:[#allocation77_spill]]  ;;  %vm872_vm0 = vcmask 1041408  }
 0x21c   :  { %v11964_v1 = vld [vmem:[#allocation2 + $0x38] sm:$0xff]   ;;  %10680 = vmatprep.subr.bf16.mxu0 %v11963_v0  ;;  %v11966_v3 = vld [vmem:[#allocation2 + $0x30] sm:$0xff]   ;;  %v11967_v4 = vld [vmem:[#allocation2 + $0x68] sm:$0xff]   ;;  %s15803_s16 = sld [smem:[#allocation81_spill]]  ;;  %v13722_v35 = vmov 0.0   ;;  %v13723_v59 = vmov 0  }
 0x21d   :  { %10681 = vmatpush3.bf16.msra.mxu0 %v11964_v1  ;;  %v11968_v5 = vld [vmem:[#allocation2 + $0x28] sm:$0xff]   ;;  %v11969_v6 = vld [vmem:[#allocation2 + $0x60] sm:$0xff]   ;;  %v11971_v8 = vld [vmem:[#allocation2 + $0x58] sm:$0xff]   ;;  %1122 = vmatprep.mubr.bf16.mxu1 %v13723_v59  ;;  %vm13724_vm1 = vmmov 0   ;;  %s15804_s18 = sld [smem:[#allocation82_spill]]  ;;  %vm1194_vm2 = vcmask 261120  }
 0x21e   :  { %10682 = vmatprep.subr.bf16.mxu0 %v11965_v2  ;;  %v11970_v7 = vld [vmem:[#allocation2 + $0x20] sm:$0xff]   ;;  %v11972_v9 = vld [vmem:[#allocation2 + $0x18] sm:$0xff]   ;;  %v11973_v10 = vld [vmem:[#allocation2 + $0x50] sm:$0xff]   ;;  %11842 = vset.pattern.permute.xlu1 %v13723_v59  ;;  %vm1274_vm3 = vcmask 1044480   ;;  %vm1246_vm4 = vcmask 80896   ;;  %vm1250_vm5 = vcmask 74752  }
 0x21f   :  { %v11974_v13 = vld [vmem:[#allocation2 + $0x10] sm:$0xff]   ;;  %v11975_v15 = vld [vmem:[#allocation2 + $0x48] sm:$0xff]   ;;  %v11977_v17 = vld [vmem:[#allocation2 + $0x40] sm:$0xff]   ;;  %11841 = vset.pattern.permute.xlu0 %v13723_v59  ;;  %s13725_s1 = smov 96   ;;  %vm1729_vm6 = vcmask 523264   ;;  %vm1732_vm7 = vcmask 785408  }
 0x220   :  { %v11976_v16 = vld [vmem:[#allocation2 + $0x8] sm:$0xff]   ;;  %v11978_v18 = vld [vmem:[#allocation2] sm:$0xff]   ;;  %s15805_s5 = sld [smem:[#allocation85_spill]]  ;;  %vm10030_vm12 = vcmask 1043456  }
 0x221   :  { %10683 = vmatpush3.bf16.msra.mxu0 %v11966_v3  ;;  %v690_v11 = vld [vmem:[%s15802_s14 + $0x8] sm:$0xff]  ;;  %v692_v12 = vld [vmem:[%s15802_s14 + $0x18] sm:$0x3]  ;;  %v689_v19 = vld [vmem:[%s15802_s14] sm:$0xff]  ;;  %s15806_s13 = sld [smem:[#allocation86_spill]] }
 0x222   :  { %10684 = vmatprep.subr.bf16.mxu0 %v11967_v4  ;;  %v694_v14 = vpack.c.bf16 %v692_v12, %v690_v11  ;;  %v691_v20 = vld [vmem:[%s15802_s14 + $0x10] sm:$0x3]  ;;  %v728_v25 = vld [vmem:[#allocation4 + $0x8] sm:$0x3]  ;;  %v727_v30 = vld [vmem:[#allocation4] sm:$0xff]  ;;  %s15807_s8 = sld [smem:[#allocation89_spill]] }
 0x223   :  { %v693_v21 = vpack.c.bf16 %v691_v20, %v689_v19  ;;  %v11979_v33 = vld [vmem:[%s15803_s16 + $0xac] ss:$12 sps:$4 sm:$0xff]   ;;  %v11981_v34 = vld [vmem:[%s15803_s16 + $0xa8] ss:$12 sps:$4 sm:$0xff]   ;;  %v11982_v36 = vld [vmem:[%s15803_s16 + $0xb0] ss:$12 sps:$4 sm:$0xff]  }
 0x224   :  { %857 = vmatprep.mubr.bf16.mxu0 %v694_v14  ;;  %1090 = vmatprep.subr.bf16.mxu1 %v11979_v33  ;;  %v11983_v46 = vld [vmem:[%s15803_s16 + $0x94] ss:$12 sps:$4 sm:$0xff]   ;;  %v11985_v47 = vld [vmem:[%s15803_s16 + $0x90] ss:$12 sps:$4 sm:$0xff]   ;;  %v11986_v48 = vld [vmem:[%s15803_s16 + $0x98] ss:$12 sps:$4 sm:$0xff]  }
 0x225   :  { %10685 = vmatpush3.bf16.msra.mxu0 %v11968_v5  ;;  %1091 = vmatpush1.bf16.msra.mxu1 %v11981_v34  ;;  %v11987_v49 = vld [vmem:[%s15803_s16 + $0x7c] ss:$12 sps:$4 sm:$0xff]   ;;  %v11989_v50 = vld [vmem:[%s15803_s16 + $0x78] ss:$12 sps:$4 sm:$0xff]   ;;  %v11990_v51 = vld [vmem:[%s15803_s16 + $0x80] ss:$12 sps:$4 sm:$0xff]  }
 0x226   :  { %10686 = vmatprep.subr.bf16.mxu0 %v11969_v6  ;;  %1092 = vmatprep.subr.bf16.mxu1 %v11983_v46  ;;  %v11991_v52 = vld [vmem:[%s15803_s16 + $0x64] ss:$12 sps:$4 sm:$0xff]   ;;  %v11993_v53 = vld [vmem:[%s15803_s16 + $0x60] ss:$12 sps:$4 sm:$0xff]   ;;  %v11994_v54 = vld [vmem:[%s15803_s16 + $0x68] ss:$12 sps:$4 sm:$0xff]  }
 0x227   :  { %v11995_v55 = vld [vmem:[%s15803_s16 + $0x4c] ss:$12 sps:$4 sm:$0xff]   ;;  %v11997_v56 = vld [vmem:[%s15803_s16 + $0x48] ss:$12 sps:$4 sm:$0xff]   ;;  %v11998_v57 = vld [vmem:[%s15803_s16 + $0x50] ss:$12 sps:$4 sm:$0xff]  }
 0x228   :  { %v11999_v58 = vld [vmem:[%s15803_s16 + $0x34] ss:$12 sps:$4 sm:$0xff]   ;;  %v12001_v60 = vld [vmem:[%s15803_s16 + $0x30] ss:$12 sps:$4 sm:$0xff]   ;;  %v12002_v61 = vld [vmem:[%s15803_s16 + $0x38] ss:$12 sps:$4 sm:$0xff]  }
 0x229   :  { %10687 = vmatpush3.bf16.msra.mxu0 %v11970_v7  ;;  %1093 = vmatpush1.bf16.msra.mxu1 %v11985_v47  ;;  %v12003_v62 = vld [vmem:[%s15803_s16 + $0x1c] ss:$12 sps:$4 sm:$0xff]   ;;  %v12005_v63 = vld [vmem:[%s15803_s16 + $0x18] ss:$12 sps:$4 sm:$0xff]   ;;  %v12006_v0 = vld [vmem:[%s15803_s16 + $0x20] ss:$12 sps:$4 sm:$0xff]  }
 0x22a   :  { %10688 = vmatprep.subr.bf16.mxu0 %v11971_v8  ;;  %1094 = vmatprep.subr.bf16.mxu1 %v11987_v49  ;;  %v12007_v1 = vld [vmem:[%s15803_s16 + $0x4] ss:$12 sps:$4 sm:$0xff]   ;;  %v12009_v2 = vld [vmem:[%s15803_s16] ss:$12 sps:$4 sm:$0xff]   ;;  %v12010_v3 = vld [vmem:[%s15803_s16 + $0x8] ss:$12 sps:$4 sm:$0xff]  }
 0x22b   :  { %v10130_v12 = vld [vmem:[#allocation7] ss:$0 sm:$0xff]  ;;  %s15808_s19 = sld [smem:[#allocation94_spill]] }
 0x22c   :  { %s15809_s23 = sld [smem:[#allocation92_spill]] }
 0x22d   :  { %10689 = vmatpush3.bf16.msra.mxu0 %v11972_v9  ;;  %1095 = vmatpush1.bf16.msra.mxu1 %v11989_v50  ;;  %s15810_s26 = sld [smem:[#allocation97_spill]] }
 0x22e   :  { %10690 = vmatprep.subr.bf16.mxu0 %v11973_v10  ;;  %1096 = vmatprep.subr.bf16.mxu1 %v11991_v52  ;;  %s15811_s25 = sld [smem:[#allocation93_spill]] }
 0x231   :  { %10691 = vmatpush3.bf16.msra.mxu0 %v11974_v13  ;;  %1097 = vmatpush1.bf16.msra.mxu1 %v11993_v53  ;;  %v14194_v53 = vld [vmem:[#allocation6] sm:$0xff] }
 0x232   :  { %10692 = vmatprep.subr.bf16.mxu0 %v11975_v15  ;;  %1098 = vmatprep.subr.bf16.mxu1 %v11995_v55 }
 0x235   :  { %10693 = vmatpush3.bf16.msra.mxu0 %v11976_v16  ;;  %1099 = vmatpush1.bf16.msra.mxu1 %v11997_v56  ;;  %v10131_v16 = vld [vmem:[#allocation9] ss:$0 sm:$0xff] }
 0x236   :  { %10694 = vmatprep.subr.bf16.mxu0 %v11977_v17  ;;  %1100 = vmatprep.subr.bf16.mxu1 %v11999_v58  ;;  %v14197_v58 = vld [vmem:[#allocation6 + $0x8] sm:$0x3] }
 0x239   :  { %10695 = vmatpush3.bf16.msra.mxu0 %v11978_v18  ;;  %1101 = vmatpush1.bf16.msra.mxu1 %v12001_v60 }
 0x23a   :  { %11080 = vmatprep.subr.bf16.mxu0 %v13722_v35  ;;  %1102 = vmatprep.subr.bf16.mxu1 %v12003_v62 }
 0x23c   :  { %858 = vmatmul.mubr.bf16.vlgmr.msra.gmra.mxu0 %v693_v21  ;;  %v947_v21 = vlaneseq }
 0x23d   :  { %11081 = vmatpush3.bf16.msra.mxu0 %v11982_v36  ;;  %11096 = vmatprep.mubr.msk.bf16.mxu0 %vm13724_vm1, %v13722_v35 }
 0x23e   :  { %11082 = vmatprep.subr.bf16.mxu0 %v13722_v35  ;;  %1103 = vmatpush1.bf16.msra.mxu1 %v12005_v63 }
 0x23f   :  { %1104 = vmatprep.subr.bf16.mxu1 %v12007_v1 }
 0x241   :  { %11083 = vmatpush3.bf16.msra.mxu0 %v11986_v48 }
 0x242   :  { %11084 = vmatprep.subr.bf16.mxu0 %v13722_v35  ;;  %1105 = vmatpush1.bf16.msra.mxu1 %v12009_v2 }
 0x243   :  { %11100 = vmatprep.subr.bf16.mxu1 %v13722_v35 }
 0x245   :  { %11085 = vmatpush3.bf16.msra.mxu0 %v11990_v51 }
 0x246   :  { %11086 = vmatprep.subr.bf16.mxu0 %v13722_v35 }
 0x249   :  { %11087 = vmatpush3.bf16.msra.mxu0 %v11994_v54 }
 0x24a   :  { %11088 = vmatprep.subr.bf16.mxu0 %v13722_v35 }
 0x24d   :  { %11089 = vmatpush3.bf16.msra.mxu0 %v11998_v57 }
 0x24e   :  { %11090 = vmatprep.subr.bf16.mxu0 %v13722_v35 }
 0x251   :  { %11091 = vmatpush3.bf16.msra.mxu0 %v12002_v61 }
 0x252   :  { %11092 = vmatprep.subr.bf16.mxu0 %v13722_v35 }
 0x255   :  { %11093 = vmatpush3.bf16.msra.mxu0 %v12006_v0 }
 0x256   :  { %11094 = vmatprep.subr.bf16.mxu0 %v13722_v35 }
 0x259   :  { %11095 = vmatpush3.bf16.msra.mxu0 %v12010_v3 }
 0x25a   :  { %11124 = vmatprep.subr.bf16.mxu0 %v13722_v35 }
 0x2fc   :  { %v10696_v22 = vpop.f32.mrf.mxu0 }
 0x2fe   :  { %v10697_v23 = vpop.f32.mrf.mxu0 }
 0x2ff   :  { %v10698_v29 = vadd.f32 %v10697_v23, %v10696_v22  ;;  %v948_v22 = vshrl.u32 %v947_v21, 7 }
 0x300   :  { %v10699_v24 = vpop.f32.mrf.mxu0 }
 0x301   :  { %v14114_v32 = vadd.f32 %v10698_v29, %v727_v30  ;;  %v14174_v23 = vsub.s32 1, %v948_v22  ;;  %v14178_v34 = vsub.s32 2, %v948_v22 }
 0x302   :  { %v10700_v26 = vpop.f32.mrf.mxu0 }
 0x303   :  { %v10701_v27 = vadd.f32 %v10700_v26, %v10699_v24  ;;  %v945_v26 = vld [vmem:[%s15804_s18] sm:$0x7] }
 0x304   :  { %v954_v30 = vrot.slane %v945_v26, %v14174_v23 }
 0x305   :  { %v14110_v28 = vadd.f32 %v10701_v27, %v728_v25 }
 0x307   :  { %v873_v31 = vsel %vm872_vm0, %v14110_v28, 0.0 }
 0x308   :  { %874 = vadd.xlane.f32.xlu0 %v873_v31 }
 0x30c   :  { %870 = vadd.xlane.f32.xlu0 %v14114_v32 }
 0x391   :  { %v875_v37 = vpop.xlane.xlu0 %874 }
 0x392   :  { %v878_v38 = vmul.f32 0.0078125, %v875_v37 }
 0x394   :  { %v14123_v41 = vsub.f32 %v14110_v28, %v878_v38  ;;  %v14180_v38 = vsub.s32 0, %v948_v22 }
 0x395   :  { %v871_v39 = vpop.xlane.xlu0 %870 }
 0x396   :  { %v877_v40 = vmul.f32 0.0078125, %v871_v39  ;;  %v882_v44 = vmul.f32 %v14123_v41, %v14123_v41 }
 0x398   :  { %v14126_v42 = vsub.f32 %v14114_v32, %v877_v40  ;;  %v885_v45 = vsel %vm872_vm0, %v882_v44, 0.0 }
 0x39a   :  { %v881_v43 = vmul.f32 %v14126_v42, %v14126_v42 }
 0x39c   :  { %883 = vadd.xlane.f32.xlu1 %v881_v43  ;;  %v950_v43 = vrot.slane %v945_v26, %v14180_v38 }
 0x3a0   :  { %886 = vadd.xlane.f32.xlu1 %v885_v45 }
 0x425   :  { %v884_v4 = vpop.xlane.xlu1 %883 }
 0x426   :  { %v888_v5 = vmul.f32 0.0078125, %v884_v4 }
 0x428   :  { %v890_v6 = vadd.f32 1e-06, %v888_v5 }
 0x429   :  { %v887_v7 = vpop.xlane.xlu1 %886 }
 0x42a   :  { %12391 = vrsqrt.f32 %v890_v6  ;;  %v889_v8 = vmul.f32 0.0078125, %v887_v7 }
 0x42c   :  { %v891_v9 = vadd.f32 1e-06, %v889_v8 }
 0x42e   :  { %12393 = vrsqrt.f32 %v891_v9 }
 0x437   :  { %v12392_v10 = vpop.eup %12391 }
 0x438   :  { %v894_v11 = vmul.f32 %v12392_v10, %v14126_v42 }
 0x43a   :  { %v902_v15 = vmul.f32 %v10130_v12, %v894_v11 }
 0x43b   :  { %v12394_v13 = vpop.eup %12393 }
 0x43c   :  { %v895_v14 = vmul.f32 %v12394_v13, %v14123_v41  ;;  %v910_v18 = vadd.f32 %v10131_v16, %v902_v15  ;;  %v958_v41 = vrot.slane %v945_v26, %v14178_v34 }
 0x43e   :  { %v903_v17 = vmul.f32 %v10130_v12, %v895_v14 }
 0x440   :  { %v911_v19 = vadd.f32 %v10131_v16, %v903_v17 }
 0x442   :  { %v912_v20 = vpack.c.bf16 %v911_v19, %v910_v18 }
 0x444   :  { %1123 = vmatmul.mubr.bf16.vlgmr.msra.gmra.mxu1 %v912_v20  ;;  %11097 = vmatmul.mubr.bf16.vlgmr.msra.gmra.mxu0 %v912_v20 }
 0x445   :  { %11102 = vmatprep.mubr.msk.bf16.mxu1 %vm13724_vm1, %v13722_v35  ;;  %11126 = vmatprep.mubr.msk.bf16.mxu0 %vm13724_vm1, %v13722_v35 }
 0x504   :  { %v1124_v24 = vpop.f32.mrf.mxu1  ;;  %v1167_v25 = vpop.f32.mrf.mxu0 }
 0x505   :  { %v1168_v46 = vadd.f32 %v1167_v25, %v958_v41  ;;  %v1125_v48 = vadd.f32 %v1124_v24, %v950_v43 }
 0x506   :  { %v1126_v27 = vpop.f32.mrf.mxu1  ;;  %v11098_v29 = vpop.f32.mrf.mxu0 }
 0x507   :  { %v1127_v39 = vadd.f32 %v1126_v27, %v954_v30 }
 0x508   :  { %v1128_v31 = vpop.f32.mrf.mxu1  ;;  %v1170_v33 = vpop.f32.mrf.mxu0 }
 0x509   :  { %v1171_v44 = vadd.f32 %v1170_v33, %v958_v41  ;;  %v1129_v47 = vadd.f32 %v1128_v31, %v950_v43 }
 0x50a   :  { %v1130_v36 = vpop.f32.mrf.mxu1  ;;  %v11099_v37 = vpop.f32.mrf.mxu0 }
 0x50b   :  { %v1131_v40 = vadd.f32 %v1130_v36, %v954_v30  ;;  %v14186_v49 = vpack.c.bf16 %v1171_v44, %v1168_v46  ;;  %v1174_v50 = vpack.c.bf16 %v1129_v47, %v1125_v48 }
 0x50d   :  { %v1175_v42 = vpack.c.bf16 %v1131_v40, %v1127_v39  ;;  %v1276_v51 = vsel %vm1274_vm3, %v14186_v49, 0 }
 0x50f   :  { %v1199_v45 = vsel %vm1194_vm2, %v1175_v42, 0 }
 0x510   :  { %11101 = vmatpush3.bf16.xpose.msra.mxu1 %v1199_v45 }
 0x511   :  { %11106 = vmatprep.subr.bf16.mxu1 %v13722_v35 }
 0x517   :  { %11103 = vmatmul.mubr.msk.bf16.vlgmr.msra.gmra.mxu1 %vm1194_vm2, %v1174_v50 }
 0x518   :  { %11107 = vmatpush3.bf16.msra.mxu1 %v1276_v51  ;;  %11108 = vmatprep.mubr.msk.bf16.mxu1 %vm13724_vm1, %v13722_v35 }
 0x519   :  { %11112 = vmatprep.subr.bf16.mxu1 %v13722_v35 }
 0x5d7   :  { %v1235_v52 = vpop.f32.mrf.mxu1 }
 0x5d8   :  { %v1242_v54 = vmul.f32 0.17677669, %v1235_v52 }
 0x5d9   :  { %v11104_v55 = vpop.f32.mrf.mxu1 }
 0x5da   :  { %v1244_v56 = vadd.f32 %v1242_v54, %v14194_v53 }
 0x5db   :  { %v1238_v57 = vpop.f32.mrf.mxu1 }
 0x5dc   :  { %v1243_v60 = vmul.f32 0.17677669, %v1238_v57  ;;  %v1247_v61 = vsel %vm1246_vm4, %v1244_v56, -inf }
 0x5dd   :  { %1248 = vmax.xlane.f32.xlu0 %v1247_v61  ;;  %v11105_v62 = vpop.f32.mrf.mxu1 }
 0x5de   :  { %v1245_v63 = vadd.f32 %v1243_v60, %v14197_v58 }
 0x5e0   :  { %v1251_v0 = vsel %vm1250_vm5, %v1245_v63, -inf }
 0x5e1   :  { %1252 = vmax.xlane.f32.xlu1 %v1251_v0 }
 0x666   :  { %v1249_v1 = vpop.xlane.xlu0 %1248 }
 0x667   :  { %v1254_v2 = vsub.f32 %v1244_v56, %v1249_v1 }
 0x669   :  { %v1256_v3 = vmul.f32 1.442695, %v1254_v2 }
 0x66a   :  { %v1253_v4 = vpop.xlane.xlu1 %1252 }
 0x66b   :  { %12395 = vpow2.f32 %v1256_v3  ;;  %v1255_v5 = vsub.f32 %v1245_v63, %v1253_v4 }
 0x66d   :  { %v1258_v6 = vmul.f32 1.442695, %v1255_v5 }
 0x66f   :  { %12397 = vpow2.f32 %v1258_v6 }
 0x678   :  { %v12396_v7 = vpop.eup %12395 }
 0x679   :  { %v1260_v8 = vsel %vm1246_vm4, %v12396_v7, 0.0 }
 0x67a   :  { %1261 = vadd.xlane.f32.xlu0 %v1260_v8 }
 0x67c   :  { %v12398_v9 = vpop.eup %12397 }
 0x67d   :  { %v1263_v10 = vsel %vm1250_vm5, %v12398_v9, 0.0 }
 0x67e   :  { %1264 = vadd.xlane.f32.xlu1 %v1263_v10 }
 0x68f   :  { %1320 = vrot.lane.b32.xlu1 %v1174_v50, %s13725_s1 }
 0x690   :  { %1323 = vrot.lane.b32.xlu0 %v1175_v42, %s13725_s1 }
 0x693   :  { %1451 = vrot.lane.b32.xlu1 %v1175_v42, %s13683_s28 }
 0x694   :  { %1578 = vrot.lane.b32.xlu0 %v1175_v42, %s13714_s30 }
 0x697   :  { %1449 = vrot.lane.b32.xlu1 %v1174_v50, %s13683_s28 }
 0x69b   :  { %1576 = vrot.lane.b32.xlu1 %v1174_v50, %s13714_s30 }
 0x703   :  { %v1262_v11 = vpop.xlane.xlu0 %1261 }
 0x704   :  { %12399 = vrcp.f32 %v1262_v11 }
 0x707   :  { %v1265_v12 = vpop.xlane.xlu1 %1264  ;;  %v1324_v14 = vpop.permute.xlu0 %1323 }
 0x708   :  { %12401 = vrcp.f32 %v1265_v12  ;;  %v1329_v27 = vsel %vm1194_vm2, %v1324_v14, 0 }
 0x70b   :  { %v1321_v13 = vpop.permute.xlu1 %1320  ;;  %v1579_v19 = vpop.permute.xlu0 %1578 }
 0x70c   :  { %v1584_v25 = vsel %vm1194_vm2, %v1579_v19, 0 }
 0x70f   :  { %v1452_v15 = vpop.permute.xlu1 %1451 }
 0x710   :  { %v1457_v16 = vsel %vm1194_vm2, %v1452_v15, 0 }
 0x711   :  { %11125 = vmatpush3.bf16.xpose.msra.mxu0 %v1457_v16  ;;  %v12400_v17 = vpop.eup %12399 }
 0x712   :  { %11136 = vmatprep.subr.bf16.mxu0 %v13722_v35  ;;  %v1268_v20 = vmul.f32 %v12400_v17, %v12396_v7 }
 0x713   :  { %v1450_v24 = vpop.permute.xlu1 %1449 }
 0x715   :  { %v12402_v18 = vpop.eup %12401 }
 0x716   :  { %v1269_v22 = vmul.f32 %v12402_v18, %v12398_v9 }
 0x717   :  { %v1577_v29 = vpop.permute.xlu1 %1576 }
 0x718   :  { %11127 = vmatmul.mubr.msk.bf16.vlgmr.msra.gmra.mxu0 %vm1194_vm2, %v1450_v24  ;;  %v1270_v26 = vpack.c.bf16 %v1269_v22, %v1268_v20 }
 0x719   :  { %11137 = vmatpush3.bf16.xpose.msra.mxu0 %v1584_v25  ;;  %11138 = vmatprep.mubr.msk.bf16.mxu0 %vm13724_vm1, %v13722_v35 }
 0x71a   :  { %11109 = vmatmul.mubr.msk.bf16.vlgmr.msra.gmra.mxu1 %vm1246_vm4, %v1270_v26  ;;  %11148 = vmatprep.subr.bf16.mxu0 %v13722_v35 }
 0x71b   :  { %11113 = vmatpush3.bf16.xpose.msra.mxu1 %v1329_v27  ;;  %11114 = vmatprep.mubr.msk.bf16.mxu1 %vm13724_vm1, %v13722_v35 }
 0x71c   :  { %11118 = vmatprep.subr.bf16.mxu1 %v13722_v35 }
 0x720   :  { %11139 = vmatmul.mubr.msk.bf16.vlgmr.msra.gmra.mxu0 %vm1194_vm2, %v1577_v29 }
 0x721   :  { %11164 = vmatprep.mubr.msk.bf16.mxu0 %vm13724_vm1, %v13722_v35 }
 0x722   :  { %11115 = vmatmul.mubr.msk.bf16.vlgmr.msra.gmra.mxu1 %vm1194_vm2, %v1321_v13 }
 0x723   :  { %11120 = vmatprep.mubr.msk.bf16.mxu1 %vm13724_vm1, %v13722_v35 }
 0x7d8   :  { %v1493_v30 = vpop.f32.mrf.mxu0 }
 0x7d9   :  { %v1500_v43 = vmul.f32 0.17677669, %v1493_v30 }
 0x7da   :  { %v14228_v31 = vpop.f32.mrf.mxu1  ;;  %v11128_v33 = vpop.f32.mrf.mxu0 }
 0x7db   :  { %v1502_v55 = vadd.f32 %v1500_v43, %v14194_v53 }
 0x7dc   :  { %v11110_v36 = vpop.f32.mrf.mxu1  ;;  %v1496_v37 = vpop.f32.mrf.mxu0 }
 0x7dd   :  { %v1501_v51 = vmul.f32 0.17677669, %v1496_v37  ;;  %v1504_v63 = vsel %vm1246_vm4, %v1502_v55, -inf }
 0x7de   :  { %v14230_v39 = vpop.f32.mrf.mxu1  ;;  %v11129_v40 = vpop.f32.mrf.mxu0 }
 0x7df   :  { %v1503_v2 = vadd.f32 %v1501_v51, %v14197_v58 }
 0x7e0   :  { %v11111_v41 = vpop.f32.mrf.mxu1  ;;  %v1620_v42 = vpop.f32.mrf.mxu0 }
 0x7e1   :  { %v1627_v0 = vmul.f32 0.17677669, %v1620_v42  ;;  %v1507_v4 = vsel %vm1250_vm5, %v1503_v2, -inf }
 0x7e2   :  { %v1365_v44 = vpop.f32.mrf.mxu1  ;;  %v11140_v45 = vpop.f32.mrf.mxu0 }
 0x7e3   :  { %v1372_v46 = vmul.f32 0.17677669, %v1365_v44  ;;  %v1629_v6 = vadd.f32 %v1627_v0, %v14194_v53 }
 0x7e4   :  { %v11116_v47 = vpop.f32.mrf.mxu1  ;;  %v1623_v48 = vpop.f32.mrf.mxu0 }
 0x7e5   :  { %v1374_v50 = vadd.f32 %v1372_v46, %v14194_v53  ;;  %v1628_v56 = vmul.f32 0.17677669, %v1623_v48  ;;  %v1631_v7 = vsel %vm1246_vm4, %v1629_v6, -inf }
 0x7e6   :  { %v1368_v52 = vpop.f32.mrf.mxu1  ;;  %v11141_v54 = vpop.f32.mrf.mxu0 }
 0x7e7   :  { %v1373_v57 = vmul.f32 0.17677669, %v1368_v52  ;;  %v1376_v60 = vsel %vm1246_vm4, %v1374_v50, -inf  ;;  %v1630_v3 = vadd.f32 %v1628_v56, %v14197_v58 }
 0x7e8   :  { %1377 = vmax.xlane.f32.xlu0 %v1376_v60  ;;  %v11117_v61 = vpop.f32.mrf.mxu1 }
 0x7e9   :  { %v1375_v62 = vadd.f32 %v1373_v57, %v14197_v58  ;;  %v1634_v5 = vsel %vm1250_vm5, %v1630_v3, -inf }
 0x7eb   :  { %v1379_v1 = vsel %vm1250_vm5, %v1375_v62, -inf }
 0x7ec   :  { %1505 = vmax.xlane.f32.xlu0 %v1504_v63  ;;  %1380 = vmax.xlane.f32.xlu1 %v1379_v1 }
 0x7f0   :  { %1508 = vmax.xlane.f32.xlu0 %v1507_v4  ;;  %1635 = vmax.xlane.f32.xlu1 %v1634_v5 }
 0x7f4   :  { %1632 = vmax.xlane.f32.xlu0 %v1631_v7 }
 0x871   :  { %v1378_v8 = vpop.xlane.xlu0 %1377 }
 0x872   :  { %v1382_v16 = vsub.f32 %v1374_v50, %v1378_v8 }
 0x874   :  { %v1384_v22 = vmul.f32 1.442695, %v1382_v16 }
 0x875   :  { %v1506_v9 = vpop.xlane.xlu0 %1505  ;;  %v1381_v10 = vpop.xlane.xlu1 %1380 }
 0x876   :  { %v1510_v11 = vsub.f32 %v1502_v55, %v1506_v9  ;;  %v1383_v17 = vsub.f32 %v1375_v62, %v1381_v10 }
 0x878   :  { %v1512_v12 = vmul.f32 1.442695, %v1510_v11  ;;  %v1386_v24 = vmul.f32 1.442695, %v1383_v17  ;;  %v12011_v11 = vld [vmem:[#allocation10 + $0x38] sm:$0xff]   ;;  %v12016_v17 = vld [vmem:[#allocation10 + $0x10] sm:$0xff]  }
 0x879   :  { %v1509_v13 = vpop.xlane.xlu0 %1508  ;;  %v1636_v58 = vpop.xlane.xlu1 %1635  ;;  %11149 = vmatpush3.bf16.msra.mxu0 %v12011_v11  ;;  %v12021_v11 = vld [vmem:[%s15805_s5 + $0x74] ss:$8 sps:$4 sm:$0xff]  }
 0x87a   :  { %12403 = vpow2.f32 %v1512_v12  ;;  %v1511_v14 = vsub.f32 %v1503_v2, %v1509_v13  ;;  %v1638_v15 = vsub.f32 %v1630_v3, %v1636_v58  ;;  %v12012_v12 = vld [vmem:[#allocation10 + $0x30] sm:$0xff]   ;;  %11150 = vmatprep.subr.bf16.mxu0 %v13722_v35  ;;  %v12013_v13 = vld [vmem:[#allocation10 + $0x28] sm:$0xff]   ;;  %v12014_v58 = vld [vmem:[#allocation10 + $0x20] sm:$0xff]  }
 0x87c   :  { %v1514_v18 = vmul.f32 1.442695, %v1511_v14  ;;  %v1641_v19 = vmul.f32 1.442695, %v1638_v15  ;;  %v12015_v14 = vld [vmem:[#allocation10 + $0x18] sm:$0xff]  }
 0x87d   :  { %v1633_v53 = vpop.xlane.xlu0 %1632  ;;  %11151 = vmatpush3.bf16.msra.mxu0 %v12012_v12  ;;  %v12019_v12 = vld [vmem:[%s15805_s5 + $0x70] ss:$8 sps:$4 sm:$0xff]  }
 0x87e   :  { %12405 = vpow2.f32 %v1514_v18  ;;  %v1637_v20 = vsub.f32 %v1629_v6, %v1633_v53  ;;  %11152 = vmatprep.subr.bf16.mxu0 %v13722_v35  ;;  %v12017_v53 = vld [vmem:[#allocation10 + $0x8] sm:$0xff]  }
 0x87f   :  { %12407 = vpow2.f32 %v1641_v19 }
 0x880   :  { %v1639_v25 = vmul.f32 1.442695, %v1637_v20 }
 0x881   :  { %11153 = vmatpush3.bf16.msra.mxu0 %v12013_v13  ;;  %v12024_v13 = vld [vmem:[%s15805_s5 + $0x64] ss:$8 sps:$4 sm:$0xff]  }
 0x882   :  { %12409 = vpow2.f32 %v1639_v25  ;;  %11154 = vmatprep.subr.bf16.mxu0 %v13722_v35  ;;  %v12018_v25 = vld [vmem:[#allocation10] sm:$0xff]  }
 0x883   :  { %12411 = vpow2.f32 %v1384_v22 }
 0x884   :  { %12413 = vpow2.f32 %v1386_v24 }
 0x885   :  { %11155 = vmatpush3.bf16.msra.mxu0 %v12014_v58  ;;  %v12022_v58 = vld [vmem:[%s15805_s5 + $0x60] ss:$8 sps:$4 sm:$0xff]  }
 0x886   :  { %11156 = vmatprep.subr.bf16.mxu0 %v13722_v35 }
 0x887   :  { %v12404_v26 = vpop.eup %12403 }
 0x888   :  { %v1516_v27 = vsel %vm1246_vm4, %v12404_v26, 0.0 }
 0x889   :  { %1517 = vadd.xlane.f32.xlu0 %v1516_v27  ;;  %11157 = vmatpush3.bf16.msra.mxu0 %v12015_v14  ;;  %v12027_v14 = vld [vmem:[%s15805_s5 + $0x54] ss:$8 sps:$4 sm:$0xff]  }
 0x88a   :  { %11158 = vmatprep.subr.bf16.mxu0 %v13722_v35 }
 0x88b   :  { %v12406_v29 = vpop.eup %12405 }
 0x88c   :  { %v1519_v30 = vsel %vm1250_vm5, %v12406_v29, 0.0  ;;  %v12408_v33 = vpop.eup %12407 }
 0x88d   :  { %1520 = vadd.xlane.f32.xlu1 %v1519_v30  ;;  %v1646_v41 = vsel %vm1250_vm5, %v12408_v33, 0.0  ;;  %11159 = vmatpush3.bf16.msra.mxu0 %v12016_v17  ;;  %v12030_v17 = vld [vmem:[%s15805_s5 + $0x44] ss:$8 sps:$4 sm:$0xff]  }
 0x88e   :  { %11160 = vmatprep.subr.bf16.mxu0 %v13722_v35 }
 0x88f   :  { %v12410_v36 = vpop.eup %12409 }
 0x890   :  { %v12412_v37 = vpop.eup %12411  ;;  %v1643_v40 = vsel %vm1246_vm4, %v12410_v36, 0.0 }
 0x891   :  { %v12414_v42 = vpop.eup %12413  ;;  %1644 = vadd.xlane.f32.xlu0 %v1643_v40  ;;  %1647 = vadd.xlane.f32.xlu1 %v1646_v41  ;;  %v1388_v43 = vsel %vm1246_vm4, %v12412_v37, 0.0 }
 0x892   :  { %v1391_v44 = vsel %vm1250_vm5, %v12414_v42, 0.0  ;;  %11161 = vmatpush3.bf16.msra.mxu0 %v12017_v53  ;;  %v12036_v53 = vld [vmem:[%s15805_s5 + $0x24] ss:$8 sps:$4 sm:$0xff]  }
 0x893   :  { %11162 = vmatprep.subr.bf16.mxu0 %v13722_v35 }
 0x895   :  { %1389 = vadd.xlane.f32.xlu0 %v1388_v43  ;;  %1392 = vadd.xlane.f32.xlu1 %v1391_v44 }
 0x896   :  { %11163 = vmatpush3.bf16.msra.mxu0 %v12018_v25  ;;  %v12042_v25 = vld [vmem:[%s15805_s5 + $0x4] ss:$8 sps:$4 sm:$0xff]  }
 0x8a6   :  { %1527 = vrot.lane.b32.xlu1 %v14186_v49, %s13683_s28 }
 0x8aa   :  { %1654 = vrot.lane.b32.xlu1 %v14186_v49, %s13714_s30 }
 0x8ab   :  { %1400 = vrot.lane.b32.xlu0 %v14186_v49, %s13725_s1 }
 0x912   :  { %v1518_v45 = vpop.xlane.xlu0 %1517 }
 0x916   :  { %v1521_v46 = vpop.xlane.xlu1 %1520 }
 0x91a   :  { %v1645_v47 = vpop.xlane.xlu0 %1644  ;;  %v1648_v48 = vpop.xlane.xlu1 %1647 }
 0x91e   :  { %v1390_v50 = vpop.xlane.xlu0 %1389  ;;  %v1393_v51 = vpop.xlane.xlu1 %1392 }
 0x91f   :  { %12415 = vrcp.f32 %v1390_v50 }
 0x920   :  { %12417 = vrcp.f32 %v1393_v51 }
 0x921   :  { %12419 = vrcp.f32 %v1521_v46 }
 0x922   :  { %v1401_v52 = vpop.permute.xlu0 %1400  ;;  %12421 = vrcp.f32 %v1518_v45  ;;  %v1528_v60 = vpop.permute.xlu1 %1527 }
 0x923   :  { %v1406_v54 = vsel %vm1274_vm3, %v1401_v52, 0  ;;  %12423 = vrcp.f32 %v1645_v47  ;;  %v1533_v63 = vsel %vm1274_vm3, %v1528_v60, 0  ;;  %v10164_v60 = vld [vmem:[#allocation12] ss:$0 sm:$0xff] }
 0x924   :  { %11119 = vmatpush3.bf16.msra.mxu1 %v1406_v54  ;;  %12425 = vrcp.f32 %v1648_v48 }
 0x925   :  { %11130 = vmatprep.subr.bf16.mxu1 %v13722_v35 }
 0x926   :  { %v1655_v3 = vpop.permute.xlu1 %1654 }
 0x927   :  { %v1660_v7 = vsel %vm1274_vm3, %v1655_v3, 0 }
 0x92c   :  { %v12416_v55 = vpop.eup %12415 }
 0x92d   :  { %v12418_v49 = vpop.eup %12417  ;;  %v1396_v56 = vmul.f32 %v12416_v55, %v12412_v37 }
 0x92e   :  { %v1397_v57 = vmul.f32 %v12418_v49, %v12414_v42  ;;  %v12420_v62 = vpop.eup %12419 }
 0x92f   :  { %v12422_v0 = vpop.eup %12421  ;;  %v1525_v1 = vmul.f32 %v12420_v62, %v12406_v29 }
 0x930   :  { %v1398_v61 = vpack.c.bf16 %v1397_v57, %v1396_v56  ;;  %v1524_v2 = vmul.f32 %v12422_v0, %v12404_v26  ;;  %v12424_v4 = vpop.eup %12423 }
 0x931   :  { %v12426_v6 = vpop.eup %12425  ;;  %v1651_v8 = vmul.f32 %v12424_v4, %v12410_v36 }
 0x932   :  { %11121 = vmatmul.mubr.msk.bf16.vlgmr.msra.gmra.mxu1 %vm1246_vm4, %v1398_v61  ;;  %v1526_v5 = vpack.c.bf16 %v1525_v1, %v1524_v2  ;;  %v1652_v9 = vmul.f32 %v12426_v6, %v12408_v33 }
 0x933   :  { %11131 = vmatpush3.bf16.msra.mxu1 %v1533_v63  ;;  %11132 = vmatprep.mubr.msk.bf16.mxu1 %vm13724_vm1, %v13722_v35 }
 0x934   :  { %11142 = vmatprep.subr.bf16.mxu1 %v13722_v35  ;;  %v1653_v10 = vpack.c.bf16 %v1652_v9, %v1651_v8 }
 0x93a   :  { %11133 = vmatmul.mubr.msk.bf16.vlgmr.msra.gmra.mxu1 %vm1246_vm4, %v1526_v5 }
 0x93b   :  { %11143 = vmatpush3.bf16.msra.mxu1 %v1660_v7  ;;  %11144 = vmatprep.mubr.msk.bf16.mxu1 %vm13724_vm1, %v13722_v35 }
 0x93c   :  { %1984 = vmatprep.subr.bf16.mxu1 %v12021_v11 }
 0x942   :  { %11145 = vmatmul.mubr.msk.bf16.vlgmr.msra.gmra.mxu1 %vm1246_vm4, %v1653_v10 }
 0x943   :  { %2016 = vmatprep.mubr.bf16.mxu1 %v13723_v59  ;;  %1985 = vmatpush1.bf16.msra.mxu1 %v12019_v12 }
 0x944   :  { %1986 = vmatprep.subr.bf16.mxu1 %v12024_v13 }
 0x947   :  { %1987 = vmatpush1.bf16.msra.mxu1 %v12022_v58 }
 0x948   :  { %1988 = vmatprep.subr.bf16.mxu1 %v12027_v14 }
 0x9f2   :  { %v1442_v15 = vpop.f32.mrf.mxu1 }
 0x9f4   :  { %v11122_v16 = vpop.f32.mrf.mxu1 }
 0x9f5   :  { %v12028_v16 = vld [vmem:[%s15805_s5 + $0x40] ss:$8 sps:$4 sm:$0xff]  }
 0x9f6   :  { %v1445_v18 = vpop.f32.mrf.mxu1 }
 0x9f7   :  { %v11811_v19 = vpack.i.bf16 %v1445_v18, %v1442_v15  ;;  %v12025_v15 = vld [vmem:[%s15805_s5 + $0x50] ss:$8 sps:$4 sm:$0xff]   ;;  %v12033_v18 = vld [vmem:[%s15805_s5 + $0x34] ss:$8 sps:$4 sm:$0xff]  }
 0x9f8   :  { %v11123_v20 = vpop.f32.mrf.mxu1  ;;  %1989 = vmatpush1.bf16.msra.mxu1 %v12025_v15 }
 0x9f9   :  { %11812 = vrot.lane.b32.xlu1 %v11811_v19, %s13714_s30  ;;  %1990 = vmatprep.subr.bf16.mxu1 %v12030_v17  ;;  %v12031_v19 = vld [vmem:[%s15805_s5 + $0x30] ss:$8 sps:$4 sm:$0xff]   ;;  %v12034_v20 = vld [vmem:[%s15805_s5 + $0x20] ss:$8 sps:$4 sm:$0xff]  }
 0x9fa   :  { %v1569_v22 = vpop.f32.mrf.mxu1 }
 0x9fc   :  { %v11134_v24 = vpop.f32.mrf.mxu1  ;;  %1991 = vmatpush1.bf16.msra.mxu1 %v12028_v16 }
 0x9fd   :  { %1992 = vmatprep.subr.bf16.mxu1 %v12033_v18  ;;  %v12037_v24 = vld [vmem:[%s15805_s5 + $0x10] ss:$8 sps:$4 sm:$0xff]  }
 0x9fe   :  { %v1572_v26 = vpop.f32.mrf.mxu1 }
 0x9ff   :  { %v11816_v27 = vpack.i.bf16 %v1572_v26, %v1569_v22  ;;  %v12039_v22 = vld [vmem:[%s15805_s5 + $0x14] ss:$8 sps:$4 sm:$0xff]   ;;  %v12040_v26 = vld [vmem:[%s15805_s5] ss:$8 sps:$4 sm:$0xff]  }
 0xa00   :  { %v11135_v29 = vpop.f32.mrf.mxu1  ;;  %1993 = vmatpush1.bf16.msra.mxu1 %v12031_v19 }
 0xa01   :  { %11817 = vrot.lane.b32.xlu0 %v11816_v27, %s13683_s28  ;;  %1994 = vmatprep.subr.bf16.mxu1 %v12036_v53 }
 0xa02   :  { %v1696_v30 = vpop.f32.mrf.mxu1 }
 0xa04   :  { %v11146_v33 = vpop.f32.mrf.mxu1  ;;  %1995 = vmatpush1.bf16.msra.mxu1 %v12034_v20 }
 0xa05   :  { %1996 = vmatprep.subr.bf16.mxu1 %v12039_v22 }
 0xa06   :  { %v1699_v36 = vpop.f32.mrf.mxu1 }
 0xa07   :  { %v11821_v37 = vpack.i.bf16 %v1699_v36, %v1696_v30 }
 0xa08   :  { %v11147_v40 = vpop.f32.mrf.mxu1  ;;  %1997 = vmatpush1.bf16.msra.mxu1 %v12037_v24 }
 0xa09   :  { %11822 = vrot.lane.b32.xlu1 %v11821_v37, %s13725_s1  ;;  %1998 = vmatprep.subr.bf16.mxu1 %v12042_v25 }
 0xa0c   :  { %1999 = vmatpush1.bf16.msra.mxu1 %v12040_v26 }
 0xa6b   :  { %v11813_v41 = vpop.permute.xlu1 %11812 }
 0xa6c   :  { %v11815_v43 = vunpack.i.h.bf16 %v11813_v41  ;;  %v11814_v44 = vunpack.i.l.bf16 %v11813_v41 }
 0xa6e   :  { %v1728_v48 = vsel %vm1194_vm2, %v14230_v39, %v11815_v43  ;;  %v1727_v50 = vsel %vm1194_vm2, %v14228_v31, %v11814_v44 }
 0xa73   :  { %v11818_v42 = vpop.permute.xlu0 %11817 }
 0xa74   :  { %v11820_v45 = vunpack.i.h.bf16 %v11818_v42  ;;  %v11819_v46 = vunpack.i.l.bf16 %v11818_v42  ;;  %v10173_v42 = vld [vmem:[#allocation13] ss:$0 sm:$0xff] }
 0xa76   :  { %v1731_v54 = vsel %vm1729_vm6, %v1728_v48, %v11820_v45  ;;  %v1730_v55 = vsel %vm1729_vm6, %v1727_v50, %v11819_v46  ;;  %v10174_v46 = vld [vmem:[#allocation15] ss:$0 sm:$0xff] }
 0xa7b   :  { %v11823_v47 = vpop.permute.xlu1 %11822 }
 0xa7c   :  { %v11825_v51 = vunpack.i.h.bf16 %v11823_v47  ;;  %v11824_v52 = vunpack.i.l.bf16 %v11823_v47 }
 0xa7e   :  { %v1734_v49 = vsel %vm1732_vm7, %v1731_v54, %v11825_v51  ;;  %v1733_v56 = vsel %vm1732_vm7, %v1730_v55, %v11824_v52  ;;  %v12043_v52 = vld [vmem:[#allocation16 + $0x78] sm:$0xff]   ;;  %v12045_v55 = vld [vmem:[#allocation16 + $0x70] sm:$0xff]  }
 0xa7f   :  { %v1735_v57 = vpack.c.bf16 %v1734_v49, %v1733_v56  ;;  %v12044_v54 = vld [vmem:[#allocation16 + $0x38] sm:$0xff]   ;;  %10736 = vmatprep.subr.bf16.mxu0 %v12043_v52  ;;  %v12046_v49 = vld [vmem:[#allocation16 + $0x30] sm:$0xff]   ;;  %v12047_v56 = vld [vmem:[#allocation16 + $0x68] sm:$0xff]  }
 0xa81   :  { %11165 = vmatmul.mubr.bf16.vlgmr.msra.gmra.mxu0 %v1735_v57  ;;  %v12048_v57 = vld [vmem:[#allocation16 + $0x28] sm:$0xff]  }
 0xa82   :  { %10737 = vmatpush3.bf16.msra.mxu0 %v12044_v54 }
 0xa83   :  { %10738 = vmatprep.subr.bf16.mxu0 %v12045_v55 }
 0xa86   :  { %10739 = vmatpush3.bf16.msra.mxu0 %v12046_v49 }
 0xa87   :  { %10740 = vmatprep.subr.bf16.mxu0 %v12047_v56 }
 0xa8a   :  { %10741 = vmatpush3.bf16.msra.mxu0 %v12048_v57 }
 0xb41   :  { %v1824_v61 = vpop.f32.mrf.mxu0 }
 0xb42   :  { %v1825_v62 = vadd.f32 %v10164_v60, %v1824_v61  ;;  %v12050_v61 = vld [vmem:[#allocation16 + $0x20] sm:$0xff]  }
 0xb43   :  { %v11166_v63 = vpop.f32.mrf.mxu0 }
 0xb44   :  { %v14288_v39 = vadd.f32 %v1825_v62, %v14114_v32  ;;  %v12051_v62 = vld [vmem:[#allocation16 + $0x58] sm:$0xff]  }
 0xb45   :  { %v1827_v31 = vpop.f32.mrf.mxu0  ;;  %v12052_v63 = vld [vmem:[#allocation16 + $0x18] sm:$0xff]  }
 0xb46   :  { %v1828_v0 = vadd.f32 %v10164_v60, %v1827_v31  ;;  %1835 = vadd.xlane.f32.xlu1 %v14288_v39  ;;  %v12049_v60 = vld [vmem:[#allocation16 + $0x60] sm:$0xff]   ;;  %v12053_v31 = vld [vmem:[#allocation16 + $0x50] sm:$0xff]  }
 0xb47   :  { %v11167_v1 = vpop.f32.mrf.mxu0  ;;  %10742 = vmatprep.subr.bf16.mxu0 %v12049_v60 }
 0xb48   :  { %v14292_v2 = vadd.f32 %v1828_v0, %v14110_v28  ;;  %10743 = vmatpush3.bf16.msra.mxu0 %v12050_v61  ;;  %v12054_v0 = vld [vmem:[#allocation16 + $0x10] sm:$0xff]   ;;  %v12055_v1 = vld [vmem:[#allocation16 + $0x48] sm:$0xff]  }
 0xb49   :  { %10744 = vmatprep.subr.bf16.mxu0 %v12051_v62 }
 0xb4a   :  { %v1837_v3 = vsel %vm872_vm0, %v14292_v2, 0.0 }
 0xb4b   :  { %1838 = vadd.xlane.f32.xlu0 %v1837_v3  ;;  %v12056_v3 = vld [vmem:[#allocation16 + $0x8] sm:$0xff]  }
 0xb4c   :  { %10745 = vmatpush3.bf16.msra.mxu0 %v12052_v63 }
 0xb4d   :  { %10746 = vmatprep.subr.bf16.mxu0 %v12053_v31  ;;  %v10191_v31 = vld [vmem:[#allocation18] ss:$0 sm:$0xff] }
 0xb50   :  { %10747 = vmatpush3.bf16.msra.mxu0 %v12054_v0 }
 0xb51   :  { %10748 = vmatprep.subr.bf16.mxu0 %v12055_v1 }
 0xb54   :  { %10749 = vmatpush3.bf16.msra.mxu0 %v12056_v3 }
 0xbcf   :  { %v1836_v4 = vpop.xlane.xlu1 %1835 }
 0xbd0   :  { %v1840_v5 = vmul.f32 0.0078125, %v1836_v4  ;;  %v12057_v4 = vld [vmem:[#allocation16 + $0x40] sm:$0xff]  }
 0xbd1   :  { %10750 = vmatprep.subr.bf16.mxu0 %v12057_v4 }
 0xbd2   :  { %v1842_v32 = vsub.f32 %v14288_v39, %v1840_v5  ;;  %v12058_v5 = vld [vmem:[#allocation16] sm:$0xff]  }
 0xbd3   :  { %10751 = vmatpush3.bf16.msra.mxu0 %v12058_v5 }
 0xbd4   :  { %v1839_v6 = vpop.xlane.xlu0 %1838  ;;  %v1844_v7 = vmul.f32 %v1842_v32, %v1842_v32  ;;  %11168 = vmatprep.subr.bf16.mxu0 %v13722_v35 }
 0xbd5   :  { %v1841_v8 = vmul.f32 0.0078125, %v1839_v6 }
 0xbd6   :  { %1846 = vadd.xlane.f32.xlu0 %v1844_v7 }
 0xbd7   :  { %v1843_v9 = vsub.f32 %v14292_v2, %v1841_v8 }
 0xbd9   :  { %v1845_v28 = vmul.f32 %v1843_v9, %v1843_v9 }
 0xbdb   :  { %v1848_v10 = vsel %vm872_vm0, %v1845_v28, 0.0 }
 0xbdc   :  { %1849 = vadd.xlane.f32.xlu0 %v1848_v10 }
 0xc5f   :  { %v1847_v27 = vpop.xlane.xlu0 %1846 }
 0xc60   :  { %v1851_v29 = vmul.f32 0.0078125, %v1847_v27 }
 0xc62   :  { %v1853_v30 = vadd.f32 1e-06, %v1851_v29 }
 0xc64   :  { %12427 = vrsqrt.f32 %v1853_v30 }
 0xc65   :  { %v1850_v33 = vpop.xlane.xlu0 %1849 }
 0xc66   :  { %v1852_v36 = vmul.f32 0.0078125, %v1850_v33 }
 0xc68   :  { %v1854_v37 = vadd.f32 1e-06, %v1852_v36 }
 0xc6a   :  { %12429 = vrsqrt.f32 %v1854_v37 }
 0xc71   :  { %v12428_v40 = vpop.eup %12427 }
 0xc72   :  { %v1857_v41 = vmul.f32 %v12428_v40, %v1842_v32  ;;  %v1892_v32 = vld [vmem:[%s15806_s13] sm:$0x3] }
 0xc73   :  { %v1897_v6 = vrot.slane %v1892_v32, %v14180_v38  ;;  %v1901_v7 = vrot.slane %v1892_v32, %v14174_v23 }
 0xc74   :  { %v1865_v45 = vmul.f32 %v10173_v42, %v1857_v41 }
 0xc76   :  { %v1873_v48 = vadd.f32 %v10174_v46, %v1865_v45 }
 0xc77   :  { %v12430_v43 = vpop.eup %12429 }
 0xc78   :  { %v1858_v44 = vmul.f32 %v12430_v43, %v1843_v9 }
 0xc7a   :  { %v1866_v47 = vmul.f32 %v10173_v42, %v1858_v44 }
 0xc7c   :  { %v1874_v50 = vadd.f32 %v10174_v46, %v1866_v47 }
 0xc7e   :  { %v1875_v51 = vpack.c.bf16 %v1874_v50, %v1873_v48 }
 0xc80   :  { %2017 = vmatmul.mubr.bf16.vlgmr.msra.gmra.mxu1 %v1875_v51 }
 0xc81   :  { %2499 = vmatprep.mubr.bf16.mxu1 %v13723_v59 }
 0xd40   :  { %v2018_v8 = vpop.f32.mrf.mxu1 }
 0xd41   :  { %v2019_v9 = vadd.f32 %v2018_v8, %v1897_v6 }
 0xd42   :  { %v2020_v28 = vpop.f32.mrf.mxu1 }
 0xd43   :  { %v2027_v10 = vmul.f32 %v2019_v9, %v2019_v9  ;;  %v2021_v11 = vadd.f32 %v2020_v28, %v1901_v7 }
 0xd44   :  { %v2022_v12 = vpop.f32.mrf.mxu1 }
 0xd45   :  { %v2031_v13 = vmul.f32 %v2027_v10, %v2019_v9  ;;  %v2028_v58 = vmul.f32 %v2021_v11, %v2021_v11  ;;  %v2023_v14 = vadd.f32 %v2022_v12, %v1897_v6 }
 0xd46   :  { %v2024_v15 = vpop.f32.mrf.mxu1 }
 0xd47   :  { %v2035_v16 = vmul.f32 0.044715, %v2031_v13  ;;  %v2032_v17 = vmul.f32 %v2028_v58, %v2021_v11  ;;  %v2029_v18 = vmul.f32 %v2023_v14, %v2023_v14  ;;  %v2025_v19 = vadd.f32 %v2024_v15, %v1901_v7  ;;  %v12061_v15 = vld [vmem:[%s15803_s16 + $0x16c] ss:$12 sps:$4 sm:$0xff]  }
 0xd48   :  { %2467 = vmatprep.subr.bf16.mxu1 %v12061_v15 }
 0xd49   :  { %v2039_v53 = vadd.f32 %v2035_v16, %v2019_v9  ;;  %v2036_v20 = vmul.f32 0.044715, %v2032_v17  ;;  %v2033_v22 = vmul.f32 %v2029_v18, %v2023_v14  ;;  %v2030_v24 = vmul.f32 %v2025_v19, %v2025_v19  ;;  %v12059_v16 = vld [vmem:[%s15803_s16 + $0x168] ss:$12 sps:$4 sm:$0xff]   ;;  %v12062_v17 = vld [vmem:[%s15803_s16 + $0x170] ss:$12 sps:$4 sm:$0xff]  }
 0xd4a   :  { %2468 = vmatpush1.bf16.msra.mxu1 %v12059_v16  ;;  %v12065_v18 = vld [vmem:[%s15803_s16 + $0x154] ss:$12 sps:$4 sm:$0xff]  }
 0xd4b   :  { %v2043_v25 = vmul.f32 0.7978846, %v2039_v53  ;;  %v2040_v26 = vadd.f32 %v2036_v20, %v2021_v11  ;;  %v2037_v27 = vmul.f32 0.044715, %v2033_v22  ;;  %v2034_v29 = vmul.f32 %v2030_v24, %v2025_v19  ;;  %v12066_v53 = vld [vmem:[%s15803_s16 + $0x158] ss:$12 sps:$4 sm:$0xff]   ;;  %2469 = vmatprep.subr.bf16.mxu1 %v12065_v18 }
 0xd4c   :  { %v12069_v20 = vld [vmem:[%s15803_s16 + $0x13c] ss:$12 sps:$4 sm:$0xff]   ;;  %v12067_v22 = vld [vmem:[%s15803_s16 + $0x138] ss:$12 sps:$4 sm:$0xff]   ;;  %v12070_v24 = vld [vmem:[%s15803_s16 + $0x140] ss:$12 sps:$4 sm:$0xff]  }
 0xd4d   :  { %v2044_v30 = vmul.f32 0.7978846, %v2040_v26  ;;  %v2041_v33 = vadd.f32 %v2037_v27, %v2023_v14  ;;  %v2038_v36 = vmul.f32 0.044715, %v2034_v29  ;;  %12431 = vtanh.f32 %v2043_v25  ;;  %v12071_v25 = vld [vmem:[%s15803_s16 + $0x120] ss:$12 sps:$4 sm:$0xff]  }
 0xd4e   :  { %v12073_v26 = vld [vmem:[%s15803_s16 + $0x124] ss:$12 sps:$4 sm:$0xff]   ;;  %v12074_v27 = vld [vmem:[%s15803_s16 + $0x128] ss:$12 sps:$4 sm:$0xff]   ;;  %v12077_v29 = vld [vmem:[%s15803_s16 + $0x10c] ss:$12 sps:$4 sm:$0xff]  }
 0xd4f   :  { %12433 = vtanh.f32 %v2044_v30  ;;  %v2045_v37 = vmul.f32 0.7978846, %v2041_v33  ;;  %v2042_v40 = vadd.f32 %v2038_v36, %v2025_v19  ;;  %v12075_v30 = vld [vmem:[%s15803_s16 + $0x108] ss:$12 sps:$4 sm:$0xff]   ;;  %v12078_v33 = vld [vmem:[%s15803_s16 + $0x110] ss:$12 sps:$4 sm:$0xff]  }
 0xd50   :  { %v12081_v36 = vld [vmem:[%s15803_s16 + $0xf4] ss:$12 sps:$4 sm:$0xff]  }
 0xd51   :  { %12435 = vtanh.f32 %v2045_v37  ;;  %v2046_v41 = vmul.f32 0.7978846, %v2042_v40  ;;  %v12079_v37 = vld [vmem:[%s15803_s16 + $0xf0] ss:$12 sps:$4 sm:$0xff]   ;;  %v12082_v40 = vld [vmem:[%s15803_s16 + $0xf8] ss:$12 sps:$4 sm:$0xff]  }
 0xd53   :  { %12437 = vtanh.f32 %v2046_v41  ;;  %v12085_v41 = vld [vmem:[%s15803_s16 + $0xdc] ss:$12 sps:$4 sm:$0xff]  }
 0xd5a   :  { %v12432_v42 = vpop.eup %12431 }
 0xd5b   :  { %v2051_v46 = vadd.f32 1.0, %v12432_v42  ;;  %v12083_v42 = vld [vmem:[%s15803_s16 + $0xd8] ss:$12 sps:$4 sm:$0xff]  }
 0xd5c   :  { %v12434_v43 = vpop.eup %12433 }
 0xd5d   :  { %v2052_v44 = vadd.f32 1.0, %v12434_v43  ;;  %v2055_v54 = vmul.f32 0.5, %v2051_v46  ;;  %v12086_v43 = vld [vmem:[%s15803_s16 + $0xe0] ss:$12 sps:$4 sm:$0xff]   ;;  %v12090_v46 = vld [vmem:[%s15803_s16 + $0xc8] ss:$12 sps:$4 sm:$0xff]  }
 0xd5e   :  { %v12436_v45 = vpop.eup %12435 }
 0xd5f   :  { %v2053_v47 = vadd.f32 1.0, %v12436_v45  ;;  %v2056_v52 = vmul.f32 0.5, %v2052_v44  ;;  %v2059_v60 = vmul.f32 %v2055_v54, %v2019_v9  ;;  %v12089_v44 = vld [vmem:[%s15803_s16 + $0xc4] ss:$12 sps:$4 sm:$0xff]   ;;  %v12087_v45 = vld [vmem:[%s15803_s16 + $0xc0] ss:$12 sps:$4 sm:$0xff]  }
 0xd60   :  { %v12438_v48 = vpop.eup %12437 }
 0xd61   :  { %v2057_v50 = vmul.f32 0.5, %v2053_v47  ;;  %v2054_v51 = vadd.f32 1.0, %v12438_v48  ;;  %v2060_v56 = vmul.f32 %v2056_v52, %v2021_v11 }
 0xd63   :  { %v2058_v55 = vmul.f32 0.5, %v2054_v51  ;;  %v2061_v49 = vmul.f32 %v2057_v50, %v2023_v14 }
 0xd65   :  { %v2062_v57 = vmul.f32 %v2058_v55, %v2025_v19  ;;  %v2063_v62 = vpack.c.bf16 %v2061_v49, %v2059_v60  ;;  %v12063_v19 = vld [vmem:[%s15803_s16 + $0x150] ss:$12 sps:$4 sm:$0xff]  }
 0xd66   :  { %2470 = vmatpush1.bf16.msra.mxu1 %v12063_v19 }
 0xd67   :  { %v2064_v61 = vpack.c.bf16 %v2062_v57, %v2060_v56  ;;  %2471 = vmatprep.subr.bf16.mxu1 %v12069_v20  ;;  %v10208_v56 = vld [vmem:[#allocation7 + $0x1] ss:$0 sm:$0xff] }
 0xd69   :  { %2232 = vmatprep.mubr.bf16.mxu0 %v2064_v61 }
 0xd6a   :  { %2233 = vmatmul.mubr.bf16.vlgmr.msra.gmra.mxu0 %v2063_v62  ;;  %2472 = vmatpush1.bf16.msra.mxu1 %v12067_v22  ;;  %v10209_v62 = vld [vmem:[#allocation9 + $0x1] ss:$0 sm:$0xff] }
 0xd6b   :  { %11184 = vmatprep.mubr.msk.bf16.mxu0 %vm13724_vm1, %v13722_v35  ;;  %11169 = vmatpush3.bf16.msra.mxu0 %v12062_v17 }
 0xd6c   :  { %11170 = vmatprep.subr.bf16.mxu0 %v13722_v35  ;;  %2473 = vmatprep.subr.bf16.mxu1 %v12073_v26 }
 0xd6e   :  { %2474 = vmatpush1.bf16.msra.mxu1 %v12071_v25 }
 0xd6f   :  { %11171 = vmatpush3.bf16.msra.mxu0 %v12066_v53  ;;  %2475 = vmatprep.subr.bf16.mxu1 %v12077_v29 }
 0xd70   :  { %11172 = vmatprep.subr.bf16.mxu0 %v13722_v35 }
 0xd72   :  { %2476 = vmatpush1.bf16.msra.mxu1 %v12075_v30 }
 0xd73   :  { %11173 = vmatpush3.bf16.msra.mxu0 %v12070_v24  ;;  %2477 = vmatprep.subr.bf16.mxu1 %v12081_v36 }
 0xd74   :  { %11174 = vmatprep.subr.bf16.mxu0 %v13722_v35 }
 0xd76   :  { %2478 = vmatpush1.bf16.msra.mxu1 %v12079_v37 }
 0xd77   :  { %11175 = vmatpush3.bf16.msra.mxu0 %v12074_v27  ;;  %2479 = vmatprep.subr.bf16.mxu1 %v12085_v41  ;;  %v14395_v27 = vld [vmem:[#allocation6] sm:$0xff] }
 0xd78   :  { %11176 = vmatprep.subr.bf16.mxu0 %v13722_v35 }
 0xd7a   :  { %2480 = vmatpush1.bf16.msra.mxu1 %v12083_v42 }
 0xd7b   :  { %11177 = vmatpush3.bf16.msra.mxu0 %v12078_v33  ;;  %2481 = vmatprep.subr.bf16.mxu1 %v12089_v44 }
 0xd7c   :  { %11178 = vmatprep.subr.bf16.mxu0 %v13722_v35 }
 0xd7e   :  { %2482 = vmatpush1.bf16.msra.mxu1 %v12087_v45 }
 0xd7f   :  { %11179 = vmatpush3.bf16.msra.mxu0 %v12082_v40  ;;  %11188 = vmatprep.subr.bf16.mxu1 %v13722_v35  ;;  %v14399_v40 = vld [vmem:[#allocation6 + $0x8] sm:$0x3] }
 0xd80   :  { %11180 = vmatprep.subr.bf16.mxu0 %v13722_v35 }
 0xd83   :  { %11181 = vmatpush3.bf16.msra.mxu0 %v12086_v43 }
 0xd84   :  { %11182 = vmatprep.subr.bf16.mxu0 %v13722_v35 }
 0xd87   :  { %11183 = vmatpush3.bf16.msra.mxu0 %v12090_v46 }
 0xd88   :  { %11212 = vmatprep.subr.bf16.mxu0 %v13722_v35 }
 0xe2a   :  { %v10752_v63 = vpop.f32.mrf.mxu0 }
 0xe2c   :  { %v10753_v0 = vpop.f32.mrf.mxu0 }
 0xe2d   :  { %v10754_v1 = vadd.f32 %v10753_v0, %v10752_v63 }
 0xe2e   :  { %v10755_v3 = vpop.f32.mrf.mxu0 }
 0xe2f   :  { %v2235_v4 = vadd.f32 %v10754_v1, %v10191_v31 }
 0xe30   :  { %v10756_v5 = vpop.f32.mrf.mxu0 }
 0xe31   :  { %v10757_v32 = vadd.f32 %v10756_v5, %v10755_v3  ;;  %v14323_v6 = vadd.f32 %v2235_v4, %v14288_v39  ;;  %v10242_v5 = vld [vmem:[%s15804_s18 + $0x3] sm:$0x7] }
 0xe33   :  { %v2238_v7 = vadd.f32 %v10757_v32, %v10191_v31  ;;  %2247 = vadd.xlane.f32.xlu1 %v14323_v6 }
 0xe35   :  { %v14327_v8 = vadd.f32 %v2238_v7, %v14292_v2 }
 0xe37   :  { %v2249_v9 = vsel %vm872_vm0, %v14327_v8, 0.0 }
 0xe38   :  { %2250 = vadd.xlane.f32.xlu0 %v2249_v9  ;;  %v2331_v9 = vrot.slane %v10242_v5, %v14174_v23 }
 0xebc   :  { %v2248_v28 = vpop.xlane.xlu1 %2247 }
 0xebd   :  { %v2252_v10 = vmul.f32 0.0078125, %v2248_v28 }
 0xebf   :  { %v14332_v11 = vsub.f32 %v14323_v6, %v2252_v10 }
 0xec1   :  { %v2251_v39 = vpop.xlane.xlu0 %2250  ;;  %v2256_v12 = vmul.f32 %v14332_v11, %v14332_v11 }
 0xec2   :  { %v2253_v13 = vmul.f32 0.0078125, %v2251_v39 }
 0xec3   :  { %2258 = vadd.xlane.f32.xlu0 %v2256_v12 }
 0xec4   :  { %v14337_v2 = vsub.f32 %v14327_v8, %v2253_v13 }
 0xec6   :  { %v2257_v58 = vmul.f32 %v14337_v2, %v14337_v2 }
 0xec8   :  { %v2260_v14 = vsel %vm872_vm0, %v2257_v58, 0.0 }
 0xec9   :  { %2261 = vadd.xlane.f32.xlu1 %v2260_v14  ;;  %v2327_v14 = vrot.slane %v10242_v5, %v14180_v38 }
 0xf4c   :  { %v2259_v47 = vpop.xlane.xlu0 %2258 }
 0xf4d   :  { %v2263_v48 = vmul.f32 0.0078125, %v2259_v47 }
 0xf4f   :  { %v2265_v50 = vadd.f32 1e-06, %v2263_v48 }
 0xf51   :  { %12439 = vrsqrt.f32 %v2265_v50 }
 0xf52   :  { %v2262_v51 = vpop.xlane.xlu1 %2261 }
 0xf53   :  { %v2264_v52 = vmul.f32 0.0078125, %v2262_v51 }
 0xf55   :  { %v2266_v54 = vadd.f32 1e-06, %v2264_v52 }
 0xf57   :  { %12441 = vrsqrt.f32 %v2266_v54 }
 0xf5e   :  { %v12440_v55 = vpop.eup %12439 }
 0xf5f   :  { %v2269_v49 = vmul.f32 %v12440_v55, %v14332_v11 }
 0xf61   :  { %v2277_v61 = vmul.f32 %v10208_v56, %v2269_v49 }
 0xf63   :  { %v2285_v31 = vadd.f32 %v10209_v62, %v2277_v61 }
 0xf64   :  { %v12442_v57 = vpop.eup %12441 }
 0xf65   :  { %v2270_v60 = vmul.f32 %v12442_v57, %v14337_v2  ;;  %v2335_v2 = vrot.slane %v10242_v5, %v14178_v34 }
 0xf67   :  { %v2278_v63 = vmul.f32 %v10208_v56, %v2270_v60 }
 0xf69   :  { %v2286_v0 = vadd.f32 %v10209_v62, %v2278_v63 }
 0xf6b   :  { %v2287_v1 = vpack.c.bf16 %v2286_v0, %v2285_v31 }
 0xf6d   :  { %2500 = vmatmul.mubr.bf16.vlgmr.msra.gmra.mxu1 %v2287_v1  ;;  %11185 = vmatmul.mubr.bf16.vlgmr.msra.gmra.mxu0 %v2287_v1 }
 0xf6e   :  { %11190 = vmatprep.mubr.msk.bf16.mxu1 %vm13724_vm1, %v13722_v35  ;;  %11214 = vmatprep.mubr.msk.bf16.mxu0 %vm13724_vm1, %v13722_v35 }
0x102d   :  { %v2501_v3 = vpop.f32.mrf.mxu1  ;;  %v2544_v4 = vpop.f32.mrf.mxu0 }
0x102e   :  { %v2545_v17 = vadd.f32 %v2544_v4, %v2335_v2  ;;  %v2502_v19 = vadd.f32 %v2501_v3, %v2327_v14 }
0x102f   :  { %v2503_v32 = vpop.f32.mrf.mxu1  ;;  %v11186_v7 = vpop.f32.mrf.mxu0 }
0x1030   :  { %v2504_v12 = vadd.f32 %v2503_v32, %v2331_v9 }
0x1031   :  { %v2505_v28 = vpop.f32.mrf.mxu1  ;;  %v2547_v10 = vpop.f32.mrf.mxu0 }
0x1032   :  { %v2548_v15 = vadd.f32 %v2547_v10, %v2335_v2  ;;  %v2506_v18 = vadd.f32 %v2505_v28, %v2327_v14 }
0x1033   :  { %v2507_v11 = vpop.f32.mrf.mxu1  ;;  %v11187_v39 = vpop.f32.mrf.mxu0 }
0x1034   :  { %v2508_v13 = vadd.f32 %v2507_v11, %v2331_v9  ;;  %v14387_v53 = vpack.c.bf16 %v2548_v15, %v2545_v17  ;;  %v2551_v20 = vpack.c.bf16 %v2506_v18, %v2502_v19 }
0x1036   :  { %v2552_v58 = vpack.c.bf16 %v2508_v13, %v2504_v12  ;;  %v2651_v22 = vsel %vm1274_vm3, %v14387_v53, 0 }
0x1038   :  { %v2577_v16 = vsel %vm1194_vm2, %v2552_v58, 0 }
0x1039   :  { %11189 = vmatpush3.bf16.xpose.msra.mxu1 %v2577_v16 }
0x103a   :  { %11194 = vmatprep.subr.bf16.mxu1 %v13722_v35 }
0x1040   :  { %11191 = vmatmul.mubr.msk.bf16.vlgmr.msra.gmra.mxu1 %vm1194_vm2, %v2551_v20 }
0x1041   :  { %11195 = vmatpush3.bf16.msra.mxu1 %v2651_v22  ;;  %11196 = vmatprep.mubr.msk.bf16.mxu1 %vm13724_vm1, %v13722_v35 }
0x1042   :  { %11200 = vmatprep.subr.bf16.mxu1 %v13722_v35 }
0x1100   :  { %v2613_v24 = vpop.f32.mrf.mxu1 }
0x1101   :  { %v2620_v25 = vmul.f32 0.17677669, %v2613_v24 }
0x1102   :  { %v11192_v26 = vpop.f32.mrf.mxu1 }
0x1103   :  { %v2622_v29 = vadd.f32 %v14395_v27, %v2620_v25 }
0x1104   :  { %v2616_v30 = vpop.f32.mrf.mxu1 }
0x1105   :  { %v2621_v33 = vmul.f32 0.17677669, %v2616_v30  ;;  %v2624_v36 = vsel %vm1246_vm4, %v2622_v29, -inf }
0x1106   :  { %2625 = vmax.xlane.f32.xlu0 %v2624_v36  ;;  %v11193_v37 = vpop.f32.mrf.mxu1 }
0x1107   :  { %v2623_v41 = vadd.f32 %v14399_v40, %v2621_v33 }
0x1109   :  { %v2627_v42 = vsel %vm1250_vm5, %v2623_v41, -inf }
0x110a   :  { %2628 = vmax.xlane.f32.xlu1 %v2627_v42 }
0x118f   :  { %v2626_v43 = vpop.xlane.xlu0 %2625 }
0x1190   :  { %v2630_v44 = vsub.f32 %v2622_v29, %v2626_v43 }
0x1192   :  { %v2632_v45 = vmul.f32 1.442695, %v2630_v44 }
0x1193   :  { %v2629_v46 = vpop.xlane.xlu1 %2628 }
0x1194   :  { %12443 = vpow2.f32 %v2632_v45  ;;  %v2631_v47 = vsub.f32 %v2623_v41, %v2629_v46 }
0x1196   :  { %v2634_v48 = vmul.f32 1.442695, %v2631_v47 }
0x1198   :  { %12445 = vpow2.f32 %v2634_v48 }
0x11a1   :  { %v12444_v50 = vpop.eup %12443 }
0x11a2   :  { %v2636_v51 = vsel %vm1246_vm4, %v12444_v50, 0.0 }
0x11a3   :  { %2637 = vadd.xlane.f32.xlu0 %v2636_v51 }
0x11a5   :  { %v12446_v52 = vpop.eup %12445 }
0x11a6   :  { %v2639_v54 = vsel %vm1250_vm5, %v12446_v52, 0.0 }
0x11a7   :  { %2640 = vadd.xlane.f32.xlu1 %v2639_v54 }
0x11b8   :  { %2695 = vrot.lane.b32.xlu1 %v2551_v20, %s13725_s1 }
0x11b9   :  { %2698 = vrot.lane.b32.xlu0 %v2552_v58, %s13725_s1 }
0x11bc   :  { %2826 = vrot.lane.b32.xlu1 %v2552_v58, %s13683_s28 }
0x11bd   :  { %2953 = vrot.lane.b32.xlu0 %v2552_v58, %s13714_s30 }
0x11c0   :  { %2824 = vrot.lane.b32.xlu1 %v2551_v20, %s13683_s28 }
0x11c4   :  { %2951 = vrot.lane.b32.xlu1 %v2551_v20, %s13714_s30 }
0x122c   :  { %v2638_v55 = vpop.xlane.xlu0 %2637 }
0x122d   :  { %12447 = vrcp.f32 %v2638_v55 }
0x1230   :  { %v2641_v49 = vpop.xlane.xlu1 %2640  ;;  %v2699_v57 = vpop.permute.xlu0 %2698 }
0x1231   :  { %12449 = vrcp.f32 %v2641_v49  ;;  %v2704_v32 = vsel %vm1194_vm2, %v2699_v57, 0 }
0x1234   :  { %v2696_v56 = vpop.permute.xlu1 %2695  ;;  %v2954_v31 = vpop.permute.xlu0 %2953 }
0x1235   :  { %v2959_v4 = vsel %vm1194_vm2, %v2954_v31, 0 }
0x1238   :  { %v2827_v60 = vpop.permute.xlu1 %2826 }
0x1239   :  { %v2832_v61 = vsel %vm1194_vm2, %v2827_v60, 0 }
0x123a   :  { %11213 = vmatpush3.bf16.xpose.msra.mxu0 %v2832_v61  ;;  %v12448_v62 = vpop.eup %12447 }
0x123b   :  { %11224 = vmatprep.subr.bf16.mxu0 %v13722_v35  ;;  %v2644_v0 = vmul.f32 %v12448_v62, %v12444_v50 }
0x123c   :  { %v2825_v3 = vpop.permute.xlu1 %2824 }
0x123e   :  { %v12450_v63 = vpop.eup %12449 }
0x123f   :  { %v2645_v1 = vmul.f32 %v12450_v63, %v12446_v52 }
0x1240   :  { %v2952_v7 = vpop.permute.xlu1 %2951 }
0x1241   :  { %11215 = vmatmul.mubr.msk.bf16.vlgmr.msra.gmra.mxu0 %vm1194_vm2, %v2825_v3  ;;  %v2646_v5 = vpack.c.bf16 %v2645_v1, %v2644_v0 }
0x1242   :  { %11225 = vmatpush3.bf16.xpose.msra.mxu0 %v2959_v4  ;;  %11226 = vmatprep.mubr.msk.bf16.mxu0 %vm13724_vm1, %v13722_v35 }
0x1243   :  { %11197 = vmatmul.mubr.msk.bf16.vlgmr.msra.gmra.mxu1 %vm1246_vm4, %v2646_v5  ;;  %11236 = vmatprep.subr.bf16.mxu0 %v13722_v35 }
0x1244   :  { %11201 = vmatpush3.bf16.xpose.msra.mxu1 %v2704_v32  ;;  %11202 = vmatprep.mubr.msk.bf16.mxu1 %vm13724_vm1, %v13722_v35 }
0x1245   :  { %11206 = vmatprep.subr.bf16.mxu1 %v13722_v35 }
0x1249   :  { %11227 = vmatmul.mubr.msk.bf16.vlgmr.msra.gmra.mxu0 %vm1194_vm2, %v2952_v7 }
0x124a   :  { %11252 = vmatprep.mubr.msk.bf16.mxu0 %vm13724_vm1, %v13722_v35 }
0x124b   :  { %11203 = vmatmul.mubr.msk.bf16.vlgmr.msra.gmra.mxu1 %vm1194_vm2, %v2696_v56 }
0x124c   :  { %11208 = vmatprep.mubr.msk.bf16.mxu1 %vm13724_vm1, %v13722_v35 }
0x1301   :  { %v2868_v9 = vpop.f32.mrf.mxu0 }
0x1302   :  { %v2875_v14 = vmul.f32 0.17677669, %v2868_v9 }
0x1303   :  { %v14429_v28 = vpop.f32.mrf.mxu1  ;;  %v11216_v10 = vpop.f32.mrf.mxu0 }
0x1304   :  { %v2877_v26 = vadd.f32 %v14395_v27, %v2875_v14 }
0x1305   :  { %v11198_v11 = vpop.f32.mrf.mxu1  ;;  %v2871_v39 = vpop.f32.mrf.mxu0 }
0x1306   :  { %v2876_v22 = vmul.f32 0.17677669, %v2871_v39  ;;  %v2879_v41 = vsel %vm1246_vm4, %v2877_v26, -inf }
0x1307   :  { %v14431_v12 = vpop.f32.mrf.mxu1  ;;  %v11217_v13 = vpop.f32.mrf.mxu0 }
0x1308   :  { %v2878_v44 = vadd.f32 %v14399_v40, %v2876_v22 }
0x1309   :  { %v11199_v2 = vpop.f32.mrf.mxu1  ;;  %v2995_v58 = vpop.f32.mrf.mxu0 }
0x130a   :  { %v3002_v42 = vmul.f32 0.17677669, %v2995_v58  ;;  %v2882_v46 = vsel %vm1250_vm5, %v2878_v44, -inf }
0x130b   :  { %v2740_v15 = vpop.f32.mrf.mxu1  ;;  %v11228_v16 = vpop.f32.mrf.mxu0 }
0x130c   :  { %v2747_v17 = vmul.f32 0.17677669, %v2740_v15  ;;  %v3004_v48 = vadd.f32 %v14395_v27, %v3002_v42 }
0x130d   :  { %v11204_v18 = vpop.f32.mrf.mxu1  ;;  %v2998_v19 = vpop.f32.mrf.mxu0 }
0x130e   :  { %v2749_v20 = vadd.f32 %v14395_v27, %v2747_v17  ;;  %v3003_v29 = vmul.f32 0.17677669, %v2998_v19  ;;  %v3006_v50 = vsel %vm1246_vm4, %v3004_v48, -inf }
0x130f   :  { %v2743_v24 = vpop.f32.mrf.mxu1  ;;  %v11229_v25 = vpop.f32.mrf.mxu0 }
0x1310   :  { %v2748_v30 = vmul.f32 0.17677669, %v2743_v24  ;;  %v2751_v33 = vsel %vm1246_vm4, %v2749_v20, -inf  ;;  %v3005_v45 = vadd.f32 %v14399_v40, %v3003_v29 }
0x1311   :  { %2752 = vmax.xlane.f32.xlu0 %v2751_v33  ;;  %v11205_v36 = vpop.f32.mrf.mxu1 }
0x1312   :  { %v2750_v37 = vadd.f32 %v14399_v40, %v2748_v30  ;;  %v3009_v47 = vsel %vm1250_vm5, %v3005_v45, -inf }
0x1314   :  { %v2754_v43 = vsel %vm1250_vm5, %v2750_v37, -inf }
0x1315   :  { %2880 = vmax.xlane.f32.xlu0 %v2879_v41  ;;  %2755 = vmax.xlane.f32.xlu1 %v2754_v43 }
0x1319   :  { %2883 = vmax.xlane.f32.xlu0 %v2882_v46  ;;  %3010 = vmax.xlane.f32.xlu1 %v3009_v47 }
0x131d   :  { %3007 = vmax.xlane.f32.xlu0 %v3006_v50 }
0x139a   :  { %v2753_v51 = vpop.xlane.xlu0 %2752 }
0x139b   :  { %v2757_v61 = vsub.f32 %v2749_v20, %v2753_v51 }
0x139d   :  { %v2759_v1 = vmul.f32 1.442695, %v2757_v61 }
0x139e   :  { %v2881_v52 = vpop.xlane.xlu0 %2880  ;;  %v2756_v54 = vpop.xlane.xlu1 %2755 }
0x139f   :  { %v2885_v55 = vsub.f32 %v2877_v26, %v2881_v52  ;;  %v2758_v62 = vsub.f32 %v2750_v37, %v2756_v54 }
0x13a1   :  { %v2887_v49 = vmul.f32 1.442695, %v2885_v55  ;;  %v2761_v3 = vmul.f32 1.442695, %v2758_v62  ;;  %v12091_v55 = vld [vmem:[#allocation10 + $0x78] sm:$0xff]   ;;  %v12096_v62 = vld [vmem:[#allocation10 + $0x50] sm:$0xff]  }
0x13a2   :  { %v2884_v56 = vpop.xlane.xlu0 %2883  ;;  %v3011_v40 = vpop.xlane.xlu1 %3010  ;;  %11237 = vmatpush3.bf16.msra.mxu0 %v12091_v55 }
0x13a3   :  { %12451 = vpow2.f32 %v2887_v49  ;;  %v2886_v57 = vsub.f32 %v2878_v44, %v2884_v56  ;;  %v3013_v60 = vsub.f32 %v3005_v45, %v3011_v40  ;;  %v12092_v49 = vld [vmem:[#allocation10 + $0x70] sm:$0xff]   ;;  %11238 = vmatprep.subr.bf16.mxu0 %v13722_v35  ;;  %v12093_v56 = vld [vmem:[#allocation10 + $0x68] sm:$0xff]   ;;  %v12094_v40 = vld [vmem:[#allocation10 + $0x60] sm:$0xff]  }
0x13a5   :  { %v2889_v63 = vmul.f32 1.442695, %v2886_v57  ;;  %v3016_v31 = vmul.f32 1.442695, %v3013_v60  ;;  %v12095_v57 = vld [vmem:[#allocation10 + $0x58] sm:$0xff]  }
0x13a6   :  { %v3008_v27 = vpop.xlane.xlu0 %3007  ;;  %11239 = vmatpush3.bf16.msra.mxu0 %v12092_v49 }
0x13a7   :  { %12453 = vpow2.f32 %v2889_v63  ;;  %v3012_v0 = vsub.f32 %v3004_v48, %v3008_v27  ;;  %11240 = vmatprep.subr.bf16.mxu0 %v13722_v35  ;;  %v12097_v27 = vld [vmem:[#allocation10 + $0x48] sm:$0xff]  }
0x13a8   :  { %12455 = vpow2.f32 %v3016_v31 }
0x13a9   :  { %v3014_v4 = vmul.f32 1.442695, %v3012_v0 }
0x13aa   :  { %11241 = vmatpush3.bf16.msra.mxu0 %v12093_v56 }
0x13ab   :  { %12457 = vpow2.f32 %v3014_v4  ;;  %11242 = vmatprep.subr.bf16.mxu0 %v13722_v35  ;;  %v12098_v4 = vld [vmem:[#allocation10 + $0x40] sm:$0xff]  }
0x13ac   :  { %12459 = vpow2.f32 %v2759_v1 }
0x13ad   :  { %12461 = vpow2.f32 %v2761_v3 }
0x13ae   :  { %11243 = vmatpush3.bf16.msra.mxu0 %v12094_v40 }
0x13af   :  { %11244 = vmatprep.subr.bf16.mxu0 %v13722_v35 }
0x13b0   :  { %v12452_v5 = vpop.eup %12451 }
0x13b1   :  { %v2891_v32 = vsel %vm1246_vm4, %v12452_v5, 0.0 }
0x13b2   :  { %2892 = vadd.xlane.f32.xlu0 %v2891_v32  ;;  %11245 = vmatpush3.bf16.msra.mxu0 %v12095_v57 }
0x13b3   :  { %11246 = vmatprep.subr.bf16.mxu0 %v13722_v35 }
0x13b4   :  { %v12454_v7 = vpop.eup %12453 }
0x13b5   :  { %v2894_v9 = vsel %vm1250_vm5, %v12454_v7, 0.0  ;;  %v12456_v10 = vpop.eup %12455 }
0x13b6   :  { %2895 = vadd.xlane.f32.xlu1 %v2894_v9  ;;  %v3021_v2 = vsel %vm1250_vm5, %v12456_v10, 0.0  ;;  %11247 = vmatpush3.bf16.msra.mxu0 %v12096_v62  ;;  %v12107_v62 = vld [vmem:[%s15805_s5 + $0xd4] ss:$8 sps:$4 sm:$0xff]  }
0x13b7   :  { %11248 = vmatprep.subr.bf16.mxu0 %v13722_v35 }
0x13b8   :  { %v12458_v11 = vpop.eup %12457 }
0x13b9   :  { %v12460_v39 = vpop.eup %12459  ;;  %v3018_v13 = vsel %vm1246_vm4, %v12458_v11, 0.0 }
0x13ba   :  { %v12462_v58 = vpop.eup %12461  ;;  %3019 = vadd.xlane.f32.xlu0 %v3018_v13  ;;  %3022 = vadd.xlane.f32.xlu1 %v3021_v2  ;;  %v2763_v14 = vsel %vm1246_vm4, %v12460_v39, 0.0 }
0x13bb   :  { %v2766_v15 = vsel %vm1250_vm5, %v12462_v58, 0.0  ;;  %11249 = vmatpush3.bf16.msra.mxu0 %v12097_v27  ;;  %v12110_v27 = vld [vmem:[%s15805_s5 + $0xc4] ss:$8 sps:$4 sm:$0xff]  }
0x13bc   :  { %11250 = vmatprep.subr.bf16.mxu0 %v13722_v35 }
0x13be   :  { %2764 = vadd.xlane.f32.xlu0 %v2763_v14  ;;  %2767 = vadd.xlane.f32.xlu1 %v2766_v15 }
0x13bf   :  { %11251 = vmatpush3.bf16.msra.mxu0 %v12098_v4  ;;  %v3665_v4 = vld [vmem:[%s15807_s8] sm:$0xff] }
0x13cf   :  { %2902 = vrot.lane.b32.xlu1 %v14387_v53, %s13683_s28 }
0x13d3   :  { %3029 = vrot.lane.b32.xlu1 %v14387_v53, %s13714_s30 }
0x13d4   :  { %2775 = vrot.lane.b32.xlu0 %v14387_v53, %s13725_s1 }
0x143b   :  { %v2893_v16 = vpop.xlane.xlu0 %2892 }
0x143f   :  { %v2896_v17 = vpop.xlane.xlu1 %2895 }
0x1443   :  { %v3020_v18 = vpop.xlane.xlu0 %3019  ;;  %v3023_v19 = vpop.xlane.xlu1 %3022 }
0x1447   :  { %v2765_v20 = vpop.xlane.xlu0 %2764  ;;  %v2768_v22 = vpop.xlane.xlu1 %2767 }
0x1448   :  { %12463 = vrcp.f32 %v2765_v20 }
0x1449   :  { %12465 = vrcp.f32 %v2768_v22 }
0x144a   :  { %12467 = vrcp.f32 %v2896_v17 }
0x144b   :  { %v2776_v24 = vpop.permute.xlu0 %2775  ;;  %12469 = vrcp.f32 %v2893_v16  ;;  %v2903_v33 = vpop.permute.xlu1 %2902 }
0x144c   :  { %v2781_v25 = vsel %vm1274_vm3, %v2776_v24, 0  ;;  %12471 = vrcp.f32 %v3020_v18  ;;  %v2908_v41 = vsel %vm1274_vm3, %v2903_v33, 0  ;;  %v10275_v33 = vld [vmem:[#allocation12 + $0x1] ss:$0 sm:$0xff] }
0x144d   :  { %11207 = vmatpush3.bf16.msra.mxu1 %v2781_v25  ;;  %12473 = vrcp.f32 %v3023_v19 }
0x144e   :  { %11218 = vmatprep.subr.bf16.mxu1 %v13722_v35 }
0x144f   :  { %v3030_v45 = vpop.permute.xlu1 %3029 }
0x1450   :  { %v3035_v50 = vsel %vm1274_vm3, %v3030_v45, 0 }
0x1455   :  { %v12464_v26 = vpop.eup %12463 }
0x1456   :  { %v12466_v53 = vpop.eup %12465  ;;  %v2771_v29 = vmul.f32 %v12464_v26, %v12460_v39 }
0x1457   :  { %v2772_v30 = vmul.f32 %v12466_v53, %v12462_v58  ;;  %v12468_v37 = vpop.eup %12467 }
0x1458   :  { %v12470_v42 = vpop.eup %12469  ;;  %v2900_v43 = vmul.f32 %v12468_v37, %v12454_v7 }
0x1459   :  { %v2773_v36 = vpack.c.bf16 %v2772_v30, %v2771_v29  ;;  %v2899_v44 = vmul.f32 %v12470_v42, %v12452_v5  ;;  %v12472_v46 = vpop.eup %12471 }
0x145a   :  { %v12474_v48 = vpop.eup %12473  ;;  %v3026_v51 = vmul.f32 %v12472_v46, %v12458_v11  ;;  %v3666_v46 = vld [vmem:[%s15807_s8 + $0x8] sm:$0xff] }
0x145b   :  { %11209 = vmatmul.mubr.msk.bf16.vlgmr.msra.gmra.mxu1 %vm1246_vm4, %v2773_v36  ;;  %v2901_v47 = vpack.c.bf16 %v2900_v43, %v2899_v44  ;;  %v3027_v52 = vmul.f32 %v12474_v48, %v12456_v10  ;;  %v3668_v48 = vld [vmem:[%s15807_s8 + $0x18] sm:$0xff] }
0x145c   :  { %11219 = vmatpush3.bf16.msra.mxu1 %v2908_v41  ;;  %11220 = vmatprep.mubr.msk.bf16.mxu1 %vm13724_vm1, %v13722_v35 }
0x145d   :  { %11230 = vmatprep.subr.bf16.mxu1 %v13722_v35  ;;  %v3028_v54 = vpack.c.bf16 %v3027_v52, %v3026_v51 }
0x1463   :  { %11221 = vmatmul.mubr.msk.bf16.vlgmr.msra.gmra.mxu1 %vm1246_vm4, %v2901_v47  ;;  %v3667_v47 = vld [vmem:[%s15807_s8 + $0x10] sm:$0xff] }
0x1464   :  { %11231 = vmatpush3.bf16.msra.mxu1 %v3035_v50  ;;  %11232 = vmatprep.mubr.msk.bf16.mxu1 %vm13724_vm1, %v13722_v35  ;;  %v12101_v50 = vld [vmem:[%s15805_s5 + $0xf4] ss:$8 sps:$4 sm:$0xff]  }
0x1465   :  { %3361 = vmatprep.subr.bf16.mxu1 %v12101_v50  ;;  %v12127_v50 = vld [vmem:[#allocation16 + $0xf8] sm:$0xff]  }
0x1466   :  { %10792 = vmatprep.subr.bf16.mxu0 %v12127_v50  ;;  %v3704_v50 = vld [vmem:[#allocation24 + $0x18] sm:$0xff] }
0x146b   :  { %11233 = vmatmul.mubr.msk.bf16.vlgmr.msra.gmra.mxu1 %vm1246_vm4, %v3028_v54 }
0x146c   :  { %3393 = vmatprep.mubr.bf16.mxu1 %v13723_v59 }
0x151b   :  { %v2817_v60 = vpop.f32.mrf.mxu1 }
0x151d   :  { %v11210_v61 = vpop.f32.mrf.mxu1 }
0x151e   :  { %v12102_v61 = vld [vmem:[%s15805_s5 + $0xe0] ss:$8 sps:$4 sm:$0xff]  }
0x151f   :  { %v2820_v63 = vpop.f32.mrf.mxu1 }
0x1520   :  { %v11826_v31 = vpack.i.bf16 %v2820_v63, %v2817_v60  ;;  %v12104_v60 = vld [vmem:[%s15805_s5 + $0xe4] ss:$8 sps:$4 sm:$0xff]   ;;  %v12105_v63 = vld [vmem:[%s15805_s5 + $0xd0] ss:$8 sps:$4 sm:$0xff]  }
0x1521   :  { %v11211_v0 = vpop.f32.mrf.mxu1 }
0x1522   :  { %11827 = vrot.lane.b32.xlu1 %v11826_v31, %s13714_s30  ;;  %v12108_v31 = vld [vmem:[%s15805_s5 + $0xc0] ss:$8 sps:$4 sm:$0xff]   ;;  %v12113_v0 = vld [vmem:[%s15805_s5 + $0xb4] ss:$8 sps:$4 sm:$0xff]  }
0x1523   :  { %v2944_v1 = vpop.f32.mrf.mxu1 }
0x1525   :  { %v11222_v3 = vpop.f32.mrf.mxu1 }
0x1526   :  { %v12116_v3 = vld [vmem:[%s15805_s5 + $0xa4] ss:$8 sps:$4 sm:$0xff]  }
0x1527   :  { %v2947_v5 = vpop.f32.mrf.mxu1 }
0x1528   :  { %v11831_v32 = vpack.i.bf16 %v2947_v5, %v2944_v1  ;;  %v12111_v1 = vld [vmem:[%s15805_s5 + $0xb0] ss:$8 sps:$4 sm:$0xff]   ;;  %v12114_v5 = vld [vmem:[%s15805_s5 + $0xa0] ss:$8 sps:$4 sm:$0xff]  }
0x1529   :  { %v11223_v7 = vpop.f32.mrf.mxu1 }
0x152a   :  { %11832 = vrot.lane.b32.xlu0 %v11831_v32, %s13683_s28  ;;  %v12119_v32 = vld [vmem:[%s15805_s5 + $0x94] ss:$8 sps:$4 sm:$0xff]   ;;  %v12117_v7 = vld [vmem:[%s15805_s5 + $0x90] ss:$8 sps:$4 sm:$0xff]  }
0x152b   :  { %v3071_v9 = vpop.f32.mrf.mxu1 }
0x152d   :  { %v11234_v10 = vpop.f32.mrf.mxu1 }
0x152e   :  { %v12120_v10 = vld [vmem:[%s15805_s5 + $0x80] ss:$8 sps:$4 sm:$0xff]  }
0x152f   :  { %v3074_v11 = vpop.f32.mrf.mxu1 }
0x1530   :  { %v11836_v39 = vpack.i.bf16 %v3074_v11, %v3071_v9  ;;  %v12122_v9 = vld [vmem:[%s15805_s5 + $0x84] ss:$8 sps:$4 sm:$0xff]  }
0x1531   :  { %v11235_v13 = vpop.f32.mrf.mxu1  ;;  %v12123_v11 = vld [vmem:[#allocation22 + $0x18] sm:$0xff]  }
0x1532   :  { %11837 = vrot.lane.b32.xlu1 %v11836_v39, %s13725_s1 }
0x1594   :  { %v11828_v2 = vpop.permute.xlu1 %11827 }
0x1595   :  { %v11830_v14 = vunpack.i.h.bf16 %v11828_v2  ;;  %v11829_v15 = vunpack.i.l.bf16 %v11828_v2 }
0x1597   :  { %v3103_v19 = vsel %vm1194_vm2, %v14431_v12, %v11830_v14  ;;  %v3102_v20 = vsel %vm1194_vm2, %v14429_v28, %v11829_v15 }
0x159c   :  { %v11833_v58 = vpop.permute.xlu0 %11832 }
0x159d   :  { %v11835_v16 = vunpack.i.h.bf16 %v11833_v58  ;;  %v11834_v17 = vunpack.i.l.bf16 %v11833_v58 }
0x159f   :  { %v3105_v25 = vsel %vm1729_vm6, %v3103_v19, %v11835_v16  ;;  %v3104_v26 = vsel %vm1729_vm6, %v3102_v20, %v11834_v17  ;;  %v3670_v17 = vand.u32 127, %v947_v21  ;;  %v10284_v20 = vld [vmem:[#allocation13 + $0x1] ss:$0 sm:$0xff] }
0x15a0   :  { %v12124_v21 = vld [vmem:[#allocation22 + $0x10] sm:$0xff]  }
0x15a4   :  { %v11838_v18 = vpop.permute.xlu1 %11837 }
0x15a5   :  { %v11840_v22 = vunpack.i.h.bf16 %v11838_v18  ;;  %v11839_v24 = vunpack.i.l.bf16 %v11838_v18 }
0x15a7   :  { %v3107_v53 = vsel %vm1732_vm7, %v3105_v25, %v11840_v22  ;;  %v3106_v29 = vsel %vm1732_vm7, %v3104_v26, %v11839_v24 }
0x15a8   :  { %v3108_v30 = vpack.c.bf16 %v3107_v53, %v3106_v29  ;;  %v10285_v53 = vld [vmem:[#allocation15 + $0x1] ss:$0 sm:$0xff] }
0x15aa   :  { %11253 = vmatmul.mubr.bf16.vlgmr.msra.gmra.mxu0 %v3108_v30 }
0x166a   :  { %v3197_v12 = vpop.f32.mrf.mxu0 }
0x166b   :  { %v3198_v36 = vadd.f32 %v10275_v33, %v3197_v12 }
0x166c   :  { %v11254_v28 = vpop.f32.mrf.mxu0 }
0x166d   :  { %v14489_v37 = vadd.f32 %v3198_v36, %v14323_v6  ;;  %v12099_v6 = vld [vmem:[%s15805_s5 + $0xf0] ss:$8 sps:$4 sm:$0xff]  }
0x166e   :  { %v3200_v41 = vpop.f32.mrf.mxu0  ;;  %3362 = vmatpush1.bf16.msra.mxu1 %v12099_v6 }
0x166f   :  { %v3201_v42 = vadd.f32 %v10275_v33, %v3200_v41  ;;  %3210 = vadd.xlane.f32.xlu1 %v14489_v37  ;;  %3363 = vmatprep.subr.bf16.mxu1 %v12104_v60  ;;  %v12137_v60 = vld [vmem:[#allocation16 + $0xd0] sm:$0xff]  }
0x1670   :  { %v11255_v43 = vpop.f32.mrf.mxu0 }
0x1671   :  { %v14493_v44 = vadd.f32 %v3201_v42, %v14327_v8  ;;  %v12125_v43 = vld [vmem:[#allocation22 + $0x8] sm:$0xff]  }
0x1672   :  { %3364 = vmatpush1.bf16.msra.mxu1 %v12102_v61  ;;  %v12138_v61 = vld [vmem:[#allocation16 + $0x90] sm:$0xff]  }
0x1673   :  { %v3212_v45 = vsel %vm872_vm0, %v14493_v44, 0.0  ;;  %3365 = vmatprep.subr.bf16.mxu1 %v12107_v62  ;;  %v12139_v62 = vld [vmem:[#allocation16 + $0xc8] sm:$0xff]  }
0x1674   :  { %3213 = vadd.xlane.f32.xlu0 %v3212_v45 }
0x1676   :  { %3366 = vmatpush1.bf16.msra.mxu1 %v12105_v63  ;;  %v12140_v63 = vld [vmem:[#allocation16 + $0x88] sm:$0xff]  }
0x1677   :  { %3367 = vmatprep.subr.bf16.mxu1 %v12110_v27  ;;  %v12142_v27 = vld [vmem:[#allocation16 + $0x80] sm:$0xff]  }
0x167a   :  { %3368 = vmatpush1.bf16.msra.mxu1 %v12108_v31  ;;  %v12141_v31 = vld [vmem:[#allocation16 + $0xc0] sm:$0xff]  }
0x167b   :  { %3369 = vmatprep.subr.bf16.mxu1 %v12113_v0  ;;  %v10302_v0 = vld [vmem:[%s15806_s13 + $0x2] sm:$0x3] }
0x167e   :  { %3370 = vmatpush1.bf16.msra.mxu1 %v12111_v1  ;;  %v3274_v1 = vrot.slane %v10302_v0, %v14180_v38 }
0x167f   :  { %3371 = vmatprep.subr.bf16.mxu1 %v12116_v3  ;;  %v3278_v3 = vrot.slane %v10302_v0, %v14174_v23 }
0x1680   :  { %3675 = vperm.xlu1 %11842, %v3666_v46   ;;  %v12126_v46 = vld [vmem:[#allocation22] sm:$0xff]  }
0x1682   :  { %3372 = vmatpush1.bf16.msra.mxu1 %v12114_v5 }
0x1683   :  { %3373 = vmatprep.subr.bf16.mxu1 %v12119_v32 }
0x1684   :  { %3678 = vperm.xlu1 %11842, %v3667_v47  }
0x1686   :  { %3374 = vmatpush1.bf16.msra.mxu1 %v12117_v7 }
0x1687   :  { %3375 = vmatprep.subr.bf16.mxu1 %v12122_v9 }
0x1688   :  { %3681 = vperm.xlu1 %11842, %v3668_v48  }
0x168a   :  { %3376 = vmatpush1.bf16.msra.mxu1 %v12120_v10 }
0x168b   :  { %11256 = vmatprep.subr.bf16.mxu1 %v12123_v11 }
0x16f8   :  { %v3211_v51 = vpop.xlane.xlu1 %3210 }
0x16f9   :  { %v3215_v8 = vmul.f32 0.0078125, %v3211_v51  ;;  %v12128_v51 = vld [vmem:[#allocation16 + $0xb8] sm:$0xff]  }
0x16fa   :  { %10793 = vmatpush3.bf16.msra.mxu0 %v12128_v51 }
0x16fb   :  { %v3217_v52 = vsub.f32 %v14489_v37, %v3215_v8  ;;  %v12129_v8 = vld [vmem:[#allocation16 + $0xf0] sm:$0xff]  }
0x16fc   :  { %v3676_v22 = vpop.permute.xlu1 %3675  ;;  %10794 = vmatprep.subr.bf16.mxu0 %v12129_v8 }
0x16fd   :  { %v3214_v54 = vpop.xlane.xlu0 %3213  ;;  %v3219_v55 = vmul.f32 %v3217_v52, %v3217_v52  ;;  %vm3684_vm8 = vcmp.eq.s32.totalorder %v3676_v22, %v3670_v17 }
0x16fe   :  { %v3216_v49 = vmul.f32 0.0078125, %v3214_v54  ;;  %v3688_v29 = vsel %vm3684_vm8, 1.0, %v13722_v35  ;;  %v12131_v54 = vld [vmem:[#allocation16 + $0xe8] sm:$0xff]  }
0x16ff   :  { %3221 = vadd.xlane.f32.xlu0 %v3219_v55  ;;  %v12132_v55 = vld [vmem:[#allocation16 + $0xa8] sm:$0xff]  }
0x1700   :  { %v3218_v56 = vsub.f32 %v14493_v44, %v3216_v49  ;;  %v3679_v42 = vpop.permute.xlu1 %3678  ;;  %v12133_v49 = vld [vmem:[#allocation16 + $0xe0] sm:$0xff]  }
0x1701   :  { %vm3685_vm10 = vcmp.eq.s32.totalorder %v3679_v42, %v3670_v17 }
0x1702   :  { %v3220_v40 = vmul.f32 %v3218_v56, %v3218_v56  ;;  %v3689_v47 = vsel %vm3685_vm10, 1.0, %v13722_v35 }
0x1704   :  { %v3223_v57 = vsel %vm872_vm0, %v3220_v40, 0.0  ;;  %v3682_v45 = vpop.permute.xlu1 %3681  ;;  %v12135_v40 = vld [vmem:[#allocation16 + $0xd8] sm:$0xff]  }
0x1705   :  { %3224 = vadd.xlane.f32.xlu0 %v3223_v57  ;;  %vm3686_vm11 = vcmp.eq.s32.totalorder %v3682_v45, %v3670_v17  ;;  %v12136_v57 = vld [vmem:[#allocation16 + $0x98] sm:$0xff]  }
0x1706   :  { %v3690_v48 = vsel %vm3686_vm11, 1.0, %v13722_v35 }
0x1707   :  { %v3692_v6 = vpack.c.bf16 %v3690_v48, %v3689_v47 }
0x171b   :  { %3672 = vperm.xlu0 %11841, %v3665_v4  }
0x1788   :  { %v3222_v39 = vpop.xlane.xlu0 %3221 }
0x1789   :  { %v3226_v13 = vmul.f32 0.0078125, %v3222_v39 }
0x178b   :  { %v3228_v2 = vadd.f32 1e-06, %v3226_v13 }
0x178d   :  { %12475 = vrsqrt.f32 %v3228_v2 }
0x178e   :  { %v3225_v58 = vpop.xlane.xlu0 %3224 }
0x178f   :  { %v3227_v14 = vmul.f32 0.0078125, %v3225_v58 }
0x1791   :  { %v3229_v15 = vadd.f32 1e-06, %v3227_v14 }
0x1793   :  { %12477 = vrsqrt.f32 %v3229_v15 }
0x1796   :  { %v3673_v19 = vpop.permute.xlu0 %3672 }
0x1797   :  { %vm3683_vm9 = vcmp.eq.s32.totalorder %v3673_v19, %v3670_v17 }
0x1798   :  { %v3687_v33 = vsel %vm3683_vm9, 1.0, %v13722_v35 }
0x1799   :  { %v3691_v28 = vpack.c.bf16 %v3688_v29, %v3687_v33 }
0x179a   :  { %v12476_v16 = vpop.eup %12475 }
0x179b   :  { %v3232_v18 = vmul.f32 %v12476_v16, %v3217_v52  ;;  %v12130_v52 = vld [vmem:[#allocation16 + $0xb0] sm:$0xff]  }
0x179c   :  { %10795 = vmatpush3.bf16.msra.mxu0 %v12130_v52 }
0x179d   :  { %v3240_v26 = vmul.f32 %v10284_v20, %v3232_v18  ;;  %10796 = vmatprep.subr.bf16.mxu0 %v12131_v54 }
0x179f   :  { %v3248_v12 = vadd.f32 %v10285_v53, %v3240_v26 }
0x17a0   :  { %v12478_v24 = vpop.eup %12477  ;;  %10797 = vmatpush3.bf16.msra.mxu0 %v12132_v55 }
0x17a1   :  { %v3233_v25 = vmul.f32 %v12478_v24, %v3218_v56  ;;  %v12134_v56 = vld [vmem:[#allocation16 + $0xa0] sm:$0xff]   ;;  %10798 = vmatprep.subr.bf16.mxu0 %v12133_v49 }
0x17a3   :  { %v3241_v30 = vmul.f32 %v10284_v20, %v3233_v25 }
0x17a4   :  { %10799 = vmatpush3.bf16.msra.mxu0 %v12134_v56 }
0x17a5   :  { %v3249_v36 = vadd.f32 %v10285_v53, %v3241_v30  ;;  %10800 = vmatprep.subr.bf16.mxu0 %v12135_v40 }
0x17a7   :  { %v3250_v41 = vpack.c.bf16 %v3249_v36, %v3248_v12 }
0x17a8   :  { %10801 = vmatpush3.bf16.msra.mxu0 %v12136_v57 }
0x17a9   :  { %3394 = vmatmul.mubr.bf16.vlgmr.msra.gmra.mxu1 %v3250_v41  ;;  %10802 = vmatprep.subr.bf16.mxu0 %v12137_v60 }
0x17aa   :  { %11257 = vmatpush3.bf16.msra.mxu1 %v12123_v11  ;;  %11264 = vmatprep.mubr.msk.bf16.mxu1 %vm1729_vm6, %v3691_v28  ;;  %v3701_v28 = vld [vmem:[#allocation24] sm:$0xff] }
0x17ab   :  { %11258 = vmatprep.subr.bf16.mxu1 %v12124_v21 }
0x17ac   :  { %10803 = vmatpush3.bf16.msra.mxu0 %v12138_v61 }
0x17ad   :  { %10804 = vmatprep.subr.bf16.mxu0 %v12139_v62 }
0x17ae   :  { %11259 = vmatpush3.bf16.msra.mxu1 %v12124_v21 }
0x17af   :  { %11260 = vmatprep.subr.bf16.mxu1 %v12125_v43 }
0x17b0   :  { %10805 = vmatpush3.bf16.msra.mxu0 %v12140_v63 }
0x17b1   :  { %10806 = vmatprep.subr.bf16.mxu0 %v12141_v31 }
0x17b2   :  { %11261 = vmatpush3.bf16.msra.mxu1 %v12125_v43  ;;  %v3703_v43 = vld [vmem:[#allocation24 + $0x10] sm:$0xff] }
0x17b3   :  { %11262 = vmatprep.subr.bf16.mxu1 %v12126_v46 }
0x17b4   :  { %10807 = vmatpush3.bf16.msra.mxu0 %v12142_v27 }
0x17b6   :  { %11263 = vmatpush3.bf16.msra.mxu1 %v12126_v46  ;;  %v3702_v46 = vld [vmem:[#allocation24 + $0x8] sm:$0xff] }
0x17b9   :  { %11265 = vmatmul.mubr.msk.bf16.vlgmr.msra.gmra.mxu1 %vm1729_vm6, %v3692_v6 }
0x17ba   :  { %4069 = vmatprep.mubr.bf16.mxu1 %v13723_v59 }
0x1869   :  { %v3395_v4 = vpop.f32.mrf.mxu1 }
0x186a   :  { %v3396_v5 = vadd.f32 %v3395_v4, %v3274_v1 }
0x186b   :  { %v3397_v32 = vpop.f32.mrf.mxu1 }
0x186c   :  { %v3404_v7 = vmul.f32 %v3396_v5, %v3396_v5  ;;  %v3398_v9 = vadd.f32 %v3397_v32, %v3278_v3  ;;  %v12143_v32 = vld [vmem:[%s15808_s19 + $0xa8] ss:$12 sps:$4 sm:$0xff]  }
0x186d   :  { %v3399_v10 = vpop.f32.mrf.mxu1 }
0x186e   :  { %v3408_v11 = vmul.f32 %v3404_v7, %v3396_v5  ;;  %v3405_v39 = vmul.f32 %v3398_v9, %v3398_v9  ;;  %v3400_v13 = vadd.f32 %v3399_v10, %v3274_v1  ;;  %v12145_v7 = vld [vmem:[%s15808_s19 + $0xac] ss:$12 sps:$4 sm:$0xff]  }
0x186f   :  { %v3401_v2 = vpop.f32.mrf.mxu1  ;;  %4037 = vmatprep.subr.bf16.mxu1 %v12145_v7 }
0x1870   :  { %v3412_v58 = vmul.f32 0.044715, %v3408_v11  ;;  %v3409_v14 = vmul.f32 %v3405_v39, %v3398_v9  ;;  %v3406_v15 = vmul.f32 %v3400_v13, %v3400_v13  ;;  %v3402_v16 = vadd.f32 %v3401_v2, %v3278_v3  ;;  %4038 = vmatpush1.bf16.msra.mxu1 %v12143_v32  ;;  %v10344_v32 = vld [vmem:[#allocation25] ss:$0 sm:$0xff] }
0x1872   :  { %v3416_v17 = vadd.f32 %v3412_v58, %v3396_v5  ;;  %v3413_v18 = vmul.f32 0.044715, %v3409_v14  ;;  %v3410_v19 = vmul.f32 %v3406_v15, %v3400_v13  ;;  %v3407_v20 = vmul.f32 %v3402_v16, %v3402_v16 }
0x1874   :  { %v3420_v22 = vmul.f32 0.7978846, %v3416_v17  ;;  %v3417_v24 = vadd.f32 %v3413_v18, %v3398_v9  ;;  %v3414_v25 = vmul.f32 0.044715, %v3410_v19  ;;  %v3411_v26 = vmul.f32 %v3407_v20, %v3402_v16 }
0x1876   :  { %v3421_v53 = vmul.f32 0.7978846, %v3417_v24  ;;  %v3418_v29 = vadd.f32 %v3414_v25, %v3400_v13  ;;  %v3415_v30 = vmul.f32 0.044715, %v3411_v26  ;;  %12479 = vtanh.f32 %v3420_v22  ;;  %v12148_v24 = vld [vmem:[%s15808_s19 + $0x94] ss:$12 sps:$4 sm:$0xff]  }
0x1877   :  { %v12149_v25 = vld [vmem:[%s15808_s19 + $0xb0] ss:$12 sps:$4 sm:$0xff]   ;;  %4039 = vmatprep.subr.bf16.mxu1 %v12148_v24 }
0x1878   :  { %12481 = vtanh.f32 %v3421_v53  ;;  %v3422_v33 = vmul.f32 0.7978846, %v3418_v29  ;;  %v3419_v12 = vadd.f32 %v3415_v30, %v3402_v16  ;;  %v12146_v26 = vld [vmem:[%s15808_s19 + $0x90] ss:$12 sps:$4 sm:$0xff]   ;;  %11268 = vmatprep.subr.bf16.mxu0 %v12149_v25  ;;  %v12153_v29 = vld [vmem:[%s15808_s19 + $0x98] ss:$12 sps:$4 sm:$0xff]  }
0x1879   :  { %v11266_v36 = vpop.f32.mrf.mxu1  ;;  %4040 = vmatpush1.bf16.msra.mxu1 %v12146_v26  ;;  %v12152_v53 = vld [vmem:[%s15808_s19 + $0x7c] ss:$12 sps:$4 sm:$0xff]   ;;  %v12150_v30 = vld [vmem:[%s15808_s19 + $0x78] ss:$12 sps:$4 sm:$0xff]  }
0x187a   :  { %12483 = vtanh.f32 %v3422_v33  ;;  %v3423_v41 = vmul.f32 0.7978846, %v3419_v12  ;;  %v3778_v48 = vadd.f32 %v11266_v36, %v3703_v43  ;;  %4041 = vmatprep.subr.bf16.mxu1 %v12152_v53  ;;  %v12156_v33 = vld [vmem:[%s15808_s19 + $0x64] ss:$12 sps:$4 sm:$0xff]   ;;  %v12157_v12 = vld [vmem:[%s15808_s19 + $0x80] ss:$12 sps:$4 sm:$0xff]  }
0x187b   :  { %v3769_v21 = vpop.f32.mrf.mxu1  ;;  %v12154_v36 = vld [vmem:[%s15808_s19 + $0x60] ss:$12 sps:$4 sm:$0xff]   ;;  %v12165_v43 = vld [vmem:[%s15808_s19 + $0x50] ss:$12 sps:$4 sm:$0xff]  }
0x187c   :  { %12485 = vtanh.f32 %v3423_v41  ;;  %v3770_v42 = vadd.f32 %v3769_v21, %v3701_v28  ;;  %v12158_v28 = vld [vmem:[%s15808_s19 + $0x48] ss:$12 sps:$4 sm:$0xff]   ;;  %v12160_v41 = vld [vmem:[%s15808_s19 + $0x4c] ss:$12 sps:$4 sm:$0xff]  }
0x187d   :  { %v11267_v45 = vpop.f32.mrf.mxu1  ;;  %4042 = vmatpush1.bf16.msra.mxu1 %v12150_v30  ;;  %v12161_v21 = vld [vmem:[%s15808_s19 + $0x68] ss:$12 sps:$4 sm:$0xff]  }
0x187e   :  { %3786 = vadd.xlane.f32.xlu1 %v3770_v42  ;;  %v3781_v8 = vadd.f32 %v11267_v45, %v3704_v50  ;;  %4043 = vmatprep.subr.bf16.mxu1 %v12156_v33  ;;  %v12162_v45 = vld [vmem:[%s15808_s19 + $0x30] ss:$12 sps:$4 sm:$0xff]   ;;  %v12173_v50 = vld [vmem:[%s15808_s19 + $0x20] ss:$12 sps:$4 sm:$0xff]  }
0x187f   :  { %v3772_v47 = vpop.f32.mrf.mxu1 }
0x1880   :  { %v3773_v6 = vadd.f32 %v3772_v47, %v3702_v46  ;;  %v12168_v46 = vld [vmem:[%s15808_s19 + $0x1c] ss:$12 sps:$4 sm:$0xff]   ;;  %v12169_v47 = vld [vmem:[%s15808_s19 + $0x38] ss:$12 sps:$4 sm:$0xff]  }
0x1881   :  { %4044 = vmatpush1.bf16.msra.mxu1 %v12154_v36 }
0x1882   :  { %3788 = vadd.xlane.f32.xlu0 %v3773_v6  ;;  %3790 = vadd.xlane.f32.xlu1 %v3778_v48 }
0x1883   :  { %v12480_v51 = vpop.eup %12479  ;;  %4045 = vmatprep.subr.bf16.mxu1 %v12160_v41 }
0x1884   :  { %v3428_v49 = vadd.f32 1.0, %v12480_v51  ;;  %v12170_v51 = vld [vmem:[%s15808_s19] ss:$12 sps:$4 sm:$0xff]  }
0x1885   :  { %v12482_v52 = vpop.eup %12481  ;;  %4046 = vmatpush1.bf16.msra.mxu1 %v12158_v28 }
0x1886   :  { %3792 = vadd.xlane.f32.xlu1 %v3781_v8  ;;  %v3429_v54 = vadd.f32 1.0, %v12482_v52  ;;  %v3432_v62 = vmul.f32 0.5, %v3428_v49 }
0x1887   :  { %v12484_v55 = vpop.eup %12483 }
0x1888   :  { %v3430_v56 = vadd.f32 1.0, %v12484_v55  ;;  %v3433_v61 = vmul.f32 0.5, %v3429_v54  ;;  %v3436_v1 = vmul.f32 %v3432_v62, %v3396_v5 }
0x1889   :  { %v12486_v40 = vpop.eup %12485 }
0x188a   :  { %v3434_v57 = vmul.f32 0.5, %v3430_v56  ;;  %v3431_v60 = vadd.f32 1.0, %v12486_v40  ;;  %v3437_v27 = vmul.f32 %v3433_v61, %v3398_v9 }
0x188c   :  { %v3435_v63 = vmul.f32 0.5, %v3431_v60  ;;  %v3438_v31 = vmul.f32 %v3434_v57, %v3400_v13 }
0x188e   :  { %v3439_v0 = vmul.f32 %v3435_v63, %v3402_v16  ;;  %v3440_v4 = vpack.c.bf16 %v3438_v31, %v3436_v1 }
0x1890   :  { %v3441_v3 = vpack.c.bf16 %v3439_v0, %v3437_v27 }
0x1892   :  { %3611 = vmatprep.mubr.bf16.mxu0 %v3441_v3 }
0x1893   :  { %3612 = vmatmul.mubr.bf16.vlgmr.msra.gmra.mxu0 %v3440_v4 }
0x1894   :  { %11269 = vmatpush3.bf16.msra.mxu0 %v12149_v25  ;;  %v3892_v25 = vld [vmem:[#allocation28] sm:$0x7] }
0x1895   :  { %11270 = vmatprep.subr.bf16.mxu0 %v12153_v29  ;;  %v3901_v33 = vrot.slane %v3892_v25, %v14174_v23  ;;  %v3905_v28 = vrot.slane %v3892_v25, %v14178_v34 }
0x1898   :  { %11271 = vmatpush3.bf16.msra.mxu0 %v12153_v29  ;;  %v3897_v29 = vrot.slane %v3892_v25, %v14180_v38 }
0x1899   :  { %11272 = vmatprep.subr.bf16.mxu0 %v12157_v12 }
0x189c   :  { %11273 = vmatpush3.bf16.msra.mxu0 %v12157_v12 }
0x189d   :  { %11274 = vmatprep.subr.bf16.mxu0 %v12161_v21 }
0x18a0   :  { %11275 = vmatpush3.bf16.msra.mxu0 %v12161_v21 }
0x18a1   :  { %11276 = vmatprep.subr.bf16.mxu0 %v12165_v43 }
0x18a4   :  { %11277 = vmatpush3.bf16.msra.mxu0 %v12165_v43 }
0x18a5   :  { %11278 = vmatprep.subr.bf16.mxu0 %v12169_v47 }
0x18a8   :  { %11279 = vmatpush3.bf16.msra.mxu0 %v12169_v47 }
0x18a9   :  { %11280 = vmatprep.subr.bf16.mxu0 %v12173_v50 }
0x18ac   :  { %11281 = vmatpush3.bf16.msra.mxu0 %v12173_v50 }
0x1907   :  { %v3787_v10 = vpop.xlane.xlu1 %3786 }
0x1908   :  { %v3794_v11 = vmul.f32 0.0078125, %v3787_v10 }
0x190a   :  { %v14533_v39 = vsub.f32 %v3770_v42, %v3794_v11  ;;  %v12164_v42 = vld [vmem:[%s15808_s19 + $0x34] ss:$12 sps:$4 sm:$0xff]  }
0x190b   :  { %v3789_v2 = vpop.xlane.xlu0 %3788  ;;  %v3791_v58 = vpop.xlane.xlu1 %3790  ;;  %4047 = vmatprep.subr.bf16.mxu1 %v12164_v42 }
0x190c   :  { %v3795_v14 = vmul.f32 0.0078125, %v3789_v2  ;;  %v3796_v9 = vmul.f32 0.0078125, %v3791_v58  ;;  %v3802_v5 = vmul.f32 %v14533_v39, %v14533_v39  ;;  %4048 = vmatpush1.bf16.msra.mxu1 %v12162_v45 }
0x190d   :  { %4049 = vmatprep.subr.bf16.mxu1 %v12168_v46 }
0x190e   :  { %3806 = vadd.xlane.f32.xlu1 %v3802_v5  ;;  %v14537_v13 = vsub.f32 %v3773_v6, %v3795_v14  ;;  %v14539_v15 = vsub.f32 %v3778_v48, %v3796_v9  ;;  %v12166_v48 = vld [vmem:[%s15808_s19 + $0x18] ss:$12 sps:$4 sm:$0xff]   ;;  %v10345_v14 = vld [vmem:[#allocation27] ss:$0 sm:$0xff] }
0x190f   :  { %v3793_v16 = vpop.xlane.xlu1 %3792  ;;  %v12172_v6 = vld [vmem:[%s15808_s19 + $0x4] ss:$12 sps:$4 sm:$0xff]  }
0x1910   :  { %v3797_v17 = vmul.f32 0.0078125, %v3793_v16  ;;  %v3803_v18 = vmul.f32 %v14537_v13, %v14537_v13  ;;  %v3804_v19 = vmul.f32 %v14539_v15, %v14539_v15  ;;  %4050 = vmatpush1.bf16.msra.mxu1 %v12166_v48 }
0x1911   :  { %4051 = vmatprep.subr.bf16.mxu1 %v12172_v6 }
0x1912   :  { %3808 = vadd.xlane.f32.xlu1 %v3803_v18  ;;  %3810 = vadd.xlane.f32.xlu0 %v3804_v19  ;;  %v14545_v20 = vsub.f32 %v3781_v8, %v3797_v17  ;;  %v12174_v8 = vld [vmem:[%s15808_s19 + $0x8] ss:$12 sps:$4 sm:$0xff]  }
0x1913   :  { %11282 = vmatprep.subr.bf16.mxu0 %v12174_v8 }
0x1914   :  { %v3805_v22 = vmul.f32 %v14545_v20, %v14545_v20  ;;  %4052 = vmatpush1.bf16.msra.mxu1 %v12170_v51  ;;  %11283 = vmatpush3.bf16.msra.mxu0 %v12174_v8 }
0x1916   :  { %3812 = vadd.xlane.f32.xlu1 %v3805_v22 }
0x1953   :  { %v10808_v52 = vpop.f32.mrf.mxu0 }
0x1955   :  { %v10809_v54 = vpop.f32.mrf.mxu0 }
0x1956   :  { %v14571_v55 = vadd.f32 %v10809_v54, %v10808_v52 }
0x1997   :  { %v3807_v49 = vpop.xlane.xlu1 %3806 }
0x1998   :  { %v3814_v56 = vmul.f32 0.0078125, %v3807_v49 }
0x199a   :  { %v3818_v40 = vadd.f32 1e-12, %v3814_v56 }
0x199b   :  { %v3811_v57 = vpop.xlane.xlu0 %3810  ;;  %v3809_v60 = vpop.xlane.xlu1 %3808 }
0x199c   :  { %12487 = vrsqrt.f32 %v3818_v40  ;;  %v3816_v61 = vmul.f32 0.0078125, %v3811_v57  ;;  %v3815_v62 = vmul.f32 0.0078125, %v3809_v60 }
0x199e   :  { %v3820_v63 = vadd.f32 1e-12, %v3816_v61  ;;  %v3819_v31 = vadd.f32 1e-12, %v3815_v62 }
0x199f   :  { %v3813_v27 = vpop.xlane.xlu1 %3812 }
0x19a0   :  { %12489 = vrsqrt.f32 %v3820_v63  ;;  %v3817_v0 = vmul.f32 0.0078125, %v3813_v27 }
0x19a1   :  { %12491 = vrsqrt.f32 %v3819_v31 }
0x19a2   :  { %v3821_v1 = vadd.f32 1e-12, %v3817_v0 }
0x19a4   :  { %12493 = vrsqrt.f32 %v3821_v1 }
0x19a9   :  { %v12488_v3 = vpop.eup %12487 }
0x19aa   :  { %v3826_v4 = vmul.f32 %v12488_v3, %v14533_v39 }
0x19ac   :  { %v3836_v58 = vmul.f32 %v10344_v32, %v3826_v4 }
0x19ad   :  { %v12490_v7 = vpop.eup %12489 }
0x19ae   :  { %v12492_v10 = vpop.eup %12491  ;;  %v3828_v11 = vmul.f32 %v12490_v7, %v14539_v15  ;;  %v14577_v18 = vadd.f32 %v10345_v14, %v3836_v58 }
0x19af   :  { %v3827_v2 = vmul.f32 %v12492_v10, %v14537_v13 }
0x19b0   :  { %v3838_v17 = vmul.f32 %v10344_v32, %v3828_v11 }
0x19b1   :  { %v12494_v9 = vpop.eup %12493  ;;  %v3837_v5 = vmul.f32 %v10344_v32, %v3827_v2 }
0x19b2   :  { %v3829_v16 = vmul.f32 %v12494_v9, %v14545_v20  ;;  %v14583_v24 = vadd.f32 %v10345_v14, %v3838_v17  ;;  %v14590_v20 = vpop.f32.mrf.mxu0 }
0x19b3   :  { %v14579_v19 = vadd.f32 %v10345_v14, %v3837_v5  ;;  %v14640_v5 = vld [vmem:[%s15809_s23] sm:$0xff] }
0x19b4   :  { %v3839_v22 = vmul.f32 %v10344_v32, %v3829_v16  ;;  %v14592_v53 = vpop.f32.mrf.mxu0 }
0x19b5   :  { %v3858_v39 = vpack.c.bf16 %v14579_v19, %v14577_v18 }
0x19b6   :  { %v14585_v15 = vadd.f32 %v10345_v14, %v3839_v22  ;;  %v14643_v22 = vld [vmem:[%s15809_s23 + $0x18] sm:$0xff] }
0x19b7   :  { %4070 = vmatmul.mubr.bf16.vlgmr.msra.gmra.mxu1 %v3858_v39  ;;  %11284 = vmatprep.mubr.bf16.mxu0 %v3858_v39 }
0x19b8   :  { %v3859_v13 = vpack.c.bf16 %v14585_v15, %v14583_v24  ;;  %4079 = vmatprep.mubr.bf16.mxu1 %v13723_v59 }
0x19ba   :  { %11285 = vmatmul.mubr.bf16.vlgmr.msra.gmra.mxu0 %v3859_v13 }
0x19bf   :  { %4080 = vmatmul.mubr.bf16.gmra.mxu1 %v3859_v13 }
0x1a77   :  { %v4071_v26 = vpop.f32.mrf.mxu1 }
0x1a78   :  { %v4072_v41 = vadd.f32 %v4071_v26, %v3897_v29  ;;  %v14647_v26 = vld [vmem:[%s15809_s23 + $0x8] sm:$0xff] }
0x1a79   :  { %v4073_v30 = vpop.f32.mrf.mxu1 }
0x1a7a   :  { %v11286_v12 = vpop.f32.mrf.mxu0  ;;  %v4074_v45 = vadd.f32 %v4073_v30, %v3901_v33 }
0x1a7b   :  { %v4075_v36 = vpop.f32.mrf.mxu1  ;;  %v4133_v6 = vadd.f32 %v11286_v12, %v3905_v28 }
0x1a7c   :  { %v4076_v21 = vadd.f32 %v4075_v36, %v3897_v29  ;;  %v4124_v42 = vpop.f32.mrf.mxu0  ;;  %v14652_v36 = vld [vmem:[%s15809_s23 + $0x10] sm:$0xff] }
0x1a7d   :  { %v4077_v43 = vpop.f32.mrf.mxu1  ;;  %v4125_v54 = vadd.f32 %v4124_v42, %v3905_v28 }
0x1a7e   :  { %v14597_v46 = vpack.c.bf16 %v4076_v21, %v4072_v41  ;;  %v4078_v47 = vadd.f32 %v4077_v43, %v3901_v33  ;;  %v11287_v48 = vpop.f32.mrf.mxu0 }
0x1a7f   :  { %v4081_v50 = vpop.f32.mrf.mxu1  ;;  %v4136_v51 = vadd.f32 %v11287_v48, %v3905_v28 }
0x1a80   :  { %v14599_v8 = vpack.c.bf16 %v4078_v47, %v4074_v45  ;;  %11292 = vmatprep.mubr.msk.bf16.mxu1 %vm1194_vm2, %v14597_v46  ;;  %v4127_v52 = vpop.f32.mrf.mxu0  ;;  %v4082_v0 = vadd.f32 %v4081_v50, %v3897_v29 }
0x1a81   :  { %v14603_v49 = vpack.c.bf16 %v4136_v51, %v4133_v6  ;;  %v4083_v56 = vpop.f32.mrf.mxu1  ;;  %v4128_v40 = vadd.f32 %v4127_v52, %v3905_v28 }
0x1a82   :  { %4340 = vrot.lane.b32.xlu1 %v14599_v8, %s13725_s1  ;;  %v4084_v62 = vadd.f32 %v4083_v56, %v3901_v33  ;;  %v4169_v4 = vsel %vm1194_vm2, %v14599_v8, 0 }
0x1a83   :  { %v14607_v57 = vpack.c.bf16 %v4128_v40, %v4125_v54  ;;  %v4085_v60 = vpop.f32.mrf.mxu1  ;;  %11296 = vmatprep.subr.bf16.mxu0 %v14603_v49 }
0x1a84   :  { %11297 = vmatpush3.bf16.msra.mxu0 %v14603_v49  ;;  %v4086_v31 = vadd.f32 %v4085_v60, %v3897_v29 }
0x1a85   :  { %v4087_v61 = vpop.f32.mrf.mxu1  ;;  %11298 = vmatprep.subr.bf16.mxu0 %v14607_v57 }
0x1a86   :  { %v4088_v63 = vadd.f32 %v4087_v61, %v3901_v33  ;;  %4334 = vrot.lane.b32.xlu1 %v14597_v46, %s13725_s1  ;;  %v14623_v3 = vpack.c.bf16 %v4086_v31, %v4082_v0 }
0x1a88   :  { %v14614_v27 = vpack.c.bf16 %v4088_v63, %v4084_v62  ;;  %11299 = vmatpush3.bf16.msra.mxu0 %v14607_v57 }
0x1a8a   :  { %4342 = vrot.lane.b32.xlu0 %v14614_v27, %s13725_s1  ;;  %11680 = vmatprep.subr.msk.bf16.mxu1 %vm1194_vm2, %v14614_v27  ;;  %v4172_v1 = vsel %vm1194_vm2, %v14614_v27, 0 }
0x1a8b   :  { %11289 = vmatpush3.bf16.xpose.msra.mxu1 %v4172_v1 }
0x1a8c   :  { %11681 = vmatprep.subr.msk.bf16.mxu1 %vm1194_vm2, %v14599_v8 }
0x1a8e   :  { %4336 = vrot.lane.b32.xlu0 %v14623_v3, %s13725_s1 }
0x1a93   :  { %11291 = vmatpush3.bf16.xpose.msra.mxu1 %v4169_v4 }
0x1a9a   :  { %11293 = vmatmul.mubr.msk.bf16.vlgmr.msra.gmra.mxu1 %vm1194_vm2, %v14623_v3 }
0x1af4   :  { %v4341_v32 = vpop.permute.xlu1 %4340 }
0x1af5   :  { %v4351_v2 = vsel %vm1194_vm2, %v4341_v32, 0 }
0x1af8   :  { %v4335_v7 = vpop.permute.xlu1 %4334 }
0x1af9   :  { %11308 = vmatprep.mubr.msk.bf16.mxu1 %vm1194_vm2, %v4335_v7 }
0x1afc   :  { %v4343_v10 = vpop.permute.xlu0 %4342 }
0x1afd   :  { %11682 = vmatprep.subr.msk.bf16.mxu1 %vm1194_vm2, %v4343_v10  ;;  %v4354_v11 = vsel %vm1194_vm2, %v4343_v10, 0 }
0x1afe   :  { %11305 = vmatpush3.bf16.xpose.msra.mxu1 %v4354_v11 }
0x1aff   :  { %11683 = vmatprep.subr.msk.bf16.mxu1 %vm1194_vm2, %v4341_v32 }
0x1b00   :  { %v4337_v58 = vpop.permute.xlu0 %4336 }
0x1b06   :  { %11307 = vmatpush3.bf16.xpose.msra.mxu1 %v4351_v2 }
0x1b0d   :  { %11309 = vmatmul.mubr.msk.bf16.vlgmr.msra.gmra.mxu1 %vm1194_vm2, %v4337_v58 }
0x1b5a   :  { %v11294_v14 = vpop.f32.mrf.mxu1 }
0x1b5b   :  { %v4225_v29 = vmul.f32 0.17677669, %v11294_v14 }
0x1b5c   :  { %v4208_v9 = vpop.f32.mrf.mxu1 }
0x1b5d   :  { %v4223_v16 = vmul.f32 0.17677669, %v4208_v9  ;;  %v4229_v42 = vadd.f32 %v4225_v29, %v14652_v36 }
0x1b5e   :  { %v11295_v17 = vpop.f32.mrf.mxu1 }
0x1b5f   :  { %v4226_v39 = vmul.f32 0.17677669, %v11295_v17  ;;  %v4227_v13 = vadd.f32 %v4223_v16, %v14640_v5  ;;  %v4237_v43 = vsel %vm1194_vm2, %v4229_v42, -inf }
0x1b60   :  { %v4211_v25 = vpop.f32.mrf.mxu1 }
0x1b61   :  { %v4224_v30 = vmul.f32 0.17677669, %v4211_v25  ;;  %v4231_v33 = vsel %vm1194_vm2, %v4227_v13, -inf  ;;  %v4230_v12 = vadd.f32 %v4226_v39, %v14643_v22 }
0x1b62   :  { %4232 = vmax.xlane.f32.xlu1 %v4231_v33 }
0x1b63   :  { %v4228_v28 = vadd.f32 %v4224_v30, %v14647_v26  ;;  %v4240_v41 = vsel %vm1194_vm2, %v4230_v12, -inf }
0x1b65   :  { %v4234_v21 = vsel %vm1194_vm2, %v4228_v28, -inf }
0x1b66   :  { %4241 = vmax.xlane.f32.xlu1 %v4240_v41  ;;  %4235 = vmax.xlane.f32.xlu0 %v4234_v21 }
0x1b6a   :  { %4238 = vmax.xlane.f32.xlu0 %v4237_v43 }
0x1bcd   :  { %v11310_v45 = vpop.f32.mrf.mxu1 }
0x1bce   :  { %v4407_v48 = vmul.f32 0.17677669, %v11310_v45 }
0x1bcf   :  { %v4390_v47 = vpop.f32.mrf.mxu1 }
0x1bd0   :  { %v4405_v6 = vmul.f32 0.17677669, %v4390_v47  ;;  %v4411_v60 = vadd.f32 %v4407_v48, %v14652_v36 }
0x1bd1   :  { %v11311_v50 = vpop.f32.mrf.mxu1 }
0x1bd2   :  { %v4409_v51 = vadd.f32 %v4405_v6, %v14640_v5  ;;  %v4408_v54 = vmul.f32 0.17677669, %v11311_v50  ;;  %v4419_v63 = vsel %vm1194_vm2, %v4411_v60, -inf }
0x1bd3   :  { %v4393_v52 = vpop.f32.mrf.mxu1 }
0x1bd4   :  { %v4406_v56 = vmul.f32 0.17677669, %v4393_v52  ;;  %v4413_v40 = vsel %vm1194_vm2, %v4409_v51, -inf  ;;  %v4412_v62 = vadd.f32 %v4408_v54, %v14643_v22 }
0x1bd5   :  { %4414 = vmax.xlane.f32.xlu0 %v4413_v40 }
0x1bd6   :  { %v4410_v61 = vadd.f32 %v4406_v56, %v14647_v26  ;;  %v4422_v0 = vsel %vm1194_vm2, %v4412_v62, -inf }
0x1bd8   :  { %v4416_v31 = vsel %vm1194_vm2, %v4410_v61, -inf }
0x1bd9   :  { %4420 = vmax.xlane.f32.xlu0 %v4419_v63  ;;  %4417 = vmax.xlane.f32.xlu1 %v4416_v31 }
0x1bdd   :  { %4423 = vmax.xlane.f32.xlu1 %v4422_v0 }
0x1beb   :  { %v4233_v1 = vpop.xlane.xlu1 %4232 }
0x1bec   :  { %v4243_v11 = vsub.f32 %v4227_v13, %v4233_v1 }
0x1bee   :  { %v4247_v16 = vmul.f32 1.442695, %v4243_v11 }
0x1bef   :  { %v4236_v4 = vpop.xlane.xlu0 %4235  ;;  %v4242_v32 = vpop.xlane.xlu1 %4241 }
0x1bf0   :  { %v4244_v7 = vsub.f32 %v4228_v28, %v4236_v4  ;;  %v4246_v10 = vsub.f32 %v4230_v12, %v4242_v32 }
0x1bf2   :  { %v4253_v2 = vmul.f32 1.442695, %v4246_v10  ;;  %v4249_v58 = vmul.f32 1.442695, %v4244_v7 }
0x1bf3   :  { %v4239_v14 = vpop.xlane.xlu0 %4238 }
0x1bf4   :  { %v4245_v9 = vsub.f32 %v4229_v42, %v4239_v14  ;;  %12495 = vpow2.f32 %v4253_v2 }
0x1bf5   :  { %12497 = vpow2.f32 %v4249_v58 }
0x1bf6   :  { %v4251_v17 = vmul.f32 1.442695, %v4245_v9 }
0x1bf8   :  { %12499 = vpow2.f32 %v4251_v17 }
0x1bf9   :  { %12501 = vpow2.f32 %v4247_v16 }
0x1c01   :  { %v12496_v39 = vpop.eup %12495 }
0x1c02   :  { %v4264_v25 = vsel %vm1194_vm2, %v12496_v39, 0.0  ;;  %v12498_v29 = vpop.eup %12497 }
0x1c03   :  { %4265 = vadd.xlane.f32.xlu1 %v4264_v25  ;;  %v4258_v13 = vsel %vm1194_vm2, %v12498_v29, 0.0 }
0x1c05   :  { %v12500_v30 = vpop.eup %12499 }
0x1c06   :  { %v4261_v33 = vsel %vm1194_vm2, %v12500_v30, 0.0  ;;  %v12502_v12 = vpop.eup %12501 }
0x1c07   :  { %4262 = vadd.xlane.f32.xlu0 %v4261_v33  ;;  %4259 = vadd.xlane.f32.xlu1 %v4258_v13  ;;  %v4255_v28 = vsel %vm1194_vm2, %v12502_v12, 0.0 }
0x1c0b   :  { %4256 = vadd.xlane.f32.xlu0 %v4255_v28 }
0x1c18   :  { %4461 = vrot.lane.b32.xlu1 %v14607_v57, %s13725_s1 }
0x1c5e   :  { %v4415_v41 = vpop.xlane.xlu0 %4414 }
0x1c5f   :  { %v4425_v21 = vsub.f32 %v4409_v51, %v4415_v41 }
0x1c61   :  { %v4429_v47 = vmul.f32 1.442695, %v4425_v21 }
0x1c62   :  { %v4421_v42 = vpop.xlane.xlu0 %4420  ;;  %v4418_v43 = vpop.xlane.xlu1 %4417 }
0x1c63   :  { %v4427_v45 = vsub.f32 %v4411_v60, %v4421_v42  ;;  %v4426_v6 = vsub.f32 %v4410_v61, %v4418_v43 }
0x1c65   :  { %v4433_v48 = vmul.f32 1.442695, %v4427_v45  ;;  %v4431_v54 = vmul.f32 1.442695, %v4426_v6 }
0x1c66   :  { %v4424_v50 = vpop.xlane.xlu1 %4423 }
0x1c67   :  { %12503 = vpow2.f32 %v4433_v48  ;;  %v4428_v52 = vsub.f32 %v4412_v62, %v4424_v50 }
0x1c68   :  { %12505 = vpow2.f32 %v4429_v47 }
0x1c69   :  { %v4435_v56 = vmul.f32 1.442695, %v4428_v52 }
0x1c6b   :  { %12507 = vpow2.f32 %v4435_v56 }
0x1c6c   :  { %12509 = vpow2.f32 %v4431_v54 }
0x1c74   :  { %v12504_v40 = vpop.eup %12503 }
0x1c75   :  { %v4443_v63 = vsel %vm1194_vm2, %v12504_v40, 0.0  ;;  %v12506_v31 = vpop.eup %12505 }
0x1c76   :  { %4444 = vadd.xlane.f32.xlu0 %v4443_v63  ;;  %v4437_v0 = vsel %vm1194_vm2, %v12506_v31, 0.0 }
0x1c78   :  { %v12508_v51 = vpop.eup %12507 }
0x1c79   :  { %v4446_v60 = vsel %vm1194_vm2, %v12508_v51, 0.0  ;;  %v12510_v1 = vpop.eup %12509 }
0x1c7a   :  { %4438 = vadd.xlane.f32.xlu0 %v4437_v0  ;;  %4447 = vadd.xlane.f32.xlu1 %v4446_v60  ;;  %v4440_v61 = vsel %vm1194_vm2, %v12510_v1, 0.0 }
0x1c7e   :  { %4441 = vadd.xlane.f32.xlu1 %v4440_v61 }
0x1c8c   :  { %v4266_v62 = vpop.xlane.xlu1 %4265 }
0x1c8f   :  { %4528 = vrot.lane.b32.xlu1 %v14614_v27, %s13683_s28 }
0x1c90   :  { %v4263_v4 = vpop.xlane.xlu0 %4262  ;;  %4463 = vrot.lane.b32.xlu0 %v14603_v49, %s13725_s1  ;;  %v4260_v32 = vpop.xlane.xlu1 %4259 }
0x1c91   :  { %12511 = vrcp.f32 %v4263_v4 }
0x1c92   :  { %12513 = vrcp.f32 %v4260_v32 }
0x1c93   :  { %4522 = vrot.lane.b32.xlu1 %v14597_v46, %s13683_s28  ;;  %12515 = vrcp.f32 %v4266_v62 }
0x1c94   :  { %v4257_v7 = vpop.xlane.xlu0 %4256  ;;  %4526 = vrot.lane.b32.xlu0 %v14599_v8, %s13683_s28  ;;  %v4462_v13 = vpop.permute.xlu1 %4461 }
0x1c95   :  { %12517 = vrcp.f32 %v4257_v7 }
0x1c98   :  { %4524 = vrot.lane.b32.xlu0 %v14623_v3, %s13683_s28 }
0x1c9e   :  { %v12512_v10 = vpop.eup %12511 }
0x1c9f   :  { %v12514_v11 = vpop.eup %12513  ;;  %v4273_v14 = vmul.f32 %v12512_v10, %v12500_v30 }
0x1ca0   :  { %v12516_v2 = vpop.eup %12515  ;;  %v4272_v16 = vmul.f32 %v12514_v11, %v12498_v29 }
0x1ca1   :  { %v4274_v17 = vmul.f32 %v12516_v2, %v12496_v39 }
0x1ca2   :  { %v12518_v58 = vpop.eup %12517 }
0x1ca3   :  { %v4271_v9 = vmul.f32 %v12518_v58, %v12502_v12  ;;  %v4276_v33 = vpack.c.bf16 %v4274_v17, %v4273_v14 }
0x1ca5   :  { %v4275_v25 = vpack.c.bf16 %v4272_v16, %v4271_v9 }
0x1ca7   :  { %11300 = vmatprep.mubr.msk.bf16.mxu0 %vm1194_vm2, %v4275_v25 }
0x1ca8   :  { %11301 = vmatmul.mubr.msk.bf16.vlgmr.msra.gmra.mxu0 %vm1194_vm2, %v4276_v33 }
0x1cff   :  { %v4445_v28 = vpop.xlane.xlu0 %4444 }
0x1d03   :  { %v4439_v41 = vpop.xlane.xlu0 %4438  ;;  %v4448_v21 = vpop.xlane.xlu1 %4447 }
0x1d04   :  { %12519 = vrcp.f32 %v4448_v21 }
0x1d05   :  { %12521 = vrcp.f32 %v4439_v41 }
0x1d06   :  { %12523 = vrcp.f32 %v4445_v28 }
0x1d07   :  { %v4464_v42 = vpop.permute.xlu0 %4463  ;;  %v4442_v43 = vpop.xlane.xlu1 %4441 }
0x1d08   :  { %12525 = vrcp.f32 %v4442_v43  ;;  %11312 = vmatprep.subr.bf16.mxu0 %v4464_v42 }
0x1d09   :  { %11313 = vmatpush3.bf16.msra.mxu0 %v4464_v42 }
0x1d0a   :  { %11314 = vmatprep.subr.bf16.mxu0 %v4462_v13 }
0x1d0b   :  { %v4529_v39 = vpop.permute.xlu1 %4528  ;;  %v4527_v0 = vpop.permute.xlu0 %4526 }
0x1d0c   :  { %v4540_v63 = vsel %vm1194_vm2, %v4529_v39, 0 }
0x1d0d   :  { %11315 = vmatpush3.bf16.msra.mxu0 %v4462_v13 }
0x1d0e   :  { %11684 = vmatprep.subr.msk.bf16.mxu0 %vm1194_vm2, %v4529_v39 }
0x1d0f   :  { %v4523_v56 = vpop.permute.xlu1 %4522 }
0x1d11   :  { %v12520_v29 = vpop.eup %12519 }
0x1d12   :  { %v12522_v30 = vpop.eup %12521  ;;  %v4456_v47 = vmul.f32 %v12520_v29, %v12508_v51  ;;  %v4537_v51 = vsel %vm1194_vm2, %v4527_v0, 0 }
0x1d13   :  { %v12524_v12 = vpop.eup %12523  ;;  %v4453_v48 = vmul.f32 %v12522_v30, %v12506_v31  ;;  %v4525_v31 = vpop.permute.xlu0 %4524 }
0x1d14   :  { %v4455_v50 = vmul.f32 %v12524_v12, %v12504_v40 }
0x1d15   :  { %v12526_v45 = vpop.eup %12525 }
0x1d16   :  { %v4454_v6 = vmul.f32 %v12526_v45, %v12510_v1  ;;  %v4458_v54 = vpack.c.bf16 %v4456_v47, %v4455_v50 }
0x1d18   :  { %v4457_v52 = vpack.c.bf16 %v4454_v6, %v4453_v48 }
0x1d1a   :  { %11316 = vmatprep.mubr.msk.bf16.mxu0 %vm1194_vm2, %v4457_v52 }
0x1d1b   :  { %11317 = vmatmul.mubr.msk.bf16.vlgmr.msra.gmra.mxu0 %vm1194_vm2, %v4458_v54 }
0x1d1c   :  { %11321 = vmatpush3.bf16.xpose.msra.mxu0 %v4540_v63  ;;  %11324 = vmatprep.mubr.msk.bf16.mxu0 %vm1194_vm2, %v4523_v56 }
0x1d1d   :  { %11685 = vmatprep.subr.msk.bf16.mxu0 %vm1194_vm2, %v4527_v0 }
0x1d24   :  { %11323 = vmatpush3.bf16.xpose.msra.mxu0 %v4537_v51 }
0x1d2b   :  { %11325 = vmatmul.mubr.msk.bf16.vlgmr.msra.gmra.mxu0 %vm1194_vm2, %v4525_v31 }
0x1d68   :  { %v14697_v40 = vpop.f32.mrf.mxu0 }
0x1d6a   :  { %v14699_v60 = vpop.f32.mrf.mxu0 }
0x1d6c   :  { %v14701_v1 = vpop.f32.mrf.mxu0 }
0x1d6e   :  { %v14703_v61 = vpop.f32.mrf.mxu0 }
0x1ddb   :  { %v14705_v62 = vpop.f32.mrf.mxu0 }
0x1ddd   :  { %v14707_v4 = vpop.f32.mrf.mxu0 }
0x1ddf   :  { %v14709_v32 = vpop.f32.mrf.mxu0 }
0x1de0   :  { %v11848_v7 = vpack.i.bf16 %v14709_v32, %v14705_v62 }
0x1de1   :  { %v14713_v10 = vpop.f32.mrf.mxu0 }
0x1de2   :  { %v11843_v11 = vpack.i.bf16 %v14713_v10, %v14707_v4 }
0x1deb   :  { %v11326_v2 = vpop.f32.mrf.mxu0 }
0x1dec   :  { %v4593_v33 = vmul.f32 0.17677669, %v11326_v2 }
0x1ded   :  { %v4576_v58 = vpop.f32.mrf.mxu0 }
0x1dee   :  { %v4591_v14 = vmul.f32 0.17677669, %v4576_v58  ;;  %v4597_v42 = vadd.f32 %v4593_v33, %v14652_v36 }
0x1def   :  { %v11327_v9 = vpop.f32.mrf.mxu0 }
0x1df0   :  { %v4595_v16 = vadd.f32 %v4591_v14, %v14640_v5  ;;  %v4594_v17 = vmul.f32 0.17677669, %v11327_v9  ;;  %v4605_v29 = vsel %vm1194_vm2, %v4597_v42, -inf }
0x1df1   :  { %v4579_v25 = vpop.f32.mrf.mxu0 }
0x1df2   :  { %v4598_v13 = vadd.f32 %v4594_v17, %v14643_v22  ;;  %v4592_v28 = vmul.f32 0.17677669, %v4579_v25  ;;  %v4599_v41 = vsel %vm1194_vm2, %v4595_v16, -inf }
0x1df3   :  { %4600 = vmax.xlane.f32.xlu1 %v4599_v41 }
0x1df4   :  { %v4596_v21 = vadd.f32 %v4592_v28, %v14647_v26  ;;  %v4608_v43 = vsel %vm1194_vm2, %v4598_v13, -inf }
0x1df6   :  { %v4602_v39 = vsel %vm1194_vm2, %v4596_v21, -inf }
0x1df7   :  { %4609 = vmax.xlane.f32.xlu1 %v4608_v43  ;;  %4603 = vmax.xlane.f32.xlu0 %v4602_v39 }
0x1dfb   :  { %4606 = vmax.xlane.f32.xlu0 %v4605_v29 }
0x1e08   :  { %4645 = vrot.lane.b32.xlu1 %v14607_v57, %s13683_s28 }
0x1e7c   :  { %v4601_v30 = vpop.xlane.xlu1 %4600 }
0x1e7d   :  { %v4611_v6 = vsub.f32 %v4595_v16, %v4601_v30 }
0x1e7f   :  { %v4615_v63 = vmul.f32 1.442695, %v4611_v6 }
0x1e80   :  { %v4610_v12 = vpop.xlane.xlu1 %4609  ;;  %v4604_v45 = vpop.xlane.xlu0 %4603 }
0x1e81   :  { %v4614_v47 = vsub.f32 %v4598_v13, %v4610_v12  ;;  %v4612_v48 = vsub.f32 %v4596_v21, %v4604_v45 }
0x1e83   :  { %v4621_v50 = vmul.f32 1.442695, %v4614_v47  ;;  %v4617_v52 = vmul.f32 1.442695, %v4612_v48 }
0x1e84   :  { %v4607_v54 = vpop.xlane.xlu0 %4606  ;;  %v4646_v25 = vpop.permute.xlu1 %4645 }
0x1e85   :  { %12527 = vpow2.f32 %v4621_v50  ;;  %v4613_v56 = vsub.f32 %v4597_v42, %v4607_v54 }
0x1e86   :  { %12529 = vpow2.f32 %v4617_v52 }
0x1e87   :  { %v4619_v0 = vmul.f32 1.442695, %v4613_v56 }
0x1e89   :  { %12531 = vpow2.f32 %v4619_v0 }
0x1e8a   :  { %12533 = vpow2.f32 %v4615_v63 }
0x1e92   :  { %v12528_v51 = vpop.eup %12527 }
0x1e93   :  { %v4632_v31 = vsel %vm1194_vm2, %v12528_v51, 0.0  ;;  %v12530_v2 = vpop.eup %12529 }
0x1e94   :  { %4633 = vadd.xlane.f32.xlu1 %v4632_v31  ;;  %v4626_v14 = vsel %vm1194_vm2, %v12530_v2, 0.0 }
0x1e96   :  { %v12532_v58 = vpop.eup %12531 }
0x1e97   :  { %v4629_v9 = vsel %vm1194_vm2, %v12532_v58, 0.0  ;;  %v12534_v16 = vpop.eup %12533 }
0x1e98   :  { %4627 = vadd.xlane.f32.xlu1 %v4626_v14  ;;  %4630 = vadd.xlane.f32.xlu0 %v4629_v9  ;;  %v4623_v17 = vsel %vm1194_vm2, %v12534_v16, 0.0 }
0x1e9c   :  { %4624 = vadd.xlane.f32.xlu0 %v4623_v17 }
0x1ea9   :  { %4712 = vrot.lane.b32.xlu1 %v14614_v27, %s13714_s30 }
0x1ead   :  { %4706 = vrot.lane.b32.xlu1 %v14597_v46, %s13714_s30 }
0x1eb2   :  { %4647 = vrot.lane.b32.xlu0 %v14603_v49, %s13683_s28 }
0x1eb6   :  { %4710 = vrot.lane.b32.xlu0 %v14599_v8, %s13714_s30 }
0x1eba   :  { %4708 = vrot.lane.b32.xlu0 %v14623_v3, %s13714_s30 }
0x1f1d   :  { %v4634_v33 = vpop.xlane.xlu1 %4633 }
0x1f21   :  { %v4628_v13 = vpop.xlane.xlu1 %4627  ;;  %v4631_v28 = vpop.xlane.xlu0 %4630 }
0x1f22   :  { %12535 = vrcp.f32 %v4631_v28 }
0x1f23   :  { %12537 = vrcp.f32 %v4628_v13 }
0x1f24   :  { %12539 = vrcp.f32 %v4634_v33 }
0x1f25   :  { %v4625_v27 = vpop.xlane.xlu0 %4624  ;;  %v4713_v46 = vpop.permute.xlu1 %4712 }
0x1f26   :  { %12541 = vrcp.f32 %v4625_v27  ;;  %v4724_v48 = vsel %vm1194_vm2, %v4713_v46, 0 }
0x1f29   :  { %v4648_v41 = vpop.permute.xlu0 %4647  ;;  %v4707_v47 = vpop.permute.xlu1 %4706 }
0x1f2a   :  { %11328 = vmatprep.subr.bf16.mxu1 %v4648_v41 }
0x1f2b   :  { %11329 = vmatpush3.bf16.msra.mxu1 %v4648_v41 }
0x1f2c   :  { %11330 = vmatprep.subr.bf16.mxu1 %v4646_v25 }
0x1f2d   :  { %v4711_v6 = vpop.permute.xlu0 %4710 }
0x1f2e   :  { %v4721_v50 = vsel %vm1194_vm2, %v4711_v6, 0 }
0x1f2f   :  { %11331 = vmatpush3.bf16.msra.mxu1 %v4646_v25  ;;  %v12536_v21 = vpop.eup %12535 }
0x1f30   :  { %11686 = vmatprep.subr.msk.bf16.mxu1 %vm1194_vm2, %v4713_v46  ;;  %v12538_v8 = vpop.eup %12537  ;;  %v4641_v43 = vmul.f32 %v12536_v21, %v12532_v58 }
0x1f31   :  { %v12540_v3 = vpop.eup %12539  ;;  %v4640_v29 = vmul.f32 %v12538_v8, %v12530_v2  ;;  %v4709_v52 = vpop.permute.xlu0 %4708 }
0x1f32   :  { %v4642_v30 = vmul.f32 %v12540_v3, %v12528_v51 }
0x1f33   :  { %v12542_v42 = vpop.eup %12541 }
0x1f34   :  { %v4639_v39 = vmul.f32 %v12542_v42, %v12534_v16  ;;  %v4644_v45 = vpack.c.bf16 %v4642_v30, %v4641_v43 }
0x1f36   :  { %v4643_v12 = vpack.c.bf16 %v4640_v29, %v4639_v39 }
0x1f38   :  { %11332 = vmatprep.mubr.msk.bf16.mxu1 %vm1194_vm2, %v4643_v12 }
0x1f39   :  { %11333 = vmatmul.mubr.msk.bf16.vlgmr.msra.gmra.mxu1 %vm1194_vm2, %v4644_v45 }
0x1f3a   :  { %11337 = vmatpush3.bf16.xpose.msra.mxu1 %v4724_v48  ;;  %11340 = vmatprep.mubr.msk.bf16.mxu1 %vm1194_vm2, %v4707_v47 }
0x1f3b   :  { %11687 = vmatprep.subr.msk.bf16.mxu1 %vm1194_vm2, %v4711_v6 }
0x1f42   :  { %11339 = vmatpush3.bf16.xpose.msra.mxu1 %v4721_v50 }
0x1f49   :  { %11341 = vmatmul.mubr.msk.bf16.vlgmr.msra.gmra.mxu1 %vm1194_vm2, %v4709_v52 }
0x1ff9   :  { %v11334_v54 = vpop.f32.mrf.mxu1 }
0x1ffb   :  { %v4691_v56 = vpop.f32.mrf.mxu1 }
0x1ffd   :  { %v11335_v63 = vpop.f32.mrf.mxu1 }
0x1ffe   :  { %v11858_v0 = vpack.i.bf16 %v11335_v63, %v11334_v54 }
0x1fff   :  { %v4694_v51 = vpop.f32.mrf.mxu1 }
0x2009   :  { %v11342_v31 = vpop.f32.mrf.mxu1 }
0x200a   :  { %v4777_v25 = vmul.f32 0.17677669, %v11342_v31 }
0x200b   :  { %v4760_v2 = vpop.f32.mrf.mxu1 }
0x200c   :  { %v4775_v58 = vmul.f32 0.17677669, %v4760_v2  ;;  %v4781_v41 = vadd.f32 %v4777_v25, %v14652_v36  ;;  %v11853_v2 = vpack.i.bf16 %v4694_v51, %v4691_v56  ;;  %v12175_v25 = vld [vmem:[#allocation30 + $0x38] sm:$0xff]  }
0x200d   :  { %v11343_v14 = vpop.f32.mrf.mxu1 }
0x200e   :  { %v4779_v9 = vadd.f32 %v4775_v58, %v14640_v5  ;;  %v4778_v16 = vmul.f32 0.17677669, %v11343_v14  ;;  %v4789_v5 = vsel %vm1194_vm2, %v4781_v41, -inf }
0x200f   :  { %v4763_v17 = vpop.f32.mrf.mxu1 }
0x2010   :  { %v4782_v33 = vadd.f32 %v4778_v16, %v14643_v22  ;;  %v4776_v13 = vmul.f32 0.17677669, %v4763_v17  ;;  %v4783_v28 = vsel %vm1194_vm2, %v4779_v9, -inf }
0x2011   :  { %4784 = vmax.xlane.f32.xlu1 %v4783_v28  ;;  %v12178_v28 = vld [vmem:[#allocation30 + $0x20] sm:$0xff]  }
0x2012   :  { %v4780_v27 = vadd.f32 %v4776_v13, %v14647_v26  ;;  %v4792_v46 = vsel %vm1194_vm2, %v4782_v33, -inf  ;;  %v12177_v13 = vld [vmem:[#allocation30 + $0x28] sm:$0xff]  }
0x2014   :  { %v4786_v21 = vsel %vm1194_vm2, %v4780_v27, -inf }
0x2015   :  { %4793 = vmax.xlane.f32.xlu1 %v4792_v46  ;;  %4787 = vmax.xlane.f32.xlu0 %v4786_v21  ;;  %v12181_v46 = vld [vmem:[#allocation30 + $0x8] sm:$0xff]   ;;  %v12182_v21 = vld [vmem:[#allocation30] sm:$0xff]  }
0x2019   :  { %4790 = vmax.xlane.f32.xlu0 %v4789_v5 }
0x209a   :  { %v4785_v8 = vpop.xlane.xlu1 %4784 }
0x209b   :  { %v4795_v39 = vsub.f32 %v4779_v9, %v4785_v8 }
0x209d   :  { %v4799_v12 = vmul.f32 1.442695, %v4795_v39  ;;  %v10319_v39 = vld [vmem:[#allocation18 + $0x1] ss:$0 sm:$0xff] }
0x209e   :  { %v4794_v3 = vpop.xlane.xlu1 %4793  ;;  %v4788_v22 = vpop.xlane.xlu0 %4787 }
0x209f   :  { %v4798_v42 = vsub.f32 %v4782_v33, %v4794_v3  ;;  %v4796_v43 = vsub.f32 %v4780_v27, %v4788_v22  ;;  %v12176_v33 = vld [vmem:[#allocation30 + $0x30] sm:$0xff]   ;;  %v12179_v27 = vld [vmem:[#allocation30 + $0x18] sm:$0xff]  }
0x20a1   :  { %v4805_v29 = vmul.f32 1.442695, %v4798_v42  ;;  %v4801_v30 = vmul.f32 1.442695, %v4796_v43 }
0x20a2   :  { %v4791_v26 = vpop.xlane.xlu0 %4790 }
0x20a3   :  { %12543 = vpow2.f32 %v4805_v29  ;;  %v4797_v36 = vsub.f32 %v4781_v41, %v4791_v26  ;;  %v12180_v41 = vld [vmem:[#allocation30 + $0x10] sm:$0xff]   ;;  %v3614_v29 = vadd.f32 %v14571_v55, %v10319_v39 }
0x20a4   :  { %12545 = vpow2.f32 %v4801_v30  ;;  %v10813_v30 = vadd.f32 %v14592_v53, %v14590_v20 }
0x20a5   :  { %v4803_v45 = vmul.f32 1.442695, %v4797_v36  ;;  %v3620_v36 = vadd.f32 %v3614_v29, %v14489_v37 }
0x20a6   :  { %v3617_v26 = vadd.f32 %v10813_v30, %v10319_v39 }
0x20a7   :  { %12547 = vpow2.f32 %v4803_v45 }
0x20a8   :  { %12549 = vpow2.f32 %v4799_v12  ;;  %v3621_v12 = vadd.f32 %v3617_v26, %v14493_v44 }
0x20aa   :  { %v3626_v45 = vsel %vm872_vm0, %v3621_v12, 0.0 }
0x20b0   :  { %v12544_v47 = vpop.eup %12543 }
0x20b1   :  { %v4816_v48 = vsel %vm1194_vm2, %v12544_v47, 0.0  ;;  %v12546_v6 = vpop.eup %12545 }
0x20b2   :  { %4817 = vadd.xlane.f32.xlu1 %v4816_v48  ;;  %v4810_v52 = vsel %vm1194_vm2, %v12546_v6, 0.0 }
0x20b4   :  { %v12548_v50 = vpop.eup %12547 }
0x20b5   :  { %v4813_v54 = vsel %vm1194_vm2, %v12548_v50, 0.0  ;;  %v12550_v63 = vpop.eup %12549 }
0x20b6   :  { %4811 = vadd.xlane.f32.xlu1 %v4810_v52  ;;  %4814 = vadd.xlane.f32.xlu0 %v4813_v54  ;;  %v4807_v31 = vsel %vm1194_vm2, %v12550_v63, 0.0 }
0x20ba   :  { %4808 = vadd.xlane.f32.xlu0 %v4807_v31 }
0x20c7   :  { %4829 = vrot.lane.b32.xlu1 %v14607_v57, %s13714_s30 }
0x20cb   :  { %11844 = vrot.lane.b32.xlu1 %v11843_v11, %s13714_s30 }
0x20cf   :  { %11854 = vrot.lane.b32.xlu1 %v11853_v2, %s13683_s28 }
0x20d0   :  { %4831 = vrot.lane.b32.xlu0 %v14603_v49, %s13714_s30 }
0x20d4   :  { %11849 = vrot.lane.b32.xlu0 %v11848_v7, %s13714_s30 }
0x20d8   :  { %11859 = vrot.lane.b32.xlu0 %v11858_v0, %s13683_s28 }
0x213b   :  { %v4818_v58 = vpop.xlane.xlu1 %4817 }
0x213f   :  { %v4812_v57 = vpop.xlane.xlu1 %4811  ;;  %v4815_v14 = vpop.xlane.xlu0 %4814 }
0x2140   :  { %12551 = vrcp.f32 %v4815_v14 }
0x2141   :  { %12553 = vrcp.f32 %v4812_v57 }
0x2142   :  { %12555 = vrcp.f32 %v4818_v58 }
0x2143   :  { %v4809_v4 = vpop.xlane.xlu0 %4808  ;;  %v4830_v11 = vpop.permute.xlu1 %4829 }
0x2144   :  { %12557 = vrcp.f32 %v4809_v4 }
0x2147   :  { %v4832_v10 = vpop.permute.xlu0 %4831  ;;  %v11845_v48 = vpop.permute.xlu1 %11844 }
0x2148   :  { %11344 = vmatprep.subr.bf16.mxu0 %v4832_v10  ;;  %v11847_v52 = vunpack.i.h.bf16 %v11845_v48  ;;  %v11846_v54 = vunpack.i.l.bf16 %v11845_v48  ;;  %v12192_v48 = vld [vmem:[#allocation37 + $0x40] ss:$8 sps:$4 sm:$0xff]  }
0x2149   :  { %11345 = vmatpush3.bf16.msra.mxu0 %v4832_v10 }
0x214a   :  { %11346 = vmatprep.subr.bf16.mxu0 %v4830_v11  ;;  %v4939_v44 = vsel %vm1194_vm2, %v14703_v61, %v11847_v52  ;;  %v4938_v14 = vsel %vm1194_vm2, %v14699_v60, %v11846_v54  ;;  %v12195_v52 = vld [vmem:[#allocation37 + $0x30] ss:$8 sps:$4 sm:$0xff]   ;;  %v12200_v54 = vld [vmem:[#allocation37 + $0x24] ss:$8 sps:$4 sm:$0xff]  }
0x214d   :  { %11347 = vmatpush3.bf16.msra.mxu0 %v4830_v11  ;;  %v12552_v49 = vpop.eup %12551 }
0x214e   :  { %v12554_v56 = vpop.eup %12553  ;;  %v4825_v7 = vmul.f32 %v12552_v49, %v12548_v50  ;;  %11352 = vmatprep.subr.bf16.mxu0 %v12175_v25  ;;  %v11855_v50 = vpop.permute.xlu1 %11854 }
0x214f   :  { %v12556_v62 = vpop.eup %12555  ;;  %v4824_v51 = vmul.f32 %v12554_v56, %v12546_v6  ;;  %v11857_v20 = vunpack.i.h.bf16 %v11855_v50  ;;  %v11856_v53 = vunpack.i.l.bf16 %v11855_v50  ;;  %v12197_v50 = vld [vmem:[#allocation37 + $0x34] ss:$8 sps:$4 sm:$0xff]  }
0x2150   :  { %v4826_v9 = vmul.f32 %v12556_v62, %v12544_v47  ;;  %v11850_v47 = vpop.permute.xlu0 %11849 }
0x2151   :  { %v12558_v32 = vpop.eup %12557  ;;  %v11851_v55 = vunpack.i.l.bf16 %v11850_v47  ;;  %v4943_v60 = vsel %vm1729_vm6, %v4939_v44, %v11857_v20  ;;  %v12204_v20 = vld [vmem:[#allocation37] ss:$8 sps:$4 sm:$0xff]  }
0x2152   :  { %v4823_v0 = vmul.f32 %v12558_v32, %v12550_v63  ;;  %v4828_v17 = vpack.c.bf16 %v4826_v9, %v4825_v7  ;;  %v11852_v63 = vunpack.i.h.bf16 %v11850_v47  ;;  %v12189_v47 = vld [vmem:[#allocation37 + $0x50] ss:$8 sps:$4 sm:$0xff]  }
0x2153   :  { %v4940_v10 = vsel %vm1194_vm2, %v14697_v40, %v11851_v55  ;;  %v12203_v55 = vld [vmem:[#allocation37 + $0x14] ss:$8 sps:$4 sm:$0xff]  }
0x2154   :  { %v4827_v16 = vpack.c.bf16 %v4824_v51, %v4823_v0  ;;  %v11860_v6 = vpop.permute.xlu0 %11859  ;;  %v4941_v4 = vsel %vm1194_vm2, %v14701_v1, %v11852_v63  ;;  %v4942_v0 = vsel %vm1729_vm6, %v4938_v14, %v11856_v53  ;;  %v12198_v63 = vld [vmem:[#allocation37 + $0x20] ss:$8 sps:$4 sm:$0xff]  }
0x2155   :  { %v11862_v31 = vunpack.i.h.bf16 %v11860_v6  ;;  %v11861_v2 = vunpack.i.l.bf16 %v11860_v6  ;;  %v12194_v6 = vld [vmem:[#allocation37 + $0x44] ss:$8 sps:$4 sm:$0xff]  }
0x2156   :  { %11348 = vmatprep.mubr.msk.bf16.mxu0 %vm1194_vm2, %v4827_v16 }
0x2157   :  { %11349 = vmatmul.mubr.msk.bf16.vlgmr.msra.gmra.mxu0 %vm1194_vm2, %v4828_v17  ;;  %v4944_v49 = vsel %vm1729_vm6, %v4940_v10, %v11861_v2  ;;  %v4945_v56 = vsel %vm1729_vm6, %v4941_v4, %v11862_v31  ;;  %v12201_v31 = vld [vmem:[#allocation37 + $0x10] ss:$8 sps:$4 sm:$0xff]   ;;  %v12206_v2 = vld [vmem:[#allocation37 + $0x4] ss:$8 sps:$4 sm:$0xff]  }
0x2158   :  { %11353 = vmatpush3.bf16.msra.mxu0 %v12175_v25  ;;  %v10386_v25 = vld [vmem:[#allocation31] ss:$0 sm:$0xff] }
0x2159   :  { %11354 = vmatprep.subr.bf16.mxu0 %v12176_v33 }
0x215c   :  { %11355 = vmatpush3.bf16.msra.mxu0 %v12176_v33 }
0x215d   :  { %11356 = vmatprep.subr.bf16.mxu0 %v12177_v13 }
0x2160   :  { %11357 = vmatpush3.bf16.msra.mxu0 %v12177_v13 }
0x2161   :  { %11358 = vmatprep.subr.bf16.mxu0 %v12178_v28 }
0x2164   :  { %11359 = vmatpush3.bf16.msra.mxu0 %v12178_v28 }
0x2165   :  { %11360 = vmatprep.subr.bf16.mxu0 %v12179_v27 }
0x2168   :  { %11361 = vmatpush3.bf16.msra.mxu0 %v12179_v27 }
0x2169   :  { %11362 = vmatprep.subr.bf16.mxu0 %v12180_v41 }
0x216c   :  { %11363 = vmatpush3.bf16.msra.mxu0 %v12180_v41 }
0x216d   :  { %11364 = vmatprep.subr.bf16.mxu0 %v12181_v46 }
0x2170   :  { %11365 = vmatpush3.bf16.msra.mxu0 %v12181_v46 }
0x2171   :  { %11366 = vmatprep.subr.bf16.mxu0 %v12182_v21 }
0x2174   :  { %11367 = vmatpush3.bf16.msra.mxu0 %v12182_v21 }
0x2217   :  { %v11350_v5 = vpop.f32.mrf.mxu0 }
0x2219   :  { %v4875_v8 = vpop.f32.mrf.mxu0 }
0x221b   :  { %v11351_v3 = vpop.f32.mrf.mxu0 }
0x221c   :  { %v11868_v22 = vpack.i.bf16 %v11351_v3, %v11350_v5 }
0x221d   :  { %v4878_v42 = vpop.f32.mrf.mxu0 }
0x221e   :  { %v11863_v43 = vpack.i.bf16 %v4878_v42, %v4875_v8  ;;  %11869 = vrot.lane.b32.xlu0 %v11868_v22, %s13725_s1 }
0x2220   :  { %11864 = vrot.lane.b32.xlu1 %v11863_v43, %s13725_s1 }
0x223d   :  { %3624 = vadd.xlane.f32.xlu0 %v3620_v36 }
0x2244   :  { %3627 = vadd.xlane.f32.xlu1 %v3626_v45  ;;  %v12183_v45 = vld [vmem:[#allocation37 + $0x70] ss:$8 sps:$4 sm:$0xff]  }
0x2290   :  { %v11870_v58 = vpop.permute.xlu0 %11869 }
0x2291   :  { %v11872_v37 = vunpack.i.h.bf16 %v11870_v58  ;;  %v11871_v57 = vunpack.i.l.bf16 %v11870_v58 }
0x2292   :  { %v11865_v11 = vpop.permute.xlu1 %11864 }
0x2293   :  { %v11867_v62 = vunpack.i.h.bf16 %v11865_v11  ;;  %v11866_v32 = vunpack.i.l.bf16 %v11865_v11  ;;  %v4948_v7 = vsel %vm1732_vm7, %v4944_v49, %v11871_v57  ;;  %v4949_v61 = vsel %vm1732_vm7, %v4945_v56, %v11872_v37 }
0x2294   :  { %v4951_v9 = vpack.c.bf16 %v4949_v61, %v4948_v7 }
0x2295   :  { %v4946_v1 = vsel %vm1732_vm7, %v4942_v0, %v11866_v32  ;;  %v4947_v51 = vsel %vm1732_vm7, %v4943_v60, %v11867_v62 }
0x2296   :  { %v4950_v40 = vpack.c.bf16 %v4947_v51, %v4946_v1 }
0x2298   :  { %11368 = vmatprep.mubr.bf16.mxu0 %v4950_v40 }
0x2299   :  { %11369 = vmatmul.mubr.bf16.vlgmr.msra.gmra.mxu0 %v4951_v9 }
0x229a   :  { %5387 = vmatprep.mubr.bf16.mxu0 %v13723_v59 }
0x22c6   :  { %v3625_v17 = vpop.xlane.xlu0 %3624 }
0x22c7   :  { %v3629_v41 = vmul.f32 0.0078125, %v3625_v17  ;;  %v12207_v17 = vld [vmem:[%s15810_s26 + $0x38] sm:$0xff]  }
0x22c8   :  { %11372 = vmatprep.subr.bf16.mxu1 %v12207_v17 }
0x22c9   :  { %v14803_v22 = vsub.f32 %v3620_v36, %v3629_v41  ;;  %11373 = vmatpush3.bf16.msra.mxu1 %v12207_v17  ;;  %v12210_v41 = vld [vmem:[%s15810_s26 + $0x20] sm:$0xff]  }
0x22cd   :  { %v3628_v13 = vpop.xlane.xlu1 %3627 }
0x22ce   :  { %v3630_v5 = vmul.f32 0.0078125, %v3628_v13  ;;  %v12209_v13 = vld [vmem:[%s15810_s26 + $0x28] sm:$0xff]  }
0x22d0   :  { %v14807_v29 = vsub.f32 %v3621_v12, %v3630_v5  ;;  %v12186_v12 = vld [vmem:[#allocation37 + $0x60] ss:$8 sps:$4 sm:$0xff]  }
0x22d2   :  { %v3634_v26 = vmul.f32 %v14807_v29, %v14807_v29 }
0x22d4   :  { %v3637_v36 = vsel %vm872_vm0, %v3634_v26, 0.0 }
0x2359   :  { %v11370_v16 = vpop.f32.mrf.mxu0 }
0x235a   :  { %v5049_v46 = vadd.f32 %v11370_v16, %v10386_v25 }
0x235b   :  { %v5040_v33 = vpop.f32.mrf.mxu0 }
0x235c   :  { %v5041_v28 = vadd.f32 %v10386_v25, %v5040_v33  ;;  %v5057_v42 = vadd.f32 %v5049_v46, %v14583_v24  ;;  %v12185_v24 = vld [vmem:[#allocation37 + $0x74] ss:$8 sps:$4 sm:$0xff]  }
0x235d   :  { %v11371_v27 = vpop.f32.mrf.mxu0  ;;  %5355 = vmatprep.subr.bf16.mxu0 %v12185_v24 }
0x235e   :  { %v5055_v21 = vadd.f32 %v5041_v28, %v14577_v18  ;;  %v5052_v43 = vadd.f32 %v11371_v27, %v10386_v25  ;;  %v3633_v18 = vmul.f32 %v14803_v22, %v14803_v22  ;;  %5356 = vmatpush1.bf16.msra.mxu0 %v12183_v45  ;;  %v10336_v27 = vld [vmem:[#allocation19] ss:$0 sm:$0xff] }
0x235f   :  { %v5043_v8 = vpop.f32.mrf.mxu0 }
0x2360   :  { %v5044_v3 = vadd.f32 %v10386_v25, %v5043_v8  ;;  %5061 = vadd.xlane.f32.xlu0 %v5055_v21  ;;  %v5058_v30 = vadd.f32 %v5052_v43, %v14585_v15  ;;  %v12191_v15 = vld [vmem:[#allocation37 + $0x54] ss:$8 sps:$4 sm:$0xff]  }
0x2361   :  { %v12208_v25 = vld [vmem:[%s15810_s26 + $0x30] sm:$0xff]  }
0x2362   :  { %v5056_v39 = vadd.f32 %v5044_v3, %v14579_v19  ;;  %v12188_v19 = vld [vmem:[#allocation37 + $0x64] ss:$8 sps:$4 sm:$0xff]   ;;  %11374 = vmatprep.subr.bf16.mxu1 %v12208_v25 }
0x2363   :  { %5357 = vmatprep.subr.bf16.mxu0 %v12188_v19  ;;  %11375 = vmatpush3.bf16.msra.mxu1 %v12208_v25  ;;  %v10337_v3 = vld [vmem:[#allocation21] ss:$0 sm:$0xff]  ;;  %v12212_v43 = vld [vmem:[%s15810_s26 + $0x10] sm:$0xff]  }
0x2364   :  { %5063 = vadd.xlane.f32.xlu1 %v5056_v39  ;;  %5065 = vadd.xlane.f32.xlu0 %v5057_v42 }
0x2365   :  { %5358 = vmatpush1.bf16.msra.mxu0 %v12186_v12  ;;  %11376 = vmatprep.subr.bf16.mxu1 %v12209_v13 }
0x2366   :  { %5359 = vmatprep.subr.bf16.mxu0 %v12191_v15 }
0x2367   :  { %11377 = vmatpush3.bf16.msra.mxu1 %v12209_v13 }
0x2368   :  { %5067 = vadd.xlane.f32.xlu1 %v5058_v30  ;;  %3635 = vadd.xlane.f32.xlu0 %v3633_v18  ;;  %v12213_v18 = vld [vmem:[%s15810_s26 + $0x8] sm:$0xff]  }
0x2369   :  { %5360 = vmatpush1.bf16.msra.mxu0 %v12189_v47  ;;  %11378 = vmatprep.subr.bf16.mxu1 %v12210_v41 }
0x236a   :  { %5361 = vmatprep.subr.bf16.mxu0 %v12194_v6 }
0x236b   :  { %11379 = vmatpush3.bf16.msra.mxu1 %v12210_v41 }
0x236c   :  { %3638 = vadd.xlane.f32.xlu1 %v3637_v36 }
0x236d   :  { %5362 = vmatpush1.bf16.msra.mxu0 %v12192_v48 }
0x236e   :  { %5363 = vmatprep.subr.bf16.mxu0 %v12197_v50 }
0x2371   :  { %5364 = vmatpush1.bf16.msra.mxu0 %v12195_v52 }
0x2372   :  { %5365 = vmatprep.subr.bf16.mxu0 %v12200_v54 }
0x2375   :  { %5366 = vmatpush1.bf16.msra.mxu0 %v12198_v63 }
0x2376   :  { %5367 = vmatprep.subr.bf16.mxu0 %v12203_v55  ;;  %v10395_v55 = vld [vmem:[#allocation33] ss:$0 sm:$0xff] }
0x2379   :  { %5368 = vmatpush1.bf16.msra.mxu0 %v12201_v31 }
0x237a   :  { %5369 = vmatprep.subr.bf16.mxu0 %v12206_v2 }
0x237d   :  { %5370 = vmatpush1.bf16.msra.mxu0 %v12204_v20 }
0x23e9   :  { %v5062_v53 = vpop.xlane.xlu0 %5061 }
0x23ea   :  { %v5069_v58 = vmul.f32 0.0078125, %v5062_v53 }
0x23ec   :  { %v14815_v37 = vsub.f32 %v5055_v21, %v5069_v58  ;;  %v12211_v21 = vld [vmem:[%s15810_s26 + $0x18] sm:$0xff]  }
0x23ed   :  { %v5064_v57 = vpop.xlane.xlu1 %5063  ;;  %v5066_v44 = vpop.xlane.xlu0 %5065  ;;  %11380 = vmatprep.subr.bf16.mxu1 %v12211_v21  ;;  %v10396_v58 = vld [vmem:[#allocation34] ss:$0 sm:$0xff] }
0x23ee   :  { %v5070_v14 = vmul.f32 0.0078125, %v5064_v57  ;;  %v5071_v4 = vmul.f32 0.0078125, %v5066_v44  ;;  %v5077_v10 = vmul.f32 %v14815_v37, %v14815_v37  ;;  %11381 = vmatpush3.bf16.msra.mxu1 %v12211_v21 }
0x23ef   :  { %11382 = vmatprep.subr.bf16.mxu1 %v12212_v43 }
0x23f0   :  { %v14819_v11 = vsub.f32 %v5056_v39, %v5070_v14  ;;  %v14821_v49 = vsub.f32 %v5057_v42, %v5071_v4  ;;  %5081 = vadd.xlane.f32.xlu0 %v5077_v10 }
0x23f1   :  { %v5068_v56 = vpop.xlane.xlu1 %5067  ;;  %v3636_v62 = vpop.xlane.xlu0 %3635 }
0x23f2   :  { %v5072_v32 = vmul.f32 0.0078125, %v5068_v56  ;;  %v3640_v7 = vmul.f32 0.0078125, %v3636_v62  ;;  %v5078_v61 = vmul.f32 %v14819_v11, %v14819_v11  ;;  %v5079_v0 = vmul.f32 %v14821_v49, %v14821_v49  ;;  %11383 = vmatpush3.bf16.msra.mxu1 %v12212_v43 }
0x23f3   :  { %11384 = vmatprep.subr.bf16.mxu1 %v12213_v18 }
0x23f4   :  { %v14827_v60 = vsub.f32 %v5058_v30, %v5072_v32  ;;  %v3642_v1 = vadd.f32 1e-06, %v3640_v7  ;;  %5083 = vadd.xlane.f32.xlu1 %v5078_v61  ;;  %5085 = vadd.xlane.f32.xlu0 %v5079_v0  ;;  %v5263_v61 = vld [vmem:[#allocation39] sm:$0x3] }
0x23f5   :  { %v3639_v51 = vpop.xlane.xlu1 %3638 }
0x23f6   :  { %12559 = vrsqrt.f32 %v3642_v1  ;;  %v3641_v40 = vmul.f32 0.0078125, %v3639_v51  ;;  %v5080_v9 = vmul.f32 %v14827_v60, %v14827_v60  ;;  %11385 = vmatpush3.bf16.msra.mxu1 %v12213_v18  ;;  %v5268_v1 = vrot.slane %v5263_v61, %v14180_v38 }
0x23f8   :  { %v3643_v16 = vadd.f32 1e-06, %v3641_v40  ;;  %5087 = vadd.xlane.f32.xlu1 %v5080_v9 }
0x23fa   :  { %12561 = vrsqrt.f32 %v3643_v16 }
0x2403   :  { %v12560_v33 = vpop.eup %12559 }
0x2404   :  { %v3646_v28 = vmul.f32 %v12560_v33, %v14803_v22 }
0x2406   :  { %v3654_v8 = vmul.f32 %v10336_v27, %v3646_v28 }
0x2407   :  { %v12562_v46 = vpop.eup %12561 }
0x2408   :  { %v3647_v5 = vmul.f32 %v12562_v46, %v14807_v29  ;;  %v3662_v39 = vadd.f32 %v10337_v3, %v3654_v8  ;;  %v12214_v29 = vld [vmem:[%s15810_s26] sm:$0xff]  }
0x2409   :  { %11386 = vmatprep.subr.bf16.mxu1 %v12214_v29 }
0x240a   :  { %v3655_v42 = vmul.f32 %v10336_v27, %v3647_v5  ;;  %11387 = vmatpush3.bf16.msra.mxu1 %v12214_v29  ;;  %v10397_v5 = vld [vmem:[#allocation36] ss:$0 sm:$0xff] }
0x240c   :  { %v3663_v30 = vadd.f32 %v10337_v3, %v3655_v42 }
0x240e   :  { %v14839_v22 = vpack.c.bf16 %v3663_v30, %v3662_v39 }
0x2410   :  { %5388 = vmatmul.mubr.bf16.vlgmr.msra.gmra.mxu0 %v14839_v22 }
0x2479   :  { %v5082_v26 = vpop.xlane.xlu0 %5081 }
0x247a   :  { %v5089_v36 = vmul.f32 0.0078125, %v5082_v26 }
0x247c   :  { %v5093_v24 = vadd.f32 1e-12, %v5089_v36  ;;  %v14883_v36 = vld [vmem:[%s15811_s25] sm:$0xff] }
0x247d   :  { %v5084_v45 = vpop.xlane.xlu1 %5083  ;;  %v5086_v19 = vpop.xlane.xlu0 %5085 }
0x247e   :  { %12563 = vrsqrt.f32 %v5093_v24  ;;  %v5090_v12 = vmul.f32 0.0078125, %v5084_v45  ;;  %v5091_v15 = vmul.f32 0.0078125, %v5086_v19 }
0x2480   :  { %v5094_v47 = vadd.f32 1e-12, %v5090_v12  ;;  %v5095_v48 = vadd.f32 1e-12, %v5091_v15  ;;  %v14886_v12 = vld [vmem:[%s15811_s25 + $0x10] sm:$0xff] }
0x2481   :  { %v5088_v6 = vpop.xlane.xlu1 %5087 }
0x2482   :  { %12565 = vrsqrt.f32 %v5094_v47  ;;  %v5092_v50 = vmul.f32 0.0078125, %v5088_v6 }
0x2483   :  { %12567 = vrsqrt.f32 %v5095_v48  ;;  %v14890_v48 = vld [vmem:[%s15811_s25 + $0x8] sm:$0xff] }
0x2484   :  { %v5096_v52 = vadd.f32 1e-12, %v5092_v50 }
0x2486   :  { %12569 = vrsqrt.f32 %v5096_v52 }
0x248b   :  { %v12564_v54 = vpop.eup %12563 }
0x248c   :  { %v5101_v63 = vmul.f32 %v12564_v54, %v14815_v37 }
0x248e   :  { %v5111_v53 = vmul.f32 %v10395_v55, %v5101_v63 }
0x248f   :  { %v12566_v31 = vpop.eup %12565 }
0x2490   :  { %v12568_v2 = vpop.eup %12567  ;;  %v5102_v20 = vmul.f32 %v12566_v31, %v14819_v11  ;;  %v14847_v4 = vadd.f32 %v10396_v58, %v5111_v53 }
0x2491   :  { %v5103_v57 = vmul.f32 %v12568_v2, %v14821_v49 }
0x2492   :  { %v5112_v44 = vmul.f32 %v10395_v55, %v5102_v20 }
0x2493   :  { %v12570_v14 = vpop.eup %12569  ;;  %v5113_v62 = vmul.f32 %v10395_v55, %v5103_v57 }
0x2494   :  { %v14849_v10 = vadd.f32 %v10396_v58, %v5112_v44  ;;  %v5104_v56 = vmul.f32 %v12570_v14, %v14827_v60  ;;  %v5272_v60 = vrot.slane %v5263_v61, %v14174_v23 }
0x2495   :  { %v14854_v7 = vadd.f32 %v10396_v58, %v5113_v62 }
0x2496   :  { %v5125_v37 = vpack.c.bf16 %v14849_v10, %v14847_v4  ;;  %v5114_v32 = vmul.f32 %v10395_v55, %v5104_v56  ;;  %v14895_v55 = vld [vmem:[%s15811_s25 + $0x18] sm:$0xff] }
0x2498   :  { %11388 = vmatprep.mubr.bf16.mxu1 %v5125_v37  ;;  %v14856_v11 = vadd.f32 %v10396_v58, %v5114_v32 }
0x249a   :  { %v5126_v49 = vpack.c.bf16 %v14856_v11, %v14854_v7 }
0x249c   :  { %11389 = vmatmul.mubr.bf16.vlgmr.msra.gmra.mxu1 %v5126_v49 }
0x24d0   :  { %v5389_v0 = vpop.f32.mrf.mxu0 }
0x24d1   :  { %v5390_v9 = vadd.f32 %v5389_v0, %v5268_v1 }
0x24d2   :  { %v5391_v51 = vpop.f32.mrf.mxu0 }
0x24d3   :  { %v5392_v25 = vadd.f32 %v5391_v51, %v5272_v60 }
0x24d4   :  { %v5393_v40 = vpop.f32.mrf.mxu0 }
0x24d5   :  { %v5394_v16 = vadd.f32 %v5393_v40, %v5268_v1 }
0x24d6   :  { %v5395_v17 = vpop.f32.mrf.mxu0 }
0x24d7   :  { %v14862_v33 = vpack.c.bf16 %v5394_v16, %v5390_v9  ;;  %v5396_v13 = vadd.f32 %v5395_v17, %v5272_v60 }
0x24d9   :  { %v14864_v28 = vpack.c.bf16 %v5396_v13, %v5392_v25  ;;  %11688 = vmatprep.subr.msk.bf16.mxu1 %vm1194_vm2, %v14862_v33  ;;  %v5426_v27 = vsel %vm1194_vm2, %v14862_v33, 0 }
0x24da   :  { %11393 = vmatpush3.bf16.xpose.msra.mxu1 %v5426_v27 }
0x24db   :  { %11689 = vmatprep.subr.msk.bf16.mxu1 %vm1274_vm3, %v14864_v28  ;;  %v5538_v29 = vsel %vm1274_vm3, %v14864_v28, 0 }
0x255c   :  { %v11390_v41 = vpop.f32.mrf.mxu1 }
0x255d   :  { %v5241_v39 = vadd.f32 %v11390_v41, %v10397_v5 }
0x255e   :  { %v5232_v46 = vpop.f32.mrf.mxu1 }
0x255f   :  { %v5233_v42 = vadd.f32 %v10397_v5, %v5232_v46 }
0x2560   :  { %v11391_v21 = vpop.f32.mrf.mxu1 }
0x2561   :  { %v5244_v8 = vadd.f32 %v11391_v21, %v10397_v5 }
0x2562   :  { %v5235_v3 = vpop.f32.mrf.mxu1 }
0x2563   :  { %v5236_v43 = vadd.f32 %v10397_v5, %v5235_v3  ;;  %v14874_v18 = vpack.c.bf16 %v5244_v8, %v5241_v39 }
0x2565   :  { %v14872_v30 = vpack.c.bf16 %v5236_v43, %v5233_v42 }
0x2567   :  { %11394 = vmatprep.mubr.msk.bf16.mxu1 %vm1194_vm2, %v14872_v30 }
0x2568   :  { %11395 = vmatmul.mubr.msk.bf16.vlgmr.msra.gmra.mxu1 %vm1194_vm2, %v14874_v18 }
0x2569   :  { %11399 = vmatpush3.bf16.msra.mxu1 %v5538_v29 }
0x2628   :  { %v11396_v26 = vpop.f32.mrf.mxu1 }
0x2629   :  { %v5479_v45 = vmul.f32 0.17677669, %v11396_v26 }
0x262a   :  { %v5462_v24 = vpop.f32.mrf.mxu1 }
0x262b   :  { %v5477_v19 = vmul.f32 0.17677669, %v5462_v24  ;;  %v5483_v50 = vadd.f32 %v5479_v45, %v14886_v12 }
0x262c   :  { %v11397_v15 = vpop.f32.mrf.mxu1 }
0x262d   :  { %v5481_v47 = vadd.f32 %v5477_v19, %v14883_v36  ;;  %v5480_v52 = vmul.f32 0.17677669, %v11397_v15  ;;  %v5491_v20 = vsel %vm1246_vm4, %v5483_v50, -inf }
0x262e   :  { %v5465_v6 = vpop.f32.mrf.mxu1 }
0x262f   :  { %v5478_v54 = vmul.f32 0.17677669, %v5465_v6  ;;  %v5485_v63 = vsel %vm1246_vm4, %v5481_v47, -inf  ;;  %v5484_v2 = vadd.f32 %v5480_v52, %v14895_v55 }
0x2630   :  { %5486 = vmax.xlane.f32.xlu0 %v5485_v63 }
0x2631   :  { %v5482_v31 = vadd.f32 %v5478_v54, %v14890_v48  ;;  %v5494_v58 = vsel %vm1246_vm4, %v5484_v2, -inf }
0x2633   :  { %v5488_v53 = vsel %vm1246_vm4, %v5482_v31, -inf }
0x2634   :  { %5492 = vmax.xlane.f32.xlu0 %v5491_v20  ;;  %5489 = vmax.xlane.f32.xlu1 %v5488_v53 }
0x2638   :  { %5495 = vmax.xlane.f32.xlu1 %v5494_v58 }
0x26b9   :  { %v5487_v57 = vpop.xlane.xlu0 %5486 }
0x26ba   :  { %v5497_v44 = vsub.f32 %v5481_v47, %v5487_v57 }
0x26bc   :  { %v5501_v37 = vmul.f32 1.442695, %v5497_v44 }
0x26bd   :  { %v5493_v14 = vpop.xlane.xlu0 %5492  ;;  %v5490_v56 = vpop.xlane.xlu1 %5489 }
0x26be   :  { %v5499_v62 = vsub.f32 %v5483_v50, %v5493_v14  ;;  %v5498_v49 = vsub.f32 %v5482_v31, %v5490_v56 }
0x26c0   :  { %v5505_v32 = vmul.f32 1.442695, %v5499_v62  ;;  %v5503_v1 = vmul.f32 1.442695, %v5498_v49 }
0x26c1   :  { %v5496_v61 = vpop.xlane.xlu1 %5495 }
0x26c2   :  { %12571 = vpow2.f32 %v5505_v32  ;;  %v5500_v0 = vsub.f32 %v5484_v2, %v5496_v61 }
0x26c3   :  { %12573 = vpow2.f32 %v5501_v37 }
0x26c4   :  { %v5507_v51 = vmul.f32 1.442695, %v5500_v0 }
0x26c6   :  { %12575 = vpow2.f32 %v5507_v51 }
0x26c7   :  { %12577 = vpow2.f32 %v5503_v1 }
0x26cf   :  { %v12572_v60 = vpop.eup %12571 }
0x26d0   :  { %v5515_v40 = vsel %vm1246_vm4, %v12572_v60, 0.0  ;;  %v12574_v9 = vpop.eup %12573 }
0x26d1   :  { %5516 = vadd.xlane.f32.xlu0 %v5515_v40  ;;  %v5509_v17 = vsel %vm1246_vm4, %v12574_v9, 0.0 }
0x26d3   :  { %v12576_v16 = vpop.eup %12575 }
0x26d4   :  { %v5518_v25 = vsel %vm1246_vm4, %v12576_v16, 0.0  ;;  %v12578_v13 = vpop.eup %12577 }
0x26d5   :  { %5510 = vadd.xlane.f32.xlu0 %v5509_v17  ;;  %5519 = vadd.xlane.f32.xlu1 %v5518_v25  ;;  %v5512_v27 = vsel %vm1246_vm4, %v12578_v13, 0.0 }
0x26d9   :  { %5513 = vadd.xlane.f32.xlu1 %v5512_v27 }
0x26ea   :  { %5591 = vrot.lane.b32.xlu1 %v14872_v30, %s13725_s1 }
0x26eb   :  { %5596 = vrot.lane.b32.xlu0 %v14862_v33, %s13725_s1 }
0x26ee   :  { %5593 = vrot.lane.b32.xlu1 %v14874_v18, %s13725_s1 }
0x26ef   :  { %5775 = vrot.lane.b32.xlu0 %v14862_v33, %s13683_s28 }
0x26f2   :  { %5771 = vrot.lane.b32.xlu1 %v14872_v30, %s13683_s28 }
0x26f3   :  { %5773 = vrot.lane.b32.xlu0 %v14874_v18, %s13683_s28 }
0x26f6   :  { %5953 = vrot.lane.b32.xlu1 %v14862_v33, %s13714_s30 }
0x26f7   :  { %5949 = vrot.lane.b32.xlu0 %v14872_v30, %s13714_s30 }
0x26fa   :  { %5951 = vrot.lane.b32.xlu1 %v14874_v18, %s13714_s30 }
0x275a   :  { %v5517_v41 = vpop.xlane.xlu0 %5516 }
0x275e   :  { %v5511_v46 = vpop.xlane.xlu0 %5510  ;;  %v5520_v21 = vpop.xlane.xlu1 %5519 }
0x275f   :  { %12579 = vrcp.f32 %v5520_v21 }
0x2760   :  { %12581 = vrcp.f32 %v5511_v46 }
0x2761   :  { %12583 = vrcp.f32 %v5517_v41 }
0x2762   :  { %v5597_v5 = vpop.permute.xlu0 %5596  ;;  %v5514_v8 = vpop.xlane.xlu1 %5513 }
0x2763   :  { %12585 = vrcp.f32 %v5514_v8  ;;  %11690 = vmatprep.subr.msk.bf16.mxu1 %vm1194_vm2, %v5597_v5  ;;  %v5605_v31 = vsel %vm1194_vm2, %v5597_v5, 0 }
0x2766   :  { %v5776_v3 = vpop.permute.xlu0 %5775  ;;  %v5592_v42 = vpop.permute.xlu1 %5591 }
0x2767   :  { %11692 = vmatprep.subr.msk.bf16.mxu0 %vm1194_vm2, %v5776_v3  ;;  %v5784_v33 = vsel %vm1194_vm2, %v5776_v3, 0 }
0x2768   :  { %11417 = vmatpush3.bf16.xpose.msra.mxu0 %v5784_v33 }
0x276a   :  { %v5774_v43 = vpop.permute.xlu0 %5773  ;;  %v5594_v39 = vpop.permute.xlu1 %5593 }
0x276c   :  { %v12580_v30 = vpop.eup %12579 }
0x276d   :  { %v12582_v18 = vpop.eup %12581  ;;  %v5528_v19 = vmul.f32 %v12580_v30, %v12576_v16 }
0x276e   :  { %v5772_v29 = vpop.permute.xlu1 %5771  ;;  %v12584_v26 = vpop.eup %12583  ;;  %v5525_v15 = vmul.f32 %v12582_v18, %v12574_v9 }
0x276f   :  { %11418 = vmatprep.mubr.msk.bf16.mxu0 %vm1194_vm2, %v5772_v29  ;;  %v5950_v45 = vpop.permute.xlu0 %5949  ;;  %v5527_v50 = vmul.f32 %v12584_v26, %v12572_v60 }
0x2770   :  { %v12586_v24 = vpop.eup %12585  ;;  %11419 = vmatmul.mubr.msk.bf16.vlgmr.msra.gmra.mxu0 %vm1194_vm2, %v5774_v43 }
0x2771   :  { %11430 = vmatprep.mubr.msk.bf16.mxu0 %vm1194_vm2, %v5950_v45  ;;  %v5526_v47 = vmul.f32 %v12586_v24, %v12578_v13  ;;  %v5530_v63 = vpack.c.bf16 %v5528_v19, %v5527_v50 }
0x2772   :  { %v5954_v6 = vpop.permute.xlu1 %5953 }
0x2773   :  { %11694 = vmatprep.subr.msk.bf16.mxu0 %vm1194_vm2, %v5954_v6  ;;  %v5962_v52 = vsel %vm1194_vm2, %v5954_v6, 0  ;;  %v5529_v54 = vpack.c.bf16 %v5526_v47, %v5525_v15 }
0x2774   :  { %11429 = vmatpush3.bf16.xpose.msra.mxu0 %v5962_v52 }
0x2775   :  { %11400 = vmatprep.mubr.msk.bf16.mxu1 %vm1246_vm4, %v5529_v54 }
0x2776   :  { %11401 = vmatmul.mubr.msk.bf16.vlgmr.msra.gmra.mxu1 %vm1246_vm4, %v5530_v63  ;;  %v5952_v2 = vpop.permute.xlu1 %5951 }
0x2777   :  { %11405 = vmatpush3.bf16.xpose.msra.mxu1 %v5605_v31  ;;  %11406 = vmatprep.mubr.msk.bf16.mxu1 %vm1194_vm2, %v5592_v42 }
0x277b   :  { %11431 = vmatmul.mubr.msk.bf16.vlgmr.msra.gmra.mxu0 %vm1194_vm2, %v5952_v2 }
0x277e   :  { %11407 = vmatmul.mubr.msk.bf16.vlgmr.msra.gmra.mxu1 %vm1194_vm2, %v5594_v39 }
0x2830   :  { %v11420_v20 = vpop.f32.mrf.mxu0 }
0x2831   :  { %v5837_v41 = vmul.f32 0.17677669, %v11420_v20 }
0x2832   :  { %v5820_v58 = vpop.f32.mrf.mxu0 }
0x2833   :  { %v5835_v60 = vmul.f32 0.17677669, %v5820_v58  ;;  %v5841_v33 = vadd.f32 %v5837_v41, %v14886_v12 }
0x2834   :  { %v11421_v14 = vpop.f32.mrf.mxu0 }
0x2835   :  { %v5839_v46 = vadd.f32 %v5835_v60, %v14883_v36  ;;  %v5838_v43 = vmul.f32 0.17677669, %v11421_v14  ;;  %v5849_v45 = vsel %vm1246_vm4, %v5841_v33, -inf }
0x2836   :  { %v14938_v53 = vpop.f32.mrf.mxu1  ;;  %v5823_v37 = vpop.f32.mrf.mxu0 }
0x2837   :  { %v5836_v21 = vmul.f32 0.17677669, %v5823_v37  ;;  %v5843_v29 = vsel %vm1246_vm4, %v5839_v46, -inf  ;;  %v5842_v24 = vadd.f32 %v5838_v43, %v14895_v55 }
0x2838   :  { %v14940_v57 = vpop.f32.mrf.mxu1 }
0x2839   :  { %v5840_v39 = vadd.f32 %v5836_v21, %v14890_v48  ;;  %v5852_v50 = vsel %vm1246_vm4, %v5842_v24, -inf }
0x283a   :  { %v14942_v44 = vpop.f32.mrf.mxu1 }
0x283b   :  { %v11432_v0 = vpop.f32.mrf.mxu0  ;;  %v5846_v6 = vsel %vm1246_vm4, %v5840_v39, -inf }
0x283c   :  { %v14944_v56 = vpop.f32.mrf.mxu1  ;;  %v6015_v19 = vmul.f32 0.17677669, %v11432_v0 }
0x283d   :  { %v5998_v13 = vpop.f32.mrf.mxu0 }
0x283e   :  { %v11408_v62 = vpop.f32.mrf.mxu1  ;;  %v6013_v30 = vmul.f32 0.17677669, %v5998_v13  ;;  %v6019_v52 = vadd.f32 %v6015_v19, %v14886_v12 }
0x283f   :  { %v5658_v49 = vmul.f32 0.17677669, %v11408_v62  ;;  %v11433_v42 = vpop.f32.mrf.mxu0 }
0x2840   :  { %v5641_v32 = vpop.f32.mrf.mxu1  ;;  %v6017_v15 = vadd.f32 %v6013_v30, %v14883_v36  ;;  %v6016_v54 = vmul.f32 0.17677669, %v11433_v42 }
0x2841   :  { %v5656_v61 = vmul.f32 0.17677669, %v5641_v32  ;;  %v14950_v9 = vadd.f32 %v5658_v49, %v14886_v12  ;;  %v6001_v26 = vpop.f32.mrf.mxu0 }
0x2842   :  { %v11409_v1 = vpop.f32.mrf.mxu1  ;;  %v6014_v47 = vmul.f32 0.17677669, %v6001_v26  ;;  %v6021_v31 = vsel %vm1246_vm4, %v6017_v15, -inf  ;;  %v6020_v2 = vadd.f32 %v6016_v54, %v14895_v55 }
0x2843   :  { %v14947_v51 = vadd.f32 %v5656_v61, %v14883_v36  ;;  %v5659_v16 = vmul.f32 0.17677669, %v11409_v1  ;;  %v5670_v8 = vsel %vm1246_vm4, %v14950_v9, -inf  ;;  %v6027_v36 = vsel %vm1246_vm4, %v6019_v52, -inf }
0x2844   :  { %v5644_v40 = vpop.f32.mrf.mxu1  ;;  %v6018_v63 = vadd.f32 %v6014_v47, %v14890_v48  ;;  %v6030_v58 = vsel %vm1246_vm4, %v6020_v2, -inf }
0x2845   :  { %v5657_v17 = vmul.f32 0.17677669, %v5644_v40  ;;  %v5664_v25 = vsel %vm1246_vm4, %v14947_v51, -inf  ;;  %v14959_v5 = vadd.f32 %v5659_v16, %v14895_v55 }
0x2846   :  { %5665 = vmax.xlane.f32.xlu0 %v5664_v25  ;;  %v6024_v20 = vsel %vm1246_vm4, %v6018_v63, -inf }
0x2847   :  { %v14955_v27 = vadd.f32 %v5657_v17, %v14890_v48  ;;  %v5673_v18 = vsel %vm1246_vm4, %v14959_v5, -inf }
0x2849   :  { %v5667_v3 = vsel %vm1246_vm4, %v14955_v27, -inf }
0x284a   :  { %5671 = vmax.xlane.f32.xlu0 %v5670_v8  ;;  %5668 = vmax.xlane.f32.xlu1 %v5667_v3 }
0x284e   :  { %5674 = vmax.xlane.f32.xlu0 %v5673_v18  ;;  %5844 = vmax.xlane.f32.xlu1 %v5843_v29 }
0x2852   :  { %5850 = vmax.xlane.f32.xlu1 %v5849_v45  ;;  %5847 = vmax.xlane.f32.xlu0 %v5846_v6 }
0x2856   :  { %5853 = vmax.xlane.f32.xlu0 %v5852_v50  ;;  %6022 = vmax.xlane.f32.xlu1 %v6021_v31 }
0x285a   :  { %6028 = vmax.xlane.f32.xlu1 %v6027_v36  ;;  %6025 = vmax.xlane.f32.xlu0 %v6024_v20 }
0x285e   :  { %6031 = vmax.xlane.f32.xlu0 %v6030_v58 }
0x28cf   :  { %v5666_v14 = vpop.xlane.xlu0 %5665 }
0x28d0   :  { %v5676_v26 = vsub.f32 %v14947_v51, %v5666_v14 }
0x28d3   :  { %v5672_v12 = vpop.xlane.xlu0 %5671  ;;  %v5669_v62 = vpop.xlane.xlu1 %5668 }
0x28d7   :  { %v5675_v37 = vpop.xlane.xlu0 %5674  ;;  %v5845_v48 = vpop.xlane.xlu1 %5844 }
0x28d8   :  { %v5855_v32 = vsub.f32 %v5839_v46, %v5845_v48  ;;  %v5679_v41 = vsub.f32 %v14959_v5, %v5675_v37  ;;  %v5678_v46 = vsub.f32 %v14950_v9, %v5672_v12 }
0x28da   :  { %v5859_v49 = vmul.f32 1.442695, %v5855_v32  ;;  %v5686_v30 = vmul.f32 1.442695, %v5679_v41 }
0x28db   :  { %v5848_v61 = vpop.xlane.xlu0 %5847  ;;  %v5851_v0 = vpop.xlane.xlu1 %5850 }
0x28dc   :  { %v5856_v1 = vsub.f32 %v5840_v39, %v5848_v61  ;;  %v5857_v55 = vsub.f32 %v5841_v33, %v5851_v0  ;;  %12587 = vpow2.f32 %v5859_v49  ;;  %v5677_v39 = vsub.f32 %v14955_v27, %v5669_v62 }
0x28de   :  { %v5861_v60 = vmul.f32 1.442695, %v5856_v1  ;;  %v5863_v40 = vmul.f32 1.442695, %v5857_v55  ;;  %v5682_v9 = vmul.f32 1.442695, %v5677_v39 }
0x28df   :  { %v5854_v16 = vpop.xlane.xlu0 %5853  ;;  %v6023_v17 = vpop.xlane.xlu1 %6022 }
0x28e0   :  { %12589 = vpow2.f32 %v5861_v60  ;;  %v5858_v25 = vsub.f32 %v5842_v24, %v5854_v16  ;;  %v6033_v13 = vsub.f32 %v6017_v15, %v6023_v17  ;;  %v5684_v24 = vmul.f32 1.442695, %v5678_v46 }
0x28e1   :  { %12591 = vpow2.f32 %v5863_v40  ;;  %v5680_v15 = vmul.f32 1.442695, %v5676_v26 }
0x28e2   :  { %v5865_v21 = vmul.f32 1.442695, %v5858_v25  ;;  %v6037_v8 = vmul.f32 1.442695, %v6033_v13 }
0x28e3   :  { %v6026_v3 = vpop.xlane.xlu0 %6025  ;;  %v6029_v42 = vpop.xlane.xlu1 %6028 }
0x28e4   :  { %12593 = vpow2.f32 %v5865_v21  ;;  %v6034_v43 = vsub.f32 %v6018_v63, %v6026_v3  ;;  %v6035_v33 = vsub.f32 %v6019_v52, %v6029_v42 }
0x28e5   :  { %12595 = vpow2.f32 %v6037_v8 }
0x28e6   :  { %v6039_v18 = vmul.f32 1.442695, %v6034_v43  ;;  %v6041_v29 = vmul.f32 1.442695, %v6035_v33 }
0x28e7   :  { %v6032_v45 = vpop.xlane.xlu0 %6031 }
0x28e8   :  { %12597 = vpow2.f32 %v6039_v18  ;;  %v6036_v19 = vsub.f32 %v6020_v2, %v6032_v45 }
0x28e9   :  { %12599 = vpow2.f32 %v6041_v29  ;;  %v14986_v5 = vpop.eup %12587 }
0x28ea   :  { %12601 = vpow2.f32 %v5686_v30  ;;  %v5867_v47 = vsel %vm1246_vm4, %v14986_v5, 0.0  ;;  %v6043_v51 = vmul.f32 1.442695, %v6036_v19 }
0x28eb   :  { %12603 = vpow2.f32 %v5684_v24  ;;  %5868 = vadd.xlane.f32.xlu1 %v5867_v47 }
0x28ec   :  { %12605 = vpow2.f32 %v5682_v9 }
0x28ed   :  { %v14990_v27 = vpop.eup %12589  ;;  %12607 = vpow2.f32 %v5680_v15 }
0x28ee   :  { %v14992_v6 = vpop.eup %12591  ;;  %v5870_v50 = vsel %vm1246_vm4, %v14990_v27, 0.0  ;;  %12609 = vpow2.f32 %v6043_v51 }
0x28ef   :  { %5871 = vadd.xlane.f32.xlu0 %v5870_v50  ;;  %v5873_v52 = vsel %vm1246_vm4, %v14992_v6, 0.0 }
0x28f0   :  { %5874 = vadd.xlane.f32.xlu1 %v5873_v52 }
0x28f1   :  { %v14998_v54 = vpop.eup %12593 }
0x28f2   :  { %v15000_v63 = vpop.eup %12595  ;;  %v5876_v31 = vsel %vm1246_vm4, %v14998_v54, 0.0 }
0x28f3   :  { %5877 = vadd.xlane.f32.xlu0 %v5876_v31  ;;  %v6045_v2 = vsel %vm1246_vm4, %v15000_v63, 0.0 }
0x28f4   :  { %6046 = vadd.xlane.f32.xlu1 %v6045_v2 }
0x28f5   :  { %v15006_v36 = vpop.eup %12597 }
0x28f6   :  { %v15008_v20 = vpop.eup %12599  ;;  %v6048_v58 = vsel %vm1246_vm4, %v15006_v36, 0.0 }
0x28f7   :  { %v12602_v14 = vpop.eup %12601  ;;  %6049 = vadd.xlane.f32.xlu0 %v6048_v58  ;;  %v6051_v12 = vsel %vm1246_vm4, %v15008_v20, 0.0 }
0x28f8   :  { %v12604_v62 = vpop.eup %12603  ;;  %6052 = vadd.xlane.f32.xlu1 %v6051_v12  ;;  %v5697_v37 = vsel %vm1246_vm4, %v12602_v14, 0.0 }
0x28f9   :  { %v12606_v48 = vpop.eup %12605  ;;  %v5694_v32 = vsel %vm1246_vm4, %v12604_v62, 0.0 }
0x28fa   :  { %v12608_v49 = vpop.eup %12607  ;;  %v5691_v61 = vsel %vm1246_vm4, %v12606_v48, 0.0 }
0x28fb   :  { %5698 = vadd.xlane.f32.xlu0 %v5697_v37  ;;  %v15017_v0 = vpop.eup %12609  ;;  %v5688_v1 = vsel %vm1246_vm4, %v12608_v49, 0.0 }
0x28fc   :  { %5695 = vadd.xlane.f32.xlu1 %v5694_v32  ;;  %v6054_v55 = vsel %vm1246_vm4, %v15017_v0, 0.0 }
0x28ff   :  { %5692 = vadd.xlane.f32.xlu0 %v5691_v61 }
0x2900   :  { %5689 = vadd.xlane.f32.xlu1 %v5688_v1 }
0x2903   :  { %6055 = vadd.xlane.f32.xlu0 %v6054_v55 }
0x2911   :  { %5711 = vrot.lane.b32.xlu1 %v14864_v28, %s13725_s1 }
0x2915   :  { %6067 = vrot.lane.b32.xlu1 %v14864_v28, %s13714_s30 }
0x2919   :  { %5889 = vrot.lane.b32.xlu0 %v14864_v28, %s13683_s28 }
0x2974   :  { %v5869_v60 = vpop.xlane.xlu1 %5868 }
0x2975   :  { %12611 = vrcp.f32 %v5869_v60 }
0x2978   :  { %v5872_v40 = vpop.xlane.xlu0 %5871 }
0x2979   :  { %v5875_v16 = vpop.xlane.xlu1 %5874 }
0x297c   :  { %v5878_v17 = vpop.xlane.xlu0 %5877 }
0x297d   :  { %v6047_v25 = vpop.xlane.xlu1 %6046 }
0x2980   :  { %v6050_v13 = vpop.xlane.xlu0 %6049 }
0x2981   :  { %v6053_v41 = vpop.xlane.xlu1 %6052 }
0x2982   :  { %v12612_v39 = vpop.eup %12611 }
0x2983   :  { %v5883_v50 = vmul.f32 %v12612_v39, %v14986_v5 }
0x2984   :  { %v5699_v21 = vpop.xlane.xlu0 %5698 }
0x2985   :  { %v5696_v8 = vpop.xlane.xlu1 %5695  ;;  %12613 = vrcp.f32 %v5699_v21 }
0x2986   :  { %12615 = vrcp.f32 %v5696_v8 }
0x2987   :  { %12617 = vrcp.f32 %v5872_v40 }
0x2988   :  { %v5693_v46 = vpop.xlane.xlu0 %5692 }
0x2989   :  { %12619 = vrcp.f32 %v5693_v46  ;;  %v5690_v3 = vpop.xlane.xlu1 %5689 }
0x298a   :  { %12621 = vrcp.f32 %v5690_v3 }
0x298b   :  { %12623 = vrcp.f32 %v5878_v17  ;;  %v12218_v17 = vld [vmem:[#allocation40 + $0x20] sm:$0xff]  }
0x298c   :  { %v6056_v42 = vpop.xlane.xlu0 %6055  ;;  %12625 = vrcp.f32 %v6050_v13 }
0x298d   :  { %v5712_v43 = vpop.permute.xlu1 %5711  ;;  %12627 = vrcp.f32 %v5875_v16  ;;  %v12217_v16 = vld [vmem:[#allocation40 + $0x28] sm:$0xff]  }
0x298e   :  { %11691 = vmatprep.subr.msk.bf16.mxu1 %vm1274_vm3, %v5712_v43  ;;  %v5720_v28 = vsel %vm1274_vm3, %v5712_v43, 0  ;;  %12629 = vrcp.f32 %v6047_v25 }
0x298f   :  { %11411 = vmatpush3.bf16.msra.mxu1 %v5720_v28  ;;  %12631 = vrcp.f32 %v6056_v42  ;;  %v12221_v42 = vld [vmem:[#allocation40 + $0x8] sm:$0xff]  }
0x2990   :  { %v5890_v33 = vpop.permute.xlu0 %5889  ;;  %12633 = vrcp.f32 %v6053_v41  ;;  %v12220_v41 = vld [vmem:[#allocation40 + $0x10] sm:$0xff]  }
0x2991   :  { %11693 = vmatprep.subr.msk.bf16.mxu1 %vm1274_vm3, %v5890_v33  ;;  %v5898_v12 = vsel %vm1274_vm3, %v5890_v33, 0  ;;  %v12222_v33 = vld [vmem:[#allocation40] sm:$0xff]  }
0x2992   :  { %v12614_v30 = vpop.eup %12613 }
0x2993   :  { %v12616_v18 = vpop.eup %12615  ;;  %v5707_v19 = vmul.f32 %v12614_v30, %v12602_v14 }
0x2994   :  { %v12618_v29 = vpop.eup %12617  ;;  %v5706_v9 = vmul.f32 %v12616_v18, %v12604_v62  ;;  %v6068_v62 = vpop.permute.xlu1 %6067 }
0x2995   :  { %v5884_v47 = vmul.f32 %v12618_v29, %v14990_v27  ;;  %v6076_v55 = vsel %vm1274_vm3, %v6068_v62, 0 }
0x2996   :  { %v12620_v26 = vpop.eup %12619  ;;  %v5709_v52 = vpack.c.bf16 %v5707_v19, %v5706_v9 }
0x2997   :  { %v12622_v24 = vpop.eup %12621  ;;  %v5705_v45 = vmul.f32 %v12620_v26, %v12606_v48  ;;  %v5887_v2 = vpack.c.bf16 %v5884_v47, %v5883_v50 }
0x2998   :  { %v5704_v15 = vmul.f32 %v12622_v24, %v12608_v49  ;;  %v12624_v31 = vpop.eup %12623 }
0x2999   :  { %v12626_v58 = vpop.eup %12625  ;;  %v5886_v14 = vmul.f32 %v12624_v31, %v14998_v54 }
0x299a   :  { %v5708_v51 = vpack.c.bf16 %v5705_v45, %v5704_v15  ;;  %v12628_v37 = vpop.eup %12627  ;;  %v6062_v5 = vmul.f32 %v12626_v58, %v15006_v36 }
0x299b   :  { %v12630_v27 = vpop.eup %12629  ;;  %v5885_v48 = vmul.f32 %v12628_v37, %v14992_v6  ;;  %v12215_v6 = vld [vmem:[#allocation40 + $0x38] sm:$0xff]  }
0x299c   :  { %11412 = vmatprep.mubr.msk.bf16.mxu1 %vm1246_vm4, %v5708_v51  ;;  %v6061_v32 = vmul.f32 %v12630_v27, %v15000_v63  ;;  %v12632_v61 = vpop.eup %12631  ;;  %v12216_v63 = vld [vmem:[#allocation40 + $0x30] sm:$0xff]   ;;  %11440 = vmatprep.subr.bf16.mxu0 %v12215_v6 }
0x299d   :  { %11413 = vmatmul.mubr.msk.bf16.vlgmr.msra.gmra.mxu1 %vm1246_vm4, %v5709_v52  ;;  %v5888_v49 = vpack.c.bf16 %v5886_v14, %v5885_v48  ;;  %v12634_v60 = vpop.eup %12633  ;;  %v6064_v54 = vmul.f32 %v12632_v61, %v15017_v0  ;;  %11441 = vmatpush3.bf16.msra.mxu0 %v12215_v6  ;;  %v12219_v0 = vld [vmem:[#allocation40 + $0x18] sm:$0xff]  }
0x299e   :  { %11423 = vmatpush3.bf16.msra.mxu1 %v5898_v12  ;;  %11424 = vmatprep.mubr.msk.bf16.mxu1 %vm1246_vm4, %v5887_v2  ;;  %v6065_v1 = vpack.c.bf16 %v6062_v5, %v6061_v32  ;;  %v6063_v40 = vmul.f32 %v12634_v60, %v15008_v20 }
0x299f   :  { %11695 = vmatprep.subr.msk.bf16.mxu1 %vm1274_vm3, %v6068_v62  ;;  %11442 = vmatprep.subr.bf16.mxu0 %v12216_v63 }
0x29a0   :  { %v6066_v36 = vpack.c.bf16 %v6064_v54, %v6063_v40 }
0x29a1   :  { %11443 = vmatpush3.bf16.msra.mxu0 %v12216_v63 }
0x29a2   :  { %11444 = vmatprep.subr.bf16.mxu0 %v12217_v16 }
0x29a5   :  { %11425 = vmatmul.mubr.msk.bf16.vlgmr.msra.gmra.mxu1 %vm1246_vm4, %v5888_v49  ;;  %11445 = vmatpush3.bf16.msra.mxu0 %v12217_v16 }
0x29a6   :  { %11435 = vmatpush3.bf16.msra.mxu1 %v6076_v55  ;;  %11436 = vmatprep.mubr.msk.bf16.mxu1 %vm1246_vm4, %v6065_v1 }
0x29a7   :  { %11446 = vmatprep.subr.bf16.mxu0 %v12218_v17 }
0x29a9   :  { %11447 = vmatpush3.bf16.msra.mxu0 %v12218_v17 }
0x29aa   :  { %11448 = vmatprep.subr.bf16.mxu0 %v12219_v0 }
0x29ad   :  { %11437 = vmatmul.mubr.msk.bf16.vlgmr.msra.gmra.mxu1 %vm1246_vm4, %v6066_v36  ;;  %11449 = vmatpush3.bf16.msra.mxu0 %v12219_v0  ;;  %v10438_v0 = vld [vmem:[#allocation42] ss:$0 sm:$0xff] }
0x29ae   :  { %6504 = vmatprep.mubr.bf16.mxu1 %v13723_v59  ;;  %11450 = vmatprep.subr.bf16.mxu0 %v12220_v41 }
0x29b1   :  { %11451 = vmatpush3.bf16.msra.mxu0 %v12220_v41 }
0x29b2   :  { %11452 = vmatprep.subr.bf16.mxu0 %v12221_v42 }
0x29b5   :  { %11453 = vmatpush3.bf16.msra.mxu0 %v12221_v42 }
0x29b6   :  { %11454 = vmatprep.subr.bf16.mxu0 %v12222_v33 }
0x29b9   :  { %11455 = vmatpush3.bf16.msra.mxu0 %v12222_v33 }
0x2a5d   :  { %v11414_v25 = vpop.f32.mrf.mxu1 }
0x2a5f   :  { %v5756_v20 = vpop.f32.mrf.mxu1 }
0x2a61   :  { %v11415_v13 = vpop.f32.mrf.mxu1 }
0x2a62   :  { %v11873_v21 = vpack.i.bf16 %v11415_v13, %v11414_v25 }
0x2a63   :  { %v5759_v8 = vpop.f32.mrf.mxu1 }
0x2a64   :  { %v11878_v46 = vpack.i.bf16 %v5759_v8, %v5756_v20  ;;  %11874 = vrot.lane.b32.xlu0 %v11873_v21, %s13714_s30 }
0x2a65   :  { %v11426_v3 = vpop.f32.mrf.mxu1 }
0x2a66   :  { %11879 = vrot.lane.b32.xlu1 %v11878_v46, %s13714_s30 }
0x2a67   :  { %v5934_v43 = vpop.f32.mrf.mxu1 }
0x2a69   :  { %v11427_v28 = vpop.f32.mrf.mxu1 }
0x2a6a   :  { %v11883_v39 = vpack.i.bf16 %v11427_v28, %v11426_v3 }
0x2a6b   :  { %v5937_v30 = vpop.f32.mrf.mxu1 }
0x2a6c   :  { %v11888_v18 = vpack.i.bf16 %v5937_v30, %v5934_v43  ;;  %11884 = vrot.lane.b32.xlu0 %v11883_v39, %s13683_s28  ;;  %v12223_v39 = vld [vmem:[#allocation46 + $0x70] ss:$8 sps:$4 sm:$0xff]   ;;  %v12225_v30 = vld [vmem:[#allocation46 + $0x74] ss:$8 sps:$4 sm:$0xff]  }
0x2a6d   :  { %v11438_v29 = vpop.f32.mrf.mxu1  ;;  %6472 = vmatprep.subr.bf16.mxu1 %v12225_v30 }
0x2a6e   :  { %11889 = vrot.lane.b32.xlu1 %v11888_v18, %s13683_s28  ;;  %6473 = vmatpush1.bf16.msra.mxu1 %v12223_v39 }
0x2a6f   :  { %v6112_v26 = vpop.f32.mrf.mxu1 }
0x2a71   :  { %v11439_v24 = vpop.f32.mrf.mxu1 }
0x2a72   :  { %v11898_v45 = vpack.i.bf16 %v11439_v24, %v11438_v29 }
0x2a73   :  { %v6115_v9 = vpop.f32.mrf.mxu1 }
0x2a74   :  { %v11893_v19 = vpack.i.bf16 %v6115_v9, %v6112_v26  ;;  %11899 = vrot.lane.b32.xlu0 %v11898_v45, %s13725_s1 }
0x2a76   :  { %11894 = vrot.lane.b32.xlu1 %v11893_v19, %s13725_s1 }
0x2ad6   :  { %v11875_v15 = vpop.permute.xlu0 %11874 }
0x2ad7   :  { %v11877_v52 = vunpack.i.h.bf16 %v11875_v15  ;;  %v11876_v31 = vunpack.i.l.bf16 %v11875_v15 }
0x2ad8   :  { %v11880_v47 = vpop.permute.xlu1 %11879 }
0x2ad9   :  { %v11882_v2 = vunpack.i.h.bf16 %v11880_v47  ;;  %v11881_v58 = vunpack.i.l.bf16 %v11880_v47  ;;  %v6178_v32 = vsel %vm1194_vm2, %v14942_v44, %v11877_v52  ;;  %v6177_v49 = vsel %vm1194_vm2, %v14938_v53, %v11876_v31  ;;  %v12228_v31 = vld [vmem:[#allocation46 + $0x64] ss:$8 sps:$4 sm:$0xff]  }
0x2ada   :  { %6474 = vmatprep.subr.bf16.mxu1 %v12228_v31  ;;  %v12259_v31 = vld [vmem:[#allocation49 + $0x48] sm:$0xff]  }
0x2adb   :  { %v6176_v61 = vsel %vm1194_vm2, %v14944_v56, %v11882_v2  ;;  %v6175_v1 = vsel %vm1194_vm2, %v14940_v57, %v11881_v58  ;;  %v12226_v2 = vld [vmem:[#allocation46 + $0x60] ss:$8 sps:$4 sm:$0xff]   ;;  %v12231_v58 = vld [vmem:[#allocation46 + $0x54] ss:$8 sps:$4 sm:$0xff]  }
0x2adc   :  { %6475 = vmatpush1.bf16.msra.mxu1 %v12226_v2  ;;  %v12260_v2 = vld [vmem:[#allocation49 + $0x8] sm:$0xff]  }
0x2add   :  { %6476 = vmatprep.subr.bf16.mxu1 %v12231_v58  ;;  %v12261_v58 = vld [vmem:[#allocation49 + $0x40] sm:$0xff]  }
0x2ade   :  { %v11885_v51 = vpop.permute.xlu0 %11884 }
0x2adf   :  { %v11887_v12 = vunpack.i.h.bf16 %v11885_v51  ;;  %v11886_v37 = vunpack.i.l.bf16 %v11885_v51 }
0x2ae0   :  { %v11890_v50 = vpop.permute.xlu1 %11889 }
0x2ae1   :  { %v11892_v62 = vunpack.i.h.bf16 %v11890_v50  ;;  %v11891_v27 = vunpack.i.l.bf16 %v11890_v50  ;;  %v6182_v60 = vsel %vm1729_vm6, %v6178_v32, %v11887_v12  ;;  %v6181_v54 = vsel %vm1729_vm6, %v6177_v49, %v11886_v37  ;;  %v12229_v12 = vld [vmem:[#allocation46 + $0x50] ss:$8 sps:$4 sm:$0xff]   ;;  %v12234_v37 = vld [vmem:[#allocation46 + $0x44] ss:$8 sps:$4 sm:$0xff]   ;;  %v12243_v32 = vld [vmem:[#allocation46 + $0x14] ss:$8 sps:$4 sm:$0xff]  }
0x2ae2   :  { %6477 = vmatpush1.bf16.msra.mxu1 %v12229_v12  ;;  %v12241_v49 = vld [vmem:[#allocation46 + $0x10] ss:$8 sps:$4 sm:$0xff]   ;;  %v12262_v12 = vld [vmem:[#allocation49] sm:$0xff]  }
0x2ae3   :  { %v6179_v63 = vsel %vm1729_vm6, %v6175_v1, %v11891_v27  ;;  %v6180_v53 = vsel %vm1729_vm6, %v6176_v61, %v11892_v62  ;;  %v12232_v62 = vld [vmem:[#allocation46 + $0x40] ss:$8 sps:$4 sm:$0xff]   ;;  %6478 = vmatprep.subr.bf16.mxu1 %v12234_v37  ;;  %v12237_v27 = vld [vmem:[#allocation46 + $0x34] ss:$8 sps:$4 sm:$0xff]   ;;  %v12246_v61 = vld [vmem:[#allocation46 + $0x4] ss:$8 sps:$4 sm:$0xff]  }
0x2ae4   :  { %v12244_v1 = vld [vmem:[#allocation46] ss:$8 sps:$4 sm:$0xff]  }
0x2ae5   :  { %v6380_v37 = vld [vmem:[#allocation48] sm:$0x3] }
0x2ae6   :  { %v11900_v14 = vpop.permute.xlu0 %11899  ;;  %6479 = vmatpush1.bf16.msra.mxu1 %v12232_v62  ;;  %v6385_v62 = vrot.slane %v6380_v37, %v14180_v38 }
0x2ae7   :  { %v11902_v5 = vunpack.i.h.bf16 %v11900_v14  ;;  %v11901_v48 = vunpack.i.l.bf16 %v11900_v14  ;;  %v12235_v14 = vld [vmem:[#allocation46 + $0x30] ss:$8 sps:$4 sm:$0xff]   ;;  %6480 = vmatprep.subr.bf16.mxu1 %v12237_v27  ;;  %v6389_v27 = vrot.slane %v6380_v37, %v14174_v23 }
0x2ae8   :  { %v11895_v55 = vpop.permute.xlu1 %11894 }
0x2ae9   :  { %v11897_v40 = vunpack.i.h.bf16 %v11895_v55  ;;  %v11896_v36 = vunpack.i.l.bf16 %v11895_v55  ;;  %v6186_v6 = vsel %vm1732_vm7, %v6182_v60, %v11902_v5  ;;  %v6185_v44 = vsel %vm1732_vm7, %v6181_v54, %v11901_v48  ;;  %v12240_v5 = vld [vmem:[#allocation46 + $0x24] ss:$8 sps:$4 sm:$0xff]   ;;  %v12238_v48 = vld [vmem:[#allocation46 + $0x20] ss:$8 sps:$4 sm:$0xff]  }
0x2aea   :  { %v6188_v17 = vpack.c.bf16 %v6186_v6, %v6185_v44  ;;  %6481 = vmatpush1.bf16.msra.mxu1 %v12235_v14 }
0x2aeb   :  { %v6183_v56 = vsel %vm1732_vm7, %v6179_v63, %v11896_v36  ;;  %v6184_v16 = vsel %vm1732_vm7, %v6180_v53, %v11897_v40  ;;  %6482 = vmatprep.subr.bf16.mxu1 %v12240_v5 }
0x2aec   :  { %v6187_v57 = vpack.c.bf16 %v6184_v16, %v6183_v56 }
0x2aee   :  { %11456 = vmatprep.mubr.bf16.mxu0 %v6187_v57  ;;  %6483 = vmatpush1.bf16.msra.mxu1 %v12238_v48 }
0x2aef   :  { %11457 = vmatmul.mubr.bf16.vlgmr.msra.gmra.mxu0 %v6188_v17  ;;  %6484 = vmatprep.subr.bf16.mxu1 %v12243_v32 }
0x2af2   :  { %6485 = vmatpush1.bf16.msra.mxu1 %v12241_v49 }
0x2af3   :  { %6486 = vmatprep.subr.bf16.mxu1 %v12246_v61 }
0x2af6   :  { %6487 = vmatpush1.bf16.msra.mxu1 %v12244_v1 }
0x2baf   :  { %v11458_v25 = vpop.f32.mrf.mxu0 }
0x2bb0   :  { %v6286_v42 = vadd.f32 %v11458_v25, %v10438_v0 }
0x2bb1   :  { %v6277_v20 = vpop.f32.mrf.mxu0 }
0x2bb2   :  { %v6278_v13 = vadd.f32 %v10438_v0, %v6277_v20  ;;  %v6294_v33 = vadd.f32 %v6286_v42, %v14854_v7 }
0x2bb3   :  { %v11459_v41 = vpop.f32.mrf.mxu0 }
0x2bb4   :  { %v6292_v21 = vadd.f32 %v6278_v13, %v14847_v4  ;;  %v6289_v8 = vadd.f32 %v11459_v41, %v10438_v0 }
0x2bb5   :  { %v6280_v46 = vpop.f32.mrf.mxu0 }
0x2bb6   :  { %v6281_v3 = vadd.f32 %v10438_v0, %v6280_v46  ;;  %6298 = vadd.xlane.f32.xlu1 %v6292_v21  ;;  %v6295_v43 = vadd.f32 %v6289_v8, %v14856_v11  ;;  %v10447_v0 = vld [vmem:[#allocation43] ss:$0 sm:$0xff] }
0x2bb8   :  { %v6293_v28 = vadd.f32 %v6281_v3, %v14849_v10 }
0x2bba   :  { %6300 = vadd.xlane.f32.xlu0 %v6293_v28  ;;  %6304 = vadd.xlane.f32.xlu1 %v6295_v43 }
0x2bbe   :  { %6302 = vadd.xlane.f32.xlu0 %v6294_v33 }
0x2c3f   :  { %v6299_v18 = vpop.xlane.xlu1 %6298 }
0x2c40   :  { %v6306_v4 = vmul.f32 0.0078125, %v6299_v18 }
0x2c42   :  { %v15075_v29 = vsub.f32 %v6292_v21, %v6306_v4  ;;  %v10448_v21 = vld [vmem:[#allocation45] ss:$0 sm:$0xff] }
0x2c43   :  { %v6301_v26 = vpop.xlane.xlu0 %6300  ;;  %v6305_v24 = vpop.xlane.xlu1 %6304 }
0x2c44   :  { %v6307_v45 = vmul.f32 0.0078125, %v6301_v26  ;;  %v6309_v9 = vmul.f32 0.0078125, %v6305_v24  ;;  %v6314_v10 = vmul.f32 %v15075_v29, %v15075_v29  ;;  %v12247_v24 = vld [vmem:[#allocation49 + $0x78] sm:$0xff]  }
0x2c45   :  { %10916 = vmatprep.subr.bf16.mxu0 %v12247_v24 }
0x2c46   :  { %v6311_v11 = vsub.f32 %v6293_v28, %v6307_v45  ;;  %6318 = vadd.xlane.f32.xlu0 %v6314_v10  ;;  %v15079_v7 = vsub.f32 %v6295_v43, %v6309_v9  ;;  %v12248_v45 = vld [vmem:[#allocation49 + $0x38] sm:$0xff]   ;;  %v12249_v9 = vld [vmem:[#allocation49 + $0x70] sm:$0xff]  }
0x2c47   :  { %v6303_v19 = vpop.xlane.xlu0 %6302  ;;  %10917 = vmatpush3.bf16.msra.mxu0 %v12248_v45  ;;  %v12250_v10 = vld [vmem:[#allocation49 + $0x30] sm:$0xff]  }
0x2c48   :  { %v6308_v15 = vmul.f32 0.0078125, %v6303_v19  ;;  %v6315_v47 = vmul.f32 %v6311_v11, %v6311_v11  ;;  %v6317_v52 = vmul.f32 %v15079_v7, %v15079_v7  ;;  %10918 = vmatprep.subr.bf16.mxu0 %v12249_v9  ;;  %v12252_v19 = vld [vmem:[#allocation49 + $0x28] sm:$0xff]  }
0x2c4a   :  { %v6312_v51 = vsub.f32 %v6294_v33, %v6308_v15  ;;  %6320 = vadd.xlane.f32.xlu1 %v6315_v47  ;;  %v12254_v15 = vld [vmem:[#allocation49 + $0x20] sm:$0xff]   ;;  %v12255_v47 = vld [vmem:[#allocation49 + $0x58] sm:$0xff]  }
0x2c4b   :  { %10919 = vmatpush3.bf16.msra.mxu0 %v12250_v10 }
0x2c4c   :  { %v6316_v50 = vmul.f32 %v6312_v51, %v6312_v51 }
0x2c4e   :  { %6322 = vadd.xlane.f32.xlu0 %v6316_v50  ;;  %6324 = vadd.xlane.f32.xlu1 %v6317_v52  ;;  %v12257_v50 = vld [vmem:[#allocation49 + $0x50] sm:$0xff]  }
0x2c4f   :  { %v12258_v52 = vld [vmem:[#allocation49 + $0x10] sm:$0xff]  }
0x2ccf   :  { %v6319_v55 = vpop.xlane.xlu0 %6318 }
0x2cd0   :  { %v6326_v60 = vmul.f32 0.0078125, %v6319_v55 }
0x2cd2   :  { %v6330_v54 = vadd.f32 1e-12, %v6326_v60 }
0x2cd3   :  { %v6321_v40 = vpop.xlane.xlu1 %6320 }
0x2cd4   :  { %12635 = vrsqrt.f32 %v6330_v54  ;;  %v6327_v36 = vmul.f32 0.0078125, %v6321_v40 }
0x2cd6   :  { %v6331_v6 = vadd.f32 1e-12, %v6327_v36 }
0x2cd7   :  { %v6323_v44 = vpop.xlane.xlu0 %6322  ;;  %v6325_v63 = vpop.xlane.xlu1 %6324 }
0x2cd8   :  { %12637 = vrsqrt.f32 %v6331_v6  ;;  %v6328_v53 = vmul.f32 0.0078125, %v6323_v44  ;;  %v6329_v56 = vmul.f32 0.0078125, %v6325_v63 }
0x2cda   :  { %v6332_v16 = vadd.f32 1e-12, %v6328_v53  ;;  %v6333_v57 = vadd.f32 1e-12, %v6329_v56 }
0x2cdc   :  { %12639 = vrsqrt.f32 %v6332_v16 }
0x2cdd   :  { %12641 = vrsqrt.f32 %v6333_v57 }
0x2ce1   :  { %v12636_v17 = vpop.eup %12635 }
0x2ce2   :  { %v6338_v25 = vmul.f32 %v12636_v17, %v15075_v29 }
0x2ce4   :  { %v6348_v41 = vmul.f32 %v10447_v0, %v6338_v25 }
0x2ce5   :  { %v12638_v20 = vpop.eup %12637 }
0x2ce6   :  { %v6339_v13 = vmul.f32 %v12638_v20, %v6311_v11  ;;  %v15084_v42 = vadd.f32 %v10448_v21, %v6348_v41  ;;  %v12251_v11 = vld [vmem:[#allocation49 + $0x68] sm:$0xff]  }
0x2ce7   :  { %10920 = vmatprep.subr.bf16.mxu0 %v12251_v11 }
0x2ce8   :  { %v6349_v8 = vmul.f32 %v10447_v0, %v6339_v13  ;;  %10921 = vmatpush3.bf16.msra.mxu0 %v12252_v19 }
0x2ce9   :  { %v12640_v46 = vpop.eup %12639 }
0x2cea   :  { %v12642_v3 = vpop.eup %12641  ;;  %v15086_v43 = vadd.f32 %v10448_v21, %v6349_v8  ;;  %v6340_v28 = vmul.f32 %v12640_v46, %v6312_v51  ;;  %v12256_v51 = vld [vmem:[#allocation49 + $0x18] sm:$0xff]  }
0x2ceb   :  { %v6341_v33 = vmul.f32 %v12642_v3, %v15079_v7  ;;  %v12253_v7 = vld [vmem:[#allocation49 + $0x60] sm:$0xff]  }
0x2cec   :  { %v6362_v39 = vpack.c.bf16 %v15086_v43, %v15084_v42  ;;  %v6350_v30 = vmul.f32 %v10447_v0, %v6340_v28  ;;  %10922 = vmatprep.subr.bf16.mxu0 %v12253_v7 }
0x2ced   :  { %v6351_v18 = vmul.f32 %v10447_v0, %v6341_v33  ;;  %10923 = vmatpush3.bf16.msra.mxu0 %v12254_v15 }
0x2cee   :  { %6505 = vmatmul.mubr.bf16.vlgmr.msra.gmra.mxu1 %v6362_v39  ;;  %v15092_v4 = vadd.f32 %v10448_v21, %v6350_v30  ;;  %10924 = vmatprep.subr.bf16.mxu0 %v12255_v47 }
0x2cef   :  { %6514 = vmatprep.mubr.bf16.mxu1 %v13723_v59  ;;  %v15094_v29 = vadd.f32 %v10448_v21, %v6351_v18 }
0x2cf1   :  { %v6363_v26 = vpack.c.bf16 %v15094_v29, %v15092_v4  ;;  %10925 = vmatpush3.bf16.msra.mxu0 %v12256_v51 }
0x2cf2   :  { %10926 = vmatprep.subr.bf16.mxu0 %v12257_v50 }
0x2cf5   :  { %10927 = vmatpush3.bf16.msra.mxu0 %v12258_v52 }
0x2cf6   :  { %6515 = vmatmul.mubr.bf16.gmra.mxu1 %v6363_v26  ;;  %10928 = vmatprep.subr.bf16.mxu0 %v12259_v31 }
0x2cf7   :  { %7068 = vmatprep.mubr.bf16.mxu1 %v13723_v59 }
0x2cf9   :  { %10929 = vmatpush3.bf16.msra.mxu0 %v12260_v2 }
0x2cfa   :  { %10930 = vmatprep.subr.bf16.mxu0 %v12261_v58 }
0x2cfd   :  { %10931 = vmatpush3.bf16.msra.mxu0 %v12262_v12 }
0x2dae   :  { %v6506_v14 = vpop.f32.mrf.mxu1 }
0x2daf   :  { %v15101_v5 = vadd.f32 %v6506_v14, %v6385_v62 }
0x2db0   :  { %v6508_v48 = vpop.f32.mrf.mxu1 }
0x2db1   :  { %v6525_v32 = vmul.f32 %v15101_v5, %v15101_v5  ;;  %v15105_v49 = vadd.f32 %v6508_v48, %v6389_v27 }
0x2db2   :  { %v6510_v61 = vpop.f32.mrf.mxu1 }
0x2db3   :  { %v6533_v1 = vmul.f32 %v6525_v32, %v15101_v5  ;;  %v6526_v55 = vmul.f32 %v15105_v49, %v15105_v49  ;;  %v15110_v60 = vadd.f32 %v6510_v61, %v6385_v62 }
0x2db4   :  { %v6512_v54 = vpop.f32.mrf.mxu1 }
0x2db5   :  { %v6541_v40 = vmul.f32 0.044715, %v6533_v1  ;;  %v6534_v36 = vmul.f32 %v6526_v55, %v15105_v49  ;;  %v6527_v6 = vmul.f32 %v15110_v60, %v15110_v60  ;;  %v15115_v44 = vadd.f32 %v6512_v54, %v6389_v27 }
0x2db6   :  { %v6516_v63 = vpop.f32.mrf.mxu1 }
0x2db7   :  { %v6549_v53 = vadd.f32 %v6541_v40, %v15101_v5  ;;  %v6542_v56 = vmul.f32 0.044715, %v6534_v36  ;;  %v6535_v16 = vmul.f32 %v6527_v6, %v15110_v60  ;;  %v6528_v57 = vmul.f32 %v15115_v44, %v15115_v44 }
0x2db8   :  { %v15121_v17 = vadd.f32 %v6516_v63, %v6385_v62  ;;  %v6518_v25 = vpop.f32.mrf.mxu1 }
0x2db9   :  { %v6557_v0 = vmul.f32 0.7978846, %v6549_v53  ;;  %v6550_v20 = vadd.f32 %v6542_v56, %v15105_v49  ;;  %v6543_v13 = vmul.f32 0.044715, %v6535_v16  ;;  %v6536_v41 = vmul.f32 %v6528_v57, %v15115_v44 }
0x2dba   :  { %v6529_v21 = vmul.f32 %v15121_v17, %v15121_v17  ;;  %v15127_v8 = vadd.f32 %v6518_v25, %v6389_v27  ;;  %v6520_v46 = vpop.f32.mrf.mxu1 }
0x2dbb   :  { %v6558_v3 = vmul.f32 0.7978846, %v6550_v20  ;;  %v6551_v28 = vadd.f32 %v6543_v13, %v15110_v60  ;;  %v6544_v33 = vmul.f32 0.044715, %v6536_v41  ;;  %12643 = vtanh.f32 %v6557_v0 }
0x2dbc   :  { %v6537_v39 = vmul.f32 %v6529_v21, %v15121_v17  ;;  %v6530_v30 = vmul.f32 %v15127_v8, %v15127_v8  ;;  %v6521_v18 = vadd.f32 %v6520_v46, %v6385_v62  ;;  %v6522_v26 = vpop.f32.mrf.mxu1 }
0x2dbd   :  { %12645 = vtanh.f32 %v6558_v3  ;;  %v6559_v24 = vmul.f32 0.7978846, %v6551_v28  ;;  %v6552_v45 = vadd.f32 %v6544_v33, %v15115_v44  ;;  %v6523_v9 = vadd.f32 %v6522_v26, %v6389_v27 }
0x2dbe   :  { %v6545_v10 = vmul.f32 0.044715, %v6537_v39  ;;  %v6538_v11 = vmul.f32 %v6530_v30, %v15127_v8  ;;  %v6531_v19 = vmul.f32 %v6521_v18, %v6521_v18 }
0x2dbf   :  { %12647 = vtanh.f32 %v6559_v24  ;;  %v6560_v7 = vmul.f32 0.7978846, %v6552_v45  ;;  %v6532_v15 = vmul.f32 %v6523_v9, %v6523_v9 }
0x2dc0   :  { %v6553_v47 = vadd.f32 %v6545_v10, %v15121_v17  ;;  %v6546_v51 = vmul.f32 0.044715, %v6538_v11  ;;  %v6539_v50 = vmul.f32 %v6531_v19, %v6521_v18 }
0x2dc1   :  { %12649 = vtanh.f32 %v6560_v7  ;;  %v6540_v52 = vmul.f32 %v6532_v15, %v6523_v9 }
0x2dc2   :  { %v6561_v31 = vmul.f32 0.7978846, %v6553_v47  ;;  %v6554_v2 = vadd.f32 %v6546_v51, %v15127_v8  ;;  %v6547_v58 = vmul.f32 0.044715, %v6539_v50  ;;  %v10465_v47 = vld [vmem:[#allocation51] ss:$0 sm:$0xff] }
0x2dc3   :  { %v6548_v12 = vmul.f32 0.044715, %v6540_v52 }
0x2dc4   :  { %12651 = vtanh.f32 %v6561_v31  ;;  %v6562_v37 = vmul.f32 0.7978846, %v6554_v2  ;;  %v6555_v62 = vadd.f32 %v6547_v58, %v6521_v18 }
0x2dc5   :  { %v6556_v27 = vadd.f32 %v6548_v12, %v6523_v9 }
0x2dc6   :  { %12653 = vtanh.f32 %v6562_v37  ;;  %v6563_v14 = vmul.f32 0.7978846, %v6555_v62 }
0x2dc7   :  { %v6564_v48 = vmul.f32 0.7978846, %v6556_v27 }
0x2dc8   :  { %12655 = vtanh.f32 %v6563_v14  ;;  %v12644_v32 = vpop.eup %12643 }
0x2dc9   :  { %12657 = vtanh.f32 %v6564_v48  ;;  %v6573_v54 = vadd.f32 1.0, %v12644_v32 }
0x2dca   :  { %v12646_v61 = vpop.eup %12645 }
0x2dcb   :  { %v6574_v1 = vadd.f32 1.0, %v12646_v61  ;;  %v6581_v56 = vmul.f32 0.5, %v6573_v54 }
0x2dcc   :  { %v12648_v55 = vpop.eup %12647 }
0x2dcd   :  { %v6575_v40 = vadd.f32 1.0, %v12648_v55  ;;  %v6582_v53 = vmul.f32 0.5, %v6574_v1  ;;  %v6589_v41 = vmul.f32 %v6581_v56, %v15101_v5  ;;  %v12263_v1 = vld [vmem:[%s15808_s19 + $0x168] ss:$12 sps:$4 sm:$0xff]   ;;  %v12265_v55 = vld [vmem:[%s15808_s19 + $0x16c] ss:$12 sps:$4 sm:$0xff]  }
0x2dce   :  { %v12650_v36 = vpop.eup %12649  ;;  %7036 = vmatprep.subr.bf16.mxu1 %v12265_v55 }
0x2dcf   :  { %v6583_v6 = vmul.f32 0.5, %v6575_v40  ;;  %v6576_v63 = vadd.f32 1.0, %v12650_v36  ;;  %v6590_v20 = vmul.f32 %v6582_v53, %v15105_v49  ;;  %7037 = vmatpush1.bf16.msra.mxu1 %v12263_v1  ;;  %v10483_v1 = vld [vmem:[#allocation54] ss:$0 sm:$0xff] }
0x2dd1   :  { %v12652_v16 = vpop.eup %12651  ;;  %v6584_v57 = vmul.f32 0.5, %v6576_v63  ;;  %v6591_v25 = vmul.f32 %v6583_v6, %v15110_v60 }
0x2dd2   :  { %v6577_v46 = vadd.f32 1.0, %v12652_v16 }
0x2dd3   :  { %v12654_v0 = vpop.eup %12653  ;;  %v6592_v13 = vmul.f32 %v6584_v57, %v15115_v44  ;;  %v6597_v39 = vpack.c.bf16 %v6591_v25, %v6589_v41  ;;  %v12268_v41 = vld [vmem:[%s15808_s19 + $0x154] ss:$12 sps:$4 sm:$0xff]  }
0x2dd4   :  { %v6578_v21 = vadd.f32 1.0, %v12654_v0  ;;  %v6585_v45 = vmul.f32 0.5, %v6577_v46  ;;  %7038 = vmatprep.subr.bf16.mxu1 %v12268_v41  ;;  %v12271_v46 = vld [vmem:[%s15808_s19 + $0x13c] ss:$12 sps:$4 sm:$0xff]  }
0x2dd5   :  { %v12656_v3 = vpop.eup %12655  ;;  %v6598_v28 = vpack.c.bf16 %v6592_v13, %v6590_v20 }
0x2dd6   :  { %v12658_v33 = vpop.eup %12657  ;;  %v6579_v30 = vadd.f32 1.0, %v12656_v3  ;;  %v6586_v24 = vmul.f32 0.5, %v6578_v21  ;;  %v6593_v5 = vmul.f32 %v6585_v45, %v15121_v17  ;;  %v12266_v21 = vld [vmem:[%s15808_s19 + $0x150] ss:$12 sps:$4 sm:$0xff]   ;;  %v12277_v45 = vld [vmem:[%s15808_s19 + $0x108] ss:$12 sps:$4 sm:$0xff]  }
0x2dd7   :  { %6768 = vmatprep.mubr.bf16.mxu0 %v6598_v28  ;;  %v6580_v26 = vadd.f32 1.0, %v12658_v33  ;;  %7039 = vmatpush1.bf16.msra.mxu1 %v12266_v21  ;;  %v12272_v3 = vld [vmem:[%s15808_s19 + $0x170] ss:$12 sps:$4 sm:$0xff]   ;;  %v12269_v28 = vld [vmem:[%s15808_s19 + $0x138] ss:$12 sps:$4 sm:$0xff]  }
0x2dd8   :  { %6769 = vmatmul.mubr.bf16.vlgmr.msra.gmra.mxu0 %v6597_v39  ;;  %v6587_v60 = vmul.f32 0.5, %v6579_v30  ;;  %v6594_v49 = vmul.f32 %v6586_v24, %v15127_v8  ;;  %7040 = vmatprep.subr.bf16.mxu1 %v12271_v46  ;;  %v12275_v33 = vld [vmem:[%s15808_s19 + $0x124] ss:$12 sps:$4 sm:$0xff]   ;;  %v12273_v30 = vld [vmem:[%s15808_s19 + $0x120] ss:$12 sps:$4 sm:$0xff]  }
0x2dd9   :  { %v6588_v10 = vmul.f32 0.5, %v6580_v26  ;;  %11460 = vmatprep.subr.bf16.mxu0 %v12272_v3  ;;  %v12276_v39 = vld [vmem:[%s15808_s19 + $0x158] ss:$12 sps:$4 sm:$0xff]   ;;  %v12280_v24 = vld [vmem:[%s15808_s19 + $0x140] ss:$12 sps:$4 sm:$0xff]  }
0x2dda   :  { %v6595_v11 = vmul.f32 %v6587_v60, %v6521_v18  ;;  %11461 = vmatpush3.bf16.msra.mxu0 %v12272_v3  ;;  %v12279_v26 = vld [vmem:[%s15808_s19 + $0x10c] ss:$12 sps:$4 sm:$0xff]   ;;  %v12283_v60 = vld [vmem:[%s15808_s19 + $0xf4] ss:$12 sps:$4 sm:$0xff]  }
0x2ddb   :  { %v6596_v44 = vmul.f32 %v6588_v10, %v6523_v9  ;;  %7041 = vmatpush1.bf16.msra.mxu1 %v12269_v28  ;;  %11462 = vmatprep.subr.bf16.mxu0 %v12276_v39  ;;  %v12284_v10 = vld [vmem:[%s15808_s19 + $0x128] ss:$12 sps:$4 sm:$0xff]  }
0x2ddc   :  { %v6599_v7 = vpack.c.bf16 %v6595_v11, %v6593_v5  ;;  %7042 = vmatprep.subr.bf16.mxu1 %v12275_v33  ;;  %v12281_v11 = vld [vmem:[%s15808_s19 + $0xf0] ss:$12 sps:$4 sm:$0xff]   ;;  %v12285_v5 = vld [vmem:[%s15808_s19 + $0xd8] ss:$12 sps:$4 sm:$0xff]  }
0x2ddd   :  { %v6600_v19 = vpack.c.bf16 %v6596_v44, %v6594_v49  ;;  %v12287_v49 = vld [vmem:[%s15808_s19 + $0xdc] ss:$12 sps:$4 sm:$0xff]  }
0x2dde   :  { %11463 = vmatpush3.bf16.msra.mxu0 %v12276_v39  ;;  %v12288_v44 = vld [vmem:[%s15808_s19 + $0x110] ss:$12 sps:$4 sm:$0xff]  }
0x2ddf   :  { %6776 = vmatprep.mubr.bf16.mxu0 %v6600_v19  ;;  %7043 = vmatpush1.bf16.msra.mxu1 %v12273_v30  ;;  %v12289_v19 = vld [vmem:[%s15808_s19 + $0xc0] ss:$12 sps:$4 sm:$0xff]  }
0x2de0   :  { %6777 = vmatmul.mubr.bf16.gmra.mxu0 %v6599_v7  ;;  %7044 = vmatprep.subr.bf16.mxu1 %v12279_v26  ;;  %v12291_v7 = vld [vmem:[%s15808_s19 + $0xc4] ss:$12 sps:$4 sm:$0xff]  }
0x2de1   :  { %11464 = vmatprep.subr.bf16.mxu0 %v12280_v24 }
0x2de2   :  { %11465 = vmatpush3.bf16.msra.mxu0 %v12280_v24 }
0x2de3   :  { %7045 = vmatpush1.bf16.msra.mxu1 %v12277_v45  ;;  %11466 = vmatprep.subr.bf16.mxu0 %v12284_v10 }
0x2de4   :  { %7046 = vmatprep.subr.bf16.mxu1 %v12283_v60 }
0x2de6   :  { %11467 = vmatpush3.bf16.msra.mxu0 %v12284_v10 }
0x2de7   :  { %7047 = vmatpush1.bf16.msra.mxu1 %v12281_v11  ;;  %11468 = vmatprep.subr.bf16.mxu0 %v12288_v44 }
0x2de8   :  { %7048 = vmatprep.subr.bf16.mxu1 %v12287_v49 }
0x2dea   :  { %11469 = vmatpush3.bf16.msra.mxu0 %v12288_v44 }
0x2deb   :  { %7049 = vmatpush1.bf16.msra.mxu1 %v12285_v5 }
0x2dec   :  { %7050 = vmatprep.subr.bf16.mxu1 %v12291_v7 }
0x2def   :  { %7051 = vmatpush1.bf16.msra.mxu1 %v12289_v19 }
0x2e98   :  { %v10932_v15 = vpop.f32.mrf.mxu0 }
0x2e9a   :  { %v10933_v51 = vpop.f32.mrf.mxu0 }
0x2e9b   :  { %v10934_v50 = vadd.f32 %v10933_v51, %v10932_v15  ;;  %v12292_v15 = vld [vmem:[%s15808_s19 + $0xf8] ss:$12 sps:$4 sm:$0xff]   ;;  %v12294_v51 = vld [vmem:[%s15808_s19 + $0xc8] ss:$12 sps:$4 sm:$0xff]  }
0x2e9c   :  { %v10935_v52 = vpop.f32.mrf.mxu0  ;;  %11470 = vmatprep.subr.bf16.mxu0 %v12292_v15 }
0x2e9d   :  { %v6771_v31 = vadd.f32 %v10934_v50, %v10465_v47  ;;  %11471 = vmatpush3.bf16.msra.mxu0 %v12292_v15 }
0x2e9e   :  { %v10936_v2 = vpop.f32.mrf.mxu0 }
0x2e9f   :  { %v10937_v58 = vadd.f32 %v10936_v2, %v10935_v52  ;;  %v6785_v12 = vadd.f32 %v6771_v31, %v15084_v42 }
0x2ea0   :  { %v10938_v18 = vpop.f32.mrf.mxu0 }
0x2ea1   :  { %v6774_v8 = vadd.f32 %v10937_v58, %v10465_v47  ;;  %6791 = vadd.xlane.f32.xlu0 %v6785_v12 }
0x2ea2   :  { %v10939_v17 = vpop.f32.mrf.mxu0 }
0x2ea3   :  { %v10940_v9 = vadd.f32 %v10939_v17, %v10938_v18  ;;  %v6786_v37 = vadd.f32 %v6774_v8, %v15086_v43 }
0x2ea4   :  { %v10941_v62 = vpop.f32.mrf.mxu0 }
0x2ea5   :  { %v6779_v27 = vadd.f32 %v10940_v9, %v10465_v47  ;;  %6793 = vadd.xlane.f32.xlu1 %v6786_v37 }
0x2ea6   :  { %v10942_v14 = vpop.f32.mrf.mxu0 }
0x2ea7   :  { %v10943_v48 = vadd.f32 %v10942_v14, %v10941_v62  ;;  %v6787_v32 = vadd.f32 %v6779_v27, %v15092_v4 }
0x2ea9   :  { %v6782_v61 = vadd.f32 %v10943_v48, %v10465_v47  ;;  %6795 = vadd.xlane.f32.xlu0 %v6787_v32  ;;  %v12293_v47 = vld [vmem:[%s15808_s19 + $0xe0] ss:$12 sps:$4 sm:$0xff]   ;;  %v10482_v48 = vld [vmem:[#allocation52] ss:$0 sm:$0xff] }
0x2eaa   :  { %11472 = vmatprep.subr.bf16.mxu0 %v12293_v47 }
0x2eab   :  { %v6788_v42 = vadd.f32 %v6782_v61, %v15094_v29  ;;  %11473 = vmatpush3.bf16.msra.mxu0 %v12293_v47 }
0x2eac   :  { %11474 = vmatprep.subr.bf16.mxu0 %v12294_v51 }
0x2ead   :  { %6797 = vadd.xlane.f32.xlu1 %v6788_v42 }
0x2eaf   :  { %11475 = vmatpush3.bf16.msra.mxu0 %v12294_v51 }
0x2f2a   :  { %v6792_v54 = vpop.xlane.xlu0 %6791 }
0x2f2b   :  { %v6799_v40 = vmul.f32 0.0078125, %v6792_v54 }
0x2f2d   :  { %v15149_v36 = vsub.f32 %v6785_v12, %v6799_v40 }
0x2f2e   :  { %v6794_v43 = vpop.xlane.xlu1 %6793 }
0x2f2f   :  { %v6800_v6 = vmul.f32 0.0078125, %v6794_v43  ;;  %v6807_v63 = vmul.f32 %v15149_v36, %v15149_v36 }
0x2f31   :  { %v15153_v4 = vsub.f32 %v6786_v37, %v6800_v6  ;;  %6811 = vadd.xlane.f32.xlu0 %v6807_v63 }
0x2f32   :  { %v6796_v29 = vpop.xlane.xlu0 %6795 }
0x2f33   :  { %v6801_v53 = vmul.f32 0.0078125, %v6796_v29  ;;  %v6808_v56 = vmul.f32 %v15153_v4, %v15153_v4 }
0x2f35   :  { %v15157_v16 = vsub.f32 %v6787_v32, %v6801_v53  ;;  %6813 = vadd.xlane.f32.xlu1 %v6808_v56 }
0x2f36   :  { %v6798_v57 = vpop.xlane.xlu1 %6797 }
0x2f37   :  { %v6802_v25 = vmul.f32 0.0078125, %v6798_v57  ;;  %v6809_v0 = vmul.f32 %v15157_v16, %v15157_v16 }
0x2f39   :  { %v15161_v20 = vsub.f32 %v6788_v42, %v6802_v25  ;;  %6815 = vadd.xlane.f32.xlu0 %v6809_v0 }
0x2f3b   :  { %v6810_v13 = vmul.f32 %v15161_v20, %v15161_v20 }
0x2f3d   :  { %6817 = vadd.xlane.f32.xlu1 %v6810_v13 }
0x2fba   :  { %v6812_v50 = vpop.xlane.xlu0 %6811 }
0x2fbb   :  { %v6819_v52 = vmul.f32 0.0078125, %v6812_v50 }
0x2fbd   :  { %v6823_v31 = vadd.f32 1e-12, %v6819_v52 }
0x2fbe   :  { %v6814_v2 = vpop.xlane.xlu1 %6813 }
0x2fbf   :  { %12659 = vrsqrt.f32 %v6823_v31  ;;  %v6820_v58 = vmul.f32 0.0078125, %v6814_v2 }
0x2fc1   :  { %v6824_v12 = vadd.f32 1e-12, %v6820_v58 }
0x2fc2   :  { %v6816_v18 = vpop.xlane.xlu0 %6815 }
0x2fc3   :  { %12661 = vrsqrt.f32 %v6824_v12  ;;  %v6821_v8 = vmul.f32 0.0078125, %v6816_v18 }
0x2fc5   :  { %v6825_v17 = vadd.f32 1e-12, %v6821_v8 }
0x2fc6   :  { %v6818_v9 = vpop.xlane.xlu1 %6817 }
0x2fc7   :  { %12663 = vrsqrt.f32 %v6825_v17  ;;  %v6822_v37 = vmul.f32 0.0078125, %v6818_v9 }
0x2fc9   :  { %v6826_v62 = vadd.f32 1e-12, %v6822_v37 }
0x2fcb   :  { %12665 = vrsqrt.f32 %v6826_v62 }
0x2fcc   :  { %v12660_v27 = vpop.eup %12659 }
0x2fcd   :  { %v6831_v14 = vmul.f32 %v12660_v27, %v15149_v36 }
0x2fcf   :  { %v6841_v61 = vmul.f32 %v10482_v48, %v6831_v14 }
0x2fd0   :  { %v12662_v32 = vpop.eup %12661 }
0x2fd1   :  { %v6832_v42 = vmul.f32 %v12662_v32, %v15153_v4  ;;  %v15189_v40 = vadd.f32 %v10483_v1, %v6841_v61 }
0x2fd3   :  { %v6842_v55 = vmul.f32 %v10482_v48, %v6832_v42  ;;  %v15240_v42 = vld [vmem:[%s15809_s23 + $0x10] sm:$0xff] }
0x2fd4   :  { %v12664_v54 = vpop.eup %12663 }
0x2fd5   :  { %v15191_v43 = vadd.f32 %v10483_v1, %v6842_v55  ;;  %v6833_v6 = vmul.f32 %v12664_v54, %v15157_v16  ;;  %v6891_v16 = vld [vmem:[#allocation28 + $0x3] sm:$0x7] }
0x2fd6   :  { %v6896_v13 = vrot.slane %v6891_v16, %v14180_v38  ;;  %v6900_v24 = vrot.slane %v6891_v16, %v14174_v23  ;;  %v6904_v47 = vrot.slane %v6891_v16, %v14178_v34 }
0x2fd7   :  { %v6855_v63 = vpack.c.bf16 %v15191_v43, %v15189_v40  ;;  %v6843_v53 = vmul.f32 %v10482_v48, %v6833_v6 }
0x2fd8   :  { %v12666_v29 = vpop.eup %12665 }
0x2fd9   :  { %7069 = vmatmul.mubr.bf16.vlgmr.msra.gmra.mxu1 %v6855_v63  ;;  %11476 = vmatprep.mubr.bf16.mxu0 %v6855_v63  ;;  %v6834_v36 = vmul.f32 %v12666_v29, %v15161_v20  ;;  %v15198_v56 = vadd.f32 %v10483_v1, %v6843_v53  ;;  %v15245_v63 = vld [vmem:[%s15809_s23 + $0x8] sm:$0xff] }
0x2fda   :  { %7078 = vmatprep.mubr.bf16.mxu1 %v13723_v59 }
0x2fdb   :  { %v6844_v4 = vmul.f32 %v10482_v48, %v6834_v36  ;;  %v15236_v48 = vld [vmem:[%s15809_s23] sm:$0xff]  ;;  %v15249_v36 = vld [vmem:[%s15809_s23 + $0x18] sm:$0xff] }
0x2fdd   :  { %v15200_v57 = vadd.f32 %v10483_v1, %v6844_v4 }
0x2fdf   :  { %v6856_v25 = vpack.c.bf16 %v15200_v57, %v15198_v56 }
0x2fe1   :  { %7079 = vmatmul.mubr.bf16.gmra.mxu1 %v6856_v25  ;;  %11477 = vmatmul.mubr.bf16.vlgmr.msra.gmra.mxu0 %v6856_v25 }
0x3099   :  { %v7070_v0 = vpop.f32.mrf.mxu1 }
0x309a   :  { %v7071_v20 = vadd.f32 %v7070_v0, %v6896_v13 }
0x309b   :  { %v7072_v41 = vpop.f32.mrf.mxu1 }
0x309c   :  { %v7073_v44 = vadd.f32 %v7072_v41, %v6900_v24 }
0x309d   :  { %v7074_v21 = vpop.f32.mrf.mxu1 }
0x309e   :  { %v7075_v46 = vadd.f32 %v7074_v21, %v6896_v13 }
0x309f   :  { %v7076_v3 = vpop.f32.mrf.mxu1 }
0x30a0   :  { %v15205_v28 = vpack.c.bf16 %v7075_v46, %v7071_v20  ;;  %v7077_v60 = vadd.f32 %v7076_v3, %v6900_v24 }
0x30a1   :  { %v7080_v33 = vpop.f32.mrf.mxu1  ;;  %v11478_v30 = vpop.f32.mrf.mxu0 }
0x30a2   :  { %11484 = vmatprep.mubr.msk.bf16.mxu1 %vm1194_vm2, %v15205_v28  ;;  %v15212_v19 = vpack.c.bf16 %v7077_v60, %v7073_v44  ;;  %v7132_v50 = vadd.f32 %v11478_v30, %v6904_v47  ;;  %v7081_v12 = vadd.f32 %v7080_v33, %v6896_v13 }
0x30a3   :  { %v7082_v39 = vpop.f32.mrf.mxu1  ;;  %v7123_v49 = vpop.f32.mrf.mxu0 }
0x30a4   :  { %v7083_v10 = vadd.f32 %v7082_v39, %v6900_v24  ;;  %v7170_v31 = vsel %vm1194_vm2, %v15212_v19, 0  ;;  %v7124_v34 = vadd.f32 %v7123_v49, %v6904_v47 }
0x30a5   :  { %v7084_v26 = vpop.f32.mrf.mxu1  ;;  %v11479_v15 = vpop.f32.mrf.mxu0 }
0x30a6   :  { %v7135_v51 = vadd.f32 %v11479_v15, %v6904_v47  ;;  %v7085_v58 = vadd.f32 %v7084_v26, %v6896_v13 }
0x30a7   :  { %v7086_v45 = vpop.f32.mrf.mxu1  ;;  %v7126_v2 = vpop.f32.mrf.mxu0 }
0x30a8   :  { %v7087_v11 = vadd.f32 %v7086_v45, %v6900_v24  ;;  %v15221_v52 = vpack.c.bf16 %v7135_v51, %v7132_v50  ;;  %v7127_v18 = vadd.f32 %v7126_v2, %v6904_v47  ;;  %v15226_v8 = vpack.c.bf16 %v7085_v58, %v7081_v12 }
0x30aa   :  { %v15210_v5 = vpack.c.bf16 %v7087_v11, %v7083_v10  ;;  %v15228_v17 = vpack.c.bf16 %v7127_v18, %v7124_v34 }
0x30ac   :  { %11696 = vmatprep.subr.msk.bf16.mxu1 %vm1194_vm2, %v15210_v5  ;;  %v7173_v7 = vsel %vm1194_vm2, %v15210_v5, 0 }
0x30ad   :  { %11481 = vmatpush3.bf16.xpose.msra.mxu1 %v7173_v7 }
0x30ae   :  { %11697 = vmatprep.subr.msk.bf16.mxu1 %vm1194_vm2, %v15212_v19 }
0x30b5   :  { %11483 = vmatpush3.bf16.xpose.msra.mxu1 %v7170_v31 }
0x30b6   :  { %11488 = vmatprep.subr.bf16.mxu1 %v15221_v52 }
0x30bc   :  { %11485 = vmatmul.mubr.msk.bf16.vlgmr.msra.gmra.mxu1 %vm1194_vm2, %v15226_v8 }
0x30bd   :  { %11489 = vmatpush3.bf16.msra.mxu1 %v15221_v52 }
0x30be   :  { %11490 = vmatprep.subr.bf16.mxu1 %v15228_v17 }
0x30c1   :  { %11491 = vmatpush3.bf16.msra.mxu1 %v15228_v17 }
0x317c   :  { %v11486_v9 = vpop.f32.mrf.mxu1 }
0x317d   :  { %v7226_v62 = vmul.f32 0.17677669, %v11486_v9 }
0x317e   :  { %v7209_v37 = vpop.f32.mrf.mxu1 }
0x317f   :  { %v7224_v27 = vmul.f32 0.17677669, %v7209_v37  ;;  %v7230_v1 = vadd.f32 %v15240_v42, %v7226_v62 }
0x3180   :  { %v11487_v14 = vpop.f32.mrf.mxu1 }
0x3181   :  { %v7228_v32 = vadd.f32 %v15236_v48, %v7224_v27  ;;  %v7227_v55 = vmul.f32 0.17677669, %v11487_v14  ;;  %v7238_v4 = vsel %vm1194_vm2, %v7230_v1, -inf }
0x3182   :  { %v7212_v61 = vpop.f32.mrf.mxu1 }
0x3183   :  { %v7225_v54 = vmul.f32 0.17677669, %v7212_v61  ;;  %v7232_v6 = vsel %vm1194_vm2, %v7228_v32, -inf  ;;  %v7231_v53 = vadd.f32 %v15249_v36, %v7227_v55 }
0x3184   :  { %7233 = vmax.xlane.f32.xlu0 %v7232_v6 }
0x3185   :  { %v7229_v29 = vadd.f32 %v15245_v63, %v7225_v54  ;;  %v7241_v16 = vsel %vm1194_vm2, %v7231_v53, -inf }
0x3187   :  { %v7235_v25 = vsel %vm1194_vm2, %v7229_v29, -inf }
0x3188   :  { %7239 = vmax.xlane.f32.xlu0 %v7238_v4  ;;  %7236 = vmax.xlane.f32.xlu1 %v7235_v25 }
0x318c   :  { %7242 = vmax.xlane.f32.xlu1 %v7241_v16 }
0x320d   :  { %v7234_v0 = vpop.xlane.xlu0 %7233 }
0x320e   :  { %v7244_v13 = vsub.f32 %v7228_v32, %v7234_v0 }
0x3210   :  { %v7248_v3 = vmul.f32 1.442695, %v7244_v13 }
0x3211   :  { %v7240_v41 = vpop.xlane.xlu0 %7239  ;;  %v7237_v21 = vpop.xlane.xlu1 %7236 }
0x3212   :  { %v7246_v20 = vsub.f32 %v7230_v1, %v7240_v41  ;;  %v7245_v46 = vsub.f32 %v7229_v29, %v7237_v21 }
0x3214   :  { %v7252_v33 = vmul.f32 1.442695, %v7246_v20  ;;  %v7250_v39 = vmul.f32 1.442695, %v7245_v46 }
0x3215   :  { %v7243_v30 = vpop.xlane.xlu1 %7242 }
0x3216   :  { %12667 = vpow2.f32 %v7252_v33  ;;  %v7247_v26 = vsub.f32 %v7231_v53, %v7243_v30 }
0x3217   :  { %12669 = vpow2.f32 %v7250_v39 }
0x3218   :  { %12671 = vpow2.f32 %v7248_v3  ;;  %v7254_v24 = vmul.f32 1.442695, %v7247_v26 }
0x321a   :  { %12673 = vpow2.f32 %v7254_v24 }
0x3223   :  { %v12668_v45 = vpop.eup %12667 }
0x3224   :  { %v12670_v60 = vpop.eup %12669  ;;  %v7262_v10 = vsel %vm1194_vm2, %v12668_v45, 0.0 }
0x3225   :  { %v12672_v11 = vpop.eup %12671  ;;  %7263 = vadd.xlane.f32.xlu0 %v7262_v10  ;;  %v7259_v49 = vsel %vm1194_vm2, %v12670_v60, 0.0 }
0x3226   :  { %7260 = vadd.xlane.f32.xlu1 %v7259_v49  ;;  %v7256_v7 = vsel %vm1194_vm2, %v12672_v11, 0.0 }
0x3227   :  { %v12674_v44 = vpop.eup %12673 }
0x3228   :  { %v7265_v15 = vsel %vm1194_vm2, %v12674_v44, 0.0 }
0x3229   :  { %7257 = vadd.xlane.f32.xlu0 %v7256_v7 }
0x322a   :  { %7266 = vadd.xlane.f32.xlu1 %v7265_v15 }
0x323b   :  { %7341 = vrot.lane.b32.xlu1 %v15212_v19, %s13725_s1 }
0x323f   :  { %7335 = vrot.lane.b32.xlu1 %v15205_v28, %s13725_s1  ;;  %7343 = vrot.lane.b32.xlu0 %v15210_v5, %s13725_s1 }
0x3243   :  { %7337 = vrot.lane.b32.xlu0 %v15226_v8, %s13725_s1 }
0x32ae   :  { %v7264_v47 = vpop.xlane.xlu0 %7263 }
0x32af   :  { %v7261_v51 = vpop.xlane.xlu1 %7260 }
0x32b0   :  { %12675 = vrcp.f32 %v7261_v51 }
0x32b1   :  { %12677 = vrcp.f32 %v7264_v47 }
0x32b2   :  { %v7258_v50 = vpop.xlane.xlu0 %7257 }
0x32b3   :  { %12679 = vrcp.f32 %v7258_v50  ;;  %v7267_v31 = vpop.xlane.xlu1 %7266 }
0x32b4   :  { %12681 = vrcp.f32 %v7267_v31 }
0x32b6   :  { %v7344_v2 = vpop.permute.xlu0 %7343 }
0x32b7   :  { %11698 = vmatprep.subr.msk.bf16.mxu1 %vm1194_vm2, %v7344_v2  ;;  %v7342_v34 = vpop.permute.xlu1 %7341  ;;  %v7355_v55 = vsel %vm1194_vm2, %v7344_v2, 0 }
0x32b8   :  { %v7352_v54 = vsel %vm1194_vm2, %v7342_v34, 0 }
0x32ba   :  { %v7338_v6 = vpop.permute.xlu0 %7337 }
0x32bb   :  { %v7336_v1 = vpop.permute.xlu1 %7335 }
0x32bd   :  { %v12676_v58 = vpop.eup %12675 }
0x32be   :  { %v12678_v12 = vpop.eup %12677  ;;  %v7273_v62 = vmul.f32 %v12676_v58, %v12670_v60 }
0x32bf   :  { %v7274_v27 = vmul.f32 %v12678_v12, %v12668_v45 }
0x32c0   :  { %v12680_v18 = vpop.eup %12679 }
0x32c1   :  { %v12682_v9 = vpop.eup %12681  ;;  %v7272_v37 = vmul.f32 %v12680_v18, %v12672_v11 }
0x32c2   :  { %v7275_v14 = vmul.f32 %v12682_v9, %v12674_v44 }
0x32c3   :  { %v7276_v32 = vpack.c.bf16 %v7273_v62, %v7272_v37 }
0x32c4   :  { %v7277_v61 = vpack.c.bf16 %v7275_v14, %v7274_v27 }
0x32c5   :  { %11492 = vmatprep.mubr.msk.bf16.mxu1 %vm1194_vm2, %v7276_v32 }
0x32c6   :  { %11493 = vmatmul.mubr.msk.bf16.vlgmr.msra.gmra.mxu1 %vm1194_vm2, %v7277_v61 }
0x32c7   :  { %11497 = vmatpush3.bf16.xpose.msra.mxu1 %v7355_v55  ;;  %11500 = vmatprep.mubr.msk.bf16.mxu1 %vm1194_vm2, %v7336_v1 }
0x32c8   :  { %11699 = vmatprep.subr.msk.bf16.mxu1 %vm1194_vm2, %v7342_v34 }
0x32cf   :  { %11499 = vmatpush3.bf16.xpose.msra.mxu1 %v7352_v54 }
0x32d6   :  { %11501 = vmatmul.mubr.msk.bf16.vlgmr.msra.gmra.mxu1 %vm1194_vm2, %v7338_v6 }
0x3386   :  { %v15275_v29 = vpop.f32.mrf.mxu1 }
0x3388   :  { %v15277_v53 = vpop.f32.mrf.mxu1 }
0x338a   :  { %v15279_v4 = vpop.f32.mrf.mxu1 }
0x338c   :  { %v15281_v25 = vpop.f32.mrf.mxu1 }
0x3396   :  { %v11502_v16 = vpop.f32.mrf.mxu1 }
0x3397   :  { %v7408_v3 = vmul.f32 0.17677669, %v11502_v16 }
0x3398   :  { %v7391_v0 = vpop.f32.mrf.mxu1 }
0x3399   :  { %v7406_v13 = vmul.f32 0.17677669, %v7391_v0  ;;  %v7412_v24 = vadd.f32 %v15240_v42, %v7408_v3 }
0x339a   :  { %v11503_v41 = vpop.f32.mrf.mxu1 }
0x339b   :  { %v7410_v21 = vadd.f32 %v15236_v48, %v7406_v13  ;;  %v7409_v20 = vmul.f32 0.17677669, %v11503_v41  ;;  %v7420_v10 = vsel %vm1194_vm2, %v7412_v24, -inf }
0x339c   :  { %v7394_v46 = vpop.f32.mrf.mxu1 }
0x339d   :  { %v7413_v33 = vadd.f32 %v15249_v36, %v7409_v20  ;;  %v7407_v39 = vmul.f32 0.17677669, %v7394_v46  ;;  %v7414_v30 = vsel %vm1194_vm2, %v7410_v21, -inf }
0x339e   :  { %7415 = vmax.xlane.f32.xlu1 %v7414_v30 }
0x339f   :  { %v7411_v26 = vadd.f32 %v15245_v63, %v7407_v39  ;;  %v7423_v45 = vsel %vm1194_vm2, %v7413_v33, -inf }
0x33a1   :  { %v7417_v60 = vsel %vm1194_vm2, %v7411_v26, -inf }
0x33a2   :  { %7424 = vmax.xlane.f32.xlu1 %v7423_v45  ;;  %7418 = vmax.xlane.f32.xlu0 %v7417_v60 }
0x33a6   :  { %7421 = vmax.xlane.f32.xlu0 %v7420_v10 }
0x33b3   :  { %7462 = vrot.lane.b32.xlu1 %v15228_v17, %s13725_s1 }
0x3427   :  { %v7416_v11 = vpop.xlane.xlu1 %7415 }
0x3428   :  { %v7426_v47 = vsub.f32 %v7410_v21, %v7416_v11 }
0x342a   :  { %v7430_v58 = vmul.f32 1.442695, %v7426_v47 }
0x342b   :  { %v7425_v49 = vpop.xlane.xlu1 %7424  ;;  %v7419_v44 = vpop.xlane.xlu0 %7418 }
0x342c   :  { %v7429_v7 = vsub.f32 %v7413_v33, %v7425_v49  ;;  %v7427_v15 = vsub.f32 %v7411_v26, %v7419_v44 }
0x342e   :  { %v7436_v51 = vmul.f32 1.442695, %v7429_v7  ;;  %v7432_v50 = vmul.f32 1.442695, %v7427_v15 }
0x342f   :  { %v7422_v31 = vpop.xlane.xlu0 %7421  ;;  %v7463_v61 = vpop.permute.xlu1 %7462 }
0x3430   :  { %12683 = vpow2.f32 %v7436_v51  ;;  %v7428_v2 = vsub.f32 %v7412_v24, %v7422_v31 }
0x3431   :  { %12685 = vpow2.f32 %v7432_v50 }
0x3432   :  { %v7434_v12 = vmul.f32 1.442695, %v7428_v2 }
0x3434   :  { %12687 = vpow2.f32 %v7434_v12 }
0x3435   :  { %12689 = vpow2.f32 %v7430_v58 }
0x343d   :  { %v12684_v18 = vpop.eup %12683 }
0x343e   :  { %v7447_v34 = vsel %vm1194_vm2, %v12684_v18, 0.0  ;;  %v12686_v9 = vpop.eup %12685 }
0x343f   :  { %7448 = vadd.xlane.f32.xlu1 %v7447_v34  ;;  %v7441_v62 = vsel %vm1194_vm2, %v12686_v9, 0.0 }
0x3441   :  { %v12688_v37 = vpop.eup %12687 }
0x3442   :  { %v7444_v27 = vsel %vm1194_vm2, %v12688_v37, 0.0  ;;  %v12690_v14 = vpop.eup %12689 }
0x3443   :  { %7442 = vadd.xlane.f32.xlu1 %v7441_v62  ;;  %7445 = vadd.xlane.f32.xlu0 %v7444_v27  ;;  %v7438_v32 = vsel %vm1194_vm2, %v12690_v14, 0.0 }
0x3447   :  { %7439 = vadd.xlane.f32.xlu0 %v7438_v32 }
0x3454   :  { %7529 = vrot.lane.b32.xlu1 %v15210_v5, %s13683_s28 }
0x3458   :  { %7523 = vrot.lane.b32.xlu1 %v15205_v28, %s13683_s28 }
0x345d   :  { %7464 = vrot.lane.b32.xlu0 %v15221_v52, %s13725_s1 }
0x3461   :  { %7527 = vrot.lane.b32.xlu0 %v15212_v19, %s13683_s28 }
0x3465   :  { %7525 = vrot.lane.b32.xlu0 %v15226_v8, %s13683_s28 }
0x34c8   :  { %v7449_v1 = vpop.xlane.xlu1 %7448 }
0x34cc   :  { %v7443_v55 = vpop.xlane.xlu1 %7442  ;;  %v7446_v54 = vpop.xlane.xlu0 %7445 }
0x34cd   :  { %12691 = vrcp.f32 %v7446_v54 }
0x34ce   :  { %12693 = vrcp.f32 %v7443_v55 }
0x34cf   :  { %12695 = vrcp.f32 %v7449_v1 }
0x34d0   :  { %v7440_v6 = vpop.xlane.xlu0 %7439  ;;  %v7530_v0 = vpop.permute.xlu1 %7529 }
0x34d1   :  { %12697 = vrcp.f32 %v7440_v6  ;;  %v7541_v45 = vsel %vm1194_vm2, %v7530_v0, 0 }
0x34d4   :  { %v7465_v16 = vpop.permute.xlu0 %7464  ;;  %v7524_v24 = vpop.permute.xlu1 %7523 }
0x34d5   :  { %11504 = vmatprep.subr.bf16.mxu0 %v7465_v16 }
0x34d6   :  { %11505 = vmatpush3.bf16.msra.mxu0 %v7465_v16 }
0x34d7   :  { %11506 = vmatprep.subr.bf16.mxu0 %v7463_v61 }
0x34d8   :  { %v7528_v60 = vpop.permute.xlu0 %7527 }
0x34d9   :  { %v7538_v10 = vsel %vm1194_vm2, %v7528_v60, 0 }
0x34da   :  { %11507 = vmatpush3.bf16.msra.mxu0 %v7463_v61  ;;  %v12692_v13 = vpop.eup %12691 }
0x34db   :  { %11700 = vmatprep.subr.msk.bf16.mxu0 %vm1194_vm2, %v7530_v0  ;;  %v12694_v41 = vpop.eup %12693  ;;  %v7456_v46 = vmul.f32 %v12692_v13, %v12688_v37 }
0x34dc   :  { %v12696_v21 = vpop.eup %12695  ;;  %v7455_v33 = vmul.f32 %v12694_v41, %v12686_v9  ;;  %v7526_v11 = vpop.permute.xlu0 %7525 }
0x34dd   :  { %v7457_v39 = vmul.f32 %v12696_v21, %v12684_v18 }
0x34de   :  { %v12698_v20 = vpop.eup %12697 }
0x34df   :  { %v7454_v3 = vmul.f32 %v12698_v20, %v12690_v14  ;;  %v7459_v26 = vpack.c.bf16 %v7457_v39, %v7456_v46 }
0x34e1   :  { %v7458_v30 = vpack.c.bf16 %v7455_v33, %v7454_v3 }
0x34e3   :  { %11508 = vmatprep.mubr.msk.bf16.mxu0 %vm1194_vm2, %v7458_v30 }
0x34e4   :  { %11509 = vmatmul.mubr.msk.bf16.vlgmr.msra.gmra.mxu0 %vm1194_vm2, %v7459_v26 }
0x34e5   :  { %11513 = vmatpush3.bf16.xpose.msra.mxu0 %v7541_v45  ;;  %11516 = vmatprep.mubr.msk.bf16.mxu0 %vm1194_vm2, %v7524_v24 }
0x34e6   :  { %11701 = vmatprep.subr.msk.bf16.mxu0 %vm1194_vm2, %v7528_v60 }
0x34ed   :  { %11515 = vmatpush3.bf16.xpose.msra.mxu0 %v7538_v10 }
0x34f4   :  { %11517 = vmatmul.mubr.msk.bf16.vlgmr.msra.gmra.mxu0 %vm1194_vm2, %v7526_v11 }
0x35a4   :  { %v15315_v49 = vpop.f32.mrf.mxu0 }
0x35a6   :  { %v15317_v44 = vpop.f32.mrf.mxu0 }
0x35a8   :  { %v15319_v7 = vpop.f32.mrf.mxu0 }
0x35a9   :  { %v11908_v15 = vpack.i.bf16 %v15319_v7, %v15315_v49 }
0x35aa   :  { %v15323_v47 = vpop.f32.mrf.mxu0 }
0x35ab   :  { %v11903_v51 = vpack.i.bf16 %v15323_v47, %v15317_v44 }
0x35b4   :  { %v11518_v50 = vpop.f32.mrf.mxu0 }
0x35b5   :  { %v7594_v9 = vmul.f32 0.17677669, %v11518_v50 }
0x35b6   :  { %v7577_v31 = vpop.f32.mrf.mxu0 }
0x35b7   :  { %v7592_v2 = vmul.f32 0.17677669, %v7577_v31  ;;  %v7598_v32 = vadd.f32 %v15240_v42, %v7594_v9 }
0x35b8   :  { %v11519_v58 = vpop.f32.mrf.mxu0 }
0x35b9   :  { %v7596_v12 = vadd.f32 %v15236_v48, %v7592_v2  ;;  %v7595_v18 = vmul.f32 0.17677669, %v11519_v58  ;;  %v7606_v55 = vsel %vm1194_vm2, %v7598_v32, -inf }
0x35ba   :  { %v7580_v34 = vpop.f32.mrf.mxu0 }
0x35bb   :  { %v7599_v37 = vadd.f32 %v15249_v36, %v7595_v18  ;;  %v7593_v62 = vmul.f32 0.17677669, %v7580_v34  ;;  %v7600_v27 = vsel %vm1194_vm2, %v7596_v12, -inf }
0x35bc   :  { %7601 = vmax.xlane.f32.xlu1 %v7600_v27 }
0x35bd   :  { %v7597_v14 = vadd.f32 %v15245_v63, %v7593_v62  ;;  %v7609_v61 = vsel %vm1194_vm2, %v7599_v37, -inf }
0x35bf   :  { %v7603_v1 = vsel %vm1194_vm2, %v7597_v14, -inf }
0x35c0   :  { %7610 = vmax.xlane.f32.xlu1 %v7609_v61  ;;  %7604 = vmax.xlane.f32.xlu0 %v7603_v1 }
0x35c4   :  { %7607 = vmax.xlane.f32.xlu0 %v7606_v55 }
0x35d1   :  { %7646 = vrot.lane.b32.xlu1 %v15228_v17, %s13683_s28 }
0x3645   :  { %v7602_v54 = vpop.xlane.xlu1 %7601 }
0x3646   :  { %v7612_v41 = vsub.f32 %v7596_v12, %v7602_v54 }
0x3648   :  { %v7616_v33 = vmul.f32 1.442695, %v7612_v41 }
0x3649   :  { %v7611_v6 = vpop.xlane.xlu1 %7610  ;;  %v7605_v16 = vpop.xlane.xlu0 %7604 }
0x364a   :  { %v7615_v0 = vsub.f32 %v7599_v37, %v7611_v6  ;;  %v7613_v13 = vsub.f32 %v7597_v14, %v7605_v16 }
0x364c   :  { %v7622_v21 = vmul.f32 1.442695, %v7615_v0  ;;  %v7618_v20 = vmul.f32 1.442695, %v7613_v13 }
0x364d   :  { %v7608_v46 = vpop.xlane.xlu0 %7607  ;;  %v7647_v31 = vpop.permute.xlu1 %7646 }
0x364e   :  { %12699 = vpow2.f32 %v7622_v21  ;;  %v7614_v3 = vsub.f32 %v7598_v32, %v7608_v46 }
0x364f   :  { %12701 = vpow2.f32 %v7618_v20 }
0x3650   :  { %v7620_v39 = vmul.f32 1.442695, %v7614_v3 }
0x3652   :  { %12703 = vpow2.f32 %v7620_v39 }
0x3653   :  { %12705 = vpow2.f32 %v7616_v33 }
0x365b   :  { %v12700_v30 = vpop.eup %12699 }
0x365c   :  { %v7633_v26 = vsel %vm1194_vm2, %v12700_v30, 0.0  ;;  %v12702_v24 = vpop.eup %12701 }
0x365d   :  { %7634 = vadd.xlane.f32.xlu1 %v7633_v26  ;;  %v7627_v60 = vsel %vm1194_vm2, %v12702_v24, 0.0 }
0x365f   :  { %v12704_v45 = vpop.eup %12703 }
0x3660   :  { %v7630_v10 = vsel %vm1194_vm2, %v12704_v45, 0.0  ;;  %v12706_v11 = vpop.eup %12705 }
0x3661   :  { %7628 = vadd.xlane.f32.xlu1 %v7627_v60  ;;  %7631 = vadd.xlane.f32.xlu0 %v7630_v10  ;;  %v7624_v50 = vsel %vm1194_vm2, %v12706_v11, 0.0 }
0x3665   :  { %7625 = vadd.xlane.f32.xlu0 %v7624_v50 }
0x3672   :  { %7713 = vrot.lane.b32.xlu1 %v15210_v5, %s13714_s30 }
0x3676   :  { %7707 = vrot.lane.b32.xlu1 %v15205_v28, %s13714_s30 }
0x367b   :  { %7648 = vrot.lane.b32.xlu0 %v15221_v52, %s13683_s28 }
0x367f   :  { %7711 = vrot.lane.b32.xlu0 %v15212_v19, %s13714_s30 }
0x3683   :  { %7709 = vrot.lane.b32.xlu0 %v15226_v8, %s13714_s30 }
0x36e6   :  { %v7635_v2 = vpop.xlane.xlu1 %7634 }
0x36ea   :  { %v7629_v58 = vpop.xlane.xlu1 %7628  ;;  %v7632_v12 = vpop.xlane.xlu0 %7631 }
0x36eb   :  { %12707 = vrcp.f32 %v7632_v12 }
0x36ec   :  { %12709 = vrcp.f32 %v7629_v58 }
0x36ed   :  { %12711 = vrcp.f32 %v7635_v2 }
0x36ee   :  { %v7626_v5 = vpop.xlane.xlu0 %7625  ;;  %v7714_v28 = vpop.permute.xlu1 %7713 }
0x36ef   :  { %12713 = vrcp.f32 %v7626_v5  ;;  %v7725_v1 = vsel %vm1194_vm2, %v7714_v28, 0 }
0x36f2   :  { %v7649_v18 = vpop.permute.xlu0 %7648  ;;  %v7708_v55 = vpop.permute.xlu1 %7707 }
0x36f3   :  { %11520 = vmatprep.subr.bf16.mxu1 %v7649_v18 }
0x36f4   :  { %11521 = vmatpush3.bf16.msra.mxu1 %v7649_v18 }
0x36f5   :  { %11522 = vmatprep.subr.bf16.mxu1 %v7647_v31 }
0x36f6   :  { %v7712_v54 = vpop.permute.xlu0 %7711 }
0x36f7   :  { %v7722_v6 = vsel %vm1194_vm2, %v7712_v54, 0 }
0x36f8   :  { %11523 = vmatpush3.bf16.msra.mxu1 %v7647_v31  ;;  %v12708_v34 = vpop.eup %12707 }
0x36f9   :  { %11702 = vmatprep.subr.msk.bf16.mxu1 %vm1194_vm2, %v7714_v28  ;;  %v12710_v19 = vpop.eup %12709  ;;  %v7642_v37 = vmul.f32 %v12708_v34, %v12704_v45 }
0x36fa   :  { %v12712_v8 = vpop.eup %12711  ;;  %v7641_v27 = vmul.f32 %v12710_v19, %v12702_v24  ;;  %v7710_v16 = vpop.permute.xlu0 %7709 }
0x36fb   :  { %v7643_v14 = vmul.f32 %v12712_v8, %v12700_v30 }
0x36fc   :  { %v12714_v9 = vpop.eup %12713 }
0x36fd   :  { %v7640_v62 = vmul.f32 %v12714_v9, %v12706_v11  ;;  %v7645_v61 = vpack.c.bf16 %v7643_v14, %v7642_v37 }
0x36ff   :  { %v7644_v32 = vpack.c.bf16 %v7641_v27, %v7640_v62 }
0x3701   :  { %11524 = vmatprep.mubr.msk.bf16.mxu1 %vm1194_vm2, %v7644_v32 }
0x3702   :  { %11525 = vmatmul.mubr.msk.bf16.vlgmr.msra.gmra.mxu1 %vm1194_vm2, %v7645_v61 }
0x3703   :  { %11529 = vmatpush3.bf16.xpose.msra.mxu1 %v7725_v1  ;;  %11532 = vmatprep.mubr.msk.bf16.mxu1 %vm1194_vm2, %v7708_v55 }
0x3704   :  { %11703 = vmatprep.subr.msk.bf16.mxu1 %vm1194_vm2, %v7712_v54 }
0x370b   :  { %11531 = vmatpush3.bf16.xpose.msra.mxu1 %v7722_v6 }
0x3712   :  { %11533 = vmatmul.mubr.msk.bf16.vlgmr.msra.gmra.mxu1 %vm1194_vm2, %v7710_v16 }
0x37c2   :  { %v11526_v0 = vpop.f32.mrf.mxu1 }
0x37c4   :  { %v7692_v13 = vpop.f32.mrf.mxu1 }
0x37c6   :  { %v11527_v41 = vpop.f32.mrf.mxu1 }
0x37c7   :  { %v11918_v21 = vpack.i.bf16 %v11527_v41, %v11526_v0 }
0x37c8   :  { %v7695_v20 = vpop.f32.mrf.mxu1 }
0x37c9   :  { %v11913_v46 = vpack.i.bf16 %v7695_v20, %v7692_v13 }
0x37d2   :  { %v11534_v3 = vpop.f32.mrf.mxu1 }
0x37d3   :  { %v7778_v60 = vmul.f32 0.17677669, %v11534_v3 }
0x37d4   :  { %v7761_v33 = vpop.f32.mrf.mxu1 }
0x37d5   :  { %v7776_v39 = vmul.f32 0.17677669, %v7761_v33  ;;  %v7782_v2 = vadd.f32 %v15240_v42, %v7778_v60  ;;  %v12295_v33 = vld [vmem:[#allocation30 + $0x78] sm:$0xff]   ;;  %v12301_v60 = vld [vmem:[#allocation30 + $0x48] sm:$0xff]  }
0x37d6   :  { %v11535_v30 = vpop.f32.mrf.mxu1 }
0x37d7   :  { %v7780_v26 = vadd.f32 %v15236_v48, %v7776_v39  ;;  %v7779_v24 = vmul.f32 0.17677669, %v11535_v30  ;;  %v7790_v48 = vsel %vm1194_vm2, %v7782_v2, -inf  ;;  %v12296_v39 = vld [vmem:[#allocation30 + $0x70] sm:$0xff]   ;;  %v12297_v30 = vld [vmem:[#allocation30 + $0x68] sm:$0xff]  }
0x37d8   :  { %v7764_v45 = vpop.f32.mrf.mxu1 }
0x37d9   :  { %v7783_v10 = vadd.f32 %v15249_v36, %v7779_v24  ;;  %v7777_v11 = vmul.f32 0.17677669, %v7764_v45  ;;  %v7784_v50 = vsel %vm1194_vm2, %v7780_v26, -inf  ;;  %v12299_v24 = vld [vmem:[#allocation30 + $0x58] sm:$0xff]   ;;  %v12300_v45 = vld [vmem:[#allocation30 + $0x50] sm:$0xff]  }
0x37da   :  { %7785 = vmax.xlane.f32.xlu1 %v7784_v50  ;;  %v12305_v50 = vld [vmem:[#allocation37 + $0xf4] ss:$8 sps:$4 sm:$0xff]  }
0x37db   :  { %v7781_v31 = vadd.f32 %v15245_v63, %v7777_v11  ;;  %v7793_v58 = vsel %vm1194_vm2, %v7783_v10, -inf }
0x37dd   :  { %v7787_v12 = vsel %vm1194_vm2, %v7781_v31, -inf }
0x37de   :  { %7794 = vmax.xlane.f32.xlu1 %v7793_v58  ;;  %7788 = vmax.xlane.f32.xlu0 %v7787_v12 }
0x37e2   :  { %7791 = vmax.xlane.f32.xlu0 %v7790_v48 }
0x3863   :  { %v7786_v5 = vpop.xlane.xlu1 %7785 }
0x3864   :  { %v7796_v19 = vsub.f32 %v7780_v26, %v7786_v5  ;;  %v12298_v26 = vld [vmem:[#allocation30 + $0x60] sm:$0xff]  }
0x3866   :  { %v7800_v37 = vmul.f32 1.442695, %v7796_v19 }
0x3867   :  { %v7795_v18 = vpop.xlane.xlu1 %7794  ;;  %v7789_v36 = vpop.xlane.xlu0 %7788 }
0x3868   :  { %v7799_v28 = vsub.f32 %v7783_v10, %v7795_v18  ;;  %v7797_v34 = vsub.f32 %v7781_v31, %v7789_v36  ;;  %v12302_v10 = vld [vmem:[#allocation30 + $0x40] sm:$0xff]  }
0x386a   :  { %v7806_v8 = vmul.f32 1.442695, %v7799_v28  ;;  %v7802_v9 = vmul.f32 1.442695, %v7797_v34 }
0x386b   :  { %v7792_v63 = vpop.xlane.xlu0 %7791 }
0x386c   :  { %12715 = vpow2.f32 %v7806_v8  ;;  %v7798_v42 = vsub.f32 %v7782_v2, %v7792_v63 }
0x386d   :  { %12717 = vpow2.f32 %v7802_v9 }
0x386e   :  { %v7804_v62 = vmul.f32 1.442695, %v7798_v42 }
0x3870   :  { %12719 = vpow2.f32 %v7804_v62 }
0x3871   :  { %12721 = vpow2.f32 %v7800_v37 }
0x3879   :  { %v12716_v27 = vpop.eup %12715 }
0x387a   :  { %v7817_v14 = vsel %vm1194_vm2, %v12716_v27, 0.0  ;;  %v12718_v32 = vpop.eup %12717 }
0x387b   :  { %7818 = vadd.xlane.f32.xlu1 %v7817_v14  ;;  %v7811_v1 = vsel %vm1194_vm2, %v12718_v32, 0.0 }
0x387d   :  { %v12720_v61 = vpop.eup %12719 }
0x387e   :  { %v7814_v55 = vsel %vm1194_vm2, %v12720_v61, 0.0  ;;  %v12722_v54 = vpop.eup %12721 }
0x387f   :  { %7812 = vadd.xlane.f32.xlu1 %v7811_v1  ;;  %7815 = vadd.xlane.f32.xlu0 %v7814_v55  ;;  %v7808_v6 = vsel %vm1194_vm2, %v12722_v54, 0.0 }
0x3883   :  { %7809 = vadd.xlane.f32.xlu0 %v7808_v6 }
0x3890   :  { %7830 = vrot.lane.b32.xlu1 %v15228_v17, %s13714_s30 }
0x3894   :  { %11904 = vrot.lane.b32.xlu1 %v11903_v51, %s13714_s30 }
0x3898   :  { %11914 = vrot.lane.b32.xlu1 %v11913_v46, %s13683_s28 }
0x3899   :  { %7832 = vrot.lane.b32.xlu0 %v15221_v52, %s13714_s30 }
0x389d   :  { %11909 = vrot.lane.b32.xlu0 %v11908_v15, %s13714_s30 }
0x38a1   :  { %11919 = vrot.lane.b32.xlu0 %v11918_v21, %s13683_s28 }
0x3904   :  { %v7819_v16 = vpop.xlane.xlu1 %7818 }
0x3908   :  { %v7813_v0 = vpop.xlane.xlu1 %7812  ;;  %v7816_v17 = vpop.xlane.xlu0 %7815 }
0x3909   :  { %12723 = vrcp.f32 %v7816_v17 }
0x390a   :  { %12725 = vrcp.f32 %v7813_v0 }
0x390b   :  { %12727 = vrcp.f32 %v7819_v16 }
0x390c   :  { %v7810_v44 = vpop.xlane.xlu0 %7809  ;;  %v7831_v51 = vpop.permute.xlu1 %7830 }
0x390d   :  { %12729 = vrcp.f32 %v7810_v44 }
0x3910   :  { %v7833_v47 = vpop.permute.xlu0 %7832  ;;  %v11905_v18 = vpop.permute.xlu1 %11904 }
0x3911   :  { %11536 = vmatprep.subr.bf16.mxu0 %v7833_v47  ;;  %v11907_v34 = vunpack.i.h.bf16 %v11905_v18  ;;  %v11906_v19 = vunpack.i.l.bf16 %v11905_v18 }
0x3912   :  { %11537 = vmatpush3.bf16.msra.mxu0 %v7833_v47 }
0x3913   :  { %11538 = vmatprep.subr.bf16.mxu0 %v7831_v51  ;;  %v7939_v1 = vsel %vm1194_vm2, %v15277_v53, %v11906_v19 }
0x3914   :  { %v11910_v5 = vpop.permute.xlu0 %11909  ;;  %v11915_v28 = vpop.permute.xlu1 %11914 }
0x3915   :  { %v11912_v8 = vunpack.i.h.bf16 %v11910_v5  ;;  %v11911_v9 = vunpack.i.l.bf16 %v11910_v5  ;;  %v11917_v37 = vunpack.i.h.bf16 %v11915_v28  ;;  %v11916_v62 = vunpack.i.l.bf16 %v11915_v28  ;;  %v10556_v5 = vld [vmem:[#allocation31 + $0x1] ss:$0 sm:$0xff] }
0x3916   :  { %11539 = vmatpush3.bf16.msra.mxu0 %v7831_v51  ;;  %v12724_v52 = vpop.eup %12723 }
0x3917   :  { %v12726_v13 = vpop.eup %12725  ;;  %v7826_v15 = vmul.f32 %v12724_v52, %v12720_v61  ;;  %11544 = vmatprep.subr.bf16.mxu0 %v12295_v33  ;;  %v7940_v61 = vsel %vm1194_vm2, %v15281_v25, %v11907_v34  ;;  %v7942_v55 = vsel %vm1194_vm2, %v15279_v4, %v11912_v8  ;;  %v7943_v47 = vsel %vm1729_vm6, %v7939_v1, %v11916_v62 }
0x3918   :  { %v12728_v49 = vpop.eup %12727  ;;  %v7825_v21 = vmul.f32 %v12726_v13, %v12718_v32  ;;  %v11920_v36 = vpop.permute.xlu0 %11919  ;;  %v7944_v25 = vsel %vm1729_vm6, %v7940_v61, %v11917_v37  ;;  %v12303_v13 = vld [vmem:[#allocation37 + $0xf0] ss:$8 sps:$4 sm:$0xff]  }
0x3919   :  { %v7827_v20 = vmul.f32 %v12728_v49, %v12716_v27  ;;  %v11922_v63 = vunpack.i.h.bf16 %v11920_v36  ;;  %v11921_v42 = vunpack.i.l.bf16 %v11920_v36 }
0x391a   :  { %v12730_v7 = vpop.eup %12729 }
0x391b   :  { %v7824_v41 = vmul.f32 %v12730_v7, %v12722_v54  ;;  %v7829_v3 = vpack.c.bf16 %v7827_v20, %v7826_v15  ;;  %v7941_v54 = vsel %vm1194_vm2, %v15275_v29, %v11911_v9  ;;  %v7946_v0 = vsel %vm1729_vm6, %v7942_v55, %v11922_v63  ;;  %v12308_v7 = vld [vmem:[#allocation37 + $0xe4] ss:$8 sps:$4 sm:$0xff]   ;;  %v12306_v15 = vld [vmem:[#allocation37 + $0xe0] ss:$8 sps:$4 sm:$0xff]  }
0x391c   :  { %v7945_v16 = vsel %vm1729_vm6, %v7941_v54, %v11921_v42  ;;  %v12314_v20 = vld [vmem:[#allocation37 + $0xc4] ss:$8 sps:$4 sm:$0xff]  }
0x391d   :  { %v7828_v46 = vpack.c.bf16 %v7825_v21, %v7824_v41  ;;  %v12311_v41 = vld [vmem:[#allocation37 + $0xd4] ss:$8 sps:$4 sm:$0xff]   ;;  %v12309_v21 = vld [vmem:[#allocation37 + $0xd0] ss:$8 sps:$4 sm:$0xff]  }
0x391f   :  { %11540 = vmatprep.mubr.msk.bf16.mxu0 %vm1194_vm2, %v7828_v46  ;;  %v12312_v46 = vld [vmem:[#allocation37 + $0xc0] ss:$8 sps:$4 sm:$0xff]  }
0x3920   :  { %11541 = vmatmul.mubr.msk.bf16.vlgmr.msra.gmra.mxu0 %vm1194_vm2, %v7829_v3  ;;  %v12317_v3 = vld [vmem:[#allocation37 + $0xb4] ss:$8 sps:$4 sm:$0xff]  }
0x3921   :  { %11545 = vmatpush3.bf16.msra.mxu0 %v12295_v33  ;;  %v12315_v33 = vld [vmem:[#allocation37 + $0xb0] ss:$8 sps:$4 sm:$0xff]  }
0x3922   :  { %11546 = vmatprep.subr.bf16.mxu0 %v12296_v39 }
0x3925   :  { %11547 = vmatpush3.bf16.msra.mxu0 %v12296_v39  ;;  %v12320_v39 = vld [vmem:[#allocation37 + $0xa4] ss:$8 sps:$4 sm:$0xff]  }
0x3926   :  { %11548 = vmatprep.subr.bf16.mxu0 %v12297_v30 }
0x3929   :  { %11549 = vmatpush3.bf16.msra.mxu0 %v12297_v30  ;;  %v12318_v30 = vld [vmem:[#allocation37 + $0xa0] ss:$8 sps:$4 sm:$0xff]  }
0x392a   :  { %11550 = vmatprep.subr.bf16.mxu0 %v12298_v26 }
0x392d   :  { %11551 = vmatpush3.bf16.msra.mxu0 %v12298_v26  ;;  %v12323_v26 = vld [vmem:[#allocation37 + $0x94] ss:$8 sps:$4 sm:$0xff]  }
0x392e   :  { %11552 = vmatprep.subr.bf16.mxu0 %v12299_v24 }
0x3931   :  { %11553 = vmatpush3.bf16.msra.mxu0 %v12299_v24  ;;  %v12321_v24 = vld [vmem:[#allocation37 + $0x90] ss:$8 sps:$4 sm:$0xff]  }
0x3932   :  { %11554 = vmatprep.subr.bf16.mxu0 %v12300_v45 }
0x3935   :  { %11555 = vmatpush3.bf16.msra.mxu0 %v12300_v45  ;;  %v12326_v45 = vld [vmem:[#allocation37 + $0x84] ss:$8 sps:$4 sm:$0xff]  }
0x3936   :  { %11556 = vmatprep.subr.bf16.mxu0 %v12301_v60 }
0x3939   :  { %11557 = vmatpush3.bf16.msra.mxu0 %v12301_v60  ;;  %v12324_v60 = vld [vmem:[#allocation37 + $0x80] ss:$8 sps:$4 sm:$0xff]  }
0x393a   :  { %11558 = vmatprep.subr.bf16.mxu0 %v12302_v10 }
0x393d   :  { %11559 = vmatpush3.bf16.msra.mxu0 %v12302_v10  ;;  %v12327_v10 = vld [vmem:[%s15810_s26 + $0x78] sm:$0xff]  }
0x393e   :  { %8362 = vmatprep.subr.bf16.mxu0 %v12305_v50  ;;  %11564 = vmatprep.subr.bf16.mxu1 %v12327_v10  ;;  %v12329_v50 = vld [vmem:[%s15810_s26 + $0x68] sm:$0xff]  }
0x393f   :  { %11565 = vmatpush3.bf16.msra.mxu1 %v12327_v10 }
0x39e0   :  { %v11542_v11 = vpop.f32.mrf.mxu0 }
0x39e2   :  { %v7876_v31 = vpop.f32.mrf.mxu0 }
0x39e4   :  { %v11543_v2 = vpop.f32.mrf.mxu0 }
0x39e5   :  { %v11928_v58 = vpack.i.bf16 %v11543_v2, %v11542_v11  ;;  %v12328_v11 = vld [vmem:[%s15810_s26 + $0x70] sm:$0xff]   ;;  %v12331_v2 = vld [vmem:[%s15810_s26 + $0x58] sm:$0xff]  }
0x39e6   :  { %v7879_v12 = vpop.f32.mrf.mxu0  ;;  %11566 = vmatprep.subr.bf16.mxu1 %v12328_v11 }
0x39e7   :  { %v11923_v48 = vpack.i.bf16 %v7879_v12, %v7876_v31  ;;  %11929 = vrot.lane.b32.xlu0 %v11928_v58, %s13725_s1  ;;  %11567 = vmatpush3.bf16.msra.mxu1 %v12328_v11  ;;  %v12330_v31 = vld [vmem:[%s15810_s26 + $0x60] sm:$0xff]   ;;  %v12332_v58 = vld [vmem:[%s15810_s26 + $0x50] sm:$0xff]  }
0x39e8   :  { %11568 = vmatprep.subr.bf16.mxu1 %v12329_v50  ;;  %v12334_v12 = vld [vmem:[%s15810_s26 + $0x40] sm:$0xff]  }
0x39e9   :  { %11924 = vrot.lane.b32.xlu1 %v11923_v48, %s13725_s1 }
0x39eb   :  { %11569 = vmatpush3.bf16.msra.mxu1 %v12329_v50 }
0x39ec   :  { %11570 = vmatprep.subr.bf16.mxu1 %v12330_v31 }
0x39ef   :  { %11571 = vmatpush3.bf16.msra.mxu1 %v12330_v31 }
0x39f0   :  { %11572 = vmatprep.subr.bf16.mxu1 %v12331_v2 }
0x39f3   :  { %11573 = vmatpush3.bf16.msra.mxu1 %v12331_v2  ;;  %v10565_v2 = vld [vmem:[#allocation33 + $0x1] ss:$0 sm:$0xff] }
0x39f4   :  { %11574 = vmatprep.subr.bf16.mxu1 %v12332_v58 }
0x39f7   :  { %11575 = vmatpush3.bf16.msra.mxu1 %v12332_v58 }
0x3a59   :  { %v11930_v27 = vpop.permute.xlu0 %11929 }
0x3a5a   :  { %v11932_v14 = vunpack.i.h.bf16 %v11930_v27  ;;  %v11931_v32 = vunpack.i.l.bf16 %v11930_v27  ;;  %v8270_v27 = vld [vmem:[#allocation39 + $0x2] sm:$0x3] }
0x3a5b   :  { %v11925_v6 = vpop.permute.xlu1 %11924 }
0x3a5c   :  { %v11927_v17 = vunpack.i.h.bf16 %v11925_v6  ;;  %v11926_v44 = vunpack.i.l.bf16 %v11925_v6  ;;  %v7949_v51 = vsel %vm1732_vm7, %v7945_v16, %v11931_v32  ;;  %v7950_v53 = vsel %vm1732_vm7, %v7946_v0, %v11932_v14 }
0x3a5d   :  { %v7952_v49 = vpack.c.bf16 %v7950_v53, %v7949_v51  ;;  %v8279_v14 = vrot.slane %v8270_v27, %v14174_v23 }
0x3a5e   :  { %v7947_v4 = vsel %vm1732_vm7, %v7943_v47, %v11926_v44  ;;  %v7948_v52 = vsel %vm1732_vm7, %v7944_v25, %v11927_v17 }
0x3a5f   :  { %v7951_v29 = vpack.c.bf16 %v7948_v52, %v7947_v4 }
0x3a61   :  { %11560 = vmatprep.mubr.bf16.mxu0 %v7951_v29 }
0x3a62   :  { %11561 = vmatmul.mubr.bf16.vlgmr.msra.gmra.mxu0 %v7952_v49 }
0x3a63   :  { %8363 = vmatpush1.bf16.msra.mxu0 %v12303_v13  ;;  %8394 = vmatprep.mubr.bf16.mxu0 %v13723_v59 }
0x3a64   :  { %8364 = vmatprep.subr.bf16.mxu0 %v12308_v7 }
0x3a67   :  { %8365 = vmatpush1.bf16.msra.mxu0 %v12306_v15 }
0x3a68   :  { %8366 = vmatprep.subr.bf16.mxu0 %v12311_v41 }
0x3a6b   :  { %8367 = vmatpush1.bf16.msra.mxu0 %v12309_v21 }
0x3a6c   :  { %8368 = vmatprep.subr.bf16.mxu0 %v12314_v20 }
0x3a6f   :  { %8369 = vmatpush1.bf16.msra.mxu0 %v12312_v46 }
0x3a70   :  { %8370 = vmatprep.subr.bf16.mxu0 %v12317_v3 }
0x3a73   :  { %8371 = vmatpush1.bf16.msra.mxu0 %v12315_v33 }
0x3a74   :  { %8372 = vmatprep.subr.bf16.mxu0 %v12320_v39 }
0x3a77   :  { %8373 = vmatpush1.bf16.msra.mxu0 %v12318_v30 }
0x3a78   :  { %8374 = vmatprep.subr.bf16.mxu0 %v12323_v26 }
0x3a7b   :  { %8375 = vmatpush1.bf16.msra.mxu0 %v12321_v24 }
0x3a7c   :  { %8376 = vmatprep.subr.bf16.mxu0 %v12326_v45 }
0x3a7f   :  { %8377 = vmatpush1.bf16.msra.mxu0 %v12324_v60 }
0x3a82   :  { %8395 = vmatmul.mubr.bf16.vlgmr.msra.gmra.mxu0 %v14839_v22  ;;  %v12333_v22 = vld [vmem:[%s15810_s26 + $0x48] sm:$0xff]  }
0x3a83   :  { %11576 = vmatprep.subr.bf16.mxu1 %v12333_v22 }
0x3a84   :  { %11577 = vmatpush3.bf16.msra.mxu1 %v12333_v22 }
0x3a85   :  { %11578 = vmatprep.subr.bf16.mxu1 %v12334_v12 }
0x3a88   :  { %11579 = vmatpush3.bf16.msra.mxu1 %v12334_v12 }
0x3b22   :  { %v11562_v48 = vpop.f32.mrf.mxu0 }
0x3b23   :  { %v8050_v63 = vadd.f32 %v11562_v48, %v10556_v5  ;;  %v10566_v48 = vld [vmem:[#allocation34 + $0x1] ss:$0 sm:$0xff] }
0x3b24   :  { %v8041_v18 = vpop.f32.mrf.mxu0 }
0x3b25   :  { %v8042_v36 = vadd.f32 %v10556_v5, %v8041_v18  ;;  %v8058_v62 = vadd.f32 %v8050_v63, %v15198_v56 }
0x3b26   :  { %v11563_v28 = vpop.f32.mrf.mxu0 }
0x3b27   :  { %v8056_v34 = vadd.f32 %v8042_v36, %v15189_v40  ;;  %v8053_v19 = vadd.f32 %v11563_v28, %v10556_v5  ;;  %v8275_v40 = vrot.slane %v8270_v27, %v14180_v38 }
0x3b28   :  { %v8044_v8 = vpop.f32.mrf.mxu0 }
0x3b29   :  { %v8045_v9 = vadd.f32 %v10556_v5, %v8044_v8  ;;  %8064 = vadd.xlane.f32.xlu1 %v8056_v34  ;;  %v8059_v42 = vadd.f32 %v8053_v19, %v15200_v57 }
0x3b2b   :  { %v8057_v37 = vadd.f32 %v8045_v9, %v15191_v43 }
0x3b2d   :  { %8066 = vadd.xlane.f32.xlu0 %v8057_v37  ;;  %8070 = vadd.xlane.f32.xlu1 %v8059_v42 }
0x3b31   :  { %8068 = vadd.xlane.f32.xlu0 %v8058_v62 }
0x3b42   :  { %v8396_v32 = vpop.f32.mrf.mxu0 }
0x3b43   :  { %v8397_v54 = vadd.f32 %v8396_v32, %v8275_v40 }
0x3b44   :  { %v8398_v61 = vpop.f32.mrf.mxu0 }
0x3b45   :  { %v8399_v1 = vadd.f32 %v8398_v61, %v8279_v14 }
0x3b46   :  { %v8400_v55 = vpop.f32.mrf.mxu0 }
0x3b47   :  { %v8401_v6 = vadd.f32 %v8400_v55, %v8275_v40 }
0x3b48   :  { %v8402_v16 = vpop.f32.mrf.mxu0 }
0x3b49   :  { %v15421_v57 = vpack.c.bf16 %v8401_v6, %v8397_v54  ;;  %v8403_v43 = vadd.f32 %v8402_v16, %v8279_v14 }
0x3b4b   :  { %v15423_v0 = vpack.c.bf16 %v8403_v43, %v8399_v1  ;;  %11704 = vmatprep.subr.msk.bf16.mxu1 %vm1194_vm2, %v15421_v57  ;;  %v8435_v14 = vsel %vm1194_vm2, %v15421_v57, 0  ;;  %v10583_v1 = vld [vmem:[#allocation36 + $0x1] ss:$0 sm:$0xff] }
0x3bb2   :  { %v8065_v56 = vpop.xlane.xlu1 %8064 }
0x3bb3   :  { %v8072_v17 = vmul.f32 0.0078125, %v8065_v56 }
0x3bb5   :  { %v8076_v44 = vsub.f32 %v8056_v34, %v8072_v17 }
0x3bb6   :  { %v8067_v47 = vpop.xlane.xlu0 %8066  ;;  %v8071_v25 = vpop.xlane.xlu1 %8070 }
0x3bb7   :  { %v8073_v51 = vmul.f32 0.0078125, %v8067_v47  ;;  %v8075_v53 = vmul.f32 0.0078125, %v8071_v25  ;;  %v8080_v4 = vmul.f32 %v8076_v44, %v8076_v44 }
0x3bb9   :  { %v8077_v52 = vsub.f32 %v8057_v37, %v8073_v51  ;;  %8084 = vadd.xlane.f32.xlu0 %v8080_v4  ;;  %v8079_v13 = vsub.f32 %v8059_v42, %v8075_v53 }
0x3bba   :  { %v8069_v29 = vpop.xlane.xlu0 %8068 }
0x3bbb   :  { %v8074_v49 = vmul.f32 0.0078125, %v8069_v29  ;;  %v8081_v7 = vmul.f32 %v8077_v52, %v8077_v52  ;;  %v8083_v21 = vmul.f32 %v8079_v13, %v8079_v13 }
0x3bbd   :  { %v8078_v15 = vsub.f32 %v8058_v62, %v8074_v49  ;;  %8086 = vadd.xlane.f32.xlu1 %v8081_v7  ;;  %v15458_v49 = vld [vmem:[%s15811_s25 + $0x10] sm:$0xff] }
0x3bbf   :  { %v8082_v41 = vmul.f32 %v8078_v15, %v8078_v15 }
0x3bc1   :  { %8088 = vadd.xlane.f32.xlu0 %v8082_v41  ;;  %8090 = vadd.xlane.f32.xlu1 %v8083_v21 }
0x3c42   :  { %v8085_v20 = vpop.xlane.xlu0 %8084 }
0x3c43   :  { %v8092_v46 = vmul.f32 0.0078125, %v8085_v20  ;;  %v15463_v20 = vld [vmem:[%s15811_s25 + $0x8] sm:$0xff] }
0x3c45   :  { %v8096_v3 = vadd.f32 1e-12, %v8092_v46 }
0x3c46   :  { %v8087_v33 = vpop.xlane.xlu1 %8086 }
0x3c47   :  { %12731 = vrsqrt.f32 %v8096_v3  ;;  %v8093_v39 = vmul.f32 0.0078125, %v8087_v33  ;;  %v15467_v3 = vld [vmem:[%s15811_s25 + $0x18] sm:$0xff] }
0x3c49   :  { %v8097_v30 = vadd.f32 1e-12, %v8093_v39 }
0x3c4a   :  { %v8089_v26 = vpop.xlane.xlu0 %8088  ;;  %v8091_v24 = vpop.xlane.xlu1 %8090 }
0x3c4b   :  { %12733 = vrsqrt.f32 %v8097_v30  ;;  %v8094_v45 = vmul.f32 0.0078125, %v8089_v26  ;;  %v8095_v60 = vmul.f32 0.0078125, %v8091_v24 }
0x3c4d   :  { %v8098_v10 = vadd.f32 1e-12, %v8094_v45  ;;  %v8099_v11 = vadd.f32 1e-12, %v8095_v60 }
0x3c4f   :  { %12735 = vrsqrt.f32 %v8098_v10 }
0x3c50   :  { %12737 = vrsqrt.f32 %v8099_v11 }
0x3c54   :  { %v12732_v50 = vpop.eup %12731 }
0x3c55   :  { %v8104_v31 = vmul.f32 %v12732_v50, %v8076_v44  ;;  %v8547_v44 = vsel %vm1274_vm3, %v15423_v0, 0 }
0x3c57   :  { %v8114_v12 = vmul.f32 %v10565_v2, %v8104_v31 }
0x3c58   :  { %v12734_v58 = vpop.eup %12733 }
0x3c59   :  { %v8105_v22 = vmul.f32 %v12734_v58, %v8077_v52  ;;  %v15427_v34 = vadd.f32 %v10566_v48, %v8114_v12  ;;  %v15454_v52 = vld [vmem:[%s15811_s25] sm:$0xff] }
0x3c5b   :  { %v8115_v5 = vmul.f32 %v10565_v2, %v8105_v22 }
0x3c5c   :  { %v12736_v18 = vpop.eup %12735 }
0x3c5d   :  { %v12738_v36 = vpop.eup %12737  ;;  %v8106_v28 = vmul.f32 %v12736_v18, %v8078_v15  ;;  %v15429_v19 = vadd.f32 %v10566_v48, %v8115_v5 }
0x3c5e   :  { %v8107_v8 = vmul.f32 %v12738_v36, %v8079_v13 }
0x3c5f   :  { %v8128_v9 = vpack.c.bf16 %v15429_v19, %v15427_v34  ;;  %v8116_v63 = vmul.f32 %v10565_v2, %v8106_v28 }
0x3c60   :  { %v8117_v42 = vmul.f32 %v10565_v2, %v8107_v8 }
0x3c61   :  { %11580 = vmatprep.mubr.bf16.mxu1 %v8128_v9  ;;  %v15433_v37 = vadd.f32 %v10566_v48, %v8116_v63 }
0x3c62   :  { %v15435_v62 = vadd.f32 %v10566_v48, %v8117_v42 }
0x3c64   :  { %v8129_v27 = vpack.c.bf16 %v15435_v62, %v15433_v37 }
0x3c66   :  { %11581 = vmatmul.mubr.bf16.vlgmr.msra.gmra.mxu1 %v8129_v27 }
0x3c67   :  { %11585 = vmatpush3.bf16.xpose.msra.mxu1 %v8435_v14 }
0x3c68   :  { %11705 = vmatprep.subr.msk.bf16.mxu1 %vm1274_vm3, %v15423_v0 }
0x3d26   :  { %v11582_v32 = vpop.f32.mrf.mxu1 }
0x3d27   :  { %v8246_v43 = vadd.f32 %v11582_v32, %v10583_v1 }
0x3d28   :  { %v8237_v40 = vpop.f32.mrf.mxu1 }
0x3d29   :  { %v8238_v6 = vadd.f32 %v10583_v1, %v8237_v40 }
0x3d2a   :  { %v11583_v61 = vpop.f32.mrf.mxu1 }
0x3d2b   :  { %v8249_v55 = vadd.f32 %v11583_v61, %v10583_v1 }
0x3d2c   :  { %v8240_v54 = vpop.f32.mrf.mxu1 }
0x3d2d   :  { %v8241_v16 = vadd.f32 %v10583_v1, %v8240_v54  ;;  %v15445_v17 = vpack.c.bf16 %v8249_v55, %v8246_v43 }
0x3d2f   :  { %v15443_v56 = vpack.c.bf16 %v8241_v16, %v8238_v6 }
0x3d31   :  { %11586 = vmatprep.mubr.msk.bf16.mxu1 %vm1194_vm2, %v15443_v56 }
0x3d32   :  { %11587 = vmatmul.mubr.msk.bf16.vlgmr.msra.gmra.mxu1 %vm1194_vm2, %v15445_v17 }
0x3d33   :  { %11591 = vmatpush3.bf16.msra.mxu1 %v8547_v44 }
0x3df2   :  { %v11588_v47 = vpop.f32.mrf.mxu1 }
0x3df3   :  { %v8488_v51 = vmul.f32 0.17677669, %v11588_v47 }
0x3df4   :  { %v8471_v25 = vpop.f32.mrf.mxu1 }
0x3df5   :  { %v8486_v53 = vmul.f32 0.17677669, %v8471_v25  ;;  %v8492_v7 = vadd.f32 %v15458_v49, %v8488_v51 }
0x3df6   :  { %v11589_v4 = vpop.f32.mrf.mxu1 }
0x3df7   :  { %v8490_v29 = vadd.f32 %v15454_v52, %v8486_v53  ;;  %v8489_v15 = vmul.f32 0.17677669, %v11589_v4  ;;  %v8500_v39 = vsel %vm1246_vm4, %v8492_v7, -inf }
0x3df8   :  { %v8474_v13 = vpop.f32.mrf.mxu1 }
0x3df9   :  { %v8487_v41 = vmul.f32 0.17677669, %v8474_v13  ;;  %v8494_v21 = vsel %vm1246_vm4, %v8490_v29, -inf  ;;  %v8493_v33 = vadd.f32 %v15467_v3, %v8489_v15 }
0x3dfa   :  { %8495 = vmax.xlane.f32.xlu0 %v8494_v21 }
0x3dfb   :  { %v8491_v46 = vadd.f32 %v15463_v20, %v8487_v41  ;;  %v8503_v26 = vsel %vm1246_vm4, %v8493_v33, -inf }
0x3dfd   :  { %v8497_v30 = vsel %vm1246_vm4, %v8491_v46, -inf }
0x3dfe   :  { %8501 = vmax.xlane.f32.xlu0 %v8500_v39  ;;  %8498 = vmax.xlane.f32.xlu1 %v8497_v30 }
0x3e02   :  { %8504 = vmax.xlane.f32.xlu1 %v8503_v26 }
0x3e83   :  { %v8496_v24 = vpop.xlane.xlu0 %8495 }
0x3e84   :  { %v8506_v45 = vsub.f32 %v8490_v29, %v8496_v24 }
0x3e86   :  { %v8510_v50 = vmul.f32 1.442695, %v8506_v45 }
0x3e87   :  { %v8502_v60 = vpop.xlane.xlu0 %8501  ;;  %v8499_v10 = vpop.xlane.xlu1 %8498 }
0x3e88   :  { %v8508_v11 = vsub.f32 %v8492_v7, %v8502_v60  ;;  %v8507_v2 = vsub.f32 %v8491_v46, %v8499_v10 }
0x3e8a   :  { %v8514_v31 = vmul.f32 1.442695, %v8508_v11  ;;  %v8512_v12 = vmul.f32 1.442695, %v8507_v2 }
0x3e8b   :  { %v8505_v58 = vpop.xlane.xlu1 %8504 }
0x3e8c   :  { %12739 = vpow2.f32 %v8514_v31  ;;  %v8509_v22 = vsub.f32 %v8493_v33, %v8505_v58 }
0x3e8d   :  { %12741 = vpow2.f32 %v8510_v50 }
0x3e8e   :  { %v8516_v48 = vmul.f32 1.442695, %v8509_v22 }
0x3e90   :  { %12743 = vpow2.f32 %v8516_v48 }
0x3e91   :  { %12745 = vpow2.f32 %v8512_v12 }
0x3e99   :  { %v12740_v5 = vpop.eup %12739 }
0x3e9a   :  { %v8524_v18 = vsel %vm1246_vm4, %v12740_v5, 0.0  ;;  %v12742_v36 = vpop.eup %12741 }
0x3e9b   :  { %8525 = vadd.xlane.f32.xlu0 %v8524_v18  ;;  %v8518_v8 = vsel %vm1246_vm4, %v12742_v36, 0.0 }
0x3e9d   :  { %v12744_v28 = vpop.eup %12743 }
0x3e9e   :  { %v8527_v9 = vsel %vm1246_vm4, %v12744_v28, 0.0  ;;  %v12746_v63 = vpop.eup %12745 }
0x3e9f   :  { %8519 = vadd.xlane.f32.xlu0 %v8518_v8  ;;  %8528 = vadd.xlane.f32.xlu1 %v8527_v9  ;;  %v8521_v42 = vsel %vm1246_vm4, %v12746_v63, 0.0 }
0x3ea3   :  { %8522 = vadd.xlane.f32.xlu1 %v8521_v42 }
0x3eb4   :  { %8600 = vrot.lane.b32.xlu1 %v15443_v56, %s13725_s1 }
0x3eb5   :  { %8605 = vrot.lane.b32.xlu0 %v15421_v57, %s13725_s1 }
0x3eb8   :  { %8602 = vrot.lane.b32.xlu1 %v15445_v17, %s13725_s1 }
0x3eb9   :  { %8784 = vrot.lane.b32.xlu0 %v15421_v57, %s13683_s28 }
0x3ebc   :  { %8780 = vrot.lane.b32.xlu1 %v15443_v56, %s13683_s28 }
0x3ebd   :  { %8782 = vrot.lane.b32.xlu0 %v15445_v17, %s13683_s28 }
0x3ec0   :  { %8962 = vrot.lane.b32.xlu1 %v15421_v57, %s13714_s30 }
0x3ec1   :  { %8958 = vrot.lane.b32.xlu0 %v15443_v56, %s13714_s30 }
0x3ec4   :  { %8960 = vrot.lane.b32.xlu1 %v15445_v17, %s13714_s30 }
0x3f24   :  { %v8526_v27 = vpop.xlane.xlu0 %8525 }
0x3f28   :  { %v8520_v14 = vpop.xlane.xlu0 %8519  ;;  %v8529_v32 = vpop.xlane.xlu1 %8528 }
0x3f29   :  { %12747 = vrcp.f32 %v8529_v32 }
0x3f2a   :  { %12749 = vrcp.f32 %v8520_v14 }
0x3f2b   :  { %12751 = vrcp.f32 %v8526_v27 }
0x3f2c   :  { %v8606_v40 = vpop.permute.xlu0 %8605  ;;  %v8523_v61 = vpop.xlane.xlu1 %8522 }
0x3f2d   :  { %12753 = vrcp.f32 %v8523_v61  ;;  %11706 = vmatprep.subr.msk.bf16.mxu1 %vm1194_vm2, %v8606_v40  ;;  %v8614_v41 = vsel %vm1194_vm2, %v8606_v40, 0 }
0x3f30   :  { %v8785_v1 = vpop.permute.xlu0 %8784  ;;  %v8601_v55 = vpop.permute.xlu1 %8600 }
0x3f31   :  { %v8793_v57 = vsel %vm1194_vm2, %v8785_v1, 0  ;;  %11708 = vmatprep.subr.msk.bf16.mxu0 %vm1194_vm2, %v8785_v1 }
0x3f32   :  { %11609 = vmatpush3.bf16.xpose.msra.mxu0 %v8793_v57 }
0x3f34   :  { %v8783_v54 = vpop.permute.xlu0 %8782  ;;  %v8603_v6 = vpop.permute.xlu1 %8602 }
0x3f36   :  { %v12748_v16 = vpop.eup %12747 }
0x3f37   :  { %v12750_v43 = vpop.eup %12749  ;;  %v8537_v47 = vmul.f32 %v12748_v16, %v12744_v28 }
0x3f38   :  { %v8781_v56 = vpop.permute.xlu1 %8780  ;;  %v12752_v17 = vpop.eup %12751  ;;  %v8534_v51 = vmul.f32 %v12750_v43, %v12742_v36 }
0x3f39   :  { %11610 = vmatprep.mubr.msk.bf16.mxu0 %vm1194_vm2, %v8781_v56  ;;  %v8959_v25 = vpop.permute.xlu0 %8958  ;;  %v8536_v4 = vmul.f32 %v12752_v17, %v12740_v5 }
0x3f3a   :  { %v12754_v44 = vpop.eup %12753  ;;  %11611 = vmatmul.mubr.msk.bf16.vlgmr.msra.gmra.mxu0 %vm1194_vm2, %v8783_v54 }
0x3f3b   :  { %11622 = vmatprep.mubr.msk.bf16.mxu0 %vm1194_vm2, %v8959_v25  ;;  %v8535_v53 = vmul.f32 %v12754_v44, %v12746_v63  ;;  %v8539_v15 = vpack.c.bf16 %v8537_v47, %v8536_v4 }
0x3f3c   :  { %v8963_v29 = vpop.permute.xlu1 %8962 }
0x3f3d   :  { %v8971_v13 = vsel %vm1194_vm2, %v8963_v29, 0  ;;  %11710 = vmatprep.subr.msk.bf16.mxu0 %vm1194_vm2, %v8963_v29  ;;  %v8538_v7 = vpack.c.bf16 %v8535_v53, %v8534_v51 }
0x3f3e   :  { %11621 = vmatpush3.bf16.xpose.msra.mxu0 %v8971_v13 }
0x3f3f   :  { %11592 = vmatprep.mubr.msk.bf16.mxu1 %vm1246_vm4, %v8538_v7 }
0x3f40   :  { %11593 = vmatmul.mubr.msk.bf16.vlgmr.msra.gmra.mxu1 %vm1246_vm4, %v8539_v15  ;;  %v8961_v21 = vpop.permute.xlu1 %8960 }
0x3f41   :  { %11597 = vmatpush3.bf16.xpose.msra.mxu1 %v8614_v41  ;;  %11598 = vmatprep.mubr.msk.bf16.mxu1 %vm1194_vm2, %v8601_v55 }
0x3f45   :  { %11623 = vmatmul.mubr.msk.bf16.vlgmr.msra.gmra.mxu0 %vm1194_vm2, %v8961_v21 }
0x3f48   :  { %11599 = vmatmul.mubr.msk.bf16.vlgmr.msra.gmra.mxu1 %vm1194_vm2, %v8603_v6 }
0x3ffa   :  { %v11612_v46 = vpop.f32.mrf.mxu0 }
0x3ffb   :  { %v8846_v63 = vmul.f32 0.17677669, %v11612_v46 }
0x3ffc   :  { %v8829_v39 = vpop.f32.mrf.mxu0 }
0x3ffd   :  { %v8844_v12 = vmul.f32 0.17677669, %v8829_v39  ;;  %v8850_v1 = vadd.f32 %v15458_v49, %v8846_v63 }
0x3ffe   :  { %v11613_v24 = vpop.f32.mrf.mxu0 }
0x3fff   :  { %v8848_v42 = vadd.f32 %v15454_v52, %v8844_v12  ;;  %v8847_v55 = vmul.f32 0.17677669, %v11613_v24  ;;  %v8858_v17 = vsel %vm1246_vm4, %v8850_v1, -inf }
0x4000   :  { %v15509_v33 = vpop.f32.mrf.mxu1  ;;  %v8832_v10 = vpop.f32.mrf.mxu0 }
0x4001   :  { %v8845_v27 = vmul.f32 0.17677669, %v8832_v10  ;;  %v8852_v16 = vsel %vm1246_vm4, %v8848_v42, -inf  ;;  %v8851_v56 = vadd.f32 %v15467_v3, %v8847_v55 }
0x4002   :  { %v15511_v30 = vpop.f32.mrf.mxu1 }
0x4003   :  { %v8849_v57 = vadd.f32 %v15463_v20, %v8845_v27  ;;  %v8861_v53 = vsel %vm1246_vm4, %v8851_v56, -inf }
0x4004   :  { %v15513_v26 = vpop.f32.mrf.mxu1 }
0x4005   :  { %v11624_v2 = vpop.f32.mrf.mxu0  ;;  %v8855_v51 = vsel %vm1246_vm4, %v8849_v57, -inf }
0x4006   :  { %v15515_v45 = vpop.f32.mrf.mxu1  ;;  %v9024_v44 = vmul.f32 0.17677669, %v11624_v2 }
0x4007   :  { %v9007_v8 = vpop.f32.mrf.mxu0 }
0x4008   :  { %v11600_v60 = vpop.f32.mrf.mxu1  ;;  %v9022_v54 = vmul.f32 0.17677669, %v9007_v8  ;;  %v9028_v4 = vadd.f32 %v15458_v49, %v9024_v44 }
0x4009   :  { %v8667_v50 = vmul.f32 0.17677669, %v11600_v60  ;;  %v11625_v61 = vpop.f32.mrf.mxu0 }
0x400a   :  { %v8650_v11 = vpop.f32.mrf.mxu1  ;;  %v9026_v47 = vadd.f32 %v15454_v52, %v9022_v54  ;;  %v9025_v29 = vmul.f32 0.17677669, %v11625_v61 }
0x400b   :  { %v8665_v31 = vmul.f32 0.17677669, %v8650_v11  ;;  %v15521_v5 = vadd.f32 %v15458_v49, %v8667_v50  ;;  %v9010_v43 = vpop.f32.mrf.mxu0 }
0x400c   :  { %v11601_v58 = vpop.f32.mrf.mxu1  ;;  %v9023_v25 = vmul.f32 0.17677669, %v9010_v43  ;;  %v9030_v7 = vsel %vm1246_vm4, %v9026_v47, -inf  ;;  %v9029_v15 = vadd.f32 %v15467_v3, %v9025_v29 }
0x400d   :  { %v15518_v22 = vadd.f32 %v15454_v52, %v8665_v31  ;;  %v8668_v18 = vmul.f32 0.17677669, %v11601_v58  ;;  %v8679_v32 = vsel %vm1246_vm4, %v15521_v5, -inf  ;;  %v9036_v52 = vsel %vm1246_vm4, %v9028_v4, -inf }
0x400e   :  { %v8653_v48 = vpop.f32.mrf.mxu1  ;;  %v9027_v13 = vadd.f32 %v15463_v20, %v9023_v25  ;;  %v9039_v21 = vsel %vm1246_vm4, %v9029_v15, -inf }
0x400f   :  { %v8666_v36 = vmul.f32 0.17677669, %v8653_v48  ;;  %v8673_v28 = vsel %vm1246_vm4, %v15518_v22, -inf  ;;  %v15530_v14 = vadd.f32 %v15467_v3, %v8668_v18 }
0x4010   :  { %8674 = vmax.xlane.f32.xlu0 %v8673_v28  ;;  %v9033_v41 = vsel %vm1246_vm4, %v9027_v13, -inf }
0x4011   :  { %v15526_v9 = vadd.f32 %v15463_v20, %v8666_v36  ;;  %v8682_v6 = vsel %vm1246_vm4, %v15530_v14, -inf }
0x4013   :  { %v8676_v40 = vsel %vm1246_vm4, %v15526_v9, -inf }
0x4014   :  { %8680 = vmax.xlane.f32.xlu0 %v8679_v32  ;;  %8677 = vmax.xlane.f32.xlu1 %v8676_v40 }
0x4018   :  { %8683 = vmax.xlane.f32.xlu0 %v8682_v6  ;;  %8853 = vmax.xlane.f32.xlu1 %v8852_v16 }
0x401c   :  { %8859 = vmax.xlane.f32.xlu1 %v8858_v17  ;;  %8856 = vmax.xlane.f32.xlu0 %v8855_v51 }
0x4020   :  { %8862 = vmax.xlane.f32.xlu0 %v8861_v53  ;;  %9031 = vmax.xlane.f32.xlu1 %v9030_v7 }
0x4024   :  { %9037 = vmax.xlane.f32.xlu1 %v9036_v52  ;;  %9034 = vmax.xlane.f32.xlu0 %v9033_v41 }
0x4028   :  { %9040 = vmax.xlane.f32.xlu0 %v9039_v21 }
0x4099   :  { %v8675_v46 = vpop.xlane.xlu0 %8674 }
0x409a   :  { %v8685_v6 = vsub.f32 %v15518_v22, %v8675_v46 }
0x409c   :  { %v8689_v17 = vmul.f32 1.442695, %v8685_v6 }
0x409d   :  { %v8681_v49 = vpop.xlane.xlu0 %8680  ;;  %v8678_v39 = vpop.xlane.xlu1 %8677 }
0x40a1   :  { %v8684_v24 = vpop.xlane.xlu0 %8683  ;;  %v8854_v20 = vpop.xlane.xlu1 %8853 }
0x40a2   :  { %v8864_v60 = vsub.f32 %v8848_v42, %v8854_v20  ;;  %v8688_v28 = vsub.f32 %v15530_v14, %v8684_v24  ;;  %v8687_v42 = vsub.f32 %v15521_v5, %v8681_v49 }
0x40a4   :  { %v8868_v10 = vmul.f32 1.442695, %v8864_v60  ;;  %v8695_v55 = vmul.f32 1.442695, %v8688_v28  ;;  %v8693_v16 = vmul.f32 1.442695, %v8687_v42 }
0x40a5   :  { %v8857_v11 = vpop.xlane.xlu0 %8856  ;;  %v8860_v50 = vpop.xlane.xlu1 %8859 }
0x40a6   :  { %v8865_v31 = vsub.f32 %v8849_v57, %v8857_v11  ;;  %v8866_v3 = vsub.f32 %v8850_v1, %v8860_v50  ;;  %12755 = vpow2.f32 %v8868_v10  ;;  %v8686_v1 = vsub.f32 %v15526_v9, %v8678_v39 }
0x40a8   :  { %v8870_v2 = vmul.f32 1.442695, %v8865_v31  ;;  %v8872_v58 = vmul.f32 1.442695, %v8866_v3  ;;  %v8691_v5 = vmul.f32 1.442695, %v8686_v1 }
0x40a9   :  { %v8863_v12 = vpop.xlane.xlu0 %8862  ;;  %v9032_v48 = vpop.xlane.xlu1 %9031 }
0x40aa   :  { %12757 = vpow2.f32 %v8870_v2  ;;  %v8867_v18 = vsub.f32 %v8851_v56, %v8863_v12  ;;  %v9042_v36 = vsub.f32 %v9026_v47, %v9032_v48 }
0x40ab   :  { %12759 = vpow2.f32 %v8872_v58 }
0x40ac   :  { %v8874_v8 = vmul.f32 1.442695, %v8867_v18  ;;  %v9046_v63 = vmul.f32 1.442695, %v9042_v36 }
0x40ad   :  { %v9035_v27 = vpop.xlane.xlu0 %9034  ;;  %v9038_v32 = vpop.xlane.xlu1 %9037 }
0x40ae   :  { %12761 = vpow2.f32 %v8874_v8  ;;  %v9043_v40 = vsub.f32 %v9027_v13, %v9035_v27  ;;  %v9044_v61 = vsub.f32 %v9028_v4, %v9038_v32 }
0x40af   :  { %12763 = vpow2.f32 %v9046_v63 }
0x40b0   :  { %v9048_v57 = vmul.f32 1.442695, %v9043_v40  ;;  %v9050_v54 = vmul.f32 1.442695, %v9044_v61 }
0x40b1   :  { %v9041_v43 = vpop.xlane.xlu0 %9040 }
0x40b2   :  { %12765 = vpow2.f32 %v9048_v57  ;;  %v9045_v56 = vsub.f32 %v9029_v15, %v9041_v43 }
0x40b3   :  { %12767 = vpow2.f32 %v9050_v54  ;;  %v15557_v14 = vpop.eup %12755 }
0x40b4   :  { %12769 = vpow2.f32 %v8695_v55  ;;  %v8876_v44 = vsel %vm1246_vm4, %v15557_v14, 0.0  ;;  %v9052_v22 = vmul.f32 1.442695, %v9045_v56 }
0x40b5   :  { %12771 = vpow2.f32 %v8693_v16  ;;  %8877 = vadd.xlane.f32.xlu1 %v8876_v44 }
0x40b6   :  { %12773 = vpow2.f32 %v8691_v5 }
0x40b7   :  { %v15561_v9 = vpop.eup %12757  ;;  %12775 = vpow2.f32 %v8689_v17 }
0x40b8   :  { %v15563_v47 = vpop.eup %12759  ;;  %v8879_v25 = vsel %vm1246_vm4, %v15561_v9, 0.0  ;;  %12777 = vpow2.f32 %v9052_v22 }
0x40b9   :  { %8880 = vadd.xlane.f32.xlu0 %v8879_v25  ;;  %v8882_v51 = vsel %vm1246_vm4, %v15563_v47, 0.0 }
0x40ba   :  { %8883 = vadd.xlane.f32.xlu1 %v8882_v51 }
0x40bb   :  { %v15569_v53 = vpop.eup %12761 }
0x40bc   :  { %v15571_v4 = vpop.eup %12763  ;;  %v8885_v29 = vsel %vm1246_vm4, %v15569_v53, 0.0 }
0x40bd   :  { %8886 = vadd.xlane.f32.xlu0 %v8885_v29  ;;  %v9054_v13 = vsel %vm1246_vm4, %v15571_v4, 0.0 }
0x40be   :  { %9055 = vadd.xlane.f32.xlu1 %v9054_v13 }
0x40bf   :  { %v15577_v7 = vpop.eup %12765 }
0x40c0   :  { %v15579_v15 = vpop.eup %12767  ;;  %v9057_v52 = vsel %vm1246_vm4, %v15577_v7, 0.0 }
0x40c1   :  { %v12770_v41 = vpop.eup %12769  ;;  %9058 = vadd.xlane.f32.xlu0 %v9057_v52  ;;  %v9060_v21 = vsel %vm1246_vm4, %v15579_v15, 0.0 }
0x40c2   :  { %v12772_v46 = vpop.eup %12771  ;;  %9061 = vadd.xlane.f32.xlu1 %v9060_v21  ;;  %v8706_v49 = vsel %vm1246_vm4, %v12770_v41, 0.0 }
0x40c3   :  { %v12774_v39 = vpop.eup %12773  ;;  %v8703_v24 = vsel %vm1246_vm4, %v12772_v46, 0.0 }
0x40c4   :  { %v12776_v20 = vpop.eup %12775  ;;  %v8700_v60 = vsel %vm1246_vm4, %v12774_v39, 0.0 }
0x40c5   :  { %8707 = vadd.xlane.f32.xlu0 %v8706_v49  ;;  %v15588_v10 = vpop.eup %12777  ;;  %v8697_v11 = vsel %vm1246_vm4, %v12776_v20, 0.0 }
0x40c6   :  { %8704 = vadd.xlane.f32.xlu1 %v8703_v24  ;;  %v9063_v50 = vsel %vm1246_vm4, %v15588_v10, 0.0 }
0x40c9   :  { %8701 = vadd.xlane.f32.xlu0 %v8700_v60 }
0x40ca   :  { %8698 = vadd.xlane.f32.xlu1 %v8697_v11 }
0x40cd   :  { %9064 = vadd.xlane.f32.xlu0 %v9063_v50 }
0x40db   :  { %8720 = vrot.lane.b32.xlu1 %v15423_v0, %s13725_s1 }
0x40df   :  { %9076 = vrot.lane.b32.xlu1 %v15423_v0, %s13714_s30 }
0x40e3   :  { %8898 = vrot.lane.b32.xlu0 %v15423_v0, %s13683_s28 }
0x413e   :  { %v8878_v31 = vpop.xlane.xlu1 %8877 }
0x413f   :  { %12779 = vrcp.f32 %v8878_v31  ;;  %v12337_v31 = vld [vmem:[#allocation40 + $0x68] sm:$0xff]  }
0x4142   :  { %v8881_v3 = vpop.xlane.xlu0 %8880 }
0x4143   :  { %v8884_v2 = vpop.xlane.xlu1 %8883 }
0x4146   :  { %v8887_v58 = vpop.xlane.xlu0 %8886 }
0x4147   :  { %v9056_v12 = vpop.xlane.xlu1 %9055 }
0x414a   :  { %v9059_v48 = vpop.xlane.xlu0 %9058 }
0x414b   :  { %v9062_v18 = vpop.xlane.xlu1 %9061 }
0x414c   :  { %v12780_v40 = vpop.eup %12779 }
0x414d   :  { %v8892_v44 = vmul.f32 %v12780_v40, %v15557_v14 }
0x414e   :  { %v8708_v36 = vpop.xlane.xlu0 %8707 }
0x414f   :  { %v8705_v28 = vpop.xlane.xlu1 %8704  ;;  %12781 = vrcp.f32 %v8708_v36 }
0x4150   :  { %12783 = vrcp.f32 %v8705_v28 }
0x4151   :  { %12785 = vrcp.f32 %v8881_v3  ;;  %v12338_v3 = vld [vmem:[#allocation40 + $0x60] sm:$0xff]  }
0x4152   :  { %v8702_v8 = vpop.xlane.xlu0 %8701 }
0x4153   :  { %12787 = vrcp.f32 %v8702_v8  ;;  %v8699_v63 = vpop.xlane.xlu1 %8698  ;;  %v12341_v8 = vld [vmem:[#allocation40 + $0x48] sm:$0xff]  }
0x4154   :  { %12789 = vrcp.f32 %v8699_v63 }
0x4155   :  { %12791 = vrcp.f32 %v8887_v58 }
0x4156   :  { %v9065_v42 = vpop.xlane.xlu0 %9064  ;;  %12793 = vrcp.f32 %v9059_v48  ;;  %v12340_v48 = vld [vmem:[#allocation40 + $0x50] sm:$0xff]  }
0x4157   :  { %v8721_v27 = vpop.permute.xlu1 %8720  ;;  %12795 = vrcp.f32 %v8884_v2 }
0x4158   :  { %v8729_v0 = vsel %vm1274_vm3, %v8721_v27, 0  ;;  %11707 = vmatprep.subr.msk.bf16.mxu1 %vm1274_vm3, %v8721_v27  ;;  %12797 = vrcp.f32 %v9056_v12 }
0x4159   :  { %11603 = vmatpush3.bf16.msra.mxu1 %v8729_v0  ;;  %12799 = vrcp.f32 %v9065_v42  ;;  %v12342_v0 = vld [vmem:[#allocation40 + $0x40] sm:$0xff]  }
0x415a   :  { %v8899_v32 = vpop.permute.xlu0 %8898  ;;  %12801 = vrcp.f32 %v9062_v18 }
0x415b   :  { %11709 = vmatprep.subr.msk.bf16.mxu1 %vm1274_vm3, %v8899_v32  ;;  %v8907_v13 = vsel %vm1274_vm3, %v8899_v32, 0 }
0x415c   :  { %v12782_v61 = vpop.eup %12781 }
0x415d   :  { %v12784_v1 = vpop.eup %12783  ;;  %v8716_v6 = vmul.f32 %v12782_v61, %v12770_v41  ;;  %v9077_v41 = vpop.permute.xlu1 %9076 }
0x415e   :  { %v12786_v55 = vpop.eup %12785  ;;  %v8715_v16 = vmul.f32 %v12784_v1, %v12772_v46  ;;  %v9085_v60 = vsel %vm1274_vm3, %v9077_v41, 0 }
0x415f   :  { %v8893_v56 = vmul.f32 %v12786_v55, %v15561_v9 }
0x4160   :  { %v12788_v57 = vpop.eup %12787  ;;  %v8718_v22 = vpack.c.bf16 %v8716_v6, %v8715_v16 }
0x4161   :  { %v12790_v54 = vpop.eup %12789  ;;  %v8714_v43 = vmul.f32 %v12788_v57, %v12774_v39  ;;  %v8896_v51 = vpack.c.bf16 %v8893_v56, %v8892_v44 }
0x4162   :  { %v8713_v5 = vmul.f32 %v12790_v54, %v12776_v20  ;;  %v12792_v25 = vpop.eup %12791 }
0x4163   :  { %v12794_v29 = vpop.eup %12793  ;;  %v8895_v21 = vmul.f32 %v12792_v25, %v15569_v53 }
0x4164   :  { %v8717_v17 = vpack.c.bf16 %v8714_v43, %v8713_v5  ;;  %v12796_v52 = vpop.eup %12795  ;;  %v9071_v14 = vmul.f32 %v12794_v29, %v15577_v7 }
0x4165   :  { %v12798_v9 = vpop.eup %12797  ;;  %v8894_v46 = vmul.f32 %v12796_v52, %v15563_v47  ;;  %v12335_v47 = vld [vmem:[#allocation40 + $0x78] sm:$0xff]  }
0x4166   :  { %11604 = vmatprep.mubr.msk.bf16.mxu1 %vm1246_vm4, %v8717_v17  ;;  %v9070_v49 = vmul.f32 %v12798_v9, %v15571_v4  ;;  %v12800_v24 = vpop.eup %12799  ;;  %v12336_v4 = vld [vmem:[#allocation40 + $0x70] sm:$0xff]   ;;  %11632 = vmatprep.subr.bf16.mxu0 %v12335_v47 }
0x4167   :  { %11605 = vmatmul.mubr.msk.bf16.vlgmr.msra.gmra.mxu1 %vm1246_vm4, %v8718_v22  ;;  %v8897_v39 = vpack.c.bf16 %v8895_v21, %v8894_v46  ;;  %v12802_v11 = vpop.eup %12801  ;;  %v9073_v53 = vmul.f32 %v12800_v24, %v15588_v10  ;;  %11633 = vmatpush3.bf16.msra.mxu0 %v12335_v47  ;;  %v12339_v10 = vld [vmem:[#allocation40 + $0x58] sm:$0xff]  }
0x4168   :  { %11615 = vmatpush3.bf16.msra.mxu1 %v8907_v13  ;;  %11616 = vmatprep.mubr.msk.bf16.mxu1 %vm1246_vm4, %v8896_v51  ;;  %v9074_v20 = vpack.c.bf16 %v9071_v14, %v9070_v49  ;;  %v9072_v50 = vmul.f32 %v12802_v11, %v15579_v15 }
0x4169   :  { %11711 = vmatprep.subr.msk.bf16.mxu1 %vm1274_vm3, %v9077_v41  ;;  %11634 = vmatprep.subr.bf16.mxu0 %v12336_v4 }
0x416a   :  { %v9075_v7 = vpack.c.bf16 %v9073_v53, %v9072_v50 }
0x416b   :  { %11635 = vmatpush3.bf16.msra.mxu0 %v12336_v4 }
0x416c   :  { %11636 = vmatprep.subr.bf16.mxu0 %v12337_v31 }
0x416f   :  { %11617 = vmatmul.mubr.msk.bf16.vlgmr.msra.gmra.mxu1 %vm1246_vm4, %v8897_v39  ;;  %11637 = vmatpush3.bf16.msra.mxu0 %v12337_v31 }
0x4170   :  { %11627 = vmatpush3.bf16.msra.mxu1 %v9085_v60  ;;  %11628 = vmatprep.mubr.msk.bf16.mxu1 %vm1246_vm4, %v9074_v20 }
0x4171   :  { %11638 = vmatprep.subr.bf16.mxu0 %v12338_v3 }
0x4173   :  { %11639 = vmatpush3.bf16.msra.mxu0 %v12338_v3  ;;  %v10624_v3 = vld [vmem:[#allocation42 + $0x1] ss:$0 sm:$0xff] }
0x4174   :  { %11640 = vmatprep.subr.bf16.mxu0 %v12339_v10 }
0x4177   :  { %11629 = vmatmul.mubr.msk.bf16.vlgmr.msra.gmra.mxu1 %vm1246_vm4, %v9075_v7  ;;  %11641 = vmatpush3.bf16.msra.mxu0 %v12339_v10 }
0x4178   :  { %9517 = vmatprep.mubr.bf16.mxu1 %v13723_v59  ;;  %11642 = vmatprep.subr.bf16.mxu0 %v12340_v48 }
0x417b   :  { %11643 = vmatpush3.bf16.msra.mxu0 %v12340_v48 }
0x417c   :  { %11644 = vmatprep.subr.bf16.mxu0 %v12341_v8 }
0x417f   :  { %11645 = vmatpush3.bf16.msra.mxu0 %v12341_v8 }
0x4180   :  { %11646 = vmatprep.subr.bf16.mxu0 %v12342_v0 }
0x4183   :  { %11647 = vmatpush3.bf16.msra.mxu0 %v12342_v0 }
0x4227   :  { %v11606_v2 = vpop.f32.mrf.mxu1 }
0x4229   :  { %v8765_v15 = vpop.f32.mrf.mxu1 }
0x422b   :  { %v11607_v58 = vpop.f32.mrf.mxu1 }
0x422c   :  { %v11933_v12 = vpack.i.bf16 %v11607_v58, %v11606_v2 }
0x422d   :  { %v8768_v18 = vpop.f32.mrf.mxu1 }
0x422e   :  { %v11938_v36 = vpack.i.bf16 %v8768_v18, %v8765_v15  ;;  %11934 = vrot.lane.b32.xlu0 %v11933_v12, %s13714_s30 }
0x422f   :  { %v11618_v28 = vpop.f32.mrf.mxu1 }
0x4230   :  { %11939 = vrot.lane.b32.xlu1 %v11938_v36, %s13714_s30 }
0x4231   :  { %v8943_v63 = vpop.f32.mrf.mxu1 }
0x4233   :  { %v11619_v42 = vpop.f32.mrf.mxu1 }
0x4234   :  { %v11943_v27 = vpack.i.bf16 %v11619_v42, %v11618_v28  ;;  %v12343_v42 = vld [vmem:[#allocation46 + $0xf0] ss:$8 sps:$4 sm:$0xff]  }
0x4235   :  { %v8946_v32 = vpop.f32.mrf.mxu1 }
0x4236   :  { %v11948_v40 = vpack.i.bf16 %v8946_v32, %v8943_v63  ;;  %11944 = vrot.lane.b32.xlu0 %v11943_v27, %s13683_s28  ;;  %v12345_v27 = vld [vmem:[#allocation46 + $0xf4] ss:$8 sps:$4 sm:$0xff]  }
0x4237   :  { %v11630_v61 = vpop.f32.mrf.mxu1  ;;  %9485 = vmatprep.subr.bf16.mxu1 %v12345_v27 }
0x4238   :  { %11949 = vrot.lane.b32.xlu1 %v11948_v40, %s13683_s28  ;;  %9486 = vmatpush1.bf16.msra.mxu1 %v12343_v42 }
0x4239   :  { %v9121_v1 = vpop.f32.mrf.mxu1 }
0x423b   :  { %v11631_v55 = vpop.f32.mrf.mxu1 }
0x423c   :  { %v11958_v57 = vpack.i.bf16 %v11631_v55, %v11630_v61 }
0x423d   :  { %v9124_v54 = vpop.f32.mrf.mxu1 }
0x423e   :  { %v11953_v6 = vpack.i.bf16 %v9124_v54, %v9121_v1  ;;  %11959 = vrot.lane.b32.xlu0 %v11958_v57, %s13725_s1 }
0x4240   :  { %11954 = vrot.lane.b32.xlu1 %v11953_v6, %s13725_s1 }
0x42a0   :  { %v11935_v16 = vpop.permute.xlu0 %11934 }
0x42a1   :  { %v11937_v17 = vunpack.i.h.bf16 %v11935_v16  ;;  %v11936_v44 = vunpack.i.l.bf16 %v11935_v16 }
0x42a2   :  { %v11940_v43 = vpop.permute.xlu1 %11939 }
0x42a3   :  { %v11942_v22 = vunpack.i.h.bf16 %v11940_v43  ;;  %v11941_v25 = vunpack.i.l.bf16 %v11940_v43  ;;  %v9187_v14 = vsel %vm1194_vm2, %v15513_v26, %v11937_v17  ;;  %v9186_v46 = vsel %vm1194_vm2, %v15509_v33, %v11936_v44  ;;  %v12346_v17 = vld [vmem:[#allocation46 + $0xe0] ss:$8 sps:$4 sm:$0xff]   ;;  %v12351_v44 = vld [vmem:[#allocation46 + $0xd4] ss:$8 sps:$4 sm:$0xff]  }
0x42a5   :  { %v9185_v49 = vsel %vm1194_vm2, %v15515_v45, %v11942_v22  ;;  %v9184_v39 = vsel %vm1194_vm2, %v15511_v30, %v11941_v25  ;;  %v12349_v22 = vld [vmem:[#allocation46 + $0xd0] ss:$8 sps:$4 sm:$0xff]   ;;  %v12354_v25 = vld [vmem:[#allocation46 + $0xc4] ss:$8 sps:$4 sm:$0xff]  }
0x42a8   :  { %v11945_v5 = vpop.permute.xlu0 %11944 }
0x42a9   :  { %v11947_v51 = vunpack.i.h.bf16 %v11945_v5  ;;  %v11946_v29 = vunpack.i.l.bf16 %v11945_v5 }
0x42aa   :  { %v11950_v56 = vpop.permute.xlu1 %11949 }
0x42ab   :  { %v11952_v13 = vunpack.i.h.bf16 %v11950_v56  ;;  %v11951_v52 = vunpack.i.l.bf16 %v11950_v56  ;;  %v9191_v20 = vsel %vm1729_vm6, %v9187_v14, %v11947_v51  ;;  %v9190_v60 = vsel %vm1729_vm6, %v9186_v46, %v11946_v29  ;;  %v12348_v56 = vld [vmem:[#allocation46 + $0xe4] ss:$8 sps:$4 sm:$0xff]   ;;  %v12352_v51 = vld [vmem:[#allocation46 + $0xc0] ss:$8 sps:$4 sm:$0xff]   ;;  %v12357_v29 = vld [vmem:[#allocation46 + $0xb4] ss:$8 sps:$4 sm:$0xff]  }
0x42ac   :  { %9487 = vmatprep.subr.bf16.mxu1 %v12348_v56  ;;  %v12366_v14 = vld [vmem:[#allocation46 + $0x84] ss:$8 sps:$4 sm:$0xff]   ;;  %v12364_v46 = vld [vmem:[#allocation46 + $0x80] ss:$8 sps:$4 sm:$0xff]  }
0x42ad   :  { %v9188_v50 = vsel %vm1729_vm6, %v9184_v39, %v11951_v52  ;;  %v9189_v26 = vsel %vm1729_vm6, %v9185_v49, %v11952_v13  ;;  %9488 = vmatpush1.bf16.msra.mxu1 %v12346_v17  ;;  %v12355_v13 = vld [vmem:[#allocation46 + $0xb0] ss:$8 sps:$4 sm:$0xff]   ;;  %v12360_v52 = vld [vmem:[#allocation46 + $0xa4] ss:$8 sps:$4 sm:$0xff]   ;;  %v9393_v17 = vld [vmem:[#allocation48 + $0x2] sm:$0x3] }
0x42ae   :  { %9489 = vmatprep.subr.bf16.mxu1 %v12351_v44  ;;  %v12382_v56 = vld [vmem:[#allocation49 + $0x80] sm:$0xff]   ;;  %v9398_v44 = vrot.slane %v9393_v17, %v14180_v38 }
0x42b0   :  { %v11960_v41 = vpop.permute.xlu0 %11959 }
0x42b1   :  { %v11962_v9 = vunpack.i.h.bf16 %v11960_v41  ;;  %v11961_v21 = vunpack.i.l.bf16 %v11960_v41  ;;  %9490 = vmatpush1.bf16.msra.mxu1 %v12349_v22  ;;  %v12358_v41 = vld [vmem:[#allocation46 + $0xa0] ss:$8 sps:$4 sm:$0xff]   ;;  %v9402_v22 = vrot.slane %v9393_v17, %v14174_v23 }
0x42b2   :  { %v11955_v24 = vpop.permute.xlu1 %11954  ;;  %9491 = vmatprep.subr.bf16.mxu1 %v12354_v25 }
0x42b3   :  { %v11957_v11 = vunpack.i.h.bf16 %v11955_v24  ;;  %v11956_v53 = vunpack.i.l.bf16 %v11955_v24  ;;  %v9195_v7 = vsel %vm1732_vm7, %v9191_v20, %v11962_v9  ;;  %v9194_v33 = vsel %vm1732_vm7, %v9190_v60, %v11961_v21  ;;  %v12363_v9 = vld [vmem:[#allocation46 + $0x94] ss:$8 sps:$4 sm:$0xff]   ;;  %v12361_v21 = vld [vmem:[#allocation46 + $0x90] ss:$8 sps:$4 sm:$0xff]  }
0x42b4   :  { %v9197_v4 = vpack.c.bf16 %v9195_v7, %v9194_v33 }
0x42b5   :  { %v9192_v45 = vsel %vm1732_vm7, %v9188_v50, %v11956_v53  ;;  %v9193_v47 = vsel %vm1732_vm7, %v9189_v26, %v11957_v11  ;;  %9492 = vmatpush1.bf16.msra.mxu1 %v12352_v51 }
0x42b6   :  { %v9196_v30 = vpack.c.bf16 %v9193_v47, %v9192_v45  ;;  %9493 = vmatprep.subr.bf16.mxu1 %v12357_v29 }
0x42b8   :  { %11648 = vmatprep.mubr.bf16.mxu0 %v9196_v30 }
0x42b9   :  { %11649 = vmatmul.mubr.bf16.vlgmr.msra.gmra.mxu0 %v9197_v4  ;;  %9494 = vmatpush1.bf16.msra.mxu1 %v12355_v13  ;;  %v10633_v4 = vld [vmem:[#allocation43 + $0x1] ss:$0 sm:$0xff] }
0x42ba   :  { %9495 = vmatprep.subr.bf16.mxu1 %v12360_v52 }
0x42bd   :  { %9496 = vmatpush1.bf16.msra.mxu1 %v12358_v41 }
0x42be   :  { %9497 = vmatprep.subr.bf16.mxu1 %v12363_v9 }
0x42c1   :  { %9498 = vmatpush1.bf16.msra.mxu1 %v12361_v21 }
0x42c2   :  { %9499 = vmatprep.subr.bf16.mxu1 %v12366_v14 }
0x42c5   :  { %9500 = vmatpush1.bf16.msra.mxu1 %v12364_v46 }
0x42c6   :  { %11652 = vmatprep.subr.bf16.mxu1 %v13722_v35 }
0x4379   :  { %v11650_v31 = vpop.f32.mrf.mxu0 }
0x437a   :  { %v9295_v36 = vadd.f32 %v11650_v31, %v10624_v3 }
0x437b   :  { %v9286_v2 = vpop.f32.mrf.mxu0 }
0x437c   :  { %v9287_v10 = vadd.f32 %v10624_v3, %v9286_v2  ;;  %v9303_v63 = vadd.f32 %v9295_v36, %v15433_v37 }
0x437d   :  { %v11651_v15 = vpop.f32.mrf.mxu0 }
0x437e   :  { %v9301_v58 = vadd.f32 %v9287_v10, %v15427_v34  ;;  %v9298_v12 = vadd.f32 %v11651_v15, %v10624_v3  ;;  %v10634_v10 = vld [vmem:[#allocation45 + $0x1] ss:$0 sm:$0xff] }
0x437f   :  { %v9289_v48 = vpop.f32.mrf.mxu0 }
0x4380   :  { %v9290_v18 = vadd.f32 %v10624_v3, %v9289_v48  ;;  %9309 = vadd.xlane.f32.xlu1 %v9301_v58  ;;  %v9304_v28 = vadd.f32 %v9298_v12, %v15435_v62 }
0x4382   :  { %v9302_v8 = vadd.f32 %v9290_v18, %v15429_v19 }
0x4384   :  { %9311 = vadd.xlane.f32.xlu0 %v9302_v8  ;;  %9315 = vadd.xlane.f32.xlu1 %v9304_v28 }
0x4388   :  { %9313 = vadd.xlane.f32.xlu0 %v9303_v63 }
0x4409   :  { %v9310_v0 = vpop.xlane.xlu1 %9309 }
0x440a   :  { %v9317_v34 = vmul.f32 0.0078125, %v9310_v0 }
0x440c   :  { %v15646_v32 = vsub.f32 %v9301_v58, %v9317_v34 }
0x440d   :  { %v9312_v40 = vpop.xlane.xlu0 %9311  ;;  %v9316_v61 = vpop.xlane.xlu1 %9315 }
0x440e   :  { %v9318_v1 = vmul.f32 0.0078125, %v9312_v40  ;;  %v9320_v55 = vmul.f32 0.0078125, %v9316_v61  ;;  %v9325_v19 = vmul.f32 %v15646_v32, %v15646_v32  ;;  %v12368_v40 = vld [vmem:[#allocation49 + $0xb8] sm:$0xff]   ;;  %v12369_v61 = vld [vmem:[#allocation49 + $0xf0] sm:$0xff]  }
0x4410   :  { %v9322_v62 = vsub.f32 %v9302_v8, %v9318_v1  ;;  %9329 = vadd.xlane.f32.xlu0 %v9325_v19  ;;  %v15650_v37 = vsub.f32 %v9304_v28, %v9320_v55  ;;  %v12370_v1 = vld [vmem:[#allocation49 + $0xb0] sm:$0xff]   ;;  %v12372_v55 = vld [vmem:[#allocation49 + $0xa8] sm:$0xff]   ;;  %v12373_v19 = vld [vmem:[#allocation49 + $0xe0] sm:$0xff]  }
0x4411   :  { %v9314_v57 = vpop.xlane.xlu0 %9313 }
0x4412   :  { %v9319_v54 = vmul.f32 0.0078125, %v9314_v57  ;;  %v9326_v6 = vmul.f32 %v9322_v62, %v9322_v62  ;;  %v9328_v5 = vmul.f32 %v15650_v37, %v15650_v37  ;;  %v12375_v57 = vld [vmem:[#allocation49 + $0xd8] sm:$0xff]  }
0x4414   :  { %v15652_v16 = vsub.f32 %v9303_v63, %v9319_v54  ;;  %9331 = vadd.xlane.f32.xlu1 %v9326_v6  ;;  %v12377_v54 = vld [vmem:[#allocation49 + $0xd0] sm:$0xff]  }
0x4415   :  { %v12378_v6 = vld [vmem:[#allocation49 + $0x90] sm:$0xff]  }
0x4416   :  { %v9327_v43 = vmul.f32 %v15652_v16, %v15652_v16 }
0x4418   :  { %9333 = vadd.xlane.f32.xlu0 %v9327_v43  ;;  %9335 = vadd.xlane.f32.xlu1 %v9328_v5  ;;  %v12380_v43 = vld [vmem:[#allocation49 + $0x88] sm:$0xff]   ;;  %v12381_v5 = vld [vmem:[#allocation49 + $0xc0] sm:$0xff]  }
0x4499   :  { %v9330_v49 = vpop.xlane.xlu0 %9329 }
0x449a   :  { %v9337_v39 = vmul.f32 0.0078125, %v9330_v49 }
0x449c   :  { %v9341_v24 = vadd.f32 1e-12, %v9337_v39 }
0x449d   :  { %v9332_v20 = vpop.xlane.xlu1 %9331 }
0x449e   :  { %12803 = vrsqrt.f32 %v9341_v24  ;;  %v9338_v60 = vmul.f32 0.0078125, %v9332_v20 }
0x44a0   :  { %v9342_v11 = vadd.f32 1e-12, %v9338_v60 }
0x44a1   :  { %v9334_v53 = vpop.xlane.xlu0 %9333  ;;  %v9336_v50 = vpop.xlane.xlu1 %9335 }
0x44a2   :  { %12805 = vrsqrt.f32 %v9342_v11  ;;  %v9339_v26 = vmul.f32 0.0078125, %v9334_v53  ;;  %v9340_v7 = vmul.f32 0.0078125, %v9336_v50 }
0x44a4   :  { %v9343_v33 = vadd.f32 1e-12, %v9339_v26  ;;  %v9344_v45 = vadd.f32 1e-12, %v9340_v7 }
0x44a6   :  { %12807 = vrsqrt.f32 %v9343_v33 }
0x44a7   :  { %12809 = vrsqrt.f32 %v9344_v45 }
0x44ab   :  { %v12804_v47 = vpop.eup %12803 }
0x44ac   :  { %v9349_v30 = vmul.f32 %v12804_v47, %v15646_v32  ;;  %v12367_v32 = vld [vmem:[#allocation49 + $0xf8] sm:$0xff]  }
0x44ad   :  { %11040 = vmatprep.subr.bf16.mxu0 %v12367_v32 }
0x44ae   :  { %v9359_v2 = vmul.f32 %v10633_v4, %v9349_v30  ;;  %11041 = vmatpush3.bf16.msra.mxu0 %v12368_v40 }
0x44af   :  { %v12806_v31 = vpop.eup %12805  ;;  %11042 = vmatprep.subr.bf16.mxu0 %v12369_v61 }
0x44b0   :  { %v9350_v3 = vmul.f32 %v12806_v31, %v9322_v62  ;;  %v15660_v48 = vadd.f32 %v10634_v10, %v9359_v2  ;;  %v12374_v62 = vld [vmem:[#allocation49 + $0xa0] sm:$0xff]  }
0x44b2   :  { %v9360_v15 = vmul.f32 %v10633_v4, %v9350_v3  ;;  %11043 = vmatpush3.bf16.msra.mxu0 %v12370_v1 }
0x44b3   :  { %v12808_v58 = vpop.eup %12807 }
0x44b4   :  { %v12810_v12 = vpop.eup %12809  ;;  %v15662_v18 = vadd.f32 %v10634_v10, %v9360_v15  ;;  %v9351_v36 = vmul.f32 %v12808_v58, %v15652_v16  ;;  %v12379_v16 = vld [vmem:[#allocation49 + $0xc8] sm:$0xff]  }
0x44b5   :  { %v9352_v28 = vmul.f32 %v12810_v12, %v15650_v37  ;;  %v12376_v37 = vld [vmem:[#allocation49 + $0x98] sm:$0xff]  }
0x44b6   :  { %v9373_v8 = vpack.c.bf16 %v15662_v18, %v15660_v48  ;;  %v9361_v63 = vmul.f32 %v10633_v4, %v9351_v36 }
0x44b7   :  { %v9362_v42 = vmul.f32 %v10633_v4, %v9352_v28 }
0x44b8   :  { %9518 = vmatmul.mubr.bf16.vlgmr.msra.gmra.mxu1 %v9373_v8  ;;  %v15669_v27 = vadd.f32 %v10634_v10, %v9361_v63 }
0x44b9   :  { %9527 = vmatprep.mubr.bf16.mxu1 %v13723_v59  ;;  %v15671_v0 = vadd.f32 %v10634_v10, %v9362_v42  ;;  %v12371_v59 = vld [vmem:[#allocation49 + $0xe8] sm:$0xff]  }
0x44ba   :  { %11044 = vmatprep.subr.bf16.mxu0 %v12371_v59 }
0x44bb   :  { %v9374_v34 = vpack.c.bf16 %v15671_v0, %v15669_v27  ;;  %11045 = vmatpush3.bf16.msra.mxu0 %v12372_v55 }
0x44bc   :  { %11046 = vmatprep.subr.bf16.mxu0 %v12373_v19 }
0x44bf   :  { %11047 = vmatpush3.bf16.msra.mxu0 %v12374_v62 }
0x44c0   :  { %9528 = vmatmul.mubr.bf16.gmra.mxu1 %v9374_v34  ;;  %11048 = vmatprep.subr.bf16.mxu0 %v12375_v57 }
0x44c1   :  { %11656 = vmatprep.mubr.msk.bf16.mxu1 %vm13724_vm1, %v13722_v35 }
0x44c3   :  { %11049 = vmatpush3.bf16.msra.mxu0 %v12376_v37 }
0x44c4   :  { %11050 = vmatprep.subr.bf16.mxu0 %v12377_v54 }
0x44c7   :  { %11051 = vmatpush3.bf16.msra.mxu0 %v12378_v6 }
0x44c8   :  { %11052 = vmatprep.subr.bf16.mxu0 %v12379_v16 }
0x44cb   :  { %11053 = vmatpush3.bf16.msra.mxu0 %v12380_v43 }
0x44cc   :  { %11054 = vmatprep.subr.bf16.mxu0 %v12381_v5 }
0x44cf   :  { %11055 = vmatpush3.bf16.msra.mxu0 %v12382_v56 }
0x4578   :  { %v9519_v25 = vpop.f32.mrf.mxu1 }
0x4579   :  { %v15679_v51 = vadd.f32 %v9519_v25, %v9398_v44 }
0x457a   :  { %v9521_v29 = vpop.f32.mrf.mxu1 }
0x457b   :  { %v9538_v13 = vmul.f32 %v15679_v51, %v15679_v51  ;;  %v15683_v52 = vadd.f32 %v9521_v29, %v9402_v22 }
0x457c   :  { %v9523_v41 = vpop.f32.mrf.mxu1 }
0x457d   :  { %v9546_v9 = vmul.f32 %v9538_v13, %v15679_v51  ;;  %v9539_v21 = vmul.f32 %v15683_v52, %v15683_v52  ;;  %v15688_v14 = vadd.f32 %v9523_v41, %v9398_v44 }
0x457e   :  { %v9525_v38 = vpop.f32.mrf.mxu1 }
0x457f   :  { %v9554_v46 = vmul.f32 0.044715, %v9546_v9  ;;  %v9547_v23 = vmul.f32 %v9539_v21, %v15683_v52  ;;  %v9540_v49 = vmul.f32 %v15688_v14, %v15688_v14  ;;  %v15693_v39 = vadd.f32 %v9525_v38, %v9402_v22 }
0x4580   :  { %v9529_v24 = vpop.f32.mrf.mxu1 }
0x4581   :  { %v9562_v20 = vadd.f32 %v9554_v46, %v15679_v51  ;;  %v9555_v60 = vmul.f32 0.044715, %v9547_v23  ;;  %v9548_v11 = vmul.f32 %v9540_v49, %v15688_v14  ;;  %v9541_v53 = vmul.f32 %v15693_v39, %v15693_v39 }
0x4582   :  { %v15699_v50 = vadd.f32 %v9529_v24, %v9398_v44  ;;  %v9531_v26 = vpop.f32.mrf.mxu1 }
0x4583   :  { %v9570_v7 = vmul.f32 0.7978846, %v9562_v20  ;;  %v9563_v33 = vadd.f32 %v9555_v60, %v15683_v52  ;;  %v9556_v45 = vmul.f32 0.044715, %v9548_v11  ;;  %v9549_v47 = vmul.f32 %v9541_v53, %v15693_v39 }
0x4584   :  { %v9542_v30 = vmul.f32 %v15699_v50, %v15699_v50  ;;  %v15705_v4 = vadd.f32 %v9531_v26, %v9402_v22  ;;  %v9533_v31 = vpop.f32.mrf.mxu1 }
0x4585   :  { %v9571_v3 = vmul.f32 0.7978846, %v9563_v33  ;;  %v9564_v2 = vadd.f32 %v9556_v45, %v15688_v14  ;;  %v9557_v10 = vmul.f32 0.044715, %v9549_v47  ;;  %12811 = vtanh.f32 %v9570_v7 }
0x4586   :  { %v9550_v15 = vmul.f32 %v9542_v30, %v15699_v50  ;;  %v9543_v58 = vmul.f32 %v15705_v4, %v15705_v4  ;;  %v9534_v12 = vadd.f32 %v9533_v31, %v9398_v44  ;;  %v9535_v36 = vpop.f32.mrf.mxu1 }
0x4587   :  { %12813 = vtanh.f32 %v9571_v3  ;;  %v9572_v28 = vmul.f32 0.7978846, %v9564_v2  ;;  %v9565_v8 = vadd.f32 %v9557_v10, %v15693_v39  ;;  %v9536_v63 = vadd.f32 %v9535_v36, %v9402_v22 }
0x4588   :  { %v9558_v42 = vmul.f32 0.044715, %v9550_v15  ;;  %v9551_v34 = vmul.f32 %v9543_v58, %v15705_v4  ;;  %v9544_v32 = vmul.f32 %v9534_v12, %v9534_v12 }
0x4589   :  { %12815 = vtanh.f32 %v9572_v28  ;;  %v9573_v40 = vmul.f32 0.7978846, %v9565_v8  ;;  %v9545_v61 = vmul.f32 %v9536_v63, %v9536_v63 }
0x458a   :  { %v9566_v1 = vadd.f32 %v9558_v42, %v15699_v50  ;;  %v9559_v59 = vmul.f32 0.044715, %v9551_v34  ;;  %v9552_v55 = vmul.f32 %v9544_v32, %v9534_v12 }
0x458b   :  { %12817 = vtanh.f32 %v9573_v40  ;;  %v9553_v19 = vmul.f32 %v9545_v61, %v9536_v63 }
0x458c   :  { %v9574_v62 = vmul.f32 0.7978846, %v9566_v1  ;;  %v9567_v57 = vadd.f32 %v9559_v59, %v15705_v4  ;;  %v9560_v37 = vmul.f32 0.044715, %v9552_v55  ;;  %v10651_v55 = vld [vmem:[#allocation51 + $0x1] ss:$0 sm:$0xff] }
0x458d   :  { %v9561_v54 = vmul.f32 0.044715, %v9553_v19 }
0x458e   :  { %12819 = vtanh.f32 %v9574_v62  ;;  %v9575_v6 = vmul.f32 0.7978846, %v9567_v57  ;;  %v9568_v16 = vadd.f32 %v9560_v37, %v9534_v12 }
0x458f   :  { %v9569_v43 = vadd.f32 %v9561_v54, %v9536_v63 }
0x4590   :  { %12821 = vtanh.f32 %v9575_v6  ;;  %v9576_v5 = vmul.f32 0.7978846, %v9568_v16 }
0x4591   :  { %v9577_v56 = vmul.f32 0.7978846, %v9569_v43 }
0x4592   :  { %12823 = vtanh.f32 %v9576_v5  ;;  %v12812_v17 = vpop.eup %12811 }
0x4593   :  { %12825 = vtanh.f32 %v9577_v56  ;;  %v9586_v29 = vadd.f32 1.0, %v12812_v17 }
0x4594   :  { %v12814_v44 = vpop.eup %12813 }
0x4595   :  { %v9587_v22 = vadd.f32 1.0, %v12814_v44  ;;  %v9594_v46 = vmul.f32 0.5, %v9586_v29 }
0x4596   :  { %v12816_v25 = vpop.eup %12815 }
0x4597   :  { %v9588_v13 = vadd.f32 1.0, %v12816_v25  ;;  %v9595_v38 = vmul.f32 0.5, %v9587_v22  ;;  %v9602_v53 = vmul.f32 %v9594_v46, %v15679_v51 }
0x4598   :  { %v12818_v41 = vpop.eup %12817 }
0x4599   :  { %v9596_v9 = vmul.f32 0.5, %v9588_v13  ;;  %v9589_v21 = vadd.f32 1.0, %v12818_v41  ;;  %v9603_v60 = vmul.f32 %v9595_v38, %v15683_v52 }
0x459b   :  { %v12820_v23 = vpop.eup %12819  ;;  %v9597_v49 = vmul.f32 0.5, %v9589_v21  ;;  %v9604_v24 = vmul.f32 %v9596_v9, %v15688_v14 }
0x459c   :  { %v9590_v26 = vadd.f32 1.0, %v12820_v23 }
0x459d   :  { %v12822_v20 = vpop.eup %12821  ;;  %v9605_v11 = vmul.f32 %v9597_v49, %v15693_v39  ;;  %v9610_v30 = vpack.c.bf16 %v9604_v24, %v9602_v53 }
0x459e   :  { %v9591_v7 = vadd.f32 1.0, %v12822_v20  ;;  %v9598_v10 = vmul.f32 0.5, %v9590_v26 }
0x459f   :  { %v12824_v33 = vpop.eup %12823  ;;  %v9611_v45 = vpack.c.bf16 %v9605_v11, %v9603_v60 }
0x45a0   :  { %v12826_v47 = vpop.eup %12825  ;;  %v9592_v31 = vadd.f32 1.0, %v12824_v33  ;;  %v9599_v2 = vmul.f32 0.5, %v9591_v7  ;;  %v9606_v51 = vmul.f32 %v9598_v10, %v15699_v50 }
0x45a1   :  { %9783 = vmatprep.mubr.bf16.mxu0 %v9611_v45  ;;  %v9593_v3 = vadd.f32 1.0, %v12826_v47 }
0x45a2   :  { %v9600_v15 = vmul.f32 0.5, %v9592_v31  ;;  %9784 = vmatmul.mubr.bf16.vlgmr.msra.gmra.mxu0 %v9610_v30  ;;  %v9607_v52 = vmul.f32 %v9599_v2, %v15705_v4  ;;  %v10668_v31 = vld [vmem:[#allocation52 + $0x1] ss:$0 sm:$0xff] }
0x45a3   :  { %v9601_v14 = vmul.f32 0.5, %v9593_v3 }
0x45a4   :  { %v9608_v58 = vmul.f32 %v9600_v15, %v9534_v12 }
0x45a5   :  { %v9609_v39 = vmul.f32 %v9601_v14, %v9536_v63  ;;  %v10669_v14 = vld [vmem:[#allocation54 + $0x1] ss:$0 sm:$0xff] }
0x45a6   :  { %v9612_v28 = vpack.c.bf16 %v9608_v58, %v9606_v51 }
0x45a7   :  { %v9613_v36 = vpack.c.bf16 %v9609_v39, %v9607_v52 }
0x45a9   :  { %9791 = vmatprep.mubr.bf16.mxu0 %v9613_v36 }
0x45aa   :  { %9792 = vmatmul.mubr.bf16.gmra.mxu0 %v9612_v28 }
0x4662   :  { %v11056_v8 = vpop.f32.mrf.mxu0 }
0x4664   :  { %v11057_v42 = vpop.f32.mrf.mxu0 }
0x4665   :  { %v11058_v1 = vadd.f32 %v11057_v42, %v11056_v8 }
0x4666   :  { %v11059_v34 = vpop.f32.mrf.mxu0 }
0x4667   :  { %v9786_v4 = vadd.f32 %v11058_v1, %v10651_v55  ;;  %v9872_v1 = vld [vmem:[#allocation55] sm:$0x3] }
0x4668   :  { %v11060_v32 = vpop.f32.mrf.mxu0 }
0x4669   :  { %v11061_v63 = vadd.f32 %v11060_v32, %v11059_v34  ;;  %v9800_v16 = vadd.f32 %v9786_v4, %v15660_v48  ;;  %v12388_v4 = vld [vmem:[#allocation57 + $0x10] sm:$0xff]  }
0x466a   :  { %v11062_v40 = vpop.f32.mrf.mxu0 }
0x466b   :  { %v9789_v54 = vadd.f32 %v11061_v63, %v10651_v55  ;;  %v12389_v63 = vld [vmem:[#allocation57 + $0x8] sm:$0xff]  }
0x466c   :  { %v11063_v61 = vpop.f32.mrf.mxu0 }
0x466d   :  { %v11064_v59 = vadd.f32 %v11063_v61, %v11062_v40  ;;  %v9801_v43 = vadd.f32 %v9789_v54, %v15662_v18 }
0x466e   :  { %v11065_v19 = vpop.f32.mrf.mxu0 }
0x466f   :  { %v9794_v12 = vadd.f32 %v11064_v59, %v10651_v55  ;;  %v12383_v59 = vld [vmem:[#allocation57 + $0x38] sm:$0xff]  }
0x4670   :  { %v11066_v62 = vpop.f32.mrf.mxu0 }
0x4671   :  { %v11067_v57 = vadd.f32 %v11066_v62, %v11065_v19  ;;  %v9802_v50 = vadd.f32 %v9794_v12, %v15669_v27  ;;  %v12385_v19 = vld [vmem:[#allocation57 + $0x28] sm:$0xff]   ;;  %v12386_v12 = vld [vmem:[#allocation57 + $0x20] sm:$0xff]   ;;  %v12387_v62 = vld [vmem:[#allocation57 + $0x18] sm:$0xff]  }
0x4673   :  { %v9797_v37 = vadd.f32 %v11067_v57, %v10651_v55  ;;  %9812 = vadd.xlane.f32.xlu0 %v9802_v50  ;;  %v12384_v55 = vld [vmem:[#allocation57 + $0x30] sm:$0xff]   ;;  %v12390_v57 = vld [vmem:[#allocation57] sm:$0xff]  }
0x4675   :  { %v9803_v6 = vadd.f32 %v9797_v37, %v15671_v0 }
0x4677   :  { %9814 = vadd.xlane.f32.xlu1 %v9803_v6  ;;  %9808 = vadd.xlane.f32.xlu0 %v9800_v16 }
0x467b   :  { %9810 = vadd.xlane.f32.xlu1 %v9801_v43 }
0x46fc   :  { %v9813_v5 = vpop.xlane.xlu0 %9812 }
0x46fd   :  { %v9818_v56 = vmul.f32 0.0078125, %v9813_v5 }
0x46ff   :  { %v9822_v17 = vsub.f32 %v9802_v50, %v9818_v56 }
0x4700   :  { %v9815_v44 = vpop.xlane.xlu1 %9814  ;;  %v9809_v22 = vpop.xlane.xlu0 %9808 }
0x4701   :  { %v9819_v25 = vmul.f32 0.0078125, %v9815_v44  ;;  %v9816_v29 = vmul.f32 0.0078125, %v9809_v22  ;;  %v9826_v27 = vmul.f32 %v9822_v17, %v9822_v17 }
0x4703   :  { %v9823_v13 = vsub.f32 %v9803_v6, %v9819_v25  ;;  %v9820_v41 = vsub.f32 %v9800_v16, %v9816_v29  ;;  %9832 = vadd.xlane.f32.xlu0 %v9826_v27 }
0x4704   :  { %v9811_v9 = vpop.xlane.xlu1 %9810 }
0x4705   :  { %v9817_v0 = vmul.f32 0.0078125, %v9811_v9  ;;  %v9827_v21 = vmul.f32 %v9823_v13, %v9823_v13  ;;  %v9824_v48 = vmul.f32 %v9820_v41, %v9820_v41 }
0x4707   :  { %v9821_v38 = vsub.f32 %v9801_v43, %v9817_v0  ;;  %9834 = vadd.xlane.f32.xlu1 %v9827_v21  ;;  %9828 = vadd.xlane.f32.xlu0 %v9824_v48  ;;  %v10671_v43 = vld [vmem:[%s13969_s17] ss:$0 sm:$0xff] }
0x4709   :  { %v9825_v18 = vmul.f32 %v9821_v38, %v9821_v38 }
0x470b   :  { %9830 = vadd.xlane.f32.xlu1 %v9825_v18 }
0x478c   :  { %v9833_v46 = vpop.xlane.xlu0 %9832 }
0x478d   :  { %v9838_v23 = vmul.f32 0.0078125, %v9833_v46 }
0x478f   :  { %v9842_v49 = vadd.f32 1e-12, %v9838_v23 }
0x4790   :  { %v9835_v24 = vpop.xlane.xlu1 %9834  ;;  %v9829_v20 = vpop.xlane.xlu0 %9828 }
0x4791   :  { %12827 = vrsqrt.f32 %v9842_v49  ;;  %v9839_v60 = vmul.f32 0.0078125, %v9835_v24  ;;  %v9836_v11 = vmul.f32 0.0078125, %v9829_v20 }
0x4793   :  { %v9843_v53 = vadd.f32 1e-12, %v9839_v60  ;;  %v9840_v26 = vadd.f32 1e-12, %v9836_v11 }
0x4794   :  { %v9831_v7 = vpop.xlane.xlu1 %9830 }
0x4795   :  { %12829 = vrsqrt.f32 %v9843_v53  ;;  %v9837_v33 = vmul.f32 0.0078125, %v9831_v7 }
0x4796   :  { %12831 = vrsqrt.f32 %v9840_v26 }
0x4797   :  { %v9841_v45 = vadd.f32 1e-12, %v9837_v33 }
0x4799   :  { %12833 = vrsqrt.f32 %v9841_v45 }
0x479e   :  { %v12828_v47 = vpop.eup %12827 }
0x479f   :  { %v9850_v30 = vmul.f32 %v12828_v47, %v9822_v17 }
0x47a1   :  { %v9860_v15 = vmul.f32 %v10668_v31, %v9850_v30 }
0x47a2   :  { %v12830_v3 = vpop.eup %12829 }
0x47a3   :  { %v12832_v2 = vpop.eup %12831  ;;  %v9851_v10 = vmul.f32 %v12830_v3, %v9823_v13  ;;  %v9870_v51 = vadd.f32 %v10669_v14, %v9860_v15 }
0x47a4   :  { %v9848_v58 = vmul.f32 %v12832_v2, %v9820_v41 }
0x47a5   :  { %v9861_v52 = vmul.f32 %v10668_v31, %v9851_v10 }
0x47a6   :  { %v12834_v39 = vpop.eup %12833  ;;  %v9858_v8 = vmul.f32 %v10668_v31, %v9848_v58 }
0x47a7   :  { %v9871_v36 = vadd.f32 %v10669_v14, %v9861_v52  ;;  %v9849_v28 = vmul.f32 %v12834_v39, %v9821_v38 }
0x47a8   :  { %v9868_v32 = vadd.f32 %v10669_v14, %v9858_v8 }
0x47a9   :  { %v9874_v42 = vpack.c.bf16 %v9871_v36, %v9870_v51  ;;  %v9859_v34 = vmul.f32 %v10668_v31, %v9849_v28 }
0x47ab   :  { %11653 = vmatpush3.bf16.msra.mxu1 %v9874_v42  ;;  %v9869_v40 = vadd.f32 %v10669_v14, %v9859_v34 }
0x47ac   :  { %11654 = vmatprep.subr.bf16.mxu1 %v13722_v35 }
0x47ad   :  { %v9873_v61 = vpack.c.bf16 %v9869_v40, %v9868_v32 }
0x47af   :  { %11655 = vmatpush3.bf16.msra.mxu1 %v9873_v61 }
0x47b0   :  { %11660 = vmatprep.subr.bf16.mxu1 %v13722_v35 }
0x47b2   :  { %11657 = vmatmul.mubr.msk.bf16.vlgmr.msra.gmra.mxu1 %vm1194_vm2, %v9872_v1 }
0x47b3   :  { %11661 = vmatpush3.bf16.msra.mxu1 %v12383_v59  ;;  %11676 = vmatprep.mubr.msk.bf16.mxu1 %vm13724_vm1, %v13722_v35 }
0x47b4   :  { %11662 = vmatprep.subr.bf16.mxu1 %v13722_v35 }
0x47b7   :  { %11663 = vmatpush3.bf16.msra.mxu1 %v12384_v55 }
0x47b8   :  { %11664 = vmatprep.subr.bf16.mxu1 %v13722_v35 }
0x47bb   :  { %11665 = vmatpush3.bf16.msra.mxu1 %v12385_v19 }
0x47bc   :  { %11666 = vmatprep.subr.bf16.mxu1 %v13722_v35 }
0x47bf   :  { %11667 = vmatpush3.bf16.msra.mxu1 %v12386_v12 }
0x47c0   :  { %11668 = vmatprep.subr.bf16.mxu1 %v13722_v35 }
0x47c3   :  { %11669 = vmatpush3.bf16.msra.mxu1 %v12387_v62 }
0x47c4   :  { %11670 = vmatprep.subr.bf16.mxu1 %v13722_v35 }
0x47c7   :  { %11671 = vmatpush3.bf16.msra.mxu1 %v12388_v4 }
0x47c8   :  { %11672 = vmatprep.subr.bf16.mxu1 %v13722_v35 }
0x47cb   :  { %11673 = vmatpush3.bf16.msra.mxu1 %v12389_v63 }
0x47cc   :  { %11674 = vmatprep.subr.bf16.mxu1 %v13722_v35 }
0x47cf   :  { %11675 = vmatpush3.bf16.msra.mxu1 %v12390_v57 }
0x4872   :  { %v9912_v50 = vpop.f32.mrf.mxu1 }
0x4873   :  { %v9918_v37 = vpack.c.bf16 %v9912_v50, %v9912_v50 }
0x4874   :  { %v11658_v54 = vpop.f32.mrf.mxu1 }
0x4875   :  { %11677 = vmatmul.mubr.bf16.vlgmr.msra.gmra.mxu1 %v9918_v37 }
0x4876   :  { %v9915_v6 = vpop.f32.mrf.mxu1 }
0x4878   :  { %v11659_v16 = vpop.f32.mrf.mxu1 }
0x4935   :  { %v10024_v5 = vpop.f32.mrf.mxu1 }
0x4936   :  { %v10025_v56 = vadd.f32 %v10671_v43, %v10024_v5 }
0x4937   :  { %v11678_v17 = vpop.f32.mrf.mxu1 }
0x4938   :  { %v10031_v44 = vsel %vm10030_vm12, %v10025_v56, -inf }
0x4939   :  { %10032 = vmax.xlane.f32.xlu0 %v10031_v44  ;;  %v10027_v22 = vpop.f32.mrf.mxu1 }
0x493b   :  { %v11679_v25 = vpop.f32.mrf.mxu1 }
0x49c2   :  { %v10033_v29 = vpop.xlane.xlu0 %10032 }
0x49c3   :  { %v10034_v35 = vsub.f32 %v10025_v56, %v10033_v29 }
0x49c5   :  { %v10035_v27 = vmul.f32 1.442695, %v10034_v35 }
0x49c7   :  { %12835 = vpow2.f32 %v10035_v27 }
0x49d4   :  { %v12836_v13 = vpop.eup %12835 }
0x49d5   :  { %v10037_v41 = vsel %vm10030_vm12, %v12836_v13, 0.0 }
0x49d6   :  { %10038 = vadd.xlane.f32.xlu1 %v10037_v41 }
0x4a5f   :  { %v10039_v9 = vpop.xlane.xlu1 %10038 }
0x4a60   :  { %12837 = vrcp.f32 %v10039_v9 }
0x4a6d   :  { %v12838_v0 = vpop.eup %12837 }
0x4a6e   :  { %v10041_v21 = vmul.f32 %v12838_v0, %v12836_v13 }
0x4a70   :  { %10042 = vst [vmem:[%s13974_s24] sm:$0xf] %v10041_v21 }
0x4a71   :  { %10047 = vsyncpa [#allocation3], 1 }
0x4a72   :  { %10048 = vsyncpa [#allocation5], 1 }
0x4a73   :  { %10049 = vsyncpa [#allocation8], 1 }
0x4a74   :  { %10050 = vsyncpa [#allocation11], 1 }
0x4a75   :  { %10051 = vsyncpa [#allocation14], 1 }
0x4a76   :  { %10052 = vsyncpa [#allocation17], 1 }
0x4a77   :  { %10053 = vsyncpa [#allocation20], 1 }
0x4a78   :  { %10054 = vsyncpa [#allocation23], 1 }
0x4a79   :  { %10055 = vsyncpa [#allocation26], 1 }
0x4a7a   :  { %10056 = vsyncpa [#allocation29], 1 }
0x4a7b   :  { %10057 = vsyncpa [#allocation32], 1 }
0x4a7c   :  { %10058 = vsyncpa [#allocation35], 1 }
0x4a7d   :  { %10059 = vsyncpa [#allocation38], 1 }
0x4a7e   :  { %10060 = vsyncpa [#allocation41], 1 }
0x4a7f   :  { %10061 = vsyncpa [#allocation44], 1 }
0x4a80   :  { %10062 = vsyncpa [#allocation47], 1 }
0x4a81   :  { %10063 = vsyncpa [#allocation50], 1 }
0x4a82   :  { %10064 = vsyncpa [#allocation53], 1 }
0x4a83   :  { %10065 = vsyncpa [#allocation56], 1 }

</bundles_post_ra>
